<compile_context>
chip_gen: v7x
topology: tpu7x:2x2x1
jax: 0.10.0
libtpu: 0.0.40
codegen_flags: <defaults>
</compile_context>

<pallas_src>
import functools

import jax
import jax.numpy as jnp
from jax.experimental import pallas as pl
from jax.experimental.pallas import tpu as pltpu


def _videonet_kernel(x_ref, w1_ref, b1_ref, w2_ref, b2_ref, o_ref, acc_ref):
    # x_ref  : (NB, FPC, 3*HW) VMEM  one chunk of frames, lane-dense (C*H*W in lanes)
    # w1_ref : (3, F)          SMEM  backbone 1x1-conv weight (BN folded), scalar reads
    # b1_ref : (F,)            SMEM  backbone bias
    # w2_ref : (F, NCP)        VMEM  new_fc weight, pre-scaled by 1/(T*H*W), lane-padded
    # b2_ref : (1, NCP)        VMEM  new_fc bias, lane-padded
    # o_ref  : (NB, NCP)       VMEM  per-video logits (padded); written on last chunk only
    # acc_ref: (NB, F)         VMEM  running sum over T*H*W of relu(conv) per feature
    j = pl.program_id(1)

    @pl.when(j == 0)
    def _init():
        acc_ref[...] = jnp.zeros_like(acc_ref)

    x = x_ref[...]                              # (NB, FPC, 3*HW) f32, loaded once
    chw = x.shape[-1]
    hw = chw // 3
    # Static, lane-aligned channel slices (HW is a multiple of 128 -> aligned vregs,
    # offsets are Python constants so no pl.multiple_of needed).
    x0 = x[:, :, 0 * hw:1 * hw]                 # (NB, FPC, HW)
    x1 = x[:, :, 1 * hw:2 * hw]
    x2 = x[:, :, 2 * hw:3 * hw]

    num_feat = acc_ref.shape[1]
    cols = []
    # Static unroll over features: each MAC uses an SMEM *scalar* weight, so the
    # broadcast is an operand splat fused into the multiply (never materialized).
    for f in range(num_feat):
        h = (x0 * w1_ref[0, f] + x1 * w1_ref[1, f] + x2 * w1_ref[2, f]
             + b1_ref[f])
        h = jnp.maximum(h, 0.0)                  # ReLU, f32 VPU
        s = jnp.sum(h, axis=2)                   # lane reduce     -> (NB, FPC)
        s = jnp.sum(s, axis=1, keepdims=True)    # lane reduce     -> (NB, 1)
        cols.append(s)
    acc_ref[...] += jnp.concatenate(cols, axis=1)        # (NB, F) partial sums

    @pl.when(j == pl.num_programs(1) - 1)
    def _finalize():
        # GAP over H*W fused with the 'avg' consensus over T: the 1/(T*H*W) mean scale is
        # folded into w2 on the host.  new_fc hoisted after the mean — valid only because
        # dropout is eval-mode identity and the consensus is 'avg' (both commute with fc).
        o_ref[...] = (jnp.dot(acc_ref[...], w2_ref[...],
                              preferred_element_type=jnp.float32)
                      + b2_ref[...])


@functools.partial(jax.jit, static_argnames=("videos_per_block", "frames_per_chunk"))
def videonet_forward(x, w1, b1, w2, b2, *, videos_per_block=None, frames_per_chunk=None):
    """x: (N, T, 3, H, W) f32.  Returns (N, num_class) consensus-averaged logits."""
    N, T, C, H, W = x.shape
    assert C == 3, "VideoNet.forward views the input as (-1, 3, H, W)"
    HW = H * W
    F = w1.shape[1]
    NC = w2.shape[1]
    NCP = max(128, ((NC + 127) // 128) * 128)        # lane-dense output slab

    # Videos per grid step (parallel axis): multiple of 8 (sublane-aligned output block),
    # chosen so there are >=2 parallel steps when possible (v7x has 2 TensorCores).
    NB = videos_per_block
    if NB is None:
        NB = 8 if (N % 8 == 0 and N > 8) else N
    assert N % NB == 0 and (NB % 8 == 0 or NB == N)

    # Frames per grid step (reduction axis, last): block sublane dim must be a multiple
    # of 8 or the full T.  At realistic frame sizes shrink FPC/NB to keep the chunk and
    # its double-buffer inside the per-generation VMEM budget (64 MiB on v7x).
    FPC = frames_per_chunk
    if FPC is None:
        FPC = 8 if (T % 8 == 0 and T > 8) else T
    assert T % FPC == 0 and (FPC % 8 == 0 or FPC == T)

    # Native memory order kept: free contiguous minor-dim collapse, NO transpose
    # (avoids an extra full HBM read+write of the largest tensor before the kernel).
    x3 = x.reshape(N, T, C * HW)

    # Fold the fused GAP+consensus mean (1/(T*HW)) into the fc weight; pad fc weight and
    # bias to a 128-wide lane-dense output slab (unmasked stores).
    w2p = jnp.zeros((F, NCP), jnp.float32).at[:, :NC].set(w2 / float(T * HW))
    b2p = jnp.zeros((1, NCP), jnp.float32).at[:, :NC].set(b2[None, :])

    grid = (N // NB, T // FPC)

    # VMEM budget from the actual tile math (double-buffered x/out blocks, fc params,
    # accumulator, a few per-feature intermediates) + headroom, capped for v7x.
    x_blk = NB * FPC * C * HW * 4
    out_blk = NB * NCP * 4
    inner = NB * FPC * HW * 4
    params = F * NCP * 4 + NCP * 4
    budget = 2 * x_blk + 2 * out_blk + params + NB * F * 4 + 8 * inner + (1 << 20)
    vmem_limit = int(min(max(budget, 4 << 20), 64 << 20))

    grid_spec = pltpu.PrefetchScalarGridSpec(
        num_scalar_prefetch=0,
        grid=grid,
        in_specs=[
            pl.BlockSpec((NB, FPC, C * HW), lambda i, j: (i, j, 0)),    # x chunk
            pl.BlockSpec(memory_space=pltpu.MemorySpace.SMEM),          # w1 scalars
            pl.BlockSpec(memory_space=pltpu.MemorySpace.SMEM),          # b1 scalars
            pl.BlockSpec((F, NCP), lambda i, j: (0, 0)),                # w2 (scaled+pad)
            pl.BlockSpec((1, NCP), lambda i, j: (0, 0)),                # b2 (pad)
        ],
        out_specs=pl.BlockSpec((NB, NCP), lambda i, j: (i, 0)),
        scratch_shapes=[pltpu.VMEM((NB, F), jnp.float32)],
    )

    out = pl.pallas_call(
        _videonet_kernel,
        out_shape=jax.ShapeDtypeStruct((N, NCP), jnp.float32),
        grid_spec=grid_spec,
        compiler_params=pltpu.CompilerParams(
            dimension_semantics=("parallel", "arbitrary"),
            vmem_limit_bytes=vmem_limit),
    )(x3, w1, b1, w2p, b2p)
    return out[:, :NC]


def videonet_reference(x, w1, b1, w2, b2):
    """Pure-JAX reference: per-frame GAP -> dropout(eval)=id -> fc -> consensus avg."""
    N, T, C, H, W = x.shape
    xf = jnp.transpose(x, (0, 1, 3, 4, 2)).reshape(N * T, H * W, C)
    h = jnp.maximum(
        jnp.einsum('bpc,cf->bpf', xf, w1, precision=jax.lax.Precision.HIGHEST) + b1,
        0.0)
    feat = jnp.mean(h, axis=1)                                         # (N*T, F) GAP
    logits = jnp.dot(feat, w2, precision=jax.lax.Precision.HIGHEST) + b2   # new_fc
    return jnp.mean(logits.reshape(N, T, -1), axis=1)                  # avg + squeeze(1)


if __name__ == "__main__":
    # Small shapes consistent with the module's forward contract, sized so the grid has
    # 2 "parallel" video-block steps x 2 "arbitrary" frame-chunk steps.
    N, T, C = 16, 16, 3       # videos, num_segments, RGB
    H = W = 16                # spatial (H*W = 256, 128-aligned lanes)
    FEAT = 32                 # stand-in for backbone feature_dim (2048 in resnet50)
    NUM_CLASS = 10

    key = jax.random.PRNGKey(0)
    kx, kw1, kw2 = jax.random.split(key, 3)

    x = jax.random.normal(kx, (N, T, C, H, W), dtype=jnp.float32)

    # Backbone stand-in params (deterministic).
    w1 = jax.random.normal(kw1, (C, FEAT), dtype=jnp.float32) * 0.1
    b1 = jnp.zeros((FEAT,), dtype=jnp.float32)

    # new_fc init mirrored from torch: normal_(weight, 0, 0.001), constant_(bias, 0).
    w2 = jax.random.normal(kw2, (FEAT, NUM_CLASS), dtype=jnp.float32) * 0.001
    b2 = jnp.zeros((NUM_CLASS,), dtype=jnp.float32)

    out = jax.block_until_ready(videonet_forward(x, w1, b1, w2, b2))
    ref = jax.block_until_ready(videonet_reference(x, w1, b1, w2, b2))

    assert out.shape == (N, NUM_CLASS)
    max_diff = float(jnp.max(jnp.abs(out - ref)))
    assert jnp.allclose(out, ref, atol=1e-5, rtol=1e-3), f"mismatch vs reference, max|diff|={max_diff}"
    print("KERNEL_OK")
</pallas_src>

<mosaic_0001>
module attributes {stable_mosaic.version = 11 : i64} {
  func.func @_videonet_kernel(%arg0: i32, %arg1: i32, %arg2: memref<8x8x768xf32, #tpu.memory_space<vmem>>, %arg3: memref<3x32xf32, #tpu.memory_space<smem>>, %arg4: memref<32xf32, #tpu.memory_space<smem>>, %arg5: memref<32x128xf32, #tpu.memory_space<vmem>>, %arg6: memref<1x128xf32, #tpu.memory_space<vmem>>, %arg7: memref<8x128xf32, #tpu.memory_space<vmem>>, %arg8: memref<8x32xf32, #tpu.memory_space<vmem>>) attributes {dimension_semantics = [#tpu.dimension_semantics<parallel>, #tpu.dimension_semantics<arbitrary>], iteration_bounds = array<i64: 2, 2>, scalar_prefetch = 0 : i64, scratch_operands = 1 : i64, tpu.core_type = #tpu.core_type<tc>, window_params = [{transform_indices = @transform_0, window_bounds = array<i64: 8, 8, 768>}, {transform_indices = @transform_1, window_bounds = array<i64: 3, 32>}, {transform_indices = @transform_2, window_bounds = array<i64: 32>}, {pipeline_mode = #tpu.pipeline_mode<synchronous>, transform_indices = @transform_3, window_bounds = array<i64: 32, 128>}, {pipeline_mode = #tpu.pipeline_mode<synchronous>, transform_indices = @transform_4, window_bounds = array<i64: 1, 128>}, {transform_indices = @transform_5, window_bounds = array<i64: 8, 128>}]} {
    %c0_i32 = arith.constant 0 : i32
    %0 = arith.cmpi eq, %arg1, %c0_i32 : i32
    %1 = arith.extui %0 : i1 to i32
    %c0_i32_0 = arith.constant 0 : i32
    %2 = arith.cmpi ne, %1, %c0_i32_0 : i32
    scf.if %2 {
      %cst_296 = arith.constant 0.000000e+00 : f32
      %624 = vector.broadcast %cst_296 : f32 to vector<8x32xf32>
      %c0_297 = arith.constant 0 : index
      %c0_298 = arith.constant 0 : index
      %625 = vector.load %arg8[%c0_297, %c0_298] : memref<8x32xf32, #tpu.memory_space<vmem>>, vector<8x32xf32>
      tpu.vector_store %arg8[%c0_297, %c0_298], %624 {strides = array<i32>} : memref<8x32xf32, #tpu.memory_space<vmem>>, vector<8x32xf32>,
    } else {
    }
    %c0 = arith.constant 0 : index
    %c0_1 = arith.constant 0 : index
    %c0_2 = arith.constant 0 : index
    %3 = vector.load %arg2[%c0, %c0_1, %c0_2] : memref<8x8x768xf32, #tpu.memory_space<vmem>>, vector<8x8x768xf32>
    %4 = vector.extract_strided_slice %3 {offsets = [0, 0, 0], sizes = [8, 8, 256], strides = [1, 1, 1]} : vector<8x8x768xf32> to vector<8x8x256xf32>
    %5 = vector.extract_strided_slice %3 {offsets = [0, 0, 256], sizes = [8, 8, 256], strides = [1, 1, 1]} : vector<8x8x768xf32> to vector<8x8x256xf32>
    %6 = vector.extract_strided_slice %3 {offsets = [0, 0, 512], sizes = [8, 8, 256], strides = [1, 1, 1]} : vector<8x8x768xf32> to vector<8x8x256xf32>
    %c0_3 = arith.constant 0 : index
    %c0_4 = arith.constant 0 : index
    %7 = memref.load %arg3[%c0_3, %c0_4] : memref<3x32xf32, #tpu.memory_space<smem>>
    %8 = vector.broadcast %7 : f32 to vector<8x8x256xf32>
    %9 = arith.mulf %4, %8 : vector<8x8x256xf32>
    %c1 = arith.constant 1 : index
    %c0_5 = arith.constant 0 : index
    %10 = memref.load %arg3[%c1, %c0_5] : memref<3x32xf32, #tpu.memory_space<smem>>
    %11 = vector.broadcast %10 : f32 to vector<8x8x256xf32>
    %12 = arith.mulf %5, %11 : vector<8x8x256xf32>
    %13 = arith.addf %9, %12 : vector<8x8x256xf32>
    %c2 = arith.constant 2 : index
    %c0_6 = arith.constant 0 : index
    %14 = memref.load %arg3[%c2, %c0_6] : memref<3x32xf32, #tpu.memory_space<smem>>
    %15 = vector.broadcast %14 : f32 to vector<8x8x256xf32>
    %16 = arith.mulf %6, %15 : vector<8x8x256xf32>
    %17 = arith.addf %13, %16 : vector<8x8x256xf32>
    %c0_7 = arith.constant 0 : index
    %18 = memref.load %arg4[%c0_7] : memref<32xf32, #tpu.memory_space<smem>>
    %19 = vector.broadcast %18 : f32 to vector<8x8x256xf32>
    %20 = arith.addf %17, %19 : vector<8x8x256xf32>
    %cst = arith.constant 0.000000e+00 : f32
    %21 = vector.broadcast %cst : f32 to vector<8x8x256xf32>
    %22 = arith.maximumf %20, %21 : vector<8x8x256xf32>
    %cst_8 = arith.constant dense<0.000000e+00> : vector<8x8xf32>
    %23 = vector.multi_reduction <add>, %22, %cst_8 [2] : vector<8x8x256xf32> to vector<8x8xf32>
    %cst_9 = arith.constant dense<0.000000e+00> : vector<8xf32>
    %24 = vector.multi_reduction <add>, %23, %cst_9 [1] : vector<8x8xf32> to vector<8xf32>
    %25 = vector.shape_cast %24 : vector<8xf32> to vector<8x1xf32>
    %c0_10 = arith.constant 0 : index
    %c1_11 = arith.constant 1 : index
    %26 = memref.load %arg3[%c0_10, %c1_11] : memref<3x32xf32, #tpu.memory_space<smem>>
    %27 = vector.broadcast %26 : f32 to vector<8x8x256xf32>
    %28 = arith.mulf %4, %27 : vector<8x8x256xf32>
    %c1_12 = arith.constant 1 : index
    %c1_13 = arith.constant 1 : index
    %29 = memref.load %arg3[%c1_12, %c1_13] : memref<3x32xf32, #tpu.memory_space<smem>>
    %30 = vector.broadcast %29 : f32 to vector<8x8x256xf32>
    %31 = arith.mulf %5, %30 : vector<8x8x256xf32>
    %32 = arith.addf %28, %31 : vector<8x8x256xf32>
    %c2_14 = arith.constant 2 : index
    %c1_15 = arith.constant 1 : index
    %33 = memref.load %arg3[%c2_14, %c1_15] : memref<3x32xf32, #tpu.memory_space<smem>>
    %34 = vector.broadcast %33 : f32 to vector<8x8x256xf32>
    %35 = arith.mulf %6, %34 : vector<8x8x256xf32>
    %36 = arith.addf %32, %35 : vector<8x8x256xf32>
    %c1_16 = arith.constant 1 : index
    %37 = memref.load %arg4[%c1_16] : memref<32xf32, #tpu.memory_space<smem>>
    %38 = vector.broadcast %37 : f32 to vector<8x8x256xf32>
    %39 = arith.addf %36, %38 : vector<8x8x256xf32>
    %cst_17 = arith.constant 0.000000e+00 : f32
    %40 = vector.broadcast %cst_17 : f32 to vector<8x8x256xf32>
    %41 = arith.maximumf %39, %40 : vector<8x8x256xf32>
    %cst_18 = arith.constant dense<0.000000e+00> : vector<8x8xf32>
    %42 = vector.multi_reduction <add>, %41, %cst_18 [2] : vector<8x8x256xf32> to vector<8x8xf32>
    %cst_19 = arith.constant dense<0.000000e+00> : vector<8xf32>
    %43 = vector.multi_reduction <add>, %42, %cst_19 [1] : vector<8x8xf32> to vector<8xf32>
    %44 = vector.shape_cast %43 : vector<8xf32> to vector<8x1xf32>
    %c0_20 = arith.constant 0 : index
    %c2_21 = arith.constant 2 : index
    %45 = memref.load %arg3[%c0_20, %c2_21] : memref<3x32xf32, #tpu.memory_space<smem>>
    %46 = vector.broadcast %45 : f32 to vector<8x8x256xf32>
    %47 = arith.mulf %4, %46 : vector<8x8x256xf32>
    %c1_22 = arith.constant 1 : index
    %c2_23 = arith.constant 2 : index
    %48 = memref.load %arg3[%c1_22, %c2_23] : memref<3x32xf32, #tpu.memory_space<smem>>
    %49 = vector.broadcast %48 : f32 to vector<8x8x256xf32>
    %50 = arith.mulf %5, %49 : vector<8x8x256xf32>
    %51 = arith.addf %47, %50 : vector<8x8x256xf32>
    %c2_24 = arith.constant 2 : index
    %c2_25 = arith.constant 2 : index
    %52 = memref.load %arg3[%c2_24, %c2_25] : memref<3x32xf32, #tpu.memory_space<smem>>
    %53 = vector.broadcast %52 : f32 to vector<8x8x256xf32>
    %54 = arith.mulf %6, %53 : vector<8x8x256xf32>
    %55 = arith.addf %51, %54 : vector<8x8x256xf32>
    %c2_26 = arith.constant 2 : index
    %56 = memref.load %arg4[%c2_26] : memref<32xf32, #tpu.memory_space<smem>>
    %57 = vector.broadcast %56 : f32 to vector<8x8x256xf32>
    %58 = arith.addf %55, %57 : vector<8x8x256xf32>
    %cst_27 = arith.constant 0.000000e+00 : f32
    %59 = vector.broadcast %cst_27 : f32 to vector<8x8x256xf32>
    %60 = arith.maximumf %58, %59 : vector<8x8x256xf32>
    %cst_28 = arith.constant dense<0.000000e+00> : vector<8x8xf32>
    %61 = vector.multi_reduction <add>, %60, %cst_28 [2] : vector<8x8x256xf32> to vector<8x8xf32>
    %cst_29 = arith.constant dense<0.000000e+00> : vector<8xf32>
    %62 = vector.multi_reduction <add>, %61, %cst_29 [1] : vector<8x8xf32> to vector<8xf32>
    %63 = vector.shape_cast %62 : vector<8xf32> to vector<8x1xf32>
    %c0_30 = arith.constant 0 : index
    %c3 = arith.constant 3 : index
    %64 = memref.load %arg3[%c0_30, %c3] : memref<3x32xf32, #tpu.memory_space<smem>>
    %65 = vector.broadcast %64 : f32 to vector<8x8x256xf32>
    %66 = arith.mulf %4, %65 : vector<8x8x256xf32>
    %c1_31 = arith.constant 1 : index
    %c3_32 = arith.constant 3 : index
    %67 = memref.load %arg3[%c1_31, %c3_32] : memref<3x32xf32, #tpu.memory_space<smem>>
    %68 = vector.broadcast %67 : f32 to vector<8x8x256xf32>
    %69 = arith.mulf %5, %68 : vector<8x8x256xf32>
    %70 = arith.addf %66, %69 : vector<8x8x256xf32>
    %c2_33 = arith.constant 2 : index
    %c3_34 = arith.constant 3 : index
    %71 = memref.load %arg3[%c2_33, %c3_34] : memref<3x32xf32, #tpu.memory_space<smem>>
    %72 = vector.broadcast %71 : f32 to vector<8x8x256xf32>
    %73 = arith.mulf %6, %72 : vector<8x8x256xf32>
    %74 = arith.addf %70, %73 : vector<8x8x256xf32>
    %c3_35 = arith.constant 3 : index
    %75 = memref.load %arg4[%c3_35] : memref<32xf32, #tpu.memory_space<smem>>
    %76 = vector.broadcast %75 : f32 to vector<8x8x256xf32>
    %77 = arith.addf %74, %76 : vector<8x8x256xf32>
    %cst_36 = arith.constant 0.000000e+00 : f32
    %78 = vector.broadcast %cst_36 : f32 to vector<8x8x256xf32>
    %79 = arith.maximumf %77, %78 : vector<8x8x256xf32>
    %cst_37 = arith.constant dense<0.000000e+00> : vector<8x8xf32>
    %80 = vector.multi_reduction <add>, %79, %cst_37 [2] : vector<8x8x256xf32> to vector<8x8xf32>
    %cst_38 = arith.constant dense<0.000000e+00> : vector<8xf32>
    %81 = vector.multi_reduction <add>, %80, %cst_38 [1] : vector<8x8xf32> to vector<8xf32>
    %82 = vector.shape_cast %81 : vector<8xf32> to vector<8x1xf32>
    %c0_39 = arith.constant 0 : index
    %c4 = arith.constant 4 : index
    %83 = memref.load %arg3[%c0_39, %c4] : memref<3x32xf32, #tpu.memory_space<smem>>
    %84 = vector.broadcast %83 : f32 to vector<8x8x256xf32>
    %85 = arith.mulf %4, %84 : vector<8x8x256xf32>
    %c1_40 = arith.constant 1 : index
    %c4_41 = arith.constant 4 : index
    %86 = memref.load %arg3[%c1_40, %c4_41] : memref<3x32xf32, #tpu.memory_space<smem>>
    %87 = vector.broadcast %86 : f32 to vector<8x8x256xf32>
    %88 = arith.mulf %5, %87 : vector<8x8x256xf32>
    %89 = arith.addf %85, %88 : vector<8x8x256xf32>
    %c2_42 = arith.constant 2 : index
    %c4_43 = arith.constant 4 : index
    %90 = memref.load %arg3[%c2_42, %c4_43] : memref<3x32xf32, #tpu.memory_space<smem>>
    %91 = vector.broadcast %90 : f32 to vector<8x8x256xf32>
    %92 = arith.mulf %6, %91 : vector<8x8x256xf32>
    %93 = arith.addf %89, %92 : vector<8x8x256xf32>
    %c4_44 = arith.constant 4 : index
    %94 = memref.load %arg4[%c4_44] : memref<32xf32, #tpu.memory_space<smem>>
    %95 = vector.broadcast %94 : f32 to vector<8x8x256xf32>
    %96 = arith.addf %93, %95 : vector<8x8x256xf32>
    %cst_45 = arith.constant 0.000000e+00 : f32
    %97 = vector.broadcast %cst_45 : f32 to vector<8x8x256xf32>
    %98 = arith.maximumf %96, %97 : vector<8x8x256xf32>
    %cst_46 = arith.constant dense<0.000000e+00> : vector<8x8xf32>
    %99 = vector.multi_reduction <add>, %98, %cst_46 [2] : vector<8x8x256xf32> to vector<8x8xf32>
    %cst_47 = arith.constant dense<0.000000e+00> : vector<8xf32>
    %100 = vector.multi_reduction <add>, %99, %cst_47 [1] : vector<8x8xf32> to vector<8xf32>
    %101 = vector.shape_cast %100 : vector<8xf32> to vector<8x1xf32>
    %c0_48 = arith.constant 0 : index
    %c5 = arith.constant 5 : index
    %102 = memref.load %arg3[%c0_48, %c5] : memref<3x32xf32, #tpu.memory_space<smem>>
    %103 = vector.broadcast %102 : f32 to vector<8x8x256xf32>
    %104 = arith.mulf %4, %103 : vector<8x8x256xf32>
    %c1_49 = arith.constant 1 : index
    %c5_50 = arith.constant 5 : index
    %105 = memref.load %arg3[%c1_49, %c5_50] : memref<3x32xf32, #tpu.memory_space<smem>>
    %106 = vector.broadcast %105 : f32 to vector<8x8x256xf32>
    %107 = arith.mulf %5, %106 : vector<8x8x256xf32>
    %108 = arith.addf %104, %107 : vector<8x8x256xf32>
    %c2_51 = arith.constant 2 : index
    %c5_52 = arith.constant 5 : index
    %109 = memref.load %arg3[%c2_51, %c5_52] : memref<3x32xf32, #tpu.memory_space<smem>>
    %110 = vector.broadcast %109 : f32 to vector<8x8x256xf32>
    %111 = arith.mulf %6, %110 : vector<8x8x256xf32>
    %112 = arith.addf %108, %111 : vector<8x8x256xf32>
    %c5_53 = arith.constant 5 : index
    %113 = memref.load %arg4[%c5_53] : memref<32xf32, #tpu.memory_space<smem>>
    %114 = vector.broadcast %113 : f32 to vector<8x8x256xf32>
    %115 = arith.addf %112, %114 : vector<8x8x256xf32>
    %cst_54 = arith.constant 0.000000e+00 : f32
    %116 = vector.broadcast %cst_54 : f32 to vector<8x8x256xf32>
    %117 = arith.maximumf %115, %116 : vector<8x8x256xf32>
    %cst_55 = arith.constant dense<0.000000e+00> : vector<8x8xf32>
    %118 = vector.multi_reduction <add>, %117, %cst_55 [2] : vector<8x8x256xf32> to vector<8x8xf32>
    %cst_56 = arith.constant dense<0.000000e+00> : vector<8xf32>
    %119 = vector.multi_reduction <add>, %118, %cst_56 [1] : vector<8x8xf32> to vector<8xf32>
    %120 = vector.shape_cast %119 : vector<8xf32> to vector<8x1xf32>
    %c0_57 = arith.constant 0 : index
    %c6 = arith.constant 6 : index
    %121 = memref.load %arg3[%c0_57, %c6] : memref<3x32xf32, #tpu.memory_space<smem>>
    %122 = vector.broadcast %121 : f32 to vector<8x8x256xf32>
    %123 = arith.mulf %4, %122 : vector<8x8x256xf32>
    %c1_58 = arith.constant 1 : index
    %c6_59 = arith.constant 6 : index
    %124 = memref.load %arg3[%c1_58, %c6_59] : memref<3x32xf32, #tpu.memory_space<smem>>
    %125 = vector.broadcast %124 : f32 to vector<8x8x256xf32>
    %126 = arith.mulf %5, %125 : vector<8x8x256xf32>
    %127 = arith.addf %123, %126 : vector<8x8x256xf32>
    %c2_60 = arith.constant 2 : index
    %c6_61 = arith.constant 6 : index
    %128 = memref.load %arg3[%c2_60, %c6_61] : memref<3x32xf32, #tpu.memory_space<smem>>
    %129 = vector.broadcast %128 : f32 to vector<8x8x256xf32>
    %130 = arith.mulf %6, %129 : vector<8x8x256xf32>
    %131 = arith.addf %127, %130 : vector<8x8x256xf32>
    %c6_62 = arith.constant 6 : index
    %132 = memref.load %arg4[%c6_62] : memref<32xf32, #tpu.memory_space<smem>>
    %133 = vector.broadcast %132 : f32 to vector<8x8x256xf32>
    %134 = arith.addf %131, %133 : vector<8x8x256xf32>
    %cst_63 = arith.constant 0.000000e+00 : f32
    %135 = vector.broadcast %cst_63 : f32 to vector<8x8x256xf32>
    %136 = arith.maximumf %134, %135 : vector<8x8x256xf32>
    %cst_64 = arith.constant dense<0.000000e+00> : vector<8x8xf32>
    %137 = vector.multi_reduction <add>, %136, %cst_64 [2] : vector<8x8x256xf32> to vector<8x8xf32>
    %cst_65 = arith.constant dense<0.000000e+00> : vector<8xf32>
    %138 = vector.multi_reduction <add>, %137, %cst_65 [1] : vector<8x8xf32> to vector<8xf32>
    %139 = vector.shape_cast %138 : vector<8xf32> to vector<8x1xf32>
    %c0_66 = arith.constant 0 : index
    %c7 = arith.constant 7 : index
    %140 = memref.load %arg3[%c0_66, %c7] : memref<3x32xf32, #tpu.memory_space<smem>>
    %141 = vector.broadcast %140 : f32 to vector<8x8x256xf32>
    %142 = arith.mulf %4, %141 : vector<8x8x256xf32>
    %c1_67 = arith.constant 1 : index
    %c7_68 = arith.constant 7 : index
    %143 = memref.load %arg3[%c1_67, %c7_68] : memref<3x32xf32, #tpu.memory_space<smem>>
    %144 = vector.broadcast %143 : f32 to vector<8x8x256xf32>
    %145 = arith.mulf %5, %144 : vector<8x8x256xf32>
    %146 = arith.addf %142, %145 : vector<8x8x256xf32>
    %c2_69 = arith.constant 2 : index
    %c7_70 = arith.constant 7 : index
    %147 = memref.load %arg3[%c2_69, %c7_70] : memref<3x32xf32, #tpu.memory_space<smem>>
    %148 = vector.broadcast %147 : f32 to vector<8x8x256xf32>
    %149 = arith.mulf %6, %148 : vector<8x8x256xf32>
    %150 = arith.addf %146, %149 : vector<8x8x256xf32>
    %c7_71 = arith.constant 7 : index
    %151 = memref.load %arg4[%c7_71] : memref<32xf32, #tpu.memory_space<smem>>
    %152 = vector.broadcast %151 : f32 to vector<8x8x256xf32>
    %153 = arith.addf %150, %152 : vector<8x8x256xf32>
    %cst_72 = arith.constant 0.000000e+00 : f32
    %154 = vector.broadcast %cst_72 : f32 to vector<8x8x256xf32>
    %155 = arith.maximumf %153, %154 : vector<8x8x256xf32>
    %cst_73 = arith.constant dense<0.000000e+00> : vector<8x8xf32>
    %156 = vector.multi_reduction <add>, %155, %cst_73 [2] : vector<8x8x256xf32> to vector<8x8xf32>
    %cst_74 = arith.constant dense<0.000000e+00> : vector<8xf32>
    %157 = vector.multi_reduction <add>, %156, %cst_74 [1] : vector<8x8xf32> to vector<8xf32>
    %158 = vector.shape_cast %157 : vector<8xf32> to vector<8x1xf32>
    %c0_75 = arith.constant 0 : index
    %c8 = arith.constant 8 : index
    %159 = memref.load %arg3[%c0_75, %c8] : memref<3x32xf32, #tpu.memory_space<smem>>
    %160 = vector.broadcast %159 : f32 to vector<8x8x256xf32>
    %161 = arith.mulf %4, %160 : vector<8x8x256xf32>
    %c1_76 = arith.constant 1 : index
    %c8_77 = arith.constant 8 : index
    %162 = memref.load %arg3[%c1_76, %c8_77] : memref<3x32xf32, #tpu.memory_space<smem>>
    %163 = vector.broadcast %162 : f32 to vector<8x8x256xf32>
    %164 = arith.mulf %5, %163 : vector<8x8x256xf32>
    %165 = arith.addf %161, %164 : vector<8x8x256xf32>
    %c2_78 = arith.constant 2 : index
    %c8_79 = arith.constant 8 : index
    %166 = memref.load %arg3[%c2_78, %c8_79] : memref<3x32xf32, #tpu.memory_space<smem>>
    %167 = vector.broadcast %166 : f32 to vector<8x8x256xf32>
    %168 = arith.mulf %6, %167 : vector<8x8x256xf32>
    %169 = arith.addf %165, %168 : vector<8x8x256xf32>
    %c8_80 = arith.constant 8 : index
    %170 = memref.load %arg4[%c8_80] : memref<32xf32, #tpu.memory_space<smem>>
    %171 = vector.broadcast %170 : f32 to vector<8x8x256xf32>
    %172 = arith.addf %169, %171 : vector<8x8x256xf32>
    %cst_81 = arith.constant 0.000000e+00 : f32
    %173 = vector.broadcast %cst_81 : f32 to vector<8x8x256xf32>
    %174 = arith.maximumf %172, %173 : vector<8x8x256xf32>
    %cst_82 = arith.constant dense<0.000000e+00> : vector<8x8xf32>
    %175 = vector.multi_reduction <add>, %174, %cst_82 [2] : vector<8x8x256xf32> to vector<8x8xf32>
    %cst_83 = arith.constant dense<0.000000e+00> : vector<8xf32>
    %176 = vector.multi_reduction <add>, %175, %cst_83 [1] : vector<8x8xf32> to vector<8xf32>
    %177 = vector.shape_cast %176 : vector<8xf32> to vector<8x1xf32>
    %c0_84 = arith.constant 0 : index
    %c9 = arith.constant 9 : index
    %178 = memref.load %arg3[%c0_84, %c9] : memref<3x32xf32, #tpu.memory_space<smem>>
    %179 = vector.broadcast %178 : f32 to vector<8x8x256xf32>
    %180 = arith.mulf %4, %179 : vector<8x8x256xf32>
    %c1_85 = arith.constant 1 : index
    %c9_86 = arith.constant 9 : index
    %181 = memref.load %arg3[%c1_85, %c9_86] : memref<3x32xf32, #tpu.memory_space<smem>>
    %182 = vector.broadcast %181 : f32 to vector<8x8x256xf32>
    %183 = arith.mulf %5, %182 : vector<8x8x256xf32>
    %184 = arith.addf %180, %183 : vector<8x8x256xf32>
    %c2_87 = arith.constant 2 : index
    %c9_88 = arith.constant 9 : index
    %185 = memref.load %arg3[%c2_87, %c9_88] : memref<3x32xf32, #tpu.memory_space<smem>>
    %186 = vector.broadcast %185 : f32 to vector<8x8x256xf32>
    %187 = arith.mulf %6, %186 : vector<8x8x256xf32>
    %188 = arith.addf %184, %187 : vector<8x8x256xf32>
    %c9_89 = arith.constant 9 : index
    %189 = memref.load %arg4[%c9_89] : memref<32xf32, #tpu.memory_space<smem>>
    %190 = vector.broadcast %189 : f32 to vector<8x8x256xf32>
    %191 = arith.addf %188, %190 : vector<8x8x256xf32>
    %cst_90 = arith.constant 0.000000e+00 : f32
    %192 = vector.broadcast %cst_90 : f32 to vector<8x8x256xf32>
    %193 = arith.maximumf %191, %192 : vector<8x8x256xf32>
    %cst_91 = arith.constant dense<0.000000e+00> : vector<8x8xf32>
    %194 = vector.multi_reduction <add>, %193, %cst_91 [2] : vector<8x8x256xf32> to vector<8x8xf32>
    %cst_92 = arith.constant dense<0.000000e+00> : vector<8xf32>
    %195 = vector.multi_reduction <add>, %194, %cst_92 [1] : vector<8x8xf32> to vector<8xf32>
    %196 = vector.shape_cast %195 : vector<8xf32> to vector<8x1xf32>
    %c0_93 = arith.constant 0 : index
    %c10 = arith.constant 10 : index
    %197 = memref.load %arg3[%c0_93, %c10] : memref<3x32xf32, #tpu.memory_space<smem>>
    %198 = vector.broadcast %197 : f32 to vector<8x8x256xf32>
    %199 = arith.mulf %4, %198 : vector<8x8x256xf32>
    %c1_94 = arith.constant 1 : index
    %c10_95 = arith.constant 10 : index
    %200 = memref.load %arg3[%c1_94, %c10_95] : memref<3x32xf32, #tpu.memory_space<smem>>
    %201 = vector.broadcast %200 : f32 to vector<8x8x256xf32>
    %202 = arith.mulf %5, %201 : vector<8x8x256xf32>
    %203 = arith.addf %199, %202 : vector<8x8x256xf32>
    %c2_96 = arith.constant 2 : index
    %c10_97 = arith.constant 10 : index
    %204 = memref.load %arg3[%c2_96, %c10_97] : memref<3x32xf32, #tpu.memory_space<smem>>
    %205 = vector.broadcast %204 : f32 to vector<8x8x256xf32>
    %206 = arith.mulf %6, %205 : vector<8x8x256xf32>
    %207 = arith.addf %203, %206 : vector<8x8x256xf32>
    %c10_98 = arith.constant 10 : index
    %208 = memref.load %arg4[%c10_98] : memref<32xf32, #tpu.memory_space<smem>>
    %209 = vector.broadcast %208 : f32 to vector<8x8x256xf32>
    %210 = arith.addf %207, %209 : vector<8x8x256xf32>
    %cst_99 = arith.constant 0.000000e+00 : f32
    %211 = vector.broadcast %cst_99 : f32 to vector<8x8x256xf32>
    %212 = arith.maximumf %210, %211 : vector<8x8x256xf32>
    %cst_100 = arith.constant dense<0.000000e+00> : vector<8x8xf32>
    %213 = vector.multi_reduction <add>, %212, %cst_100 [2] : vector<8x8x256xf32> to vector<8x8xf32>
    %cst_101 = arith.constant dense<0.000000e+00> : vector<8xf32>
    %214 = vector.multi_reduction <add>, %213, %cst_101 [1] : vector<8x8xf32> to vector<8xf32>
    %215 = vector.shape_cast %214 : vector<8xf32> to vector<8x1xf32>
    %c0_102 = arith.constant 0 : index
    %c11 = arith.constant 11 : index
    %216 = memref.load %arg3[%c0_102, %c11] : memref<3x32xf32, #tpu.memory_space<smem>>
    %217 = vector.broadcast %216 : f32 to vector<8x8x256xf32>
    %218 = arith.mulf %4, %217 : vector<8x8x256xf32>
    %c1_103 = arith.constant 1 : index
    %c11_104 = arith.constant 11 : index
    %219 = memref.load %arg3[%c1_103, %c11_104] : memref<3x32xf32, #tpu.memory_space<smem>>
    %220 = vector.broadcast %219 : f32 to vector<8x8x256xf32>
    %221 = arith.mulf %5, %220 : vector<8x8x256xf32>
    %222 = arith.addf %218, %221 : vector<8x8x256xf32>
    %c2_105 = arith.constant 2 : index
    %c11_106 = arith.constant 11 : index
    %223 = memref.load %arg3[%c2_105, %c11_106] : memref<3x32xf32, #tpu.memory_space<smem>>
    %224 = vector.broadcast %223 : f32 to vector<8x8x256xf32>
    %225 = arith.mulf %6, %224 : vector<8x8x256xf32>
    %226 = arith.addf %222, %225 : vector<8x8x256xf32>
    %c11_107 = arith.constant 11 : index
    %227 = memref.load %arg4[%c11_107] : memref<32xf32, #tpu.memory_space<smem>>
    %228 = vector.broadcast %227 : f32 to vector<8x8x256xf32>
    %229 = arith.addf %226, %228 : vector<8x8x256xf32>
    %cst_108 = arith.constant 0.000000e+00 : f32
    %230 = vector.broadcast %cst_108 : f32 to vector<8x8x256xf32>
    %231 = arith.maximumf %229, %230 : vector<8x8x256xf32>
    %cst_109 = arith.constant dense<0.000000e+00> : vector<8x8xf32>
    %232 = vector.multi_reduction <add>, %231, %cst_109 [2] : vector<8x8x256xf32> to vector<8x8xf32>
    %cst_110 = arith.constant dense<0.000000e+00> : vector<8xf32>
    %233 = vector.multi_reduction <add>, %232, %cst_110 [1] : vector<8x8xf32> to vector<8xf32>
    %234 = vector.shape_cast %233 : vector<8xf32> to vector<8x1xf32>
    %c0_111 = arith.constant 0 : index
    %c12 = arith.constant 12 : index
    %235 = memref.load %arg3[%c0_111, %c12] : memref<3x32xf32, #tpu.memory_space<smem>>
    %236 = vector.broadcast %235 : f32 to vector<8x8x256xf32>
    %237 = arith.mulf %4, %236 : vector<8x8x256xf32>
    %c1_112 = arith.constant 1 : index
    %c12_113 = arith.constant 12 : index
    %238 = memref.load %arg3[%c1_112, %c12_113] : memref<3x32xf32, #tpu.memory_space<smem>>
    %239 = vector.broadcast %238 : f32 to vector<8x8x256xf32>
    %240 = arith.mulf %5, %239 : vector<8x8x256xf32>
    %241 = arith.addf %237, %240 : vector<8x8x256xf32>
    %c2_114 = arith.constant 2 : index
    %c12_115 = arith.constant 12 : index
    %242 = memref.load %arg3[%c2_114, %c12_115] : memref<3x32xf32, #tpu.memory_space<smem>>
    %243 = vector.broadcast %242 : f32 to vector<8x8x256xf32>
    %244 = arith.mulf %6, %243 : vector<8x8x256xf32>
    %245 = arith.addf %241, %244 : vector<8x8x256xf32>
    %c12_116 = arith.constant 12 : index
    %246 = memref.load %arg4[%c12_116] : memref<32xf32, #tpu.memory_space<smem>>
    %247 = vector.broadcast %246 : f32 to vector<8x8x256xf32>
    %248 = arith.addf %245, %247 : vector<8x8x256xf32>
    %cst_117 = arith.constant 0.000000e+00 : f32
    %249 = vector.broadcast %cst_117 : f32 to vector<8x8x256xf32>
    %250 = arith.maximumf %248, %249 : vector<8x8x256xf32>
    %cst_118 = arith.constant dense<0.000000e+00> : vector<8x8xf32>
    %251 = vector.multi_reduction <add>, %250, %cst_118 [2] : vector<8x8x256xf32> to vector<8x8xf32>
    %cst_119 = arith.constant dense<0.000000e+00> : vector<8xf32>
    %252 = vector.multi_reduction <add>, %251, %cst_119 [1] : vector<8x8xf32> to vector<8xf32>
    %253 = vector.shape_cast %252 : vector<8xf32> to vector<8x1xf32>
    %c0_120 = arith.constant 0 : index
    %c13 = arith.constant 13 : index
    %254 = memref.load %arg3[%c0_120, %c13] : memref<3x32xf32, #tpu.memory_space<smem>>
    %255 = vector.broadcast %254 : f32 to vector<8x8x256xf32>
    %256 = arith.mulf %4, %255 : vector<8x8x256xf32>
    %c1_121 = arith.constant 1 : index
    %c13_122 = arith.constant 13 : index
    %257 = memref.load %arg3[%c1_121, %c13_122] : memref<3x32xf32, #tpu.memory_space<smem>>
    %258 = vector.broadcast %257 : f32 to vector<8x8x256xf32>
    %259 = arith.mulf %5, %258 : vector<8x8x256xf32>
    %260 = arith.addf %256, %259 : vector<8x8x256xf32>
    %c2_123 = arith.constant 2 : index
    %c13_124 = arith.constant 13 : index
    %261 = memref.load %arg3[%c2_123, %c13_124] : memref<3x32xf32, #tpu.memory_space<smem>>
    %262 = vector.broadcast %261 : f32 to vector<8x8x256xf32>
    %263 = arith.mulf %6, %262 : vector<8x8x256xf32>
    %264 = arith.addf %260, %263 : vector<8x8x256xf32>
    %c13_125 = arith.constant 13 : index
    %265 = memref.load %arg4[%c13_125] : memref<32xf32, #tpu.memory_space<smem>>
    %266 = vector.broadcast %265 : f32 to vector<8x8x256xf32>
    %267 = arith.addf %264, %266 : vector<8x8x256xf32>
    %cst_126 = arith.constant 0.000000e+00 : f32
    %268 = vector.broadcast %cst_126 : f32 to vector<8x8x256xf32>
    %269 = arith.maximumf %267, %268 : vector<8x8x256xf32>
    %cst_127 = arith.constant dense<0.000000e+00> : vector<8x8xf32>
    %270 = vector.multi_reduction <add>, %269, %cst_127 [2] : vector<8x8x256xf32> to vector<8x8xf32>
    %cst_128 = arith.constant dense<0.000000e+00> : vector<8xf32>
    %271 = vector.multi_reduction <add>, %270, %cst_128 [1] : vector<8x8xf32> to vector<8xf32>
    %272 = vector.shape_cast %271 : vector<8xf32> to vector<8x1xf32>
    %c0_129 = arith.constant 0 : index
    %c14 = arith.constant 14 : index
    %273 = memref.load %arg3[%c0_129, %c14] : memref<3x32xf32, #tpu.memory_space<smem>>
    %274 = vector.broadcast %273 : f32 to vector<8x8x256xf32>
    %275 = arith.mulf %4, %274 : vector<8x8x256xf32>
    %c1_130 = arith.constant 1 : index
    %c14_131 = arith.constant 14 : index
    %276 = memref.load %arg3[%c1_130, %c14_131] : memref<3x32xf32, #tpu.memory_space<smem>>
    %277 = vector.broadcast %276 : f32 to vector<8x8x256xf32>
    %278 = arith.mulf %5, %277 : vector<8x8x256xf32>
    %279 = arith.addf %275, %278 : vector<8x8x256xf32>
    %c2_132 = arith.constant 2 : index
    %c14_133 = arith.constant 14 : index
    %280 = memref.load %arg3[%c2_132, %c14_133] : memref<3x32xf32, #tpu.memory_space<smem>>
    %281 = vector.broadcast %280 : f32 to vector<8x8x256xf32>
    %282 = arith.mulf %6, %281 : vector<8x8x256xf32>
    %283 = arith.addf %279, %282 : vector<8x8x256xf32>
    %c14_134 = arith.constant 14 : index
    %284 = memref.load %arg4[%c14_134] : memref<32xf32, #tpu.memory_space<smem>>
    %285 = vector.broadcast %284 : f32 to vector<8x8x256xf32>
    %286 = arith.addf %283, %285 : vector<8x8x256xf32>
    %cst_135 = arith.constant 0.000000e+00 : f32
    %287 = vector.broadcast %cst_135 : f32 to vector<8x8x256xf32>
    %288 = arith.maximumf %286, %287 : vector<8x8x256xf32>
    %cst_136 = arith.constant dense<0.000000e+00> : vector<8x8xf32>
    %289 = vector.multi_reduction <add>, %288, %cst_136 [2] : vector<8x8x256xf32> to vector<8x8xf32>
    %cst_137 = arith.constant dense<0.000000e+00> : vector<8xf32>
    %290 = vector.multi_reduction <add>, %289, %cst_137 [1] : vector<8x8xf32> to vector<8xf32>
    %291 = vector.shape_cast %290 : vector<8xf32> to vector<8x1xf32>
    %c0_138 = arith.constant 0 : index
    %c15 = arith.constant 15 : index
    %292 = memref.load %arg3[%c0_138, %c15] : memref<3x32xf32, #tpu.memory_space<smem>>
    %293 = vector.broadcast %292 : f32 to vector<8x8x256xf32>
    %294 = arith.mulf %4, %293 : vector<8x8x256xf32>
    %c1_139 = arith.constant 1 : index
    %c15_140 = arith.constant 15 : index
    %295 = memref.load %arg3[%c1_139, %c15_140] : memref<3x32xf32, #tpu.memory_space<smem>>
    %296 = vector.broadcast %295 : f32 to vector<8x8x256xf32>
    %297 = arith.mulf %5, %296 : vector<8x8x256xf32>
    %298 = arith.addf %294, %297 : vector<8x8x256xf32>
    %c2_141 = arith.constant 2 : index
    %c15_142 = arith.constant 15 : index
    %299 = memref.load %arg3[%c2_141, %c15_142] : memref<3x32xf32, #tpu.memory_space<smem>>
    %300 = vector.broadcast %299 : f32 to vector<8x8x256xf32>
    %301 = arith.mulf %6, %300 : vector<8x8x256xf32>
    %302 = arith.addf %298, %301 : vector<8x8x256xf32>
    %c15_143 = arith.constant 15 : index
    %303 = memref.load %arg4[%c15_143] : memref<32xf32, #tpu.memory_space<smem>>
    %304 = vector.broadcast %303 : f32 to vector<8x8x256xf32>
    %305 = arith.addf %302, %304 : vector<8x8x256xf32>
    %cst_144 = arith.constant 0.000000e+00 : f32
    %306 = vector.broadcast %cst_144 : f32 to vector<8x8x256xf32>
    %307 = arith.maximumf %305, %306 : vector<8x8x256xf32>
    %cst_145 = arith.constant dense<0.000000e+00> : vector<8x8xf32>
    %308 = vector.multi_reduction <add>, %307, %cst_145 [2] : vector<8x8x256xf32> to vector<8x8xf32>
    %cst_146 = arith.constant dense<0.000000e+00> : vector<8xf32>
    %309 = vector.multi_reduction <add>, %308, %cst_146 [1] : vector<8x8xf32> to vector<8xf32>
    %310 = vector.shape_cast %309 : vector<8xf32> to vector<8x1xf32>
    %c0_147 = arith.constant 0 : index
    %c16 = arith.constant 16 : index
    %311 = memref.load %arg3[%c0_147, %c16] : memref<3x32xf32, #tpu.memory_space<smem>>
    %312 = vector.broadcast %311 : f32 to vector<8x8x256xf32>
    %313 = arith.mulf %4, %312 : vector<8x8x256xf32>
    %c1_148 = arith.constant 1 : index
    %c16_149 = arith.constant 16 : index
    %314 = memref.load %arg3[%c1_148, %c16_149] : memref<3x32xf32, #tpu.memory_space<smem>>
    %315 = vector.broadcast %314 : f32 to vector<8x8x256xf32>
    %316 = arith.mulf %5, %315 : vector<8x8x256xf32>
    %317 = arith.addf %313, %316 : vector<8x8x256xf32>
    %c2_150 = arith.constant 2 : index
    %c16_151 = arith.constant 16 : index
    %318 = memref.load %arg3[%c2_150, %c16_151] : memref<3x32xf32, #tpu.memory_space<smem>>
    %319 = vector.broadcast %318 : f32 to vector<8x8x256xf32>
    %320 = arith.mulf %6, %319 : vector<8x8x256xf32>
    %321 = arith.addf %317, %320 : vector<8x8x256xf32>
    %c16_152 = arith.constant 16 : index
    %322 = memref.load %arg4[%c16_152] : memref<32xf32, #tpu.memory_space<smem>>
    %323 = vector.broadcast %322 : f32 to vector<8x8x256xf32>
    %324 = arith.addf %321, %323 : vector<8x8x256xf32>
    %cst_153 = arith.constant 0.000000e+00 : f32
    %325 = vector.broadcast %cst_153 : f32 to vector<8x8x256xf32>
    %326 = arith.maximumf %324, %325 : vector<8x8x256xf32>
    %cst_154 = arith.constant dense<0.000000e+00> : vector<8x8xf32>
    %327 = vector.multi_reduction <add>, %326, %cst_154 [2] : vector<8x8x256xf32> to vector<8x8xf32>
    %cst_155 = arith.constant dense<0.000000e+00> : vector<8xf32>
    %328 = vector.multi_reduction <add>, %327, %cst_155 [1] : vector<8x8xf32> to vector<8xf32>
    %329 = vector.shape_cast %328 : vector<8xf32> to vector<8x1xf32>
    %c0_156 = arith.constant 0 : index
    %c17 = arith.constant 17 : index
    %330 = memref.load %arg3[%c0_156, %c17] : memref<3x32xf32, #tpu.memory_space<smem>>
    %331 = vector.broadcast %330 : f32 to vector<8x8x256xf32>
    %332 = arith.mulf %4, %331 : vector<8x8x256xf32>
    %c1_157 = arith.constant 1 : index
    %c17_158 = arith.constant 17 : index
    %333 = memref.load %arg3[%c1_157, %c17_158] : memref<3x32xf32, #tpu.memory_space<smem>>
    %334 = vector.broadcast %333 : f32 to vector<8x8x256xf32>
    %335 = arith.mulf %5, %334 : vector<8x8x256xf32>
    %336 = arith.addf %332, %335 : vector<8x8x256xf32>
    %c2_159 = arith.constant 2 : index
    %c17_160 = arith.constant 17 : index
    %337 = memref.load %arg3[%c2_159, %c17_160] : memref<3x32xf32, #tpu.memory_space<smem>>
    %338 = vector.broadcast %337 : f32 to vector<8x8x256xf32>
    %339 = arith.mulf %6, %338 : vector<8x8x256xf32>
    %340 = arith.addf %336, %339 : vector<8x8x256xf32>
    %c17_161 = arith.constant 17 : index
    %341 = memref.load %arg4[%c17_161] : memref<32xf32, #tpu.memory_space<smem>>
    %342 = vector.broadcast %341 : f32 to vector<8x8x256xf32>
    %343 = arith.addf %340, %342 : vector<8x8x256xf32>
    %cst_162 = arith.constant 0.000000e+00 : f32
    %344 = vector.broadcast %cst_162 : f32 to vector<8x8x256xf32>
    %345 = arith.maximumf %343, %344 : vector<8x8x256xf32>
    %cst_163 = arith.constant dense<0.000000e+00> : vector<8x8xf32>
    %346 = vector.multi_reduction <add>, %345, %cst_163 [2] : vector<8x8x256xf32> to vector<8x8xf32>
    %cst_164 = arith.constant dense<0.000000e+00> : vector<8xf32>
    %347 = vector.multi_reduction <add>, %346, %cst_164 [1] : vector<8x8xf32> to vector<8xf32>
    %348 = vector.shape_cast %347 : vector<8xf32> to vector<8x1xf32>
    %c0_165 = arith.constant 0 : index
    %c18 = arith.constant 18 : index
    %349 = memref.load %arg3[%c0_165, %c18] : memref<3x32xf32, #tpu.memory_space<smem>>
    %350 = vector.broadcast %349 : f32 to vector<8x8x256xf32>
    %351 = arith.mulf %4, %350 : vector<8x8x256xf32>
    %c1_166 = arith.constant 1 : index
    %c18_167 = arith.constant 18 : index
    %352 = memref.load %arg3[%c1_166, %c18_167] : memref<3x32xf32, #tpu.memory_space<smem>>
    %353 = vector.broadcast %352 : f32 to vector<8x8x256xf32>
    %354 = arith.mulf %5, %353 : vector<8x8x256xf32>
    %355 = arith.addf %351, %354 : vector<8x8x256xf32>
    %c2_168 = arith.constant 2 : index
    %c18_169 = arith.constant 18 : index
    %356 = memref.load %arg3[%c2_168, %c18_169] : memref<3x32xf32, #tpu.memory_space<smem>>
    %357 = vector.broadcast %356 : f32 to vector<8x8x256xf32>
    %358 = arith.mulf %6, %357 : vector<8x8x256xf32>
    %359 = arith.addf %355, %358 : vector<8x8x256xf32>
    %c18_170 = arith.constant 18 : index
    %360 = memref.load %arg4[%c18_170] : memref<32xf32, #tpu.memory_space<smem>>
    %361 = vector.broadcast %360 : f32 to vector<8x8x256xf32>
    %362 = arith.addf %359, %361 : vector<8x8x256xf32>
    %cst_171 = arith.constant 0.000000e+00 : f32
    %363 = vector.broadcast %cst_171 : f32 to vector<8x8x256xf32>
    %364 = arith.maximumf %362, %363 : vector<8x8x256xf32>
    %cst_172 = arith.constant dense<0.000000e+00> : vector<8x8xf32>
    %365 = vector.multi_reduction <add>, %364, %cst_172 [2] : vector<8x8x256xf32> to vector<8x8xf32>
    %cst_173 = arith.constant dense<0.000000e+00> : vector<8xf32>
    %366 = vector.multi_reduction <add>, %365, %cst_173 [1] : vector<8x8xf32> to vector<8xf32>
    %367 = vector.shape_cast %366 : vector<8xf32> to vector<8x1xf32>
    %c0_174 = arith.constant 0 : index
    %c19 = arith.constant 19 : index
    %368 = memref.load %arg3[%c0_174, %c19] : memref<3x32xf32, #tpu.memory_space<smem>>
    %369 = vector.broadcast %368 : f32 to vector<8x8x256xf32>
    %370 = arith.mulf %4, %369 : vector<8x8x256xf32>
    %c1_175 = arith.constant 1 : index
    %c19_176 = arith.constant 19 : index
    %371 = memref.load %arg3[%c1_175, %c19_176] : memref<3x32xf32, #tpu.memory_space<smem>>
    %372 = vector.broadcast %371 : f32 to vector<8x8x256xf32>
    %373 = arith.mulf %5, %372 : vector<8x8x256xf32>
    %374 = arith.addf %370, %373 : vector<8x8x256xf32>
    %c2_177 = arith.constant 2 : index
    %c19_178 = arith.constant 19 : index
    %375 = memref.load %arg3[%c2_177, %c19_178] : memref<3x32xf32, #tpu.memory_space<smem>>
    %376 = vector.broadcast %375 : f32 to vector<8x8x256xf32>
    %377 = arith.mulf %6, %376 : vector<8x8x256xf32>
    %378 = arith.addf %374, %377 : vector<8x8x256xf32>
    %c19_179 = arith.constant 19 : index
    %379 = memref.load %arg4[%c19_179] : memref<32xf32, #tpu.memory_space<smem>>
    %380 = vector.broadcast %379 : f32 to vector<8x8x256xf32>
    %381 = arith.addf %378, %380 : vector<8x8x256xf32>
    %cst_180 = arith.constant 0.000000e+00 : f32
    %382 = vector.broadcast %cst_180 : f32 to vector<8x8x256xf32>
    %383 = arith.maximumf %381, %382 : vector<8x8x256xf32>
    %cst_181 = arith.constant dense<0.000000e+00> : vector<8x8xf32>
    %384 = vector.multi_reduction <add>, %383, %cst_181 [2] : vector<8x8x256xf32> to vector<8x8xf32>
    %cst_182 = arith.constant dense<0.000000e+00> : vector<8xf32>
    %385 = vector.multi_reduction <add>, %384, %cst_182 [1] : vector<8x8xf32> to vector<8xf32>
    %386 = vector.shape_cast %385 : vector<8xf32> to vector<8x1xf32>
    %c0_183 = arith.constant 0 : index
    %c20 = arith.constant 20 : index
    %387 = memref.load %arg3[%c0_183, %c20] : memref<3x32xf32, #tpu.memory_space<smem>>
    %388 = vector.broadcast %387 : f32 to vector<8x8x256xf32>
    %389 = arith.mulf %4, %388 : vector<8x8x256xf32>
    %c1_184 = arith.constant 1 : index
    %c20_185 = arith.constant 20 : index
    %390 = memref.load %arg3[%c1_184, %c20_185] : memref<3x32xf32, #tpu.memory_space<smem>>
    %391 = vector.broadcast %390 : f32 to vector<8x8x256xf32>
    %392 = arith.mulf %5, %391 : vector<8x8x256xf32>
    %393 = arith.addf %389, %392 : vector<8x8x256xf32>
    %c2_186 = arith.constant 2 : index
    %c20_187 = arith.constant 20 : index
    %394 = memref.load %arg3[%c2_186, %c20_187] : memref<3x32xf32, #tpu.memory_space<smem>>
    %395 = vector.broadcast %394 : f32 to vector<8x8x256xf32>
    %396 = arith.mulf %6, %395 : vector<8x8x256xf32>
    %397 = arith.addf %393, %396 : vector<8x8x256xf32>
    %c20_188 = arith.constant 20 : index
    %398 = memref.load %arg4[%c20_188] : memref<32xf32, #tpu.memory_space<smem>>
    %399 = vector.broadcast %398 : f32 to vector<8x8x256xf32>
    %400 = arith.addf %397, %399 : vector<8x8x256xf32>
    %cst_189 = arith.constant 0.000000e+00 : f32
    %401 = vector.broadcast %cst_189 : f32 to vector<8x8x256xf32>
    %402 = arith.maximumf %400, %401 : vector<8x8x256xf32>
    %cst_190 = arith.constant dense<0.000000e+00> : vector<8x8xf32>
    %403 = vector.multi_reduction <add>, %402, %cst_190 [2] : vector<8x8x256xf32> to vector<8x8xf32>
    %cst_191 = arith.constant dense<0.000000e+00> : vector<8xf32>
    %404 = vector.multi_reduction <add>, %403, %cst_191 [1] : vector<8x8xf32> to vector<8xf32>
    %405 = vector.shape_cast %404 : vector<8xf32> to vector<8x1xf32>
    %c0_192 = arith.constant 0 : index
    %c21 = arith.constant 21 : index
    %406 = memref.load %arg3[%c0_192, %c21] : memref<3x32xf32, #tpu.memory_space<smem>>
    %407 = vector.broadcast %406 : f32 to vector<8x8x256xf32>
    %408 = arith.mulf %4, %407 : vector<8x8x256xf32>
    %c1_193 = arith.constant 1 : index
    %c21_194 = arith.constant 21 : index
    %409 = memref.load %arg3[%c1_193, %c21_194] : memref<3x32xf32, #tpu.memory_space<smem>>
    %410 = vector.broadcast %409 : f32 to vector<8x8x256xf32>
    %411 = arith.mulf %5, %410 : vector<8x8x256xf32>
    %412 = arith.addf %408, %411 : vector<8x8x256xf32>
    %c2_195 = arith.constant 2 : index
    %c21_196 = arith.constant 21 : index
    %413 = memref.load %arg3[%c2_195, %c21_196] : memref<3x32xf32, #tpu.memory_space<smem>>
    %414 = vector.broadcast %413 : f32 to vector<8x8x256xf32>
    %415 = arith.mulf %6, %414 : vector<8x8x256xf32>
    %416 = arith.addf %412, %415 : vector<8x8x256xf32>
    %c21_197 = arith.constant 21 : index
    %417 = memref.load %arg4[%c21_197] : memref<32xf32, #tpu.memory_space<smem>>
    %418 = vector.broadcast %417 : f32 to vector<8x8x256xf32>
    %419 = arith.addf %416, %418 : vector<8x8x256xf32>
    %cst_198 = arith.constant 0.000000e+00 : f32
    %420 = vector.broadcast %cst_198 : f32 to vector<8x8x256xf32>
    %421 = arith.maximumf %419, %420 : vector<8x8x256xf32>
    %cst_199 = arith.constant dense<0.000000e+00> : vector<8x8xf32>
    %422 = vector.multi_reduction <add>, %421, %cst_199 [2] : vector<8x8x256xf32> to vector<8x8xf32>
    %cst_200 = arith.constant dense<0.000000e+00> : vector<8xf32>
    %423 = vector.multi_reduction <add>, %422, %cst_200 [1] : vector<8x8xf32> to vector<8xf32>
    %424 = vector.shape_cast %423 : vector<8xf32> to vector<8x1xf32>
    %c0_201 = arith.constant 0 : index
    %c22 = arith.constant 22 : index
    %425 = memref.load %arg3[%c0_201, %c22] : memref<3x32xf32, #tpu.memory_space<smem>>
    %426 = vector.broadcast %425 : f32 to vector<8x8x256xf32>
    %427 = arith.mulf %4, %426 : vector<8x8x256xf32>
    %c1_202 = arith.constant 1 : index
    %c22_203 = arith.constant 22 : index
    %428 = memref.load %arg3[%c1_202, %c22_203] : memref<3x32xf32, #tpu.memory_space<smem>>
    %429 = vector.broadcast %428 : f32 to vector<8x8x256xf32>
    %430 = arith.mulf %5, %429 : vector<8x8x256xf32>
    %431 = arith.addf %427, %430 : vector<8x8x256xf32>
    %c2_204 = arith.constant 2 : index
    %c22_205 = arith.constant 22 : index
    %432 = memref.load %arg3[%c2_204, %c22_205] : memref<3x32xf32, #tpu.memory_space<smem>>
    %433 = vector.broadcast %432 : f32 to vector<8x8x256xf32>
    %434 = arith.mulf %6, %433 : vector<8x8x256xf32>
    %435 = arith.addf %431, %434 : vector<8x8x256xf32>
    %c22_206 = arith.constant 22 : index
    %436 = memref.load %arg4[%c22_206] : memref<32xf32, #tpu.memory_space<smem>>
    %437 = vector.broadcast %436 : f32 to vector<8x8x256xf32>
    %438 = arith.addf %435, %437 : vector<8x8x256xf32>
    %cst_207 = arith.constant 0.000000e+00 : f32
    %439 = vector.broadcast %cst_207 : f32 to vector<8x8x256xf32>
    %440 = arith.maximumf %438, %439 : vector<8x8x256xf32>
    %cst_208 = arith.constant dense<0.000000e+00> : vector<8x8xf32>
    %441 = vector.multi_reduction <add>, %440, %cst_208 [2] : vector<8x8x256xf32> to vector<8x8xf32>
    %cst_209 = arith.constant dense<0.000000e+00> : vector<8xf32>
    %442 = vector.multi_reduction <add>, %441, %cst_209 [1] : vector<8x8xf32> to vector<8xf32>
    %443 = vector.shape_cast %442 : vector<8xf32> to vector<8x1xf32>
    %c0_210 = arith.constant 0 : index
    %c23 = arith.constant 23 : index
    %444 = memref.load %arg3[%c0_210, %c23] : memref<3x32xf32, #tpu.memory_space<smem>>
    %445 = vector.broadcast %444 : f32 to vector<8x8x256xf32>
    %446 = arith.mulf %4, %445 : vector<8x8x256xf32>
    %c1_211 = arith.constant 1 : index
    %c23_212 = arith.constant 23 : index
    %447 = memref.load %arg3[%c1_211, %c23_212] : memref<3x32xf32, #tpu.memory_space<smem>>
    %448 = vector.broadcast %447 : f32 to vector<8x8x256xf32>
    %449 = arith.mulf %5, %448 : vector<8x8x256xf32>
    %450 = arith.addf %446, %449 : vector<8x8x256xf32>
    %c2_213 = arith.constant 2 : index
    %c23_214 = arith.constant 23 : index
    %451 = memref.load %arg3[%c2_213, %c23_214] : memref<3x32xf32, #tpu.memory_space<smem>>
    %452 = vector.broadcast %451 : f32 to vector<8x8x256xf32>
    %453 = arith.mulf %6, %452 : vector<8x8x256xf32>
    %454 = arith.addf %450, %453 : vector<8x8x256xf32>
    %c23_215 = arith.constant 23 : index
    %455 = memref.load %arg4[%c23_215] : memref<32xf32, #tpu.memory_space<smem>>
    %456 = vector.broadcast %455 : f32 to vector<8x8x256xf32>
    %457 = arith.addf %454, %456 : vector<8x8x256xf32>
    %cst_216 = arith.constant 0.000000e+00 : f32
    %458 = vector.broadcast %cst_216 : f32 to vector<8x8x256xf32>
    %459 = arith.maximumf %457, %458 : vector<8x8x256xf32>
    %cst_217 = arith.constant dense<0.000000e+00> : vector<8x8xf32>
    %460 = vector.multi_reduction <add>, %459, %cst_217 [2] : vector<8x8x256xf32> to vector<8x8xf32>
    %cst_218 = arith.constant dense<0.000000e+00> : vector<8xf32>
    %461 = vector.multi_reduction <add>, %460, %cst_218 [1] : vector<8x8xf32> to vector<8xf32>
    %462 = vector.shape_cast %461 : vector<8xf32> to vector<8x1xf32>
    %c0_219 = arith.constant 0 : index
    %c24 = arith.constant 24 : index
    %463 = memref.load %arg3[%c0_219, %c24] : memref<3x32xf32, #tpu.memory_space<smem>>
    %464 = vector.broadcast %463 : f32 to vector<8x8x256xf32>
    %465 = arith.mulf %4, %464 : vector<8x8x256xf32>
    %c1_220 = arith.constant 1 : index
    %c24_221 = arith.constant 24 : index
    %466 = memref.load %arg3[%c1_220, %c24_221] : memref<3x32xf32, #tpu.memory_space<smem>>
    %467 = vector.broadcast %466 : f32 to vector<8x8x256xf32>
    %468 = arith.mulf %5, %467 : vector<8x8x256xf32>
    %469 = arith.addf %465, %468 : vector<8x8x256xf32>
    %c2_222 = arith.constant 2 : index
    %c24_223 = arith.constant 24 : index
    %470 = memref.load %arg3[%c2_222, %c24_223] : memref<3x32xf32, #tpu.memory_space<smem>>
    %471 = vector.broadcast %470 : f32 to vector<8x8x256xf32>
    %472 = arith.mulf %6, %471 : vector<8x8x256xf32>
    %473 = arith.addf %469, %472 : vector<8x8x256xf32>
    %c24_224 = arith.constant 24 : index
    %474 = memref.load %arg4[%c24_224] : memref<32xf32, #tpu.memory_space<smem>>
    %475 = vector.broadcast %474 : f32 to vector<8x8x256xf32>
    %476 = arith.addf %473, %475 : vector<8x8x256xf32>
    %cst_225 = arith.constant 0.000000e+00 : f32
    %477 = vector.broadcast %cst_225 : f32 to vector<8x8x256xf32>
    %478 = arith.maximumf %476, %477 : vector<8x8x256xf32>
    %cst_226 = arith.constant dense<0.000000e+00> : vector<8x8xf32>
    %479 = vector.multi_reduction <add>, %478, %cst_226 [2] : vector<8x8x256xf32> to vector<8x8xf32>
    %cst_227 = arith.constant dense<0.000000e+00> : vector<8xf32>
    %480 = vector.multi_reduction <add>, %479, %cst_227 [1] : vector<8x8xf32> to vector<8xf32>
    %481 = vector.shape_cast %480 : vector<8xf32> to vector<8x1xf32>
    %c0_228 = arith.constant 0 : index
    %c25 = arith.constant 25 : index
    %482 = memref.load %arg3[%c0_228, %c25] : memref<3x32xf32, #tpu.memory_space<smem>>
    %483 = vector.broadcast %482 : f32 to vector<8x8x256xf32>
    %484 = arith.mulf %4, %483 : vector<8x8x256xf32>
    %c1_229 = arith.constant 1 : index
    %c25_230 = arith.constant 25 : index
    %485 = memref.load %arg3[%c1_229, %c25_230] : memref<3x32xf32, #tpu.memory_space<smem>>
    %486 = vector.broadcast %485 : f32 to vector<8x8x256xf32>
    %487 = arith.mulf %5, %486 : vector<8x8x256xf32>
    %488 = arith.addf %484, %487 : vector<8x8x256xf32>
    %c2_231 = arith.constant 2 : index
    %c25_232 = arith.constant 25 : index
    %489 = memref.load %arg3[%c2_231, %c25_232] : memref<3x32xf32, #tpu.memory_space<smem>>
    %490 = vector.broadcast %489 : f32 to vector<8x8x256xf32>
    %491 = arith.mulf %6, %490 : vector<8x8x256xf32>
    %492 = arith.addf %488, %491 : vector<8x8x256xf32>
    %c25_233 = arith.constant 25 : index
    %493 = memref.load %arg4[%c25_233] : memref<32xf32, #tpu.memory_space<smem>>
    %494 = vector.broadcast %493 : f32 to vector<8x8x256xf32>
    %495 = arith.addf %492, %494 : vector<8x8x256xf32>
    %cst_234 = arith.constant 0.000000e+00 : f32
    %496 = vector.broadcast %cst_234 : f32 to vector<8x8x256xf32>
    %497 = arith.maximumf %495, %496 : vector<8x8x256xf32>
    %cst_235 = arith.constant dense<0.000000e+00> : vector<8x8xf32>
    %498 = vector.multi_reduction <add>, %497, %cst_235 [2] : vector<8x8x256xf32> to vector<8x8xf32>
    %cst_236 = arith.constant dense<0.000000e+00> : vector<8xf32>
    %499 = vector.multi_reduction <add>, %498, %cst_236 [1] : vector<8x8xf32> to vector<8xf32>
    %500 = vector.shape_cast %499 : vector<8xf32> to vector<8x1xf32>
    %c0_237 = arith.constant 0 : index
    %c26 = arith.constant 26 : index
    %501 = memref.load %arg3[%c0_237, %c26] : memref<3x32xf32, #tpu.memory_space<smem>>
    %502 = vector.broadcast %501 : f32 to vector<8x8x256xf32>
    %503 = arith.mulf %4, %502 : vector<8x8x256xf32>
    %c1_238 = arith.constant 1 : index
    %c26_239 = arith.constant 26 : index
    %504 = memref.load %arg3[%c1_238, %c26_239] : memref<3x32xf32, #tpu.memory_space<smem>>
    %505 = vector.broadcast %504 : f32 to vector<8x8x256xf32>
    %506 = arith.mulf %5, %505 : vector<8x8x256xf32>
    %507 = arith.addf %503, %506 : vector<8x8x256xf32>
    %c2_240 = arith.constant 2 : index
    %c26_241 = arith.constant 26 : index
    %508 = memref.load %arg3[%c2_240, %c26_241] : memref<3x32xf32, #tpu.memory_space<smem>>
    %509 = vector.broadcast %508 : f32 to vector<8x8x256xf32>
    %510 = arith.mulf %6, %509 : vector<8x8x256xf32>
    %511 = arith.addf %507, %510 : vector<8x8x256xf32>
    %c26_242 = arith.constant 26 : index
    %512 = memref.load %arg4[%c26_242] : memref<32xf32, #tpu.memory_space<smem>>
    %513 = vector.broadcast %512 : f32 to vector<8x8x256xf32>
    %514 = arith.addf %511, %513 : vector<8x8x256xf32>
    %cst_243 = arith.constant 0.000000e+00 : f32
    %515 = vector.broadcast %cst_243 : f32 to vector<8x8x256xf32>
    %516 = arith.maximumf %514, %515 : vector<8x8x256xf32>
    %cst_244 = arith.constant dense<0.000000e+00> : vector<8x8xf32>
    %517 = vector.multi_reduction <add>, %516, %cst_244 [2] : vector<8x8x256xf32> to vector<8x8xf32>
    %cst_245 = arith.constant dense<0.000000e+00> : vector<8xf32>
    %518 = vector.multi_reduction <add>, %517, %cst_245 [1] : vector<8x8xf32> to vector<8xf32>
    %519 = vector.shape_cast %518 : vector<8xf32> to vector<8x1xf32>
    %c0_246 = arith.constant 0 : index
    %c27 = arith.constant 27 : index
    %520 = memref.load %arg3[%c0_246, %c27] : memref<3x32xf32, #tpu.memory_space<smem>>
    %521 = vector.broadcast %520 : f32 to vector<8x8x256xf32>
    %522 = arith.mulf %4, %521 : vector<8x8x256xf32>
    %c1_247 = arith.constant 1 : index
    %c27_248 = arith.constant 27 : index
    %523 = memref.load %arg3[%c1_247, %c27_248] : memref<3x32xf32, #tpu.memory_space<smem>>
    %524 = vector.broadcast %523 : f32 to vector<8x8x256xf32>
    %525 = arith.mulf %5, %524 : vector<8x8x256xf32>
    %526 = arith.addf %522, %525 : vector<8x8x256xf32>
    %c2_249 = arith.constant 2 : index
    %c27_250 = arith.constant 27 : index
    %527 = memref.load %arg3[%c2_249, %c27_250] : memref<3x32xf32, #tpu.memory_space<smem>>
    %528 = vector.broadcast %527 : f32 to vector<8x8x256xf32>
    %529 = arith.mulf %6, %528 : vector<8x8x256xf32>
    %530 = arith.addf %526, %529 : vector<8x8x256xf32>
    %c27_251 = arith.constant 27 : index
    %531 = memref.load %arg4[%c27_251] : memref<32xf32, #tpu.memory_space<smem>>
    %532 = vector.broadcast %531 : f32 to vector<8x8x256xf32>
    %533 = arith.addf %530, %532 : vector<8x8x256xf32>
    %cst_252 = arith.constant 0.000000e+00 : f32
    %534 = vector.broadcast %cst_252 : f32 to vector<8x8x256xf32>
    %535 = arith.maximumf %533, %534 : vector<8x8x256xf32>
    %cst_253 = arith.constant dense<0.000000e+00> : vector<8x8xf32>
    %536 = vector.multi_reduction <add>, %535, %cst_253 [2] : vector<8x8x256xf32> to vector<8x8xf32>
    %cst_254 = arith.constant dense<0.000000e+00> : vector<8xf32>
    %537 = vector.multi_reduction <add>, %536, %cst_254 [1] : vector<8x8xf32> to vector<8xf32>
    %538 = vector.shape_cast %537 : vector<8xf32> to vector<8x1xf32>
    %c0_255 = arith.constant 0 : index
    %c28 = arith.constant 28 : index
    %539 = memref.load %arg3[%c0_255, %c28] : memref<3x32xf32, #tpu.memory_space<smem>>
    %540 = vector.broadcast %539 : f32 to vector<8x8x256xf32>
    %541 = arith.mulf %4, %540 : vector<8x8x256xf32>
    %c1_256 = arith.constant 1 : index
    %c28_257 = arith.constant 28 : index
    %542 = memref.load %arg3[%c1_256, %c28_257] : memref<3x32xf32, #tpu.memory_space<smem>>
    %543 = vector.broadcast %542 : f32 to vector<8x8x256xf32>
    %544 = arith.mulf %5, %543 : vector<8x8x256xf32>
    %545 = arith.addf %541, %544 : vector<8x8x256xf32>
    %c2_258 = arith.constant 2 : index
    %c28_259 = arith.constant 28 : index
    %546 = memref.load %arg3[%c2_258, %c28_259] : memref<3x32xf32, #tpu.memory_space<smem>>
    %547 = vector.broadcast %546 : f32 to vector<8x8x256xf32>
    %548 = arith.mulf %6, %547 : vector<8x8x256xf32>
    %549 = arith.addf %545, %548 : vector<8x8x256xf32>
    %c28_260 = arith.constant 28 : index
    %550 = memref.load %arg4[%c28_260] : memref<32xf32, #tpu.memory_space<smem>>
    %551 = vector.broadcast %550 : f32 to vector<8x8x256xf32>
    %552 = arith.addf %549, %551 : vector<8x8x256xf32>
    %cst_261 = arith.constant 0.000000e+00 : f32
    %553 = vector.broadcast %cst_261 : f32 to vector<8x8x256xf32>
    %554 = arith.maximumf %552, %553 : vector<8x8x256xf32>
    %cst_262 = arith.constant dense<0.000000e+00> : vector<8x8xf32>
    %555 = vector.multi_reduction <add>, %554, %cst_262 [2] : vector<8x8x256xf32> to vector<8x8xf32>
    %cst_263 = arith.constant dense<0.000000e+00> : vector<8xf32>
    %556 = vector.multi_reduction <add>, %555, %cst_263 [1] : vector<8x8xf32> to vector<8xf32>
    %557 = vector.shape_cast %556 : vector<8xf32> to vector<8x1xf32>
    %c0_264 = arith.constant 0 : index
    %c29 = arith.constant 29 : index
    %558 = memref.load %arg3[%c0_264, %c29] : memref<3x32xf32, #tpu.memory_space<smem>>
    %559 = vector.broadcast %558 : f32 to vector<8x8x256xf32>
    %560 = arith.mulf %4, %559 : vector<8x8x256xf32>
    %c1_265 = arith.constant 1 : index
    %c29_266 = arith.constant 29 : index
    %561 = memref.load %arg3[%c1_265, %c29_266] : memref<3x32xf32, #tpu.memory_space<smem>>
    %562 = vector.broadcast %561 : f32 to vector<8x8x256xf32>
    %563 = arith.mulf %5, %562 : vector<8x8x256xf32>
    %564 = arith.addf %560, %563 : vector<8x8x256xf32>
    %c2_267 = arith.constant 2 : index
    %c29_268 = arith.constant 29 : index
    %565 = memref.load %arg3[%c2_267, %c29_268] : memref<3x32xf32, #tpu.memory_space<smem>>
    %566 = vector.broadcast %565 : f32 to vector<8x8x256xf32>
    %567 = arith.mulf %6, %566 : vector<8x8x256xf32>
    %568 = arith.addf %564, %567 : vector<8x8x256xf32>
    %c29_269 = arith.constant 29 : index
    %569 = memref.load %arg4[%c29_269] : memref<32xf32, #tpu.memory_space<smem>>
    %570 = vector.broadcast %569 : f32 to vector<8x8x256xf32>
    %571 = arith.addf %568, %570 : vector<8x8x256xf32>
    %cst_270 = arith.constant 0.000000e+00 : f32
    %572 = vector.broadcast %cst_270 : f32 to vector<8x8x256xf32>
    %573 = arith.maximumf %571, %572 : vector<8x8x256xf32>
    %cst_271 = arith.constant dense<0.000000e+00> : vector<8x8xf32>
    %574 = vector.multi_reduction <add>, %573, %cst_271 [2] : vector<8x8x256xf32> to vector<8x8xf32>
    %cst_272 = arith.constant dense<0.000000e+00> : vector<8xf32>
    %575 = vector.multi_reduction <add>, %574, %cst_272 [1] : vector<8x8xf32> to vector<8xf32>
    %576 = vector.shape_cast %575 : vector<8xf32> to vector<8x1xf32>
    %c0_273 = arith.constant 0 : index
    %c30 = arith.constant 30 : index
    %577 = memref.load %arg3[%c0_273, %c30] : memref<3x32xf32, #tpu.memory_space<smem>>
    %578 = vector.broadcast %577 : f32 to vector<8x8x256xf32>
    %579 = arith.mulf %4, %578 : vector<8x8x256xf32>
    %c1_274 = arith.constant 1 : index
    %c30_275 = arith.constant 30 : index
    %580 = memref.load %arg3[%c1_274, %c30_275] : memref<3x32xf32, #tpu.memory_space<smem>>
    %581 = vector.broadcast %580 : f32 to vector<8x8x256xf32>
    %582 = arith.mulf %5, %581 : vector<8x8x256xf32>
    %583 = arith.addf %579, %582 : vector<8x8x256xf32>
    %c2_276 = arith.constant 2 : index
    %c30_277 = arith.constant 30 : index
    %584 = memref.load %arg3[%c2_276, %c30_277] : memref<3x32xf32, #tpu.memory_space<smem>>
    %585 = vector.broadcast %584 : f32 to vector<8x8x256xf32>
    %586 = arith.mulf %6, %585 : vector<8x8x256xf32>
    %587 = arith.addf %583, %586 : vector<8x8x256xf32>
    %c30_278 = arith.constant 30 : index
    %588 = memref.load %arg4[%c30_278] : memref<32xf32, #tpu.memory_space<smem>>
    %589 = vector.broadcast %588 : f32 to vector<8x8x256xf32>
    %590 = arith.addf %587, %589 : vector<8x8x256xf32>
    %cst_279 = arith.constant 0.000000e+00 : f32
    %591 = vector.broadcast %cst_279 : f32 to vector<8x8x256xf32>
    %592 = arith.maximumf %590, %591 : vector<8x8x256xf32>
    %cst_280 = arith.constant dense<0.000000e+00> : vector<8x8xf32>
    %593 = vector.multi_reduction <add>, %592, %cst_280 [2] : vector<8x8x256xf32> to vector<8x8xf32>
    %cst_281 = arith.constant dense<0.000000e+00> : vector<8xf32>
    %594 = vector.multi_reduction <add>, %593, %cst_281 [1] : vector<8x8xf32> to vector<8xf32>
    %595 = vector.shape_cast %594 : vector<8xf32> to vector<8x1xf32>
    %c0_282 = arith.constant 0 : index
    %c31 = arith.constant 31 : index
    %596 = memref.load %arg3[%c0_282, %c31] : memref<3x32xf32, #tpu.memory_space<smem>>
    %597 = vector.broadcast %596 : f32 to vector<8x8x256xf32>
    %598 = arith.mulf %4, %597 : vector<8x8x256xf32>
    %c1_283 = arith.constant 1 : index
    %c31_284 = arith.constant 31 : index
    %599 = memref.load %arg3[%c1_283, %c31_284] : memref<3x32xf32, #tpu.memory_space<smem>>
    %600 = vector.broadcast %599 : f32 to vector<8x8x256xf32>
    %601 = arith.mulf %5, %600 : vector<8x8x256xf32>
    %602 = arith.addf %598, %601 : vector<8x8x256xf32>
    %c2_285 = arith.constant 2 : index
    %c31_286 = arith.constant 31 : index
    %603 = memref.load %arg3[%c2_285, %c31_286] : memref<3x32xf32, #tpu.memory_space<smem>>
    %604 = vector.broadcast %603 : f32 to vector<8x8x256xf32>
    %605 = arith.mulf %6, %604 : vector<8x8x256xf32>
    %606 = arith.addf %602, %605 : vector<8x8x256xf32>
    %c31_287 = arith.constant 31 : index
    %607 = memref.load %arg4[%c31_287] : memref<32xf32, #tpu.memory_space<smem>>
    %608 = vector.broadcast %607 : f32 to vector<8x8x256xf32>
    %609 = arith.addf %606, %608 : vector<8x8x256xf32>
    %cst_288 = arith.constant 0.000000e+00 : f32
    %610 = vector.broadcast %cst_288 : f32 to vector<8x8x256xf32>
    %611 = arith.maximumf %609, %610 : vector<8x8x256xf32>
    %cst_289 = arith.constant dense<0.000000e+00> : vector<8x8xf32>
    %612 = vector.multi_reduction <add>, %611, %cst_289 [2] : vector<8x8x256xf32> to vector<8x8xf32>
    %cst_290 = arith.constant dense<0.000000e+00> : vector<8xf32>
    %613 = vector.multi_reduction <add>, %612, %cst_290 [1] : vector<8x8xf32> to vector<8xf32>
    %614 = vector.shape_cast %613 : vector<8xf32> to vector<8x1xf32>
    %c0_291 = arith.constant 0 : index
    %c0_292 = arith.constant 0 : index
    %615 = vector.load %arg8[%c0_291, %c0_292] : memref<8x32xf32, #tpu.memory_space<vmem>>, vector<8x32xf32>
    %616 = tpu.concatenate %25, %44, %63, %82, %101, %120, %139, %158, %177, %196, %215, %234, %253, %272, %291, %310 in 1 : vector<8x1xf32>, vector<8x1xf32>, vector<8x1xf32>, vector<8x1xf32>, vector<8x1xf32>, vector<8x1xf32>, vector<8x1xf32>, vector<8x1xf32>, vector<8x1xf32>, vector<8x1xf32>, vector<8x1xf32>, vector<8x1xf32>, vector<8x1xf32>, vector<8x1xf32>, vector<8x1xf32>, vector<8x1xf32> -> vector<8x16xf32>
    %617 = tpu.concatenate %329, %348, %367, %386, %405, %424, %443, %462, %481, %500, %519, %538, %557, %576, %595, %614 in 1 : vector<8x1xf32>, vector<8x1xf32>, vector<8x1xf32>, vector<8x1xf32>, vector<8x1xf32>, vector<8x1xf32>, vector<8x1xf32>, vector<8x1xf32>, vector<8x1xf32>, vector<8x1xf32>, vector<8x1xf32>, vector<8x1xf32>, vector<8x1xf32>, vector<8x1xf32>, vector<8x1xf32>, vector<8x1xf32> -> vector<8x16xf32>
    %618 = tpu.concatenate %616, %617 in 1 : vector<8x16xf32>, vector<8x16xf32> -> vector<8x32xf32>
    %619 = arith.addf %615, %618 : vector<8x32xf32>
    %c0_293 = arith.constant 0 : index
    %c0_294 = arith.constant 0 : index
    %620 = vector.load %arg8[%c0_293, %c0_294] : memref<8x32xf32, #tpu.memory_space<vmem>>, vector<8x32xf32>
    tpu.vector_store %arg8[%c0_293, %c0_294], %619 {strides = array<i32>} : memref<8x32xf32, #tpu.memory_space<vmem>>, vector<8x32xf32>,
    %c1_i32 = arith.constant 1 : i32
    %621 = arith.cmpi eq, %arg1, %c1_i32 : i32
    %622 = arith.extui %621 : i1 to i32
    %c0_i32_295 = arith.constant 0 : i32
    %623 = arith.cmpi ne, %622, %c0_i32_295 : i32
    scf.if %623 {
      %c0_296 = arith.constant 0 : index
      %c0_297 = arith.constant 0 : index
      %624 = vector.load %arg8[%c0_296, %c0_297] : memref<8x32xf32, #tpu.memory_space<vmem>>, vector<8x32xf32>
      %c0_298 = arith.constant 0 : index
      %c0_299 = arith.constant 0 : index
      %625 = vector.load %arg5[%c0_298, %c0_299] : memref<32x128xf32, #tpu.memory_space<vmem>>, vector<32x128xf32>
      %cst_300 = arith.constant dense<0.000000e+00> : vector<8x128xf32>
      %626 = tpu.matmul %624, %625, %cst_300 {dimension_numbers = #tpu.dot_dimension_numbers<[1], [0], [0], [1], [0, 0, 1, 1], [], []>} : vector<8x32xf32>, vector<32x128xf32>, vector<8x128xf32> -> vector<8x128xf32>
      %c0_301 = arith.constant 0 : index
      %c0_302 = arith.constant 0 : index
      %627 = vector.load %arg6[%c0_301, %c0_302] : memref<1x128xf32, #tpu.memory_space<vmem>>, vector<1x128xf32>
      %628 = vector.broadcast %627 : vector<1x128xf32> to vector<8x128xf32>
      %629 = arith.addf %626, %628 : vector<8x128xf32>
      %c0_303 = arith.constant 0 : index
      %c0_304 = arith.constant 0 : index
      %630 = vector.load %arg7[%c0_303, %c0_304] : memref<8x128xf32, #tpu.memory_space<vmem>>, vector<8x128xf32>
      tpu.vector_store %arg7[%c0_303, %c0_304], %629 {strides = array<i32>} : memref<8x128xf32, #tpu.memory_space<vmem>>, vector<8x128xf32>,
    } else {
    }
    return
  }
  func.func @transform_0(%arg0: i32, %arg1: i32) -> (i32, i32, i32) {
    %c0_i32 = arith.constant 0 : i32
    %c0_i32_0 = arith.constant 0 : i32
    return %arg0, %arg1, %c0_i32 : i32, i32, i32
  }
  func.func @transform_1(%arg0: i32, %arg1: i32) -> (i32, i32) {
    %c0_i32 = arith.constant 0 : i32
    %c0_i32_0 = arith.constant 0 : i32
    %c0_i32_1 = arith.constant 0 : i32
    return %c0_i32, %c0_i32_0 : i32, i32
  }
  func.func @transform_2(%arg0: i32, %arg1: i32) -> i32 {
    %c0_i32 = arith.constant 0 : i32
    %c0_i32_0 = arith.constant 0 : i32
    return %c0_i32 : i32
  }
  func.func @transform_3(%arg0: i32, %arg1: i32) -> (i32, i32) {
    %c0_i32 = arith.constant 0 : i32
    %c0_i32_0 = arith.constant 0 : i32
    %c0_i32_1 = arith.constant 0 : i32
    return %c0_i32, %c0_i32_0 : i32, i32
  }
  func.func @transform_4(%arg0: i32, %arg1: i32) -> (i32, i32) {
    %c0_i32 = arith.constant 0 : i32
    %c0_i32_0 = arith.constant 0 : i32
    %c0_i32_1 = arith.constant 0 : i32
    return %c0_i32, %c0_i32_0 : i32, i32
  }
  func.func @transform_5(%arg0: i32, %arg1: i32) -> (i32, i32) {
    %c0_i32 = arith.constant 0 : i32
    %c0_i32_0 = arith.constant 0 : i32
    return %arg0, %c0_i32 : i32, i32
  }
}

</mosaic_0001>

<bundles_post_ra>
// kernel: videonet_forward.1
= control target key start
LH: loop header
LB: loop body
LE: loop exit
PB: predicated region body
PF: predicated region fallthrough
CT: control target
= control target key end

     0   :  { %s14549_s0 = inlined_call_operand.vmem [shape: f32[16,16,768], index: 0, kind: input, shape index: {}]   ;;  %s14550_s1 = inlined_call_operand.vmem [shape: f32[3,32], index: 1, kind: input, shape index: {}]   ;;  %s14551_s2 = inlined_call_operand.vmem [shape: f32[32], index: 2, kind: input, shape index: {}]   ;;  %s14552_s3 = inlined_call_operand.vmem [shape: f32[32,128], index: 3, kind: input, shape index: {}]   ;;  %s14553_s4 = inlined_call_operand.vmem [shape: f32[1,128], index: 4, kind: input, shape index: {}]   ;;  %s14554_s5 = inlined_call_operand.hbm [shape: f32[16,128], index: 5, kind: output, shape index: {}]  }
   0x1   :  { %14989 = sst [smem:[#allocation102_spill]] %s14550_s1 }
   0x2   :  { %14990 = sst [smem:[#allocation103_spill]] %s14551_s2 }
   0x3   :  { %10 = vsyncpa [#allocation6], 0 }
   0x4   :  { %11 = vsyncpa [#allocation8], 0 }
   0x5   :  { %12 = vsyncpa [#allocation5], 0 }
   0x6   :  { %14 = vsyncpa [#allocation5 + $0x1], 0  ;;  %s7785_s18 = smov 0   ;;  %s7787_s19 = smov 0  }
   0x7   :  { %s7789_s20 = smov 0   ;;  %s7791_s21 = smov 0  }
   0x8   :  { %s7793_s22 = smov 0   ;;  %s7795_s23 = smov 0  }
   0x9   :  { %s7797_s24 = smov 0   ;;  %s7799_s25 = smov 0  }
   0xa   :  { %s7801_s26 = smov 0   ;;  %s7803_s27 = smov 0  }
   0xb LB: > { %s6945_s28 = sadd.s32 4294967295, %s7745_s27   ;;  %s6946_s29 = sadd.s32 4294967294, %s7745_s27   ;;  %s7745_s27 = sphi %s7803_s27, %s20_s27   ;;  %s7741_s26 = sphi %s7801_s26, %s15734_s26   ;;  %s7737_s25 = sphi %s7799_s25, %s15733_s25   ;;  %s7733_s24 = sphi %s7797_s24, %s15732_s24   ;;  %s7729_s23 = sphi %s7795_s23, %s15731_s23   ;;  %s7725_s22 = sphi %s7793_s22, %s15730_s22   ;;  %s7721_s21 = sphi %s7791_s21, %s15729_s21   ;;  %s7717_s20 = sphi %s7789_s20, %s15728_s20   ;;  %s7713_s19 = sphi %s7787_s19, %s15727_s19   ;;  %s7709_s18 = sphi %s7785_s18, %s15726_s18  }
   0xc   : > { %s29_s30 = sadd.s32 1, %s7737_s25  ;;  %s32_s6 = sadd.s32 1, %s7741_s26 }
   0xd   : > { %p30_p0 = scmp.ge.s32.totalorder %s29_s30, 2  ;;  %s41_s7 = sadd.s32 1, %s7725_s22 }
   0xe   : > { %p48_p1 = scmp.ne.s32.totalorder %s7725_s22, %s7721_s21  ;;  %p49_p2 = scmp.eq.s32.totalorder %s7745_s27, 0 }
   0xf   : > { %s15736_s30 = smov (%p30_p0, %s29_s30), 0  ;;  %s15738_s6 = smov (!%p30_p0, %s32_s6), %s7741_s26 }
  0x10   : > { %14991 = sst [smem:[#allocation13_spill]] %s15736_s30  ;;  %s37_s8 = ssub.s32 %s7737_s25, %s15736_s30 }
  0x11   : > { %p7848_p3 = por %p49_p2, %p48_p1  ;;  %p34_p4 = scmp.ge.s32.totalorder %s15738_s6, 2 }
  0x12   : > { %s151_s10 = sadd.s32 1, %s7717_s20  ;;  %p161_p5 = scmp.ne.s32.totalorder %s7717_s20, %s7713_s19 }
  0x13   : > { %s14992_s9 = scalar_select %p7848_p3, 1, 0 }
  0x14   : > { %p162_p6 = scmp.eq.s32.totalorder %s6945_s28, 3  ;;  %s15740_s6 = smov (%p34_p4, %s15738_s6), 0 }
  0x15   : > { %14993 = sst [smem:[#allocation14_spill]] %s15740_s6  ;;  %p167_p8 = scmp.ne.s32.totalorder %s7713_s19, %s7709_s18 }
  0x16   : > { %p7857_p7 = por %p162_p6, %p161_p5  ;;  %s36_s12 = ssub.s32 %s7741_s26, %s15740_s6 }
  0x17   : > { %p168_p9 = scmp.eq.s32.totalorder %s6946_s29, 3  ;;  %s38_s13 = sor.u32 %s37_s8, %s36_s12 }
  0x18   : > { %s14994_s11 = scalar_select %p7857_p7, 1, 0 }
  0x19   : > { %p149_p10 = scmp.eq.s32.totalorder %s36_s12, 0  ;;  %p39_p11 = scmp.eq.s32.totalorder %s38_s13, 0 }
  0x1a   : > { %p7865_p12 = por %p168_p9, %p167_p8  ;;  %p6947_p13 = scmp.ge.s32.totalorder %s7745_s27, 1 }
  0x1b   : > { %s7870_s15 = scalar_select %p149_p10, %s7717_s20, %s151_s10  }
  0x1c   : > { %s14995_s14 = scalar_select %p7865_p12, 1, 0 }
  0x1d   : > { %s7873_s16 = scalar_select %p39_p11, %s7725_s22, %s41_s7  }
  0x1e   : > { %p175_p0 = scmp.lt.s32.totalorder %s7745_s27, 5  ;;  %p7877_p1 = scmp.eq.s32.totalorder %s6945_s28, 0 }
  0x1f   : > { %14996 = sst [smem:[#allocation15_spill]] %s7873_s16  ;;  %s14999_s1 = sld [smem:[#allocation102_spill]] }
  0x20   : > { %s14997_s17 = scalar_select %p7877_p1, 1, 0 }
  0x21   : > { %p7881_p2 = pnand %p6947_p13, %p175_p0  ;;  %s15000_s2 = sld [smem:[#allocation103_spill]] }
  0x23   : > { %s14998_s29 = scalar_select %p7881_p2, 1, 0 }
  0x24   : > { %p7128_p4 = pneg %p7881_p2 }
  0x25   : > { %s188_s13 = sshll.u32 %s14999_s1, 4  ;;  %s189_s13 = int_to_ptr.vmem [resolvable:$true] %s188_s13 }
  0x26   : > { %p7895_p5 = pnand %p7877_p1, %p7128_p4  ;;  %s7597_s30 = scalar_lea.vmem %s189_s13, 64 }
  0x27   : > { %s199_s6 = sshll.u32 %s15000_s2, 4  ;;  %p7598_p6 = scmp.ne.s32.totalorder %s189_s13, %s7597_s30  ;;  %s200_s6 = int_to_ptr.vmem [resolvable:$true] %s199_s6 }
  0x28   : > { %p7599_p8 = pneg %p7895_p5  ;;  %p7605_p11 = scmp.lt.s32.totalorder %s189_s13, %s189_s13 }
  0x29   : > { %p7606_p13 = scmp.lt.s32.totalorder %s7597_s30, %s7597_s30 }
  0x2a   : > { %p7600_p9 = pnand %p7599_p8, %p7598_p6 }
  0x2b   : > { %p7607_p0 = por %p7606_p13, %p7605_p11 }
  0x2c   : > { %p7601_p10 = pneg %p7600_p9 }
  0x2e   : > { %p7608_p12 = pnand %p7607_p0, %p7601_p10 }
  0x30   : > { %7611 = shalt.err (!%p7608_p12)
}
  0x31   : > { %s7747_s8 = smov [#allocation4]   ;;  %s7612_s12 = scalar_lea.vmem %s200_s6, 16 }
  0x32   : > { %7131 = dma.vmem_to_smem (!%p7895_p5), %s189_s13, 64, %s7747_s8, [#allocation6]  }
  0x33   : > { %p7613_p4 = scmp.ne.s32.totalorder %s200_s6, %s7612_s12  ;;  %p7620_p2 = scmp.lt.s32.totalorder %s200_s6, %s200_s6 }
  0x34   : > { %p7621_p3 = scmp.lt.s32.totalorder %s7612_s12, %s7612_s12 }
  0x35   : > { %p7615_p7 = pnand %p7613_p4, %p7599_p8 }
  0x36   : > { %p7622_p6 = por %p7621_p3, %p7620_p2 }
  0x37   : > { %p7616_p1 = pneg %p7615_p7 }
  0x39   : > { %p7623_p9 = pnand %p7622_p6, %p7616_p1 }
  0x3b   : > { %7626 = shalt.err (!%p7623_p9)
}
  0x3c   : > { %s7748_s7 = smov [#allocation7]   ;;  %p6950_p10 = scmp.ge.s32.totalorder %s7745_s27, 4 }
  0x3d   : > { %7134 = dma.vmem_to_smem (!%p7895_p5), %s200_s6, 16, %s7748_s7, [#allocation8]  }
  0x3e   : > { %212 = sbr.rel (%p6950_p10) target bundleno = 102 (0x66), region = 32  ;;  %p15002_p12 = scmp.ne.s32.totalorder (!%p6950_p10), %s14992_s9, 0 }
  0x45   : > { %215 = sbr.rel (!%p15002_p12) target bundleno = 102 (0x66), region = 36  ;;  %s217_s30 = sand.u32 (%p15002_p12), 1, %s7725_s22  }
  0x46   : > { %s7115_s13 = smul.u32 (%p15002_p12), 6, %s7737_s25 }
  0x47   : > { %s7114_s10 = smul.u32 (%p15002_p12), 384, %s217_s30 }
  0x48   : > { %s7116_s8 = smul.u32 (%p15002_p12), 96, %s7741_s26 }
  0x49   : > { %s7919_s6 = scalar_lea.vmem (%p15002_p12), [#allocation3], %s7114_s10 }
  0x4a   : > { %s223_s12 = sadd.s32 (%p15002_p12), %s7116_s8, %s7115_s13 }
  0x4b   : > { %s6953_s1 = sshll.u32 (%p15002_p12), %s223_s12, 3 }
  0x4c   : > { %s7914_s28 = scalar_lea.vmem %s14549_s0, %s6953_s1 }
  0x4d   : > { %v238_v0 = vld [vmem:[%s7914_s28] sm:$0xff]  ;;  %v240_v1 = vld [vmem:[%s7914_s28 + $0x8] sm:$0xff]  ;;  %v242_v2 = vld [vmem:[%s7914_s28 + $0x10] sm:$0xff] }
  0x4e   : > { %239 = vst [vmem:[%s7919_s6] sm:$0xff] %v238_v0  ;;  %241 = vst [vmem:[%s7919_s6 + $0x8] sm:$0xff] %v240_v1  ;;  %v244_v3 = vld [vmem:[%s7914_s28 + $0x18] sm:$0xff]  ;;  %v246_v4 = vld [vmem:[%s7914_s28 + $0x20] sm:$0xff] }
  0x4f   : > { %243 = vst [vmem:[%s7919_s6 + $0x10] sm:$0xff] %v242_v2  ;;  %v248_v5 = vld [vmem:[%s7914_s28 + $0x28] sm:$0xff]  ;;  %245 = vst [vmem:[%s7919_s6 + $0x18] sm:$0xff] %v244_v3  ;;  %v250_v6 = vld [vmem:[%s7914_s28 + $0x60] sm:$0xff] }
  0x50   : > { %247 = vst [vmem:[%s7919_s6 + $0x20] sm:$0xff] %v246_v4  ;;  %249 = vst [vmem:[%s7919_s6 + $0x28] sm:$0xff] %v248_v5  ;;  %v252_v7 = vld [vmem:[%s7914_s28 + $0x68] sm:$0xff]  ;;  %v254_v8 = vld [vmem:[%s7914_s28 + $0x70] sm:$0xff] }
  0x51   : > { %251 = vst [vmem:[%s7919_s6 + $0x30] sm:$0xff] %v250_v6  ;;  %253 = vst [vmem:[%s7919_s6 + $0x38] sm:$0xff] %v252_v7  ;;  %v256_v9 = vld [vmem:[%s7914_s28 + $0x78] sm:$0xff]  ;;  %v258_v10 = vld [vmem:[%s7914_s28 + $0x80] sm:$0xff] }
  0x52   : > { %255 = vst [vmem:[%s7919_s6 + $0x40] sm:$0xff] %v254_v8  ;;  %v260_v11 = vld [vmem:[%s7914_s28 + $0x88] sm:$0xff]  ;;  %257 = vst [vmem:[%s7919_s6 + $0x48] sm:$0xff] %v256_v9  ;;  %v262_v12 = vld [vmem:[%s7914_s28 + $0xc0] sm:$0xff] }
  0x53   : > { %259 = vst [vmem:[%s7919_s6 + $0x50] sm:$0xff] %v258_v10  ;;  %261 = vst [vmem:[%s7919_s6 + $0x58] sm:$0xff] %v260_v11  ;;  %v264_v13 = vld [vmem:[%s7914_s28 + $0xc8] sm:$0xff]  ;;  %v266_v14 = vld [vmem:[%s7914_s28 + $0xd0] sm:$0xff] }
  0x54   : > { %263 = vst [vmem:[%s7919_s6 + $0x60] sm:$0xff] %v262_v12  ;;  %265 = vst [vmem:[%s7919_s6 + $0x68] sm:$0xff] %v264_v13  ;;  %v268_v15 = vld [vmem:[%s7914_s28 + $0xd8] sm:$0xff]  ;;  %v270_v16 = vld [vmem:[%s7914_s28 + $0xe0] sm:$0xff] }
  0x55   : > { %267 = vst [vmem:[%s7919_s6 + $0x70] sm:$0xff] %v266_v14  ;;  %v272_v17 = vld [vmem:[%s7914_s28 + $0xe8] sm:$0xff]  ;;  %269 = vst [vmem:[%s7919_s6 + $0x78] sm:$0xff] %v268_v15  ;;  %v274_v18 = vld [vmem:[%s7914_s28 + $0x120] sm:$0xff] }
  0x56   : > { %271 = vst [vmem:[%s7919_s6 + $0x80] sm:$0xff] %v270_v16  ;;  %273 = vst [vmem:[%s7919_s6 + $0x88] sm:$0xff] %v272_v17  ;;  %v276_v19 = vld [vmem:[%s7914_s28 + $0x128] sm:$0xff]  ;;  %v278_v20 = vld [vmem:[%s7914_s28 + $0x130] sm:$0xff] }
  0x57   : > { %275 = vst [vmem:[%s7919_s6 + $0x90] sm:$0xff] %v274_v18  ;;  %277 = vst [vmem:[%s7919_s6 + $0x98] sm:$0xff] %v276_v19  ;;  %v280_v21 = vld [vmem:[%s7914_s28 + $0x138] sm:$0xff]  ;;  %v282_v22 = vld [vmem:[%s7914_s28 + $0x140] sm:$0xff] }
  0x58   : > { %279 = vst [vmem:[%s7919_s6 + $0xa0] sm:$0xff] %v278_v20  ;;  %v284_v23 = vld [vmem:[%s7914_s28 + $0x148] sm:$0xff]  ;;  %281 = vst [vmem:[%s7919_s6 + $0xa8] sm:$0xff] %v280_v21  ;;  %v286_v24 = vld [vmem:[%s7914_s28 + $0x180] sm:$0xff] }
  0x59   : > { %283 = vst [vmem:[%s7919_s6 + $0xb0] sm:$0xff] %v282_v22  ;;  %285 = vst [vmem:[%s7919_s6 + $0xb8] sm:$0xff] %v284_v23  ;;  %v288_v25 = vld [vmem:[%s7914_s28 + $0x188] sm:$0xff]  ;;  %v290_v26 = vld [vmem:[%s7914_s28 + $0x190] sm:$0xff] }
  0x5a   : > { %287 = vst [vmem:[%s7919_s6 + $0xc0] sm:$0xff] %v286_v24  ;;  %289 = vst [vmem:[%s7919_s6 + $0xc8] sm:$0xff] %v288_v25  ;;  %v292_v27 = vld [vmem:[%s7914_s28 + $0x198] sm:$0xff]  ;;  %v294_v28 = vld [vmem:[%s7914_s28 + $0x1a0] sm:$0xff] }
  0x5b   : > { %291 = vst [vmem:[%s7919_s6 + $0xd0] sm:$0xff] %v290_v26  ;;  %v296_v29 = vld [vmem:[%s7914_s28 + $0x1a8] sm:$0xff]  ;;  %293 = vst [vmem:[%s7919_s6 + $0xd8] sm:$0xff] %v292_v27  ;;  %v298_v30 = vld [vmem:[%s7914_s28 + $0x1e0] sm:$0xff] }
  0x5c   : > { %295 = vst [vmem:[%s7919_s6 + $0xe0] sm:$0xff] %v294_v28  ;;  %297 = vst [vmem:[%s7919_s6 + $0xe8] sm:$0xff] %v296_v29  ;;  %v300_v31 = vld [vmem:[%s7914_s28 + $0x1e8] sm:$0xff]  ;;  %v302_v32 = vld [vmem:[%s7914_s28 + $0x1f0] sm:$0xff] }
  0x5d   : > { %299 = vst [vmem:[%s7919_s6 + $0xf0] sm:$0xff] %v298_v30  ;;  %301 = vst [vmem:[%s7919_s6 + $0xf8] sm:$0xff] %v300_v31  ;;  %v304_v33 = vld [vmem:[%s7914_s28 + $0x1f8] sm:$0xff]  ;;  %v306_v34 = vld [vmem:[%s7914_s28 + $0x200] sm:$0xff] }
  0x5e   : > { %303 = vst [vmem:[%s7919_s6 + $0x100] sm:$0xff] %v302_v32  ;;  %v308_v35 = vld [vmem:[%s7914_s28 + $0x208] sm:$0xff]  ;;  %305 = vst [vmem:[%s7919_s6 + $0x108] sm:$0xff] %v304_v33  ;;  %v310_v36 = vld [vmem:[%s7914_s28 + $0x240] sm:$0xff] }
  0x5f   : > { %307 = vst [vmem:[%s7919_s6 + $0x110] sm:$0xff] %v306_v34  ;;  %309 = vst [vmem:[%s7919_s6 + $0x118] sm:$0xff] %v308_v35  ;;  %v312_v37 = vld [vmem:[%s7914_s28 + $0x248] sm:$0xff]  ;;  %v314_v38 = vld [vmem:[%s7914_s28 + $0x250] sm:$0xff] }
  0x60   : > { %311 = vst [vmem:[%s7919_s6 + $0x120] sm:$0xff] %v310_v36  ;;  %313 = vst [vmem:[%s7919_s6 + $0x128] sm:$0xff] %v312_v37  ;;  %v316_v39 = vld [vmem:[%s7914_s28 + $0x258] sm:$0xff]  ;;  %v318_v40 = vld [vmem:[%s7914_s28 + $0x260] sm:$0xff] }
  0x61   : > { %315 = vst [vmem:[%s7919_s6 + $0x130] sm:$0xff] %v314_v38  ;;  %v320_v41 = vld [vmem:[%s7914_s28 + $0x268] sm:$0xff]  ;;  %317 = vst [vmem:[%s7919_s6 + $0x138] sm:$0xff] %v316_v39  ;;  %v322_v42 = vld [vmem:[%s7914_s28 + $0x2a0] sm:$0xff] }
  0x62   : > { %319 = vst [vmem:[%s7919_s6 + $0x140] sm:$0xff] %v318_v40  ;;  %321 = vst [vmem:[%s7919_s6 + $0x148] sm:$0xff] %v320_v41  ;;  %v324_v43 = vld [vmem:[%s7914_s28 + $0x2a8] sm:$0xff]  ;;  %v326_v44 = vld [vmem:[%s7914_s28 + $0x2b0] sm:$0xff] }
  0x63   : > { %323 = vst [vmem:[%s7919_s6 + $0x150] sm:$0xff] %v322_v42  ;;  %325 = vst [vmem:[%s7919_s6 + $0x158] sm:$0xff] %v324_v43  ;;  %v328_v45 = vld [vmem:[%s7914_s28 + $0x2b8] sm:$0xff]  ;;  %v330_v46 = vld [vmem:[%s7914_s28 + $0x2c0] sm:$0xff] }
  0x64   : > { %327 = vst [vmem:[%s7919_s6 + $0x160] sm:$0xff] %v326_v44  ;;  %v332_v47 = vld [vmem:[%s7914_s28 + $0x2c8] sm:$0xff]  ;;  %329 = vst [vmem:[%s7919_s6 + $0x168] sm:$0xff] %v328_v45 }
  0x65   : > { %331 = vst [vmem:[%s7919_s6 + $0x170] sm:$0xff] %v330_v46  ;;  %333 = vst [vmem:[%s7919_s6 + $0x178] sm:$0xff] %v332_v47 }
  0x66 PF: > { %p15003_p3 = scmp.ne.s32.totalorder %s14998_s29, 0 }
  0x68   : > { %342 = sbr.rel (%p15003_p3) target bundleno = 3234 (0xca2), region = 59 }
  0x6f   : > { %s345_s1 = sand.u32 1, %s7721_s21   ;;  %p15004_p7 = scmp.ne.s32.totalorder %s14997_s17, 0 }
  0x70   : > { %s7117_s2 = smul.u32 384, %s345_s1 }
  0x72   : > { %s8017_s9 = scalar_lea.vmem [#allocation3], %s7117_s2 }
  0x73   : > { %7696 = dma.done.wait (%p15004_p7), [#allocation6], 64  }
  0x74   : > { %7698 = vsyncadd (%p15004_p7), [#allocation6], 4294967232 }
  0x75   : > { %7700 = dma.done.wait (%p15004_p7), [#allocation8], 16  }
  0x76   : > { %7702 = vsyncadd (%p15004_p7), [#allocation8], 4294967280 }
  0x77   : > { %359 = sfence }
  0x78   : > { %s378_s16 = sand.u32 1, %s7713_s19   ;;  %p6958_p1 = scmp.ne.s32.totalorder %s7729_s23, 0 }
  0x79   : > { %s8030_s21 = sshll.u32 %s378_s16, 3  ;;  %vm386_vm0 = vcmask (!%p6958_p1), 261120   ;;  %v7749_v48 = vmov (!%p6958_p1), 0.0  }
  0x7a   : > { %s380_s29 = scalar_lea.vmem [#allocation9], %s8030_s21  ;;  %385 = sbr.rel (%p6958_p1) target bundleno = 129 (0x81), region = 75  ;;  %387 = vst.msk [vmem:[#allocation2] sm:$0xff] (!%p6958_p1), %vm386_vm0, %v7749_v48 }
  0x81 PF: > { %s436_s7 = sld [smem:[#allocation4]]  ;;  %v8035_v49 = vld [vmem:[%s8017_s9 + $0x60] sm:$0xff]  ;;  %v8038_v50 = vld [vmem:[%s8017_s9 + $0x68] sm:$0xff]  ;;  %v8044_v52 = vld [vmem:[%s8017_s9 + $0x70] sm:$0xff]  ;;  %s8248_s10 = sld [smem:[#allocation4 + $0x1]]  ;;  %vm622_vm1 = vcmask 1041409  }
  0x82   : > { %s6959_s17 = sld [smem:[#allocation4 + $0x80]]  ;;  %v8041_v51 = vld [vmem:[%s8017_s9] sm:$0xff]  ;;  %v8047_v53 = vld [vmem:[%s8017_s9 + $0x78] sm:$0xff]  ;;  %v8053_v55 = vld [vmem:[%s8017_s9 + $0x88] sm:$0xff]  ;;  %s8255_s8 = sld [smem:[#allocation4 + $0x81]]  ;;  %vm624_vm2 = vcmask 1042434  }
  0x83   : > { %s6960_s30 = sld [smem:[#allocation4 + $0x100]]  ;;  %v8050_v54 = vld [vmem:[%s8017_s9 + $0x80] sm:$0xff]  ;;  %15005 = vst [vmem:[#allocation16_spill] sm:$0xff] %v8053_v55  ;;  %v8058_v57 = vld [vmem:[%s8017_s9 + $0x8] sm:$0xff]  ;;  %v8061_v58 = vld [vmem:[%s8017_s9 + $0x10] sm:$0xff]  ;;  %s8269_s12 = sld [smem:[#allocation4 + $0x101]] }
  0x84   : > { %s522_s13 = sld [smem:[#allocation7]]  ;;  %v8070_v62 = vld [vmem:[%s8017_s9 + $0x18] sm:$0xff]  ;;  %v8073_v63 = vld [vmem:[%s8017_s9 + $0x20] sm:$0xff]  ;;  %v8076_v0 = vld [vmem:[%s8017_s9 + $0x28] sm:$0xff]  ;;  %s8285_s28 = sld [smem:[#allocation7 + $0x1]]  ;;  %vm626_vm3 = vcmask 1043459  }
  0x85   : > { %15006 = vst [vmem:[#allocation17_spill] sm:$0xff] %v8076_v0  ;;  %v8089_v6 = vld [vmem:[%s8017_s9 + $0x90] sm:$0xff]  ;;  %v8092_v7 = vld [vmem:[%s8017_s9 + $0x98] sm:$0xff]  ;;  %v8103_v12 = vld [vmem:[%s8017_s9 + $0xa0] sm:$0xff]  ;;  %s8400_s6 = sld [smem:[#allocation4 + $0x2]]  ;;  %vm628_vm4 = vcmask 1044484  }
  0x86   : > { %15007 = vst [vmem:[#allocation18_spill] sm:$0xff] %v8089_v6  ;;  %v8110_v17 = vld [vmem:[%s8017_s9 + $0xa8] sm:$0xff]  ;;  %v8113_v18 = vld [vmem:[%s8017_s9 + $0xb0] sm:$0xff]  ;;  %v8116_v19 = vld [vmem:[%s8017_s9 + $0xb8] sm:$0xff]  ;;  %s8410_s1 = sld [smem:[#allocation4 + $0x82]]  ;;  %vm630_vm5 = vcmask 1045509  }
  0x87   : > { %v8055_v56 = vstv %s436_s7  ;;  %15008 = vst [vmem:[#allocation19_spill] sm:$0xff] %v8116_v19  ;;  %v8127_v28 = vld [vmem:[%s8017_s9 + $0x30] sm:$0xff]  ;;  %v8130_v29 = vld [vmem:[%s8017_s9 + $0x38] sm:$0xff]  ;;  %v8141_v38 = vld [vmem:[%s8017_s9 + $0x40] sm:$0xff]  ;;  %s8414_s2 = sld [smem:[#allocation4 + $0x102]]  ;;  %vm632_vm6 = vcmask 1046534  }
  0x88   : > { %v442_v59 = vmul.f32 %v8055_v56, %v8035_v49  ;;  %v443_v60 = vmul.f32 %v8055_v56, %v8038_v50  ;;  %v8067_v61 = vstv %s6959_s17  ;;  %v438_v1 = vmul.f32 %v8055_v56, %v8041_v51  ;;  %v8144_v39 = vld [vmem:[%s8017_s9 + $0x48] sm:$0xff]  ;;  %v8148_v42 = vld [vmem:[%s8017_s9 + $0x50] sm:$0xff]  ;;  %s8424_s7 = sld [smem:[#allocation7 + $0x2]]  ;;  %s8531_s17 = sld [smem:[#allocation4 + $0x3]] }
  0x89   : > { %v460_v2 = vmul.f32 %v8067_v61, %v8044_v52  ;;  %v461_v3 = vmul.f32 %v8067_v61, %v8047_v53  ;;  %v8084_v4 = vstv %s6960_s30  ;;  %v439_v10 = vmul.f32 %v8055_v56, %v8058_v57  ;;  %15009 = vst [vmem:[#allocation20_spill] sm:$0xff] %v8148_v42  ;;  %s8540_s30 = sld [smem:[#allocation4 + $0x83]]  ;;  %p7085_p2 = scmp.ne.s32.totalorder %s7729_s23, 1 }
  0x8a   : > { %v8086_v5 = vstv %s522_s13  ;;  %v494_v8 = vmul.f32 %v8084_v4, %v8050_v54  ;;  %v495_v9 = vmul.f32 %v8084_v4, %v8053_v55  ;;  %v456_v11 = vmul.f32 %v8067_v61, %v8061_v58  ;;  %s8546_s13 = sld [smem:[#allocation4 + $0x103]] }
  0x8b   : > { %v476_v13 = vadd.f32 %v460_v2, %v442_v59  ;;  %v477_v14 = vadd.f32 %v461_v3, %v443_v60  ;;  %v457_v15 = vmul.f32 %v8067_v61, %v8070_v62  ;;  %v490_v16 = vmul.f32 %v8084_v4, %v8073_v63  ;;  %v8156_v59 = vld [vmem:[%s8017_s9 + $0x58] sm:$0xff] }
  0x8c   : > { %v472_v20 = vadd.f32 %v456_v11, %v438_v1  ;;  %v491_v21 = vmul.f32 %v8084_v4, %v8076_v0  ;;  %v444_v22 = vmul.f32 %v8055_v56, %v8089_v6  ;;  %v445_v23 = vmul.f32 %v8055_v56, %v8092_v7  ;;  %15010 = vst [vmem:[#allocation21_spill] sm:$0xff] %v8156_v59 }
  0x8d   : > { %v510_v24 = vadd.f32 %v494_v8, %v476_v13  ;;  %v511_v25 = vadd.f32 %v495_v9, %v477_v14  ;;  %v473_v26 = vadd.f32 %v457_v15, %v439_v10  ;;  %v462_v27 = vmul.f32 %v8067_v61, %v8103_v12  ;;  %v8163_v8 = vld [vmem:[%s8017_s9 + $0xf0] sm:$0xff]  ;;  %v8166_v9 = vld [vmem:[%s8017_s9 + $0xf8] sm:$0xff]  ;;  %v8172_v15 = vld [vmem:[%s8017_s9 + $0x100] sm:$0xff] }
  0x8e   : > { %v506_v30 = vadd.f32 %v490_v16, %v472_v20  ;;  %v463_v31 = vmul.f32 %v8067_v61, %v8110_v17  ;;  %v496_v32 = vmul.f32 %v8084_v4, %v8113_v18  ;;  %v497_v33 = vmul.f32 %v8084_v4, %v8116_v19  ;;  %v8175_v16 = vld [vmem:[%s8017_s9 + $0x108] sm:$0xff] }
  0x8f   : > { %v528_v34 = vadd.f32 %v8086_v5, %v510_v24  ;;  %v529_v35 = vadd.f32 %v8086_v5, %v511_v25  ;;  %v507_v36 = vadd.f32 %v491_v21, %v473_v26  ;;  %v478_v37 = vadd.f32 %v462_v27, %v444_v22  ;;  %v8181_v24 = vld [vmem:[%s8017_s9 + $0x110] sm:$0xff]  ;;  %v8184_v25 = vld [vmem:[%s8017_s9 + $0x118] sm:$0xff]  ;;  %v8187_v26 = vld [vmem:[%s8017_s9 + $0xc0] sm:$0xff] }
  0x90   : > { %v524_v40 = vadd.f32 %v8086_v5, %v506_v30  ;;  %v479_v41 = vadd.f32 %v463_v31, %v445_v23  ;;  %v440_v43 = vmul.f32 %v8055_v56, %v8127_v28  ;;  %v441_v44 = vmul.f32 %v8055_v56, %v8130_v29  ;;  %15011 = vst [vmem:[#allocation22_spill] sm:$0xff] %v8184_v25 }
  0x91   : > { %v544_v45 = vmax.f32 %v528_v34, 0.0  ;;  %v545_v46 = vmax.f32 %v529_v35, 0.0  ;;  %v525_v47 = vadd.f32 %v8086_v5, %v507_v36  ;;  %v512_v48 = vadd.f32 %v496_v32, %v478_v37  ;;  %v8196_v37 = vld [vmem:[%s8017_s9 + $0xc8] sm:$0xff] }
  0x92   : > { %v540_v60 = vmax.f32 %v524_v40, 0.0  ;;  %v513_v1 = vadd.f32 %v497_v33, %v479_v41  ;;  %v458_v2 = vmul.f32 %v8067_v61, %v8141_v38  ;;  %v459_v3 = vmul.f32 %v8067_v61, %v8144_v39  ;;  %v8199_v40 = vld [vmem:[%s8017_s9 + $0xd0] sm:$0xff]  ;;  %v8202_v41 = vld [vmem:[%s8017_s9 + $0xd8] sm:$0xff] }
  0x93   : > { %v562_v10 = vadd.f32 %v545_v46, %v544_v45  ;;  %v541_v11 = vmax.f32 %v525_v47, 0.0  ;;  %v530_v13 = vadd.f32 %v8086_v5, %v512_v48  ;;  %v492_v14 = vmul.f32 %v8084_v4, %v8148_v42  ;;  %v8211_v46 = vld [vmem:[%s8017_s9 + $0xe0] sm:$0xff] }
  0x94   : > { %v531_v20 = vadd.f32 %v8086_v5, %v513_v1  ;;  %v474_v21 = vadd.f32 %v458_v2, %v440_v43  ;;  %v475_v22 = vadd.f32 %v459_v3, %v441_v44  ;;  %v493_v23 = vmul.f32 %v8084_v4, %v8156_v59  ;;  %v8218_v3 = vld [vmem:[%s8017_s9 + $0xe8] sm:$0xff] }
  0x95   : > { %563 = vadd.xlane.f32.xlu1 %v562_v10  ;;  %v556_v27 = vadd.f32 %v541_v11, %v540_v60  ;;  %v546_v30 = vmax.f32 %v530_v13, 0.0  ;;  %v448_v31 = vmul.f32 %v8055_v56, %v8163_v8  ;;  %v449_v32 = vmul.f32 %v8055_v56, %v8166_v9 }
  0x96   : > { %v547_v33 = vmax.f32 %v531_v20, 0.0  ;;  %v508_v34 = vadd.f32 %v492_v14, %v474_v21  ;;  %v509_v35 = vadd.f32 %v493_v23, %v475_v22  ;;  %v466_v36 = vmul.f32 %v8067_v61, %v8172_v15  ;;  %v8227_v20 = vld [vmem:[%s8017_s9 + $0x150] sm:$0xff]  ;;  %v8230_v21 = vld [vmem:[%s8017_s9 + $0x158] sm:$0xff] }
  0x97   : > { %557 = vadd.xlane.f32.xlu0 %v556_v27  ;;  %v467_v43 = vmul.f32 %v8067_v61, %v8175_v16  ;;  %v500_v44 = vmul.f32 %v8084_v4, %v8181_v24  ;;  %v501_v45 = vmul.f32 %v8084_v4, %v8184_v25  ;;  %v446_v47 = vmul.f32 %v8055_v56, %v8187_v26 }
  0x98   : > { %v565_v48 = vadd.f32 %v547_v33, %v546_v30  ;;  %v526_v60 = vadd.f32 %v8086_v5, %v508_v34  ;;  %v527_v1 = vadd.f32 %v8086_v5, %v509_v35  ;;  %v482_v2 = vadd.f32 %v466_v36, %v448_v31  ;;  %15012 = vst [vmem:[#allocation23_spill] sm:$0xff] %v8227_v20  ;;  %v8235_v31 = vld [vmem:[%s8017_s9 + $0x160] sm:$0xff]  ;;  %v8240_v36 = vld [vmem:[%s8017_s9 + $0x168] sm:$0xff] }
  0x99   : > { %v483_v10 = vadd.f32 %v467_v43, %v449_v32  ;;  %v447_v11 = vmul.f32 %v8055_v56, %v8196_v37  ;;  %v464_v13 = vmul.f32 %v8067_v61, %v8199_v40  ;;  %v465_v14 = vmul.f32 %v8067_v61, %v8202_v41  ;;  %15013 = vst [vmem:[#allocation24_spill] sm:$0xff] %v8230_v21  ;;  %v8243_v43 = vld [vmem:[%s8017_s9 + $0x170] sm:$0xff] }
  0x9a   : > { %566 = vadd.xlane.f32.xlu1 %v565_v48  ;;  %v542_v22 = vmax.f32 %v526_v60, 0.0  ;;  %v543_v23 = vmax.f32 %v527_v1, 0.0  ;;  %v516_v27 = vadd.f32 %v500_v44, %v482_v2  ;;  %v498_v30 = vmul.f32 %v8084_v4, %v8211_v46  ;;  %15014 = vst [vmem:[#allocation25_spill] sm:$0xff] %v8235_v31  ;;  %15015 = vst [vmem:[#allocation26_spill] sm:$0xff] %v8240_v36  ;;  %v8246_v48 = vld [vmem:[%s8017_s9 + $0x178] sm:$0xff] }
  0x9b   : > { %v517_v32 = vadd.f32 %v501_v45, %v483_v10  ;;  %v480_v33 = vadd.f32 %v464_v13, %v446_v47  ;;  %v481_v34 = vadd.f32 %v465_v14, %v447_v11  ;;  %v499_v35 = vmul.f32 %v8084_v4, %v8218_v3  ;;  %15016 = vst [vmem:[#allocation27_spill] sm:$0xff] %v8243_v43  ;;  %v8261_v13 = vld [vmem:[%s8017_s9 + $0x120] sm:$0xff]  ;;  %v8264_v14 = vld [vmem:[%s8017_s9 + $0x128] sm:$0xff] }
  0x9c   : > { %15017 = vst [vmem:[#allocation28_spill] sm:$0xff] %v8246_v48  ;;  %v559_v44 = vadd.f32 %v543_v23, %v542_v22  ;;  %v534_v60 = vadd.f32 %v8086_v5, %v516_v27  ;;  %v452_v45 = vmul.f32 %v8055_v56, %v8227_v20  ;;  %v453_v47 = vmul.f32 %v8055_v56, %v8230_v21  ;;  %v8267_v22 = vld [vmem:[%s8017_s9 + $0x130] sm:$0xff]  ;;  %v8280_v21 = vld [vmem:[%s8017_s9 + $0x138] sm:$0xff]  ;;  %v8283_v20 = vld [vmem:[%s8017_s9 + $0x140] sm:$0xff] }
  0x9d   : > { %v535_v1 = vadd.f32 %v8086_v5, %v517_v32  ;;  %v514_v2 = vadd.f32 %v498_v30, %v480_v33  ;;  %v515_v10 = vadd.f32 %v499_v35, %v481_v34  ;;  %v470_v11 = vmul.f32 %v8067_v61, %v8235_v31  ;;  %15018 = vst [vmem:[#allocation29_spill] sm:$0xff] %v8261_v13 }
  0x9e   : > { %15019 = vst [vmem:[#allocation30_spill] sm:$0xff] %v8267_v22  ;;  %560 = vadd.xlane.f32.xlu0 %v559_v44  ;;  %v550_v23 = vmax.f32 %v534_v60, 0.0  ;;  %v471_v27 = vmul.f32 %v8067_v61, %v8240_v36  ;;  %v504_v30 = vmul.f32 %v8084_v4, %v8243_v43  ;;  %v505_v32 = vmul.f32 %v8084_v4, %v8246_v48  ;;  %v8288_v60 = vld [vmem:[%s8017_s9 + $0x148] sm:$0xff] }
  0x9f   : > { %v551_v33 = vmax.f32 %v535_v1, 0.0  ;;  %v532_v34 = vadd.f32 %v8086_v5, %v514_v2  ;;  %v533_v35 = vadd.f32 %v8086_v5, %v515_v10  ;;  %v486_v31 = vadd.f32 %v470_v11, %v452_v45  ;;  %15020 = vst [vmem:[#allocation31_spill] sm:$0xff] %v8280_v21  ;;  %15021 = vst [vmem:[#allocation32_spill] sm:$0xff] %v8283_v20 }
  0xa0   : > { %v487_v44 = vadd.f32 %v471_v27, %v453_v47  ;;  %15022 = vst [vmem:[#allocation33_spill] sm:$0xff] %v8288_v60  ;;  %v450_v43 = vmul.f32 %v8055_v56, %v8261_v13  ;;  %v451_v1 = vmul.f32 %v8055_v56, %v8264_v14  ;;  %v468_v2 = vmul.f32 %v8067_v61, %v8267_v22 }
  0xa1   : > { %v571_v45 = vadd.f32 %v551_v33, %v550_v23  ;;  %v548_v10 = vmax.f32 %v532_v34, 0.0  ;;  %v549_v11 = vmax.f32 %v533_v35, 0.0  ;;  %v520_v48 = vadd.f32 %v504_v30, %v486_v31 }
  0xa2   : > { %v521_v36 = vadd.f32 %v505_v32, %v487_v44  ;;  %v469_v47 = vmul.f32 %v8067_v61, %v8280_v21  ;;  %v484_v27 = vadd.f32 %v468_v2, %v450_v43  ;;  %v502_v13 = vmul.f32 %v8084_v4, %v8283_v20 }
  0xa3   : > { %572 = vadd.xlane.f32.xlu1 %v571_v45  ;;  %v568_v25 = vadd.f32 %v549_v11, %v548_v10  ;;  %v538_v56 = vadd.f32 %v8086_v5, %v520_v48  ;;  %v503_v23 = vmul.f32 %v8084_v4, %v8288_v60  ;;  %v8304_v33 = vstv %s8248_s10  ;;  %s8556_s10 = sld [smem:[#allocation7 + $0x3]] }
  0xa4   : > { %v539_v31 = vadd.f32 %v8086_v5, %v521_v36  ;;  %v485_v30 = vadd.f32 %v469_v47, %v451_v1  ;;  %v518_v32 = vadd.f32 %v502_v13, %v484_v27  ;;  %v643_v61 = vmul.f32 %v8304_v33, %v8041_v51 }
  0xa5   : > { %569 = vadd.xlane.f32.xlu0 %v568_v25  ;;  %v554_v43 = vmax.f32 %v538_v56, 0.0  ;;  %v644_v34 = vmul.f32 %v8304_v33, %v8058_v57  ;;  %v8312_v35 = vstv %s8255_s8  ;;  %v8315_v48 = vstv %s8269_s12  ;;  %s8663_s8 = sld [smem:[#allocation4 + $0x4]] }
  0xa6   : > { %v555_v4 = vmax.f32 %v539_v31, 0.0  ;;  %v519_v44 = vadd.f32 %v503_v23, %v485_v30  ;;  %v536_v2 = vadd.f32 %v8086_v5, %v518_v32  ;;  %v661_v36 = vmul.f32 %v8312_v35, %v8061_v58  ;;  %s8672_s12 = sld [smem:[#allocation4 + $0x84]] }
  0xa7   : > { %v662_v13 = vmul.f32 %v8312_v35, %v8070_v62  ;;  %v695_v25 = vmul.f32 %v8315_v48, %v8073_v63  ;;  %v696_v1 = vmul.f32 %v8315_v48, %v8076_v0  ;;  %v8327_v45 = vstv %s8285_s28  ;;  %s8683_s28 = sld [smem:[#allocation4 + $0x104]] }
  0xa8   : > { %v577_v10 = vadd.f32 %v555_v4, %v554_v43  ;;  %v537_v11 = vadd.f32 %v8086_v5, %v519_v44  ;;  %v552_v47 = vmax.f32 %v536_v2, 0.0  ;;  %v677_v27 = vadd.f32 %v661_v36, %v643_v61 }
  0xa9   : > { %v678_v56 = vadd.f32 %v662_v13, %v644_v34  ;;  %v645_v23 = vmul.f32 %v8304_v33, %v8127_v28  ;;  %v646_v31 = vmul.f32 %v8304_v33, %v8130_v29  ;;  %v663_v30 = vmul.f32 %v8312_v35, %v8141_v38 }
  0xaa   : > { %578 = vadd.xlane.f32.xlu1 %v577_v10  ;;  %v553_v32 = vmax.f32 %v537_v11, 0.0  ;;  %v711_v0 = vadd.f32 %v695_v25, %v677_v27  ;;  %v664_v43 = vmul.f32 %v8312_v35, %v8144_v39  ;;  %v697_v5 = vmul.f32 %v8315_v48, %v8148_v42 }
  0xab   : > { %v712_v61 = vadd.f32 %v696_v1, %v678_v56  ;;  %v679_v34 = vadd.f32 %v663_v30, %v645_v23  ;;  %v698_v4 = vmul.f32 %v8315_v48, %v8156_v59  ;;  %v647_v44 = vmul.f32 %v8304_v33, %v8035_v49 }
  0xac   : > { %v574_v2 = vadd.f32 %v553_v32, %v552_v47  ;;  %v729_v36 = vadd.f32 %v8327_v45, %v711_v0  ;;  %v680_v13 = vadd.f32 %v664_v43, %v646_v31  ;;  %v648_v25 = vmul.f32 %v8304_v33, %v8038_v50 }
  0xad   : > { %v730_v10 = vadd.f32 %v8327_v45, %v712_v61  ;;  %v713_v11 = vadd.f32 %v697_v5, %v679_v34  ;;  %v665_v1 = vmul.f32 %v8312_v35, %v8044_v52  ;;  %v666_v27 = vmul.f32 %v8312_v35, %v8047_v53 }
  0xae   : > { %575 = vadd.xlane.f32.xlu0 %v574_v2  ;;  %v745_v56 = vmax.f32 %v729_v36, 0.0  ;;  %v714_v23 = vadd.f32 %v698_v4, %v680_v13  ;;  %v699_v47 = vmul.f32 %v8315_v48, %v8050_v54  ;;  %v700_v0 = vmul.f32 %v8315_v48, %v8053_v55 }
  0xaf   : > { %v746_v31 = vmax.f32 %v730_v10, 0.0  ;;  %v731_v30 = vadd.f32 %v8327_v45, %v713_v11  ;;  %v681_v32 = vadd.f32 %v665_v1, %v647_v44  ;;  %v682_v43 = vadd.f32 %v666_v27, %v648_v25 }
  0xb0   : > { %v732_v5 = vadd.f32 %v8327_v45, %v714_v23  ;;  %v649_v61 = vmul.f32 %v8304_v33, %v8089_v6  ;;  %v650_v34 = vmul.f32 %v8304_v33, %v8092_v7  ;;  %v667_v4 = vmul.f32 %v8312_v35, %v8103_v12 }
  0xb1   : > { %v761_v2 = vadd.f32 %v746_v31, %v745_v56  ;;  %v747_v36 = vmax.f32 %v731_v30, 0.0  ;;  %v715_v13 = vadd.f32 %v699_v47, %v681_v32  ;;  %v716_v55 = vadd.f32 %v700_v0, %v682_v43 }
  0xb2   : > { %v748_v10 = vmax.f32 %v732_v5, 0.0  ;;  %v668_v44 = vmul.f32 %v8312_v35, %v8110_v17  ;;  %v683_v25 = vadd.f32 %v667_v4, %v649_v61  ;;  %v701_v11 = vmul.f32 %v8315_v48, %v8113_v18 }
  0xb3   : > { %762 = vadd.xlane.f32.xlu1 %v761_v2  ;;  %v733_v1 = vadd.f32 %v8327_v45, %v715_v13  ;;  %v734_v27 = vadd.f32 %v8327_v45, %v716_v55  ;;  %v702_v23 = vmul.f32 %v8315_v48, %v8116_v19  ;;  %v651_v56 = vmul.f32 %v8304_v33, %v8187_v26 }
  0xb4   : > { %v764_v47 = vadd.f32 %v748_v10, %v747_v36  ;;  %v684_v0 = vadd.f32 %v668_v44, %v650_v34  ;;  %v717_v31 = vadd.f32 %v701_v11, %v683_v25  ;;  %v652_v30 = vmul.f32 %v8304_v33, %v8196_v37 }
  0xb5   : > { %v749_v32 = vmax.f32 %v733_v1, 0.0  ;;  %v750_v43 = vmax.f32 %v734_v27, 0.0  ;;  %v669_v5 = vmul.f32 %v8312_v35, %v8199_v40  ;;  %v670_v55 = vmul.f32 %v8312_v35, %v8202_v41 }
  0xb6   : > { %765 = vadd.xlane.f32.xlu0 %v764_v47  ;;  %v718_v61 = vadd.f32 %v702_v23, %v684_v0  ;;  %v735_v4 = vadd.f32 %v8327_v45, %v717_v31  ;;  %v703_v2 = vmul.f32 %v8315_v48, %v8211_v46  ;;  %v704_v34 = vmul.f32 %v8315_v48, %v8218_v3 }
  0xb7   : > { %v767_v36 = vadd.f32 %v750_v43, %v749_v32  ;;  %v685_v13 = vadd.f32 %v669_v5, %v651_v56  ;;  %v686_v10 = vadd.f32 %v670_v55, %v652_v30  ;;  %v653_v44 = vmul.f32 %v8304_v33, %v8163_v8  ;;  %v15023_v32 = vld [vmem:[#allocation22_spill] sm:$0xff]  ;;  %v15024_v5 = vld [vmem:[#allocation29_spill] sm:$0xff] }
  0xb8   : > { %v736_v25 = vadd.f32 %v8327_v45, %v718_v61  ;;  %v751_v11 = vmax.f32 %v735_v4, 0.0  ;;  %v654_v1 = vmul.f32 %v8304_v33, %v8166_v9  ;;  %v671_v27 = vmul.f32 %v8312_v35, %v8172_v15 }
  0xb9   : > { %768 = vadd.xlane.f32.xlu1 %v767_v36  ;;  %v719_v23 = vadd.f32 %v703_v2, %v685_v13  ;;  %v720_v47 = vadd.f32 %v704_v34, %v686_v10  ;;  %v672_v0 = vmul.f32 %v8312_v35, %v8175_v16  ;;  %v705_v56 = vmul.f32 %v8315_v48, %v8181_v24 }
  0xba   : > { %v752_v31 = vmax.f32 %v736_v25, 0.0  ;;  %v687_v30 = vadd.f32 %v671_v27, %v653_v44  ;;  %v706_v43 = vmul.f32 %v8315_v48, %v15023_v32  ;;  %v655_v55 = vmul.f32 %v8304_v33, %v15024_v5 }
  0xbb   : > { %v737_v61 = vadd.f32 %v8327_v45, %v719_v23  ;;  %v738_v4 = vadd.f32 %v8327_v45, %v720_v47  ;;  %v688_v2 = vadd.f32 %v672_v0, %v654_v1  ;;  %v656_v34 = vmul.f32 %v8304_v33, %v8264_v14 }
  0xbc   : > { %v770_v36 = vadd.f32 %v752_v31, %v751_v11  ;;  %v721_v13 = vadd.f32 %v705_v56, %v687_v30  ;;  %v673_v10 = vmul.f32 %v8312_v35, %v8267_v22  ;;  %v674_v44 = vmul.f32 %v8312_v35, %v8280_v21  ;;  %v15025_v30 = vld [vmem:[#allocation23_spill] sm:$0xff] }
  0xbd   : > { %v753_v25 = vmax.f32 %v737_v61, 0.0  ;;  %v754_v27 = vmax.f32 %v738_v4, 0.0  ;;  %v722_v5 = vadd.f32 %v706_v43, %v688_v2  ;;  %v707_v23 = vmul.f32 %v8315_v48, %v8283_v20  ;;  %v15026_v61 = vld [vmem:[#allocation24_spill] sm:$0xff] }
  0xbe   : > { %771 = vadd.xlane.f32.xlu0 %v770_v36  ;;  %v739_v11 = vadd.f32 %v8327_v45, %v721_v13  ;;  %v689_v1 = vadd.f32 %v673_v10, %v655_v55  ;;  %v690_v47 = vadd.f32 %v674_v44, %v656_v34  ;;  %v708_v0 = vmul.f32 %v8315_v48, %v8288_v60  ;;  %v15027_v55 = vld [vmem:[#allocation25_spill] sm:$0xff]  ;;  %v15028_v44 = vld [vmem:[#allocation26_spill] sm:$0xff]  ;;  %v15030_v60 = vld [vmem:[#allocation28_spill] sm:$0xff] }
  0xbf   : > { %v773_v56 = vadd.f32 %v754_v27, %v753_v25  ;;  %v740_v31 = vadd.f32 %v8327_v45, %v722_v5  ;;  %v657_v43 = vmul.f32 %v8304_v33, %v15025_v30  ;;  %v658_v4 = vmul.f32 %v8304_v33, %v15026_v61  ;;  %v15029_v25 = vld [vmem:[#allocation27_spill] sm:$0xff] }
  0xc0   : > { %v755_v2 = vmax.f32 %v739_v11, 0.0  ;;  %v723_v36 = vadd.f32 %v707_v23, %v689_v1  ;;  %v724_v13 = vadd.f32 %v708_v0, %v690_v47  ;;  %v675_v34 = vmul.f32 %v8312_v35, %v15027_v55 }
  0xc1   : > { %774 = vadd.xlane.f32.xlu1 %v773_v56  ;;  %v756_v10 = vmax.f32 %v740_v31, 0.0  ;;  %v676_v5 = vmul.f32 %v8312_v35, %v15028_v44  ;;  %v709_v27 = vmul.f32 %v8315_v48, %v15029_v25  ;;  %v710_v33 = vmul.f32 %v8315_v48, %v15030_v60 }
  0xc2   : > { %v741_v20 = vadd.f32 %v8327_v45, %v723_v36  ;;  %v742_v23 = vadd.f32 %v8327_v45, %v724_v13  ;;  %v691_v11 = vadd.f32 %v675_v34, %v657_v43  ;;  %v8437_v1 = vstv %s8400_s6  ;;  %s8685_s6 = sld [smem:[#allocation7 + $0x4]] }
  0xc3   : > { %v776_v47 = vadd.f32 %v756_v10, %v755_v2  ;;  %v692_v0 = vadd.f32 %v676_v5, %v658_v4  ;;  %v840_v56 = vmul.f32 %v8437_v1, %v8127_v28  ;;  %v841_v35 = vmul.f32 %v8437_v1, %v8130_v29 }
  0xc4   : > { %v757_v31 = vmax.f32 %v741_v20, 0.0  ;;  %v758_v21 = vmax.f32 %v742_v23, 0.0  ;;  %v725_v48 = vadd.f32 %v709_v27, %v691_v11  ;;  %v8444_v22 = vstv %s8410_s1  ;;  %s8902_s1 = sld [smem:[#allocation4 + $0x5]] }
  0xc5   : > { %777 = vadd.xlane.f32.xlu0 %v776_v47  ;;  %v726_v36 = vadd.f32 %v710_v33, %v692_v0  ;;  %v858_v43 = vmul.f32 %v8444_v22, %v8141_v38  ;;  %v859_v4 = vmul.f32 %v8444_v22, %v8144_v39  ;;  %v8451_v2 = vstv %s8414_s2  ;;  %s8921_s2 = sld [smem:[#allocation4 + $0x85]] }
  0xc6   : > { %v779_v13 = vadd.f32 %v758_v21, %v757_v31  ;;  %v743_v34 = vadd.f32 %v8327_v45, %v725_v48  ;;  %v892_v20 = vmul.f32 %v8451_v2, %v8148_v42  ;;  %v893_v10 = vmul.f32 %v8451_v2, %v8156_v59 }
  0xc7   : > { %v744_v5 = vadd.f32 %v8327_v45, %v726_v36  ;;  %v874_v27 = vadd.f32 %v858_v43, %v840_v56  ;;  %v875_v33 = vadd.f32 %v859_v4, %v841_v35  ;;  %v8460_v23 = vstv %s8424_s7  ;;  %v15031_v36 = vld [vmem:[#allocation17_spill] sm:$0xff]  ;;  %s8923_s7 = sld [smem:[#allocation4 + $0x105]] }
  0xc8   : > { %780 = vadd.xlane.f32.xlu1 %v779_v13  ;;  %v759_v11 = vmax.f32 %v743_v34, 0.0  ;;  %v838_v47 = vmul.f32 %v8437_v1, %v8041_v51  ;;  %v839_v21 = vmul.f32 %v8437_v1, %v8058_v57  ;;  %v856_v0 = vmul.f32 %v8444_v22, %v8061_v58 }
  0xc9   : > { %v760_v31 = vmax.f32 %v744_v5, 0.0  ;;  %v908_v48 = vadd.f32 %v892_v20, %v874_v27  ;;  %v909_v59 = vadd.f32 %v893_v10, %v875_v33  ;;  %v857_v45 = vmul.f32 %v8444_v22, %v8070_v62 }
  0xca   : > { %v872_v56 = vadd.f32 %v856_v0, %v838_v47  ;;  %v890_v35 = vmul.f32 %v8451_v2, %v8073_v63  ;;  %v891_v43 = vmul.f32 %v8451_v2, %v15031_v36  ;;  %v844_v4 = vmul.f32 %v8437_v1, %v8089_v6 }
  0xcb   : > { %v782_v13 = vadd.f32 %v760_v31, %v759_v11  ;;  %v926_v34 = vadd.f32 %v8460_v23, %v908_v48  ;;  %v927_v5 = vadd.f32 %v8460_v23, %v909_v59  ;;  %v873_v20 = vadd.f32 %v857_v45, %v839_v21 }
  0xcc   : > { %v906_v10 = vadd.f32 %v890_v35, %v872_v56  ;;  %v845_v27 = vmul.f32 %v8437_v1, %v8092_v7  ;;  %v862_v33 = vmul.f32 %v8444_v22, %v8103_v12  ;;  %v863_v47 = vmul.f32 %v8444_v22, %v8110_v17 }
  0xcd   : > { %783 = vadd.xlane.f32.xlu0 %v782_v13  ;;  %v942_v0 = vmax.f32 %v926_v34, 0.0  ;;  %v943_v42 = vmax.f32 %v927_v5, 0.0  ;;  %v907_v6 = vadd.f32 %v891_v43, %v873_v20  ;;  %v896_v11 = vmul.f32 %v8451_v2, %v8113_v18 }
  0xce   : > { %v924_v59 = vadd.f32 %v8460_v23, %v906_v10  ;;  %v878_v21 = vadd.f32 %v862_v33, %v844_v4  ;;  %v879_v31 = vadd.f32 %v863_v47, %v845_v27  ;;  %v897_v48 = vmul.f32 %v8451_v2, %v8116_v19 }
  0xcf   : > { %v959_v45 = vadd.f32 %v943_v42, %v942_v0  ;;  %v925_v56 = vadd.f32 %v8460_v23, %v907_v6  ;;  %v842_v35 = vmul.f32 %v8437_v1, %v8035_v49  ;;  %v843_v13 = vmul.f32 %v8437_v1, %v8038_v50  ;;  %v15032_v42 = vld [vmem:[#allocation16_spill] sm:$0xff] }
  0xd0   : > { %v940_v43 = vmax.f32 %v924_v59, 0.0  ;;  %v912_v34 = vadd.f32 %v896_v11, %v878_v21  ;;  %v913_v5 = vadd.f32 %v897_v48, %v879_v31  ;;  %v860_v20 = vmul.f32 %v8444_v22, %v8044_v52 }
  0xd1   : > { %960 = vadd.xlane.f32.xlu1 %v959_v45  ;;  %v941_v4 = vmax.f32 %v925_v56, 0.0  ;;  %v861_v10 = vmul.f32 %v8444_v22, %v8047_v53  ;;  %v894_v6 = vmul.f32 %v8451_v2, %v8050_v54  ;;  %v895_v27 = vmul.f32 %v8451_v2, %v15032_v42 }
  0xd2   : > { %v930_v33 = vadd.f32 %v8460_v23, %v912_v34  ;;  %v931_v47 = vadd.f32 %v8460_v23, %v913_v5  ;;  %v876_v0 = vadd.f32 %v860_v20, %v842_v35  ;;  %v848_v11 = vmul.f32 %v8437_v1, %v8163_v8 }
  0xd3   : > { %v956_v59 = vadd.f32 %v941_v4, %v940_v43  ;;  %v877_v21 = vadd.f32 %v861_v10, %v843_v13  ;;  %v849_v31 = vmul.f32 %v8437_v1, %v8166_v9  ;;  %v866_v48 = vmul.f32 %v8444_v22, %v8172_v15 }
  0xd4   : > { %v946_v45 = vmax.f32 %v930_v33, 0.0  ;;  %v947_v56 = vmax.f32 %v931_v47, 0.0  ;;  %v910_v19 = vadd.f32 %v894_v6, %v876_v0  ;;  %v867_v34 = vmul.f32 %v8444_v22, %v8175_v16 }
  0xd5   : > { %957 = vadd.xlane.f32.xlu0 %v956_v59  ;;  %v911_v5 = vadd.f32 %v895_v27, %v877_v21  ;;  %v882_v35 = vadd.f32 %v866_v48, %v848_v11  ;;  %v900_v20 = vmul.f32 %v8451_v2, %v8181_v24  ;;  %v901_v13 = vmul.f32 %v8451_v2, %v15023_v32 }
  0xd6   : > { %v965_v43 = vadd.f32 %v947_v56, %v946_v45  ;;  %v928_v4 = vadd.f32 %v8460_v23, %v910_v19  ;;  %v883_v10 = vadd.f32 %v867_v34, %v849_v31  ;;  %v846_v33 = vmul.f32 %v8437_v1, %v8187_v26 }
  0xd7   : > { %v929_v6 = vadd.f32 %v8460_v23, %v911_v5  ;;  %v916_v47 = vadd.f32 %v900_v20, %v882_v35  ;;  %v847_v27 = vmul.f32 %v8437_v1, %v8196_v37  ;;  %v864_v0 = vmul.f32 %v8444_v22, %v8199_v40 }
  0xd8   : > { %966 = vadd.xlane.f32.xlu1 %v965_v43  ;;  %v944_v11 = vmax.f32 %v928_v4, 0.0  ;;  %v917_v59 = vadd.f32 %v901_v13, %v883_v10  ;;  %v865_v21 = vmul.f32 %v8444_v22, %v8202_v41  ;;  %v898_v19 = vmul.f32 %v8451_v2, %v8211_v46 }
  0xd9   : > { %v945_v31 = vmax.f32 %v929_v6, 0.0  ;;  %v934_v48 = vadd.f32 %v8460_v23, %v916_v47  ;;  %v880_v45 = vadd.f32 %v864_v0, %v846_v33  ;;  %v899_v56 = vmul.f32 %v8451_v2, %v8218_v3 }
  0xda   : > { %v935_v34 = vadd.f32 %v8460_v23, %v917_v59  ;;  %v881_v5 = vadd.f32 %v865_v21, %v847_v27  ;;  %v852_v35 = vmul.f32 %v8437_v1, %v15025_v30  ;;  %v853_v20 = vmul.f32 %v8437_v1, %v15026_v61  ;;  %v15033_v21 = vld [vmem:[#allocation29_spill] sm:$0xff] }
  0xdb   : > { %v962_v13 = vadd.f32 %v945_v31, %v944_v11  ;;  %v950_v43 = vmax.f32 %v934_v48, 0.0  ;;  %v914_v4 = vadd.f32 %v898_v19, %v880_v45  ;;  %v870_v10 = vmul.f32 %v8444_v22, %v15027_v55 }
  0xdc   : > { %v951_v33 = vmax.f32 %v935_v34, 0.0  ;;  %v915_v6 = vadd.f32 %v899_v56, %v881_v5  ;;  %v871_v47 = vmul.f32 %v8444_v22, %v15028_v44  ;;  %v904_v27 = vmul.f32 %v8451_v2, %v15029_v25 }
  0xdd   : > { %963 = vadd.xlane.f32.xlu0 %v962_v13  ;;  %v932_v0 = vadd.f32 %v8460_v23, %v914_v4  ;;  %v886_v11 = vadd.f32 %v870_v10, %v852_v35  ;;  %v905_v59 = vmul.f32 %v8451_v2, %v15030_v60  ;;  %v850_v19 = vmul.f32 %v8437_v1, %v15033_v21  ;;  %v15034_v13 = vld [vmem:[#allocation30_spill] sm:$0xff]  ;;  %v15035_v4 = vld [vmem:[#allocation31_spill] sm:$0xff] }
  0xde   : > { %v971_v31 = vadd.f32 %v951_v33, %v950_v43  ;;  %v933_v48 = vadd.f32 %v8460_v23, %v915_v6  ;;  %v887_v45 = vadd.f32 %v871_v47, %v853_v20  ;;  %v851_v56 = vmul.f32 %v8437_v1, %v8264_v14  ;;  %v15036_v6 = vld [vmem:[#allocation32_spill] sm:$0xff]  ;;  %v15037_v47 = vld [vmem:[#allocation33_spill] sm:$0xff] }
  0xdf   : > { %v948_v34 = vmax.f32 %v932_v0, 0.0  ;;  %v920_v5 = vadd.f32 %v904_v27, %v886_v11  ;;  %v868_v35 = vmul.f32 %v8444_v22, %v15034_v13  ;;  %v869_v10 = vmul.f32 %v8444_v22, %v15035_v4 }
  0xe0   : > { %972 = vadd.xlane.f32.xlu1 %v971_v31  ;;  %v949_v43 = vmax.f32 %v933_v48, 0.0  ;;  %v921_v33 = vadd.f32 %v905_v59, %v887_v45  ;;  %v902_v20 = vmul.f32 %v8451_v2, %v15036_v6  ;;  %v903_v1 = vmul.f32 %v8451_v2, %v15037_v47 }
  0xe1   : > { %v938_v60 = vadd.f32 %v8460_v23, %v920_v5  ;;  %v884_v27 = vadd.f32 %v868_v35, %v850_v19  ;;  %v885_v0 = vadd.f32 %v869_v10, %v851_v56  ;;  %v8568_v11 = vstv %s8531_s17  ;;  %s8942_s17 = sld [smem:[#allocation7 + $0x5]] }
  0xe2   : > { %v968_v25 = vadd.f32 %v949_v43, %v948_v34  ;;  %v939_v22 = vadd.f32 %v8460_v23, %v921_v33  ;;  %v1033_v31 = vmul.f32 %v8568_v11, %v8041_v51  ;;  %v1034_v59 = vmul.f32 %v8568_v11, %v8058_v57 }
  0xe3   : > { %v954_v48 = vmax.f32 %v938_v60, 0.0  ;;  %v918_v45 = vadd.f32 %v902_v20, %v884_v27  ;;  %v919_v2 = vadd.f32 %v903_v1, %v885_v0  ;;  %v8576_v44 = vstv %s8540_s30  ;;  %s9072_s30 = sld [smem:[#allocation4 + $0x6]] }
  0xe4   : > { %969 = vadd.xlane.f32.xlu0 %v968_v25  ;;  %v955_v19 = vmax.f32 %v939_v22, 0.0  ;;  %v1051_v56 = vmul.f32 %v8576_v44, %v8061_v58  ;;  %v1052_v34 = vmul.f32 %v8576_v44, %v8070_v62  ;;  %v8583_v5 = vstv %s8546_s13  ;;  %v15038_v22 = vld [vmem:[#allocation20_spill] sm:$0xff]  ;;  %s9082_s13 = sld [smem:[#allocation4 + $0x86]] }
  0xe5   : > { %v936_v51 = vadd.f32 %v8460_v23, %v918_v45  ;;  %v937_v57 = vadd.f32 %v8460_v23, %v919_v2  ;;  %v1085_v60 = vmul.f32 %v8583_v5, %v8073_v63  ;;  %v1086_v35 = vmul.f32 %v8583_v5, %v15031_v36 }
  0xe6   : > { %v977_v25 = vadd.f32 %v955_v19, %v954_v48  ;;  %v1067_v10 = vadd.f32 %v1051_v56, %v1033_v31  ;;  %v1068_v43 = vadd.f32 %v1052_v34, %v1034_v59  ;;  %v8592_v33 = vstv %s8556_s10  ;;  %v15039_v59 = vld [vmem:[#allocation21_spill] sm:$0xff]  ;;  %s9086_s10 = sld [smem:[#allocation4 + $0x106]] }
  0xe7   : > { %v952_v58 = vmax.f32 %v936_v51, 0.0  ;;  %v953_v20 = vmax.f32 %v937_v57, 0.0  ;;  %v1035_v62 = vmul.f32 %v8568_v11, %v8127_v28  ;;  %v1036_v1 = vmul.f32 %v8568_v11, %v8130_v29 }
  0xe8   : > { %978 = vadd.xlane.f32.xlu1 %v977_v25  ;;  %v1101_v23 = vadd.f32 %v1085_v60, %v1067_v10  ;;  %v1102_v27 = vadd.f32 %v1086_v35, %v1068_v43  ;;  %v1053_v63 = vmul.f32 %v8576_v44, %v8141_v38  ;;  %v1054_v36 = vmul.f32 %v8576_v44, %v8144_v39  ;;  %v15040_v43 = vld [vmem:[#allocation18_spill] sm:$0xff] }
  0xe9   : > { %v974_v0 = vadd.f32 %v953_v20, %v952_v58  ;;  %v1087_v31 = vmul.f32 %v8583_v5, %v15038_v22  ;;  %v1088_v48 = vmul.f32 %v8583_v5, %v15039_v59  ;;  %v1037_v28 = vmul.f32 %v8568_v11, %v8035_v49 }
  0xea   : > { %v1119_v29 = vadd.f32 %v8592_v33, %v1101_v23  ;;  %v1120_v45 = vadd.f32 %v8592_v33, %v1102_v27  ;;  %v1069_v2 = vadd.f32 %v1053_v63, %v1035_v62  ;;  %v1070_v19 = vadd.f32 %v1054_v36, %v1036_v1  ;;  %v15041_v36 = vld [vmem:[#allocation19_spill] sm:$0xff] }
  0xeb   : > { %975 = vadd.xlane.f32.xlu0 %v974_v0  ;;  %v1038_v38 = vmul.f32 %v8568_v11, %v8038_v50  ;;  %v1055_v39 = vmul.f32 %v8576_v44, %v8044_v52  ;;  %v1056_v56 = vmul.f32 %v8576_v44, %v8047_v53  ;;  %v1089_v34 = vmul.f32 %v8583_v5, %v8050_v54 }
  0xec   : > { %v1135_v49 = vmax.f32 %v1119_v29, 0.0  ;;  %v1136_v51 = vmax.f32 %v1120_v45, 0.0  ;;  %v1103_v57 = vadd.f32 %v1087_v31, %v1069_v2  ;;  %v1104_v60 = vadd.f32 %v1088_v48, %v1070_v19 }
  0xed   : > { %v1071_v35 = vadd.f32 %v1055_v39, %v1037_v28  ;;  %v1072_v25 = vadd.f32 %v1056_v56, %v1038_v38  ;;  %v1090_v10 = vmul.f32 %v8583_v5, %v15032_v42  ;;  %v1039_v50 = vmul.f32 %v8568_v11, %v15040_v43 }
  0xee   : > { %v1151_v58 = vadd.f32 %v1136_v51, %v1135_v49  ;;  %v1121_v52 = vadd.f32 %v8592_v33, %v1103_v57  ;;  %v1122_v53 = vadd.f32 %v8592_v33, %v1104_v60  ;;  %v1040_v54 = vmul.f32 %v8568_v11, %v8092_v7 }
  0xef   : > { %v1105_v20 = vadd.f32 %v1089_v34, %v1071_v35  ;;  %v1106_v62 = vadd.f32 %v1090_v10, %v1072_v25  ;;  %v1057_v1 = vmul.f32 %v8576_v44, %v8103_v12  ;;  %v1058_v23 = vmul.f32 %v8576_v44, %v8110_v17 }
  0xf0   : > { %1152 = vadd.xlane.f32.xlu1 %v1151_v58  ;;  %v1137_v42 = vmax.f32 %v1121_v52, 0.0  ;;  %v1138_v27 = vmax.f32 %v1122_v53, 0.0  ;;  %v1091_v63 = vmul.f32 %v8583_v5, %v8113_v18  ;;  %v1092_v0 = vmul.f32 %v8583_v5, %v15041_v36  ;;  %v15042_v36 = vld [vmem:[#allocation26_spill] sm:$0xff] }
  0xf1   : > { %v1123_v22 = vadd.f32 %v8592_v33, %v1105_v20  ;;  %v1124_v7 = vadd.f32 %v8592_v33, %v1106_v62  ;;  %v1073_v31 = vadd.f32 %v1057_v1, %v1039_v50  ;;  %v1074_v59 = vadd.f32 %v1058_v23, %v1040_v54 }
  0xf2   : > { %v1154_v48 = vadd.f32 %v1138_v27, %v1137_v42  ;;  %v1041_v12 = vmul.f32 %v8568_v11, %v8187_v26  ;;  %v1042_v17 = vmul.f32 %v8568_v11, %v8196_v37  ;;  %v1059_v28 = vmul.f32 %v8576_v44, %v8199_v40 }
  0xf3   : > { %v1139_v18 = vmax.f32 %v1123_v22, 0.0  ;;  %v1140_v29 = vmax.f32 %v1124_v7, 0.0  ;;  %v1107_v45 = vadd.f32 %v1091_v63, %v1073_v31  ;;  %v1108_v2 = vadd.f32 %v1092_v0, %v1074_v59  ;;  %v15043_v31 = vld [vmem:[#allocation27_spill] sm:$0xff] }
  0xf4   : > { %1155 = vadd.xlane.f32.xlu0 %v1154_v48  ;;  %v1060_v19 = vmul.f32 %v8576_v44, %v8202_v41  ;;  %v1075_v38 = vadd.f32 %v1059_v28, %v1041_v12  ;;  %v1093_v39 = vmul.f32 %v8583_v5, %v8211_v46  ;;  %v1094_v26 = vmul.f32 %v8583_v5, %v8218_v3 }
  0xf5   : > { %v1157_v56 = vadd.f32 %v1140_v29, %v1139_v18  ;;  %v1125_v37 = vadd.f32 %v8592_v33, %v1107_v45  ;;  %v1126_v40 = vadd.f32 %v8592_v33, %v1108_v2  ;;  %v1043_v34 = vmul.f32 %v8568_v11, %v8163_v8  ;;  %v8704_v18 = vld [vmem:[%s8017_s9 + $0x30] sm:$0xff] }
  0xf6   : > { %v1076_v49 = vadd.f32 %v1060_v19, %v1042_v17  ;;  %v1109_v51 = vadd.f32 %v1093_v39, %v1075_v38  ;;  %v1044_v41 = vmul.f32 %v8568_v11, %v8166_v9  ;;  %v1061_v57 = vmul.f32 %v8576_v44, %v8172_v15  ;;  %v8709_v19 = vld [vmem:[%s8017_s9 + $0x38] sm:$0xff] }
  0xf7   : > { %1158 = vadd.xlane.f32.xlu1 %v1157_v56  ;;  %v1141_v46 = vmax.f32 %v1125_v37, 0.0  ;;  %v1142_v60 = vmax.f32 %v1126_v40, 0.0  ;;  %v1062_v3 = vmul.f32 %v8576_v44, %v8175_v16  ;;  %v1095_v35 = vmul.f32 %v8583_v5, %v8181_v24  ;;  %v8718_v56 = vld [vmem:[%s8017_s9 + $0x40] sm:$0xff]  ;;  %v8723_v40 = vld [vmem:[%s8017_s9 + $0x48] sm:$0xff] }
  0xf8   : > { %v1110_v25 = vadd.f32 %v1094_v26, %v1076_v49  ;;  %v1127_v8 = vadd.f32 %v8592_v33, %v1109_v51  ;;  %v1077_v10 = vadd.f32 %v1061_v57, %v1043_v34  ;;  %v1096_v43 = vmul.f32 %v8583_v5, %v15023_v32  ;;  %15045 = vst [vmem:[#allocation22_spill] sm:$0xff] %v8718_v56  ;;  %v8735_v57 = vld [vmem:[%s8017_s9] sm:$0xff] }
  0xf9   : > { %v1160_v9 = vadd.f32 %v1142_v60, %v1141_v46  ;;  %v1078_v15 = vadd.f32 %v1062_v3, %v1044_v41  ;;  %v1045_v50 = vmul.f32 %v8568_v11, %v15033_v21  ;;  %v1046_v16 = vmul.f32 %v8568_v11, %v8264_v14  ;;  %15046 = vst [vmem:[#allocation23_spill] sm:$0xff] %v8723_v40 }
  0xfa   : > { %v1128_v58 = vadd.f32 %v8592_v33, %v1110_v25  ;;  %v1143_v24 = vmax.f32 %v1127_v8, 0.0  ;;  %v1111_v52 = vadd.f32 %v1095_v35, %v1077_v10  ;;  %v1063_v53 = vmul.f32 %v8576_v44, %v15034_v13  ;;  %v8740_v10 = vld [vmem:[%s8017_s9 + $0x50] sm:$0xff] }
  0xfb   : > { %1161 = vadd.xlane.f32.xlu0 %v1160_v9  ;;  %v1112_v32 = vadd.f32 %v1096_v43, %v1078_v15  ;;  %v1064_v54 = vmul.f32 %v8576_v44, %v15035_v4  ;;  %v1097_v21 = vmul.f32 %v8583_v5, %v15036_v6  ;;  %v1098_v14 = vmul.f32 %v8583_v5, %v15037_v47  ;;  %v8745_v43 = vld [vmem:[%s8017_s9 + $0x58] sm:$0xff]  ;;  %v8750_v15 = vld [vmem:[%s8017_s9 + $0x8] sm:$0xff] }
  0xfc   : > { %v1144_v20 = vmax.f32 %v1128_v58, 0.0  ;;  %v1129_v62 = vadd.f32 %v8592_v33, %v1111_v52  ;;  %v1079_v1 = vadd.f32 %v1063_v53, %v1045_v50  ;;  %v1047_v13 = vmul.f32 %v8568_v11, %v15025_v30  ;;  %15047 = vst [vmem:[#allocation24_spill] sm:$0xff] %v8740_v10  ;;  %15048 = vst [vmem:[#allocation25_spill] sm:$0xff] %v8745_v43  ;;  %v8765_v53 = vld [vmem:[%s8017_s9 + $0x20] sm:$0xff] }
  0xfd   : > { %v1130_v23 = vadd.f32 %v8592_v33, %v1112_v32  ;;  %v1080_v4 = vadd.f32 %v1064_v54, %v1046_v16  ;;  %v1048_v6 = vmul.f32 %v8568_v11, %v15026_v61  ;;  %v1065_v47 = vmul.f32 %v8576_v44, %v15027_v55  ;;  %v15044_v55 = vld [vmem:[#allocation28_spill] sm:$0xff]  ;;  %15050 = vst [vmem:[#allocation16_spill] sm:$0xff] %v8765_v53  ;;  %v8770_v54 = vld [vmem:[%s8017_s9 + $0x28] sm:$0xff] }
  0xfe   : > { %v1163_v42 = vadd.f32 %v1144_v20, %v1143_v24  ;;  %v1145_v27 = vmax.f32 %v1129_v62, 0.0  ;;  %v1113_v63 = vadd.f32 %v1097_v21, %v1079_v1  ;;  %v1066_v30 = vmul.f32 %v8576_v44, %v15042_v36  ;;  %v8755_v16 = vld [vmem:[%s8017_s9 + $0x10] sm:$0xff]  ;;  %v8760_v24 = vld [vmem:[%s8017_s9 + $0x18] sm:$0xff]  ;;  %15051 = vst [vmem:[#allocation29_spill] sm:$0xff] %v8770_v54 }
  0xff   : > { %v1146_v0 = vmax.f32 %v1130_v23, 0.0  ;;  %v1114_v22 = vadd.f32 %v1098_v14, %v1080_v4  ;;  %v1081_v7 = vadd.f32 %v1065_v47, %v1047_v13  ;;  %v1099_v59 = vmul.f32 %v8583_v5, %v15043_v31  ;;  %15049 = vst [vmem:[#allocation17_spill] sm:$0xff] %v8760_v24  ;;  %v8775_v1 = vld [vmem:[%s8017_s9 + $0x90] sm:$0xff] }
 0x100   : > { %1164 = vadd.xlane.f32.xlu1 %v1163_v42  ;;  %v1131_v61 = vadd.f32 %v8592_v33, %v1113_v63  ;;  %v1082_v11 = vadd.f32 %v1066_v30, %v1048_v6  ;;  %v1100_v48 = vmul.f32 %v8583_v5, %v15044_v55  ;;  %v8700_v12 = vstv %s8663_s8  ;;  %15052 = vst [vmem:[#allocation30_spill] sm:$0xff] %v8775_v1  ;;  %v8780_v6 = vld [vmem:[%s8017_s9 + $0x98] sm:$0xff]  ;;  %v8785_v42 = vld [vmem:[%s8017_s9 + $0xa0] sm:$0xff]  ;;  %v8792_v30 = vld [vmem:[%s8017_s9 + $0xa8] sm:$0xff]  ;;  %s9096_s8 = sld [smem:[#allocation7 + $0x6]] }
 0x101   : > { %v1166_v44 = vadd.f32 %v1146_v0, %v1145_v27  ;;  %v1132_v17 = vadd.f32 %v8592_v33, %v1114_v22  ;;  %v1115_v28 = vadd.f32 %v1099_v59, %v1081_v7  ;;  %v1230_v29 = vmul.f32 %v8704_v18, %v8700_v12  ;;  %v8797_v22 = vld [vmem:[%s8017_s9 + $0xb0] sm:$0xff] }
 0x102   : > { %v1147_v45 = vmax.f32 %v1131_v61, 0.0  ;;  %v1116_v2 = vadd.f32 %v1100_v48, %v1082_v11  ;;  %v1231_v5 = vmul.f32 %v8709_v19, %v8700_v12  ;;  %v8714_v38 = vstv %s8672_s12  ;;  %15053 = vst [vmem:[#allocation31_spill] sm:$0xff] %v8797_v22  ;;  %v8802_v11 = vld [vmem:[%s8017_s9 + $0xb8] sm:$0xff]  ;;  %s9213_s12 = sld [smem:[#allocation4 + $0x7]] }
 0x103   : > { %1167 = vadd.xlane.f32.xlu0 %v1166_v44  ;;  %v1148_v39 = vmax.f32 %v1132_v17, 0.0  ;;  %v1133_v26 = vadd.f32 %v8592_v33, %v1115_v28  ;;  %v1248_v37 = vmul.f32 %v8718_v56, %v8714_v38  ;;  %v1249_v34 = vmul.f32 %v8723_v40, %v8714_v38  ;;  %15054 = vst [vmem:[#allocation32_spill] sm:$0xff] %v8802_v11  ;;  %v8807_v28 = vld [vmem:[%s8017_s9 + $0x60] sm:$0xff] }
 0x104   : > { %v1134_v49 = vadd.f32 %v8592_v33, %v1116_v2  ;;  %v8729_v51 = vstv %s8683_s28  ;;  %v8732_v41 = vstv %s8685_s6  ;;  %v1228_v46 = vmul.f32 %v8735_v57, %v8700_v12  ;;  %s9224_s28 = sld [smem:[#allocation4 + $0x87]] }
 0x105   : > { %v1169_v60 = vadd.f32 %v1148_v39, %v1147_v45  ;;  %v1149_v3 = vmax.f32 %v1133_v26, 0.0  ;;  %v1264_v35 = vadd.f32 %v1248_v37, %v1230_v29  ;;  %v1265_v25 = vadd.f32 %v1249_v34, %v1231_v5  ;;  %v8814_v39 = vld [vmem:[%s8017_s9 + $0x68] sm:$0xff]  ;;  %s9230_s6 = sld [smem:[#allocation4 + $0x107]] }
 0x106   : > { %v1150_v8 = vmax.f32 %v1134_v49, 0.0  ;;  %v1282_v33 = vmul.f32 %v8740_v10, %v8729_v51  ;;  %v1283_v9 = vmul.f32 %v8745_v43, %v8729_v51  ;;  %v1229_v50 = vmul.f32 %v8750_v15, %v8700_v12  ;;  %v8819_v49 = vld [vmem:[%s8017_s9 + $0x70] sm:$0xff] }
 0x107   : > { %1170 = vadd.xlane.f32.xlu1 %v1169_v60  ;;  %v1246_v58 = vmul.f32 %v8755_v16, %v8714_v38  ;;  %v1247_v52 = vmul.f32 %v8760_v24, %v8714_v38  ;;  %v1280_v32 = vmul.f32 %v8765_v53, %v8729_v51  ;;  %v1281_v21 = vmul.f32 %v8770_v54, %v8729_v51  ;;  %v8824_v60 = vld [vmem:[%s8017_s9 + $0x78] sm:$0xff] }
 0x108   : > { %v1172_v14 = vadd.f32 %v1150_v8, %v1149_v3  ;;  %v1298_v20 = vadd.f32 %v1282_v33, %v1264_v35  ;;  %v1299_v62 = vadd.f32 %v1283_v9, %v1265_v25  ;;  %v1234_v13 = vmul.f32 %v8775_v1, %v8700_v12  ;;  %v8830_v33 = vld [vmem:[%s8017_s9 + $0x80] sm:$0xff] }
 0x109   : > { %v1262_v23 = vadd.f32 %v1246_v58, %v1228_v46  ;;  %v1263_v4 = vadd.f32 %v1247_v52, %v1229_v50  ;;  %v1235_v47 = vmul.f32 %v8780_v6, %v8700_v12  ;;  %v1252_v27 = vmul.f32 %v8785_v42, %v8714_v38 }
 0x10a   : > { %1173 = vadd.xlane.f32.xlu0 %v1172_v14  ;;  %v1316_v63 = vadd.f32 %v8732_v41, %v1298_v20  ;;  %v1317_v36 = vadd.f32 %v8732_v41, %v1299_v62  ;;  %v1253_v0 = vmul.f32 %v8792_v30, %v8714_v38  ;;  %v1286_v7 = vmul.f32 %v8797_v22, %v8729_v51  ;;  %v8841_v62 = vld [vmem:[%s8017_s9 + $0xf0] sm:$0xff] }
 0x10b   : > { %v1296_v31 = vadd.f32 %v1280_v32, %v1262_v23  ;;  %v1297_v59 = vadd.f32 %v1281_v21, %v1263_v4  ;;  %v1268_v61 = vadd.f32 %v1252_v27, %v1234_v13  ;;  %v1287_v55 = vmul.f32 %v8802_v11, %v8729_v51  ;;  %v8836_v32 = vld [vmem:[%s8017_s9 + $0x88] sm:$0xff]  ;;  %v8846_v23 = vld [vmem:[%s8017_s9 + $0xf8] sm:$0xff] }
 0x10c   : > { %v1332_v48 = vmax.f32 %v1316_v63, 0.0  ;;  %v1333_v44 = vmax.f32 %v1317_v36, 0.0  ;;  %v1269_v17 = vadd.f32 %v1253_v0, %v1235_v47  ;;  %v1232_v29 = vmul.f32 %v8807_v28, %v8700_v12  ;;  %15055 = vst [vmem:[#allocation33_spill] sm:$0xff] %v8836_v32  ;;  %v8851_v36 = vld [vmem:[%s8017_s9 + $0x100] sm:$0xff] }
 0x10d   : > { %v1314_v45 = vadd.f32 %v8732_v41, %v1296_v31  ;;  %v1315_v2 = vadd.f32 %v8732_v41, %v1297_v59  ;;  %v1302_v5 = vadd.f32 %v1286_v7, %v1268_v61  ;;  %v1233_v26 = vmul.f32 %v8814_v39, %v8700_v12  ;;  %v8856_v7 = vld [vmem:[%s8017_s9 + $0x108] sm:$0xff]  ;;  %v8861_v59 = vld [vmem:[%s8017_s9 + $0x110] sm:$0xff] }
 0x10e   : > { %v1349_v37 = vadd.f32 %v1333_v44, %v1332_v48  ;;  %v1303_v34 = vadd.f32 %v1287_v55, %v1269_v17  ;;  %v1250_v46 = vmul.f32 %v8819_v49, %v8714_v38  ;;  %v1251_v3 = vmul.f32 %v8824_v60, %v8714_v38  ;;  %v8866_v55 = vld [vmem:[%s8017_s9 + $0x118] sm:$0xff]  ;;  %v8871_v44 = vld [vmem:[%s8017_s9 + $0xc0] sm:$0xff] }
 0x10f   : > { %v1330_v35 = vmax.f32 %v1314_v45, 0.0  ;;  %v1331_v25 = vmax.f32 %v1315_v2, 0.0  ;;  %v1320_v8 = vadd.f32 %v8732_v41, %v1302_v5  ;;  %v1284_v9 = vmul.f32 %v8830_v33, %v8729_v51 }
 0x110   : > { %1350 = vadd.xlane.f32.xlu1 %v1349_v37  ;;  %v1321_v50 = vadd.f32 %v8732_v41, %v1303_v34  ;;  %v1266_v58 = vadd.f32 %v1250_v46, %v1232_v29  ;;  %v1267_v52 = vadd.f32 %v1251_v3, %v1233_v26  ;;  %v1285_v21 = vmul.f32 %v8836_v32, %v8729_v51  ;;  %v8878_v37 = vld [vmem:[%s8017_s9 + $0xc8] sm:$0xff]  ;;  %v8883_v46 = vld [vmem:[%s8017_s9 + $0xd0] sm:$0xff] }
 0x111   : > { %v1346_v14 = vadd.f32 %v1331_v25, %v1330_v35  ;;  %v1336_v20 = vmax.f32 %v1320_v8, 0.0  ;;  %v1238_v13 = vmul.f32 %v8841_v62, %v8700_v12  ;;  %v1239_v4 = vmul.f32 %v8846_v23, %v8700_v12  ;;  %v8888_v35 = vld [vmem:[%s8017_s9 + $0xd8] sm:$0xff] }
 0x112   : > { %v1337_v47 = vmax.f32 %v1321_v50, 0.0  ;;  %v1300_v27 = vadd.f32 %v1284_v9, %v1266_v58  ;;  %v1301_v63 = vadd.f32 %v1285_v21, %v1267_v52  ;;  %v1256_v0 = vmul.f32 %v8851_v36, %v8714_v38  ;;  %v8893_v58 = vld [vmem:[%s8017_s9 + $0xe0] sm:$0xff] }
 0x113   : > { %1347 = vadd.xlane.f32.xlu0 %v1346_v14  ;;  %v1257_v31 = vmul.f32 %v8856_v7, %v8714_v38  ;;  %v1290_v61 = vmul.f32 %v8861_v59, %v8729_v51  ;;  %v1291_v48 = vmul.f32 %v8866_v55, %v8729_v51  ;;  %v1236_v17 = vmul.f32 %v8871_v44, %v8700_v12 }
 0x114   : > { %v1355_v29 = vadd.f32 %v1337_v47, %v1336_v20  ;;  %v1318_v45 = vadd.f32 %v8732_v41, %v1300_v27  ;;  %v1319_v2 = vadd.f32 %v8732_v41, %v1301_v63  ;;  %v1272_v5 = vadd.f32 %v1256_v0, %v1238_v13  ;;  %v8898_v13 = vld [vmem:[%s8017_s9 + $0xe8] sm:$0xff]  ;;  %v8906_v63 = vld [vmem:[%s8017_s9 + $0x150] sm:$0xff] }
 0x115   : > { %v1273_v26 = vadd.f32 %v1257_v31, %v1239_v4  ;;  %v1237_v34 = vmul.f32 %v8878_v37, %v8700_v12  ;;  %v1254_v3 = vmul.f32 %v8883_v46, %v8714_v38  ;;  %v1255_v25 = vmul.f32 %v8888_v35, %v8714_v38  ;;  %15056 = vst [vmem:[#allocation20_spill] sm:$0xff] %v8906_v63  ;;  %v8911_v31 = vld [vmem:[%s8017_s9 + $0x158] sm:$0xff] }
 0x116   : > { %1356 = vadd.xlane.f32.xlu1 %v1355_v29  ;;  %v1334_v8 = vmax.f32 %v1318_v45, 0.0  ;;  %v1335_v9 = vmax.f32 %v1319_v2, 0.0  ;;  %v1306_v50 = vadd.f32 %v1290_v61, %v1272_v5  ;;  %v1288_v52 = vmul.f32 %v8893_v58, %v8729_v51  ;;  %15057 = vst [vmem:[#allocation21_spill] sm:$0xff] %v8911_v31  ;;  %v8917_v45 = vld [vmem:[%s8017_s9 + $0x160] sm:$0xff] }
 0x117   : > { %v1307_v21 = vadd.f32 %v1291_v48, %v1273_v26  ;;  %v1270_v14 = vadd.f32 %v1254_v3, %v1236_v17  ;;  %v1271_v20 = vadd.f32 %v1255_v25, %v1237_v34  ;;  %v1289_v4 = vmul.f32 %v8898_v13, %v8729_v51  ;;  %15058 = vst [vmem:[#allocation18_spill] sm:$0xff] %v8917_v45  ;;  %v8926_v26 = vld [vmem:[%s8017_s9 + $0x168] sm:$0xff]  ;;  %v8931_v3 = vld [vmem:[%s8017_s9 + $0x170] sm:$0xff] }
 0x118   : > { %v1352_v47 = vadd.f32 %v1335_v9, %v1334_v8  ;;  %v1324_v27 = vadd.f32 %v8732_v41, %v1306_v50  ;;  %v1242_v0 = vmul.f32 %v8906_v63, %v8700_v12  ;;  %v1243_v61 = vmul.f32 %v8911_v31, %v8700_v12  ;;  %15059 = vst [vmem:[#allocation19_spill] sm:$0xff] %v8926_v26  ;;  %v8936_v8 = vld [vmem:[%s8017_s9 + $0x178] sm:$0xff] }
 0x119   : > { %v1325_v48 = vadd.f32 %v8732_v41, %v1307_v21  ;;  %v1304_v17 = vadd.f32 %v1288_v52, %v1270_v14  ;;  %v1305_v29 = vadd.f32 %v1289_v4, %v1271_v20  ;;  %v1260_v2 = vmul.f32 %v8917_v45, %v8714_v38  ;;  %15060 = vst [vmem:[#allocation26_spill] sm:$0xff] %v8931_v3  ;;  %v8945_v4 = vld [vmem:[%s8017_s9 + $0x120] sm:$0xff] }
 0x11a   : > { %1353 = vadd.xlane.f32.xlu0 %v1352_v47  ;;  %v1340_v5 = vmax.f32 %v1324_v27, 0.0  ;;  %v1261_v34 = vmul.f32 %v8926_v26, %v8714_v38  ;;  %v1294_v25 = vmul.f32 %v8931_v3, %v8729_v51  ;;  %15061 = vst [vmem:[#allocation27_spill] sm:$0xff] %v8936_v8  ;;  %v1295_v9 = vmul.f32 %v8936_v8, %v8729_v51  ;;  %v8950_v27 = vld [vmem:[%s8017_s9 + $0x128] sm:$0xff]  ;;  %v8960_v3 = vld [vmem:[%s8017_s9 + $0x138] sm:$0xff] }
 0x11b   : > { %v1341_v50 = vmax.f32 %v1325_v48, 0.0  ;;  %v1322_v52 = vadd.f32 %v8732_v41, %v1304_v17  ;;  %v1323_v21 = vadd.f32 %v8732_v41, %v1305_v29  ;;  %v1276_v14 = vadd.f32 %v1260_v2, %v1242_v0  ;;  %v8955_v17 = vld [vmem:[%s8017_s9 + $0x130] sm:$0xff]  ;;  %15062 = vst [vmem:[#allocation28_spill] sm:$0xff] %v8960_v3 }
 0x11c   : > { %v1277_v20 = vadd.f32 %v1261_v34, %v1243_v61  ;;  %v1240_v47 = vmul.f32 %v8945_v4, %v8700_v12  ;;  %v1241_v48 = vmul.f32 %v8950_v27, %v8700_v12  ;;  %v1258_v0 = vmul.f32 %v8955_v17, %v8714_v38  ;;  %v8965_v12 = vld [vmem:[%s8017_s9 + $0x140] sm:$0xff] }
 0x11d   : > { %v1361_v29 = vadd.f32 %v1341_v50, %v1340_v5  ;;  %v1338_v2 = vmax.f32 %v1322_v52, 0.0  ;;  %v1339_v61 = vmax.f32 %v1323_v21, 0.0  ;;  %v1310_v34 = vadd.f32 %v1294_v25, %v1276_v14  ;;  %15063 = vst [vmem:[#allocation34_spill] sm:$0xff] %v8965_v12  ;;  %v8971_v50 = vld [vmem:[%s8017_s9 + $0x148] sm:$0xff] }
 0x11e   : > { %v1311_v8 = vadd.f32 %v1295_v9, %v1277_v20  ;;  %v1259_v26 = vmul.f32 %v8960_v3, %v8714_v38  ;;  %v1274_v45 = vadd.f32 %v1258_v0, %v1240_v47  ;;  %v1292_v31 = vmul.f32 %v8965_v12, %v8729_v51  ;;  %15064 = vst [vmem:[#allocation35_spill] sm:$0xff] %v8971_v50 }
 0x11f   : > { %1362 = vadd.xlane.f32.xlu1 %v1361_v29  ;;  %v1358_v63 = vadd.f32 %v1339_v61, %v1338_v2  ;;  %v1328_v5 = vadd.f32 %v8732_v41, %v1310_v34  ;;  %v1293_v25 = vmul.f32 %v8971_v50, %v8729_v51  ;;  %v8976_v9 = vstv %s8902_s1  ;;  %s9242_s1 = sld [smem:[#allocation7 + $0x7]] }
 0x120   : > { %v1329_v38 = vadd.f32 %v8732_v41, %v1311_v8  ;;  %v1275_v52 = vadd.f32 %v1259_v26, %v1241_v48  ;;  %v1308_v21 = vadd.f32 %v1292_v31, %v1274_v45  ;;  %v1423_v14 = vmul.f32 %v8735_v57, %v8976_v9 }
 0x121   : > { %1359 = vadd.xlane.f32.xlu0 %v1358_v63  ;;  %v1344_v20 = vmax.f32 %v1328_v5, 0.0  ;;  %v1424_v47 = vmul.f32 %v8750_v15, %v8976_v9  ;;  %v8984_v0 = vstv %s8921_s2  ;;  %v8987_v29 = vstv %s8923_s7  ;;  %s9367_s2 = sld [smem:[#allocation4 + $0x8]] }
 0x122   : > { %v1345_v51 = vmax.f32 %v1329_v38, 0.0  ;;  %v1309_v2 = vadd.f32 %v1293_v25, %v1275_v52  ;;  %v1326_v61 = vadd.f32 %v8732_v41, %v1308_v21  ;;  %v1441_v26 = vmul.f32 %v8755_v16, %v8984_v0  ;;  %s9376_s7 = sld [smem:[#allocation4 + $0x88]] }
 0x123   : > { %v1442_v31 = vmul.f32 %v8760_v24, %v8984_v0  ;;  %v1475_v63 = vmul.f32 %v8765_v53, %v8987_v29  ;;  %v1476_v45 = vmul.f32 %v8770_v54, %v8987_v29  ;;  %v8999_v8 = vstv %s8942_s17  ;;  %s9389_s17 = sld [smem:[#allocation4 + $0x108]] }
 0x124   : > { %v1367_v48 = vadd.f32 %v1345_v51, %v1344_v20  ;;  %v1327_v34 = vadd.f32 %v8732_v41, %v1309_v2  ;;  %v1342_v5 = vmax.f32 %v1326_v61, 0.0  ;;  %v1457_v25 = vadd.f32 %v1441_v26, %v1423_v14 }
 0x125   : > { %v1458_v38 = vadd.f32 %v1442_v31, %v1424_v47  ;;  %v1425_v52 = vmul.f32 %v8704_v18, %v8976_v9  ;;  %v1426_v21 = vmul.f32 %v8709_v19, %v8976_v9  ;;  %v1443_v53 = vmul.f32 %v8718_v56, %v8984_v0 }
 0x126   : > { %1368 = vadd.xlane.f32.xlu1 %v1367_v48  ;;  %v1343_v24 = vmax.f32 %v1327_v34, 0.0  ;;  %v1491_v54 = vadd.f32 %v1475_v63, %v1457_v25  ;;  %v1444_v20 = vmul.f32 %v8723_v40, %v8984_v0  ;;  %v1477_v41 = vmul.f32 %v8740_v10, %v8987_v29 }
 0x127   : > { %v1492_v14 = vadd.f32 %v1476_v45, %v1458_v38  ;;  %v1459_v47 = vadd.f32 %v1443_v53, %v1425_v52  ;;  %v1478_v51 = vmul.f32 %v8745_v43, %v8987_v29  ;;  %v1427_v2 = vmul.f32 %v8807_v28, %v8976_v9 }
 0x128   : > { %v1364_v61 = vadd.f32 %v1343_v24, %v1342_v5  ;;  %v1509_v26 = vadd.f32 %v8999_v8, %v1491_v54  ;;  %v1460_v31 = vadd.f32 %v1444_v20, %v1426_v21  ;;  %v1428_v63 = vmul.f32 %v8814_v39, %v8976_v9 }
 0x129   : > { %v1510_v48 = vadd.f32 %v8999_v8, %v1492_v14  ;;  %v1493_v34 = vadd.f32 %v1477_v41, %v1459_v47  ;;  %v1445_v45 = vmul.f32 %v8819_v49, %v8984_v0  ;;  %v1446_v53 = vmul.f32 %v8824_v60, %v8984_v0 }
 0x12a   : > { %1365 = vadd.xlane.f32.xlu0 %v1364_v61  ;;  %v1525_v25 = vmax.f32 %v1509_v26, 0.0  ;;  %v1494_v38 = vadd.f32 %v1478_v51, %v1460_v31  ;;  %v1479_v24 = vmul.f32 %v8830_v33, %v8987_v29  ;;  %v1480_v54 = vmul.f32 %v8836_v32, %v8987_v29 }
 0x12b   : > { %v1526_v5 = vmax.f32 %v1510_v48, 0.0  ;;  %v1511_v52 = vadd.f32 %v8999_v8, %v1493_v34  ;;  %v1461_v21 = vadd.f32 %v1445_v45, %v1427_v2  ;;  %v1462_v20 = vadd.f32 %v1446_v53, %v1428_v63 }
 0x12c   : > { %v1512_v41 = vadd.f32 %v8999_v8, %v1494_v38  ;;  %v1429_v14 = vmul.f32 %v8775_v1, %v8976_v9  ;;  %v1430_v47 = vmul.f32 %v8780_v6, %v8976_v9  ;;  %v1447_v51 = vmul.f32 %v8785_v42, %v8984_v0 }
 0x12d   : > { %v1541_v61 = vadd.f32 %v1526_v5, %v1525_v25  ;;  %v1527_v26 = vmax.f32 %v1511_v52, 0.0  ;;  %v1495_v31 = vadd.f32 %v1479_v24, %v1461_v21  ;;  %v1496_v32 = vadd.f32 %v1480_v54, %v1462_v20 }
 0x12e   : > { %v1528_v48 = vmax.f32 %v1512_v41, 0.0  ;;  %v1448_v2 = vmul.f32 %v8792_v30, %v8984_v0  ;;  %v1463_v63 = vadd.f32 %v1447_v51, %v1429_v14  ;;  %v1481_v34 = vmul.f32 %v8797_v22, %v8987_v29 }
 0x12f   : > { %1542 = vadd.xlane.f32.xlu1 %v1541_v61  ;;  %v1513_v45 = vadd.f32 %v8999_v8, %v1495_v31  ;;  %v1514_v53 = vadd.f32 %v8999_v8, %v1496_v32  ;;  %v1482_v38 = vmul.f32 %v8802_v11, %v8987_v29  ;;  %v1431_v25 = vmul.f32 %v8871_v44, %v8976_v9 }
 0x130   : > { %v1544_v24 = vadd.f32 %v1528_v48, %v1527_v26  ;;  %v1464_v54 = vadd.f32 %v1448_v2, %v1430_v47  ;;  %v1497_v5 = vadd.f32 %v1481_v34, %v1463_v63  ;;  %v1432_v52 = vmul.f32 %v8878_v37, %v8976_v9 }
 0x131   : > { %v1529_v21 = vmax.f32 %v1513_v45, 0.0  ;;  %v1530_v20 = vmax.f32 %v1514_v53, 0.0  ;;  %v1449_v41 = vmul.f32 %v8883_v46, %v8984_v0  ;;  %v1450_v32 = vmul.f32 %v8888_v35, %v8984_v0 }
 0x132   : > { %1545 = vadd.xlane.f32.xlu0 %v1544_v24  ;;  %v1498_v14 = vadd.f32 %v1482_v38, %v1464_v54  ;;  %v1515_v51 = vadd.f32 %v8999_v8, %v1497_v5  ;;  %v1483_v61 = vmul.f32 %v8893_v58, %v8987_v29  ;;  %v1484_v47 = vmul.f32 %v8898_v13, %v8987_v29 }
 0x133   : > { %v1547_v26 = vadd.f32 %v1530_v20, %v1529_v21  ;;  %v1465_v31 = vadd.f32 %v1449_v41, %v1431_v25  ;;  %v1466_v48 = vadd.f32 %v1450_v32, %v1432_v52  ;;  %v1433_v2 = vmul.f32 %v8841_v62, %v8976_v9 }
 0x134   : > { %v1516_v63 = vadd.f32 %v8999_v8, %v1498_v14  ;;  %v1531_v34 = vmax.f32 %v1515_v51, 0.0  ;;  %v1434_v45 = vmul.f32 %v8846_v23, %v8976_v9  ;;  %v1451_v53 = vmul.f32 %v8851_v36, %v8984_v0 }
 0x135   : > { %1548 = vadd.xlane.f32.xlu1 %v1547_v26  ;;  %v1499_v38 = vadd.f32 %v1483_v61, %v1465_v31  ;;  %v1500_v24 = vadd.f32 %v1484_v47, %v1466_v48  ;;  %v1452_v54 = vmul.f32 %v8856_v7, %v8984_v0  ;;  %v1485_v25 = vmul.f32 %v8861_v59, %v8987_v29 }
 0x136   : > { %v1532_v5 = vmax.f32 %v1516_v63, 0.0  ;;  %v1467_v52 = vadd.f32 %v1451_v53, %v1433_v2  ;;  %v1486_v21 = vmul.f32 %v8866_v55, %v8987_v29  ;;  %v1435_v20 = vmul.f32 %v8945_v4, %v8976_v9 }
 0x137   : > { %v1517_v41 = vadd.f32 %v8999_v8, %v1499_v38  ;;  %v1518_v32 = vadd.f32 %v8999_v8, %v1500_v24  ;;  %v1468_v14 = vadd.f32 %v1452_v54, %v1434_v45  ;;  %v1436_v51 = vmul.f32 %v8950_v27, %v8976_v9 }
 0x138   : > { %v1550_v61 = vadd.f32 %v1532_v5, %v1531_v34  ;;  %v1501_v47 = vadd.f32 %v1485_v25, %v1467_v52  ;;  %v1453_v26 = vmul.f32 %v8955_v17, %v8984_v0  ;;  %v1454_v31 = vmul.f32 %v8960_v3, %v8984_v0  ;;  %v15065_v5 = vld [vmem:[#allocation20_spill] sm:$0xff] }
 0x139   : > { %v1533_v48 = vmax.f32 %v1517_v41, 0.0  ;;  %v1534_v2 = vmax.f32 %v1518_v32, 0.0  ;;  %v1502_v63 = vadd.f32 %v1486_v21, %v1468_v14  ;;  %v1487_v53 = vmul.f32 %v8965_v12, %v8987_v29  ;;  %v15066_v21 = vld [vmem:[#allocation21_spill] sm:$0xff] }
 0x13a   : > { %1551 = vadd.xlane.f32.xlu0 %v1550_v61  ;;  %v1519_v34 = vadd.f32 %v8999_v8, %v1501_v47  ;;  %v1469_v45 = vadd.f32 %v1453_v26, %v1435_v20  ;;  %v1470_v38 = vadd.f32 %v1454_v31, %v1436_v51  ;;  %v1488_v24 = vmul.f32 %v8971_v50, %v8987_v29  ;;  %v15067_v20 = vld [vmem:[#allocation18_spill] sm:$0xff]  ;;  %v15068_v26 = vld [vmem:[#allocation19_spill] sm:$0xff] }
 0x13b   : > { %v1553_v54 = vadd.f32 %v1534_v2, %v1533_v48  ;;  %v1520_v25 = vadd.f32 %v8999_v8, %v1502_v63  ;;  %v1437_v52 = vmul.f32 %v15065_v5, %v8976_v9  ;;  %v1438_v41 = vmul.f32 %v15066_v21, %v8976_v9  ;;  %v15069_v48 = vld [vmem:[#allocation26_spill] sm:$0xff]  ;;  %v15070_v63 = vld [vmem:[#allocation27_spill] sm:$0xff] }
 0x13c   : > { %v1535_v32 = vmax.f32 %v1519_v34, 0.0  ;;  %v1503_v14 = vadd.f32 %v1487_v53, %v1469_v45  ;;  %v1504_v61 = vadd.f32 %v1488_v24, %v1470_v38  ;;  %v1455_v51 = vmul.f32 %v15067_v20, %v8984_v0 }
 0x13d   : > { %1554 = vadd.xlane.f32.xlu1 %v1553_v54  ;;  %v1536_v47 = vmax.f32 %v1520_v25, 0.0  ;;  %v1456_v31 = vmul.f32 %v15068_v26, %v8984_v0  ;;  %v1489_v2 = vmul.f32 %v15069_v48, %v8987_v29  ;;  %v1490_v9 = vmul.f32 %v15070_v63, %v8987_v29 }
 0x13e   : > { %v1521_v50 = vadd.f32 %v8999_v8, %v1503_v14  ;;  %v1522_v53 = vadd.f32 %v8999_v8, %v1504_v61  ;;  %v1471_v34 = vadd.f32 %v1455_v51, %v1437_v52  ;;  %v9109_v45 = vstv %s9072_s30  ;;  %s9391_s30 = sld [smem:[#allocation7 + $0x8]] }
 0x13f   : > { %v1556_v38 = vadd.f32 %v1536_v47, %v1535_v32  ;;  %v1472_v24 = vadd.f32 %v1456_v31, %v1438_v41  ;;  %v1620_v54 = vmul.f32 %v8704_v18, %v9109_v45  ;;  %v1621_v0 = vmul.f32 %v8709_v19, %v9109_v45 }
 0x140   : > { %v1537_v25 = vmax.f32 %v1521_v50, 0.0  ;;  %v1538_v12 = vmax.f32 %v1522_v53, 0.0  ;;  %v1505_v29 = vadd.f32 %v1489_v2, %v1471_v34  ;;  %v9116_v3 = vstv %s9082_s13  ;;  %s9674_s13 = sld [smem:[#allocation4 + $0x9]] }
 0x141   : > { %1557 = vadd.xlane.f32.xlu0 %v1556_v38  ;;  %v1506_v14 = vadd.f32 %v1490_v9, %v1472_v24  ;;  %v1638_v52 = vmul.f32 %v8718_v56, %v9116_v3  ;;  %v1639_v41 = vmul.f32 %v8723_v40, %v9116_v3  ;;  %v9123_v32 = vstv %s9086_s10  ;;  %s9694_s10 = sld [smem:[#allocation4 + $0x89]] }
 0x142   : > { %v1559_v61 = vadd.f32 %v1538_v12, %v1537_v25  ;;  %v1523_v51 = vadd.f32 %v8999_v8, %v1505_v29  ;;  %v1672_v50 = vmul.f32 %v8740_v10, %v9123_v32  ;;  %v1673_v47 = vmul.f32 %v8745_v43, %v9123_v32  ;;  %v9148_v10 = vpop.xlane.xlu1 %563 }
 0x143   : > { %v1524_v31 = vadd.f32 %v8999_v8, %v1506_v14  ;;  %v1654_v2 = vadd.f32 %v1638_v52, %v1620_v54  ;;  %v1655_v9 = vadd.f32 %v1639_v41, %v1621_v0  ;;  %v9132_v53 = vstv %s9096_s8  ;;  %v15071_v8 = vld [vmem:[#allocation17_spill] sm:$0xff]  ;;  %v15072_v14 = vld [vmem:[#allocation16_spill] sm:$0xff]  ;;  %15074 = vst [vmem:[#allocation20_spill] sm:$0xff] %v9148_v10  ;;  %s9696_s8 = sld [smem:[#allocation4 + $0x109]] }
 0x144   : > { %1560 = vadd.xlane.f32.xlu1 %v1559_v61  ;;  %v1539_v34 = vmax.f32 %v1523_v51, 0.0  ;;  %v1618_v38 = vmul.f32 %v8735_v57, %v9109_v45  ;;  %v1619_v12 = vmul.f32 %v8750_v15, %v9109_v45  ;;  %v1636_v24 = vmul.f32 %v8755_v16, %v9116_v3  ;;  %v15073_v41 = vld [vmem:[#allocation29_spill] sm:$0xff] }
 0x145   : > { %v1540_v25 = vmax.f32 %v1524_v31, 0.0  ;;  %v1688_v29 = vadd.f32 %v1672_v50, %v1654_v2  ;;  %v1689_v43 = vadd.f32 %v1673_v47, %v1655_v9  ;;  %v1637_v54 = vmul.f32 %v15071_v8, %v9116_v3 }
 0x146   : > { %v1652_v0 = vadd.f32 %v1636_v24, %v1618_v38  ;;  %v1670_v52 = vmul.f32 %v15072_v14, %v9123_v32  ;;  %v1671_v61 = vmul.f32 %v15073_v41, %v9123_v32  ;;  %v1624_v51 = vmul.f32 %v8775_v1, %v9109_v45 }
 0x147   : > { %v1562_v40 = vadd.f32 %v1540_v25, %v1539_v34  ;;  %v1706_v31 = vadd.f32 %v9132_v53, %v1688_v29  ;;  %v1707_v50 = vadd.f32 %v9132_v53, %v1689_v43  ;;  %v1653_v47 = vadd.f32 %v1637_v54, %v1619_v12  ;;  %v9160_v25 = vpop.xlane.xlu0 %557 }
 0x148   : > { %v1686_v2 = vadd.f32 %v1670_v52, %v1652_v0  ;;  %v1625_v9 = vmul.f32 %v8780_v6, %v9109_v45  ;;  %v1642_v38 = vmul.f32 %v8785_v42, %v9116_v3  ;;  %v1643_v24 = vmul.f32 %v8792_v30, %v9116_v3  ;;  %15075 = vst [vmem:[#allocation21_spill] sm:$0xff] %v9160_v25 }
 0x149   : > { %1563 = vadd.xlane.f32.xlu0 %v1562_v40  ;;  %v1722_v1 = vmax.f32 %v1706_v31, 0.0  ;;  %v1723_v56 = vmax.f32 %v1707_v50, 0.0  ;;  %v1687_v10 = vadd.f32 %v1671_v61, %v1653_v47  ;;  %v1676_v34 = vmul.f32 %v8797_v22, %v9123_v32 }
 0x14a   : > { %v1704_v43 = vadd.f32 %v9132_v53, %v1686_v2  ;;  %v1658_v12 = vadd.f32 %v1642_v38, %v1624_v51  ;;  %v1659_v29 = vadd.f32 %v1643_v24, %v1625_v9  ;;  %v1677_v54 = vmul.f32 %v8802_v11, %v9123_v32  ;;  %v9172_v51 = vpop.xlane.xlu1 %566 }
 0x14b   : > { %v1739_v0 = vadd.f32 %v1723_v56, %v1722_v1  ;;  %v1705_v52 = vadd.f32 %v9132_v53, %v1687_v10  ;;  %v1622_v40 = vmul.f32 %v8807_v28, %v9109_v45  ;;  %v1623_v61 = vmul.f32 %v8814_v39, %v9109_v45  ;;  %15076 = vst [vmem:[#allocation18_spill] sm:$0xff] %v9172_v51  ;;  %v15077_v1 = vld [vmem:[#allocation33_spill] sm:$0xff]  ;;  %v9188_v51 = vpop.xlane.xlu0 %560 }
 0x14c   : > { %v1720_v31 = vmax.f32 %v1704_v43, 0.0  ;;  %v1692_v50 = vadd.f32 %v1676_v34, %v1658_v12  ;;  %v1693_v47 = vadd.f32 %v1677_v54, %v1659_v29  ;;  %v1640_v2 = vmul.f32 %v8819_v49, %v9116_v3 }
 0x14d   : > { %1740 = vadd.xlane.f32.xlu1 %v1739_v0  ;;  %v1721_v9 = vmax.f32 %v1705_v52, 0.0  ;;  %v1641_v56 = vmul.f32 %v8824_v60, %v9116_v3  ;;  %v1674_v10 = vmul.f32 %v8830_v33, %v9123_v32  ;;  %v1675_v38 = vmul.f32 %v15077_v1, %v9123_v32 }
 0x14e   : > { %v1710_v24 = vadd.f32 %v9132_v53, %v1692_v50  ;;  %v1711_v34 = vadd.f32 %v9132_v53, %v1693_v47  ;;  %v1656_v43 = vadd.f32 %v1640_v2, %v1622_v40  ;;  %v1628_v12 = vmul.f32 %v8841_v62, %v9109_v45 }
 0x14f   : > { %v1736_v29 = vadd.f32 %v1721_v9, %v1720_v31  ;;  %v1657_v54 = vadd.f32 %v1641_v56, %v1623_v61  ;;  %v1629_v0 = vmul.f32 %v8846_v23, %v9109_v45  ;;  %v1646_v52 = vmul.f32 %v8851_v36, %v9116_v3 }
 0x150   : > { %v1726_v25 = vmax.f32 %v1710_v24, 0.0  ;;  %v1727_v11 = vmax.f32 %v1711_v34, 0.0  ;;  %v1690_v22 = vadd.f32 %v1674_v10, %v1656_v43  ;;  %v1647_v50 = vmul.f32 %v8856_v7, %v9116_v3  ;;  %v9199_v10 = vpop.xlane.xlu1 %572 }
 0x151   : > { %1737 = vadd.xlane.f32.xlu0 %v1736_v29  ;;  %v1691_v40 = vadd.f32 %v1675_v38, %v1657_v54  ;;  %v1662_v47 = vadd.f32 %v1646_v52, %v1628_v12  ;;  %v1680_v61 = vmul.f32 %v8861_v59, %v9123_v32  ;;  %v1681_v31 = vmul.f32 %v8866_v55, %v9123_v32 }
 0x152   : > { %v1745_v2 = vadd.f32 %v1727_v11, %v1726_v25  ;;  %v1708_v9 = vadd.f32 %v9132_v53, %v1690_v22  ;;  %v1663_v56 = vadd.f32 %v1647_v50, %v1629_v0  ;;  %v1626_v24 = vmul.f32 %v8871_v44, %v9109_v45  ;;  %15078 = vst [vmem:[#allocation19_spill] sm:$0xff] %v9199_v10 }
 0x153   : > { %v1709_v34 = vadd.f32 %v9132_v53, %v1691_v40  ;;  %v1696_v43 = vadd.f32 %v1680_v61, %v1662_v47  ;;  %v1627_v38 = vmul.f32 %v8878_v37, %v9109_v45  ;;  %v1644_v12 = vmul.f32 %v8883_v46, %v9116_v3  ;;  %v9215_v40 = vpop.xlane.xlu0 %569 }
 0x154   : > { %1746 = vadd.xlane.f32.xlu1 %v1745_v2  ;;  %v1724_v29 = vmax.f32 %v1708_v9, 0.0  ;;  %v1697_v11 = vadd.f32 %v1681_v31, %v1663_v56  ;;  %v1645_v22 = vmul.f32 %v8888_v35, %v9116_v3  ;;  %v1678_v25 = vmul.f32 %v8893_v58, %v9123_v32  ;;  %15079 = vst [vmem:[#allocation26_spill] sm:$0xff] %v9215_v40 }
 0x155   : > { %v1725_v54 = vmax.f32 %v1709_v34, 0.0  ;;  %v1714_v0 = vadd.f32 %v9132_v53, %v1696_v43  ;;  %v1660_v52 = vadd.f32 %v1644_v12, %v1626_v24  ;;  %v1679_v50 = vmul.f32 %v8898_v13, %v9123_v32 }
 0x156   : > { %v1715_v47 = vadd.f32 %v9132_v53, %v1697_v11  ;;  %v1661_v61 = vadd.f32 %v1645_v22, %v1627_v38  ;;  %v1632_v31 = vmul.f32 %v15065_v5, %v9109_v45  ;;  %v1633_v2 = vmul.f32 %v15066_v21, %v9109_v45  ;;  %v9232_v22 = vpop.xlane.xlu1 %578 }
 0x157   : > { %v1742_v9 = vadd.f32 %v1725_v54, %v1724_v29  ;;  %v1730_v56 = vmax.f32 %v1714_v0, 0.0  ;;  %v1694_v34 = vadd.f32 %v1678_v25, %v1660_v52  ;;  %v1650_v24 = vmul.f32 %v15067_v20, %v9116_v3  ;;  %15080 = vst [vmem:[#allocation27_spill] sm:$0xff] %v9232_v22  ;;  %v9248_v40 = vpop.xlane.xlu0 %575 }
 0x158   : > { %v1731_v43 = vmax.f32 %v1715_v47, 0.0  ;;  %v1695_v12 = vadd.f32 %v1679_v50, %v1661_v61  ;;  %v1651_v11 = vmul.f32 %v15068_v26, %v9116_v3  ;;  %v1684_v38 = vmul.f32 %v15069_v48, %v9123_v32  ;;  %15082 = vst [vmem:[#allocation17_spill] sm:$0xff] %v9248_v40 }
 0x159   : > { %1743 = vadd.xlane.f32.xlu0 %v1742_v9  ;;  %v1712_v29 = vadd.f32 %v9132_v53, %v1694_v34  ;;  %v1666_v25 = vadd.f32 %v1650_v24, %v1632_v31  ;;  %v1685_v54 = vmul.f32 %v15070_v63, %v9123_v32  ;;  %v1630_v0 = vmul.f32 %v8945_v4, %v9109_v45  ;;  %v15081_v34 = vld [vmem:[#allocation28_spill] sm:$0xff] }
 0x15a   : > { %v1751_v52 = vadd.f32 %v1731_v43, %v1730_v56  ;;  %v1713_v50 = vadd.f32 %v9132_v53, %v1695_v12  ;;  %v1667_v47 = vadd.f32 %v1651_v11, %v1633_v2  ;;  %v1631_v61 = vmul.f32 %v8950_v27, %v9109_v45  ;;  %v15083_v43 = vld [vmem:[#allocation34_spill] sm:$0xff]  ;;  %v15084_v45 = vld [vmem:[#allocation35_spill] sm:$0xff] }
 0x15b   : > { %v1728_v9 = vmax.f32 %v1712_v29, 0.0  ;;  %v1700_v22 = vadd.f32 %v1684_v38, %v1666_v25  ;;  %v1648_v31 = vmul.f32 %v8955_v17, %v9116_v3  ;;  %v1649_v24 = vmul.f32 %v15081_v34, %v9116_v3 }
 0x15c   : > { %1752 = vadd.xlane.f32.xlu1 %v1751_v52  ;;  %v1729_v56 = vmax.f32 %v1713_v50, 0.0  ;;  %v1701_v2 = vadd.f32 %v1685_v54, %v1667_v47  ;;  %v1682_v12 = vmul.f32 %v15083_v43, %v9123_v32  ;;  %v1683_v11 = vmul.f32 %v15084_v45, %v9123_v32  ;;  %v9263_v50 = vpop.xlane.xlu1 %762 }
 0x15d   : > { %v1718_v38 = vadd.f32 %v9132_v53, %v1700_v22  ;;  %v1664_v29 = vadd.f32 %v1648_v31, %v1630_v0  ;;  %v1665_v25 = vadd.f32 %v1649_v24, %v1631_v61  ;;  %v9256_v10 = vstv %s9213_s12  ;;  %s9706_s12 = sld [smem:[#allocation7 + $0x9]] }
 0x15e   : > { %v1748_v3 = vadd.f32 %v1729_v56, %v1728_v9  ;;  %v1719_v40 = vadd.f32 %v9132_v53, %v1701_v2  ;;  %v1813_v52 = vmul.f32 %v8735_v57, %v9256_v10  ;;  %v1814_v54 = vmul.f32 %v8750_v15, %v9256_v10 }
 0x15f   : > { %v1734_v47 = vmax.f32 %v1718_v38, 0.0  ;;  %v1698_v32 = vadd.f32 %v1682_v12, %v1664_v29  ;;  %v1699_v22 = vadd.f32 %v1683_v11, %v1665_v25  ;;  %v9266_v0 = vstv %s9224_s28  ;;  %v9281_v12 = vpop.xlane.xlu0 %765  ;;  %s6997_s28 = sld [smem:[#allocation4 + $0xa]] }
 0x160   : > { %1749 = vadd.xlane.f32.xlu0 %v1748_v3  ;;  %v1735_v61 = vmax.f32 %v1719_v40, 0.0  ;;  %v1831_v9 = vmul.f32 %v8755_v16, %v9266_v0  ;;  %v1832_v31 = vmul.f32 %v15071_v8, %v9266_v0  ;;  %v9273_v57 = vstv %s9230_s6  ;;  %s6998_s6 = sld [smem:[#allocation4 + $0x8a]] }
 0x161   : > { %v1716_v15 = vadd.f32 %v9132_v53, %v1698_v32  ;;  %v1717_v24 = vadd.f32 %v9132_v53, %v1699_v22  ;;  %v1865_v56 = vmul.f32 %v15072_v14, %v9273_v57  ;;  %v1866_v2 = vmul.f32 %v15073_v41, %v9273_v57  ;;  %v15085_v41 = vld [vmem:[#allocation22_spill] sm:$0xff] }
 0x162   : > { %v1757_v40 = vadd.f32 %v1735_v61, %v1734_v47  ;;  %v1847_v11 = vadd.f32 %v1831_v9, %v1813_v52  ;;  %v1848_v16 = vadd.f32 %v1832_v31, %v1814_v54  ;;  %v9284_v38 = vstv %s9242_s1  ;;  %v15086_v47 = vld [vmem:[#allocation23_spill] sm:$0xff]  ;;  %v9294_v54 = vpop.xlane.xlu1 %768  ;;  %v15087_v61 = vld [vmem:[#allocation24_spill] sm:$0xff]  ;;  %s6999_s1 = sld [smem:[#allocation4 + $0x10a]] }
 0x163   : > { %v1732_v8 = vmax.f32 %v1716_v15, 0.0  ;;  %v1733_v29 = vmax.f32 %v1717_v24, 0.0  ;;  %v1815_v25 = vmul.f32 %v8704_v18, %v9256_v10  ;;  %v1816_v53 = vmul.f32 %v8709_v19, %v9256_v10  ;;  %v15088_v18 = vld [vmem:[#allocation25_spill] sm:$0xff] }
 0x164   : > { %1758 = vadd.xlane.f32.xlu1 %v1757_v40  ;;  %v1881_v14 = vadd.f32 %v1865_v56, %v1847_v11  ;;  %v1882_v3 = vadd.f32 %v1866_v2, %v1848_v16  ;;  %v1833_v32 = vmul.f32 %v15085_v41, %v9266_v0  ;;  %v1834_v52 = vmul.f32 %v15086_v47, %v9266_v0 }
 0x165   : > { %v1754_v22 = vadd.f32 %v1733_v29, %v1732_v8  ;;  %v1867_v9 = vmul.f32 %v15087_v61, %v9273_v57  ;;  %v1868_v31 = vmul.f32 %v15088_v18, %v9273_v57  ;;  %v1817_v19 = vmul.f32 %v8807_v28, %v9256_v10  ;;  %v9312_v28 = vpop.xlane.xlu0 %771 }
 0x166   : > { %v1899_v15 = vadd.f32 %v9284_v38, %v1881_v14  ;;  %v1900_v24 = vadd.f32 %v9284_v38, %v1882_v3  ;;  %v1849_v56 = vadd.f32 %v1833_v32, %v1815_v25  ;;  %v1850_v2 = vadd.f32 %v1834_v52, %v1816_v53  ;;  %v15089_v32 = vld [vmem:[#allocation30_spill] sm:$0xff] }
 0x167   : > { %1755 = vadd.xlane.f32.xlu0 %v1754_v22  ;;  %v1818_v40 = vmul.f32 %v8814_v39, %v9256_v10  ;;  %v1835_v11 = vmul.f32 %v8819_v49, %v9266_v0  ;;  %v1836_v16 = vmul.f32 %v8824_v60, %v9266_v0  ;;  %v1869_v8 = vmul.f32 %v8830_v33, %v9273_v57  ;;  %v9322_v22 = vpop.xlane.xlu1 %774 }
 0x168   : > { %v1915_v29 = vmax.f32 %v1899_v15, 0.0  ;;  %v1916_v14 = vmax.f32 %v1900_v24, 0.0  ;;  %v1883_v3 = vadd.f32 %v1867_v9, %v1849_v56  ;;  %v1884_v25 = vadd.f32 %v1868_v31, %v1850_v2  ;;  %v15090_v15 = vld [vmem:[#allocation31_spill] sm:$0xff]  ;;  %v15091_v56 = vld [vmem:[#allocation32_spill] sm:$0xff] }
 0x169   : > { %v1851_v53 = vadd.f32 %v1835_v11, %v1817_v19  ;;  %v1852_v41 = vadd.f32 %v1836_v16, %v1818_v40  ;;  %v1870_v39 = vmul.f32 %v15077_v1, %v9273_v57  ;;  %v1819_v49 = vmul.f32 %v15089_v32, %v9256_v10 }
 0x16a   : > { %v1931_v47 = vadd.f32 %v1916_v14, %v1915_v29  ;;  %v1901_v60 = vadd.f32 %v9284_v38, %v1883_v3  ;;  %v1902_v52 = vadd.f32 %v9284_v38, %v1884_v25  ;;  %v1820_v33 = vmul.f32 %v8780_v6, %v9256_v10 }
 0x16b   : > { %v1885_v61 = vadd.f32 %v1869_v8, %v1851_v53  ;;  %v1886_v9 = vadd.f32 %v1870_v39, %v1852_v41  ;;  %v1837_v18 = vmul.f32 %v8785_v42, %v9266_v0  ;;  %v1838_v1 = vmul.f32 %v8792_v30, %v9266_v0  ;;  %v9334_v8 = vpop.xlane.xlu0 %777 }
 0x16c   : > { %1932 = vadd.xlane.f32.xlu1 %v1931_v47  ;;  %v1917_v31 = vmax.f32 %v1901_v60, 0.0  ;;  %v1918_v19 = vmax.f32 %v1902_v52, 0.0  ;;  %v1871_v24 = vmul.f32 %v15090_v15, %v9273_v57  ;;  %v1872_v2 = vmul.f32 %v15091_v56, %v9273_v57  ;;  %v9348_v47 = vpop.xlane.xlu1 %780 }
 0x16d   : > { %v1903_v6 = vadd.f32 %v9284_v38, %v1885_v61  ;;  %v1904_v40 = vadd.f32 %v9284_v38, %v1886_v9  ;;  %v1853_v11 = vadd.f32 %v1837_v18, %v1819_v49  ;;  %v1854_v16 = vadd.f32 %v1838_v1, %v1820_v33 }
 0x16e   : > { %v1934_v42 = vadd.f32 %v1918_v19, %v1917_v31  ;;  %v1821_v30 = vmul.f32 %v8871_v44, %v9256_v10  ;;  %v1822_v29 = vmul.f32 %v8878_v37, %v9256_v10  ;;  %v1839_v14 = vmul.f32 %v8883_v46, %v9266_v0 }
 0x16f   : > { %v1919_v3 = vmax.f32 %v1903_v6, 0.0  ;;  %v1920_v25 = vmax.f32 %v1904_v40, 0.0  ;;  %v1887_v53 = vadd.f32 %v1871_v24, %v1853_v11  ;;  %v1888_v41 = vadd.f32 %v1872_v2, %v1854_v16  ;;  %v9362_v31 = vpop.xlane.xlu0 %783 }
 0x170   : > { %1935 = vadd.xlane.f32.xlu0 %v1934_v42  ;;  %v1840_v39 = vmul.f32 %v8888_v35, %v9266_v0  ;;  %v1855_v32 = vadd.f32 %v1839_v14, %v1821_v30  ;;  %v1873_v49 = vmul.f32 %v8893_v58, %v9273_v57  ;;  %v1874_v44 = vmul.f32 %v8898_v13, %v9273_v57 }
 0x171   : > { %v1937_v37 = vadd.f32 %v1920_v25, %v1919_v3  ;;  %v1905_v46 = vadd.f32 %v9284_v38, %v1887_v53  ;;  %v1906_v60 = vadd.f32 %v9284_v38, %v1888_v41  ;;  %v1823_v52 = vmul.f32 %v8841_v62, %v9256_v10 }
 0x172   : > { %v1856_v33 = vadd.f32 %v1840_v39, %v1822_v29  ;;  %v1889_v61 = vadd.f32 %v1873_v49, %v1855_v32  ;;  %v1824_v35 = vmul.f32 %v8846_v23, %v9256_v10  ;;  %v1841_v58 = vmul.f32 %v8851_v36, %v9266_v0 }
 0x173   : > { %1938 = vadd.xlane.f32.xlu1 %v1937_v37  ;;  %v1921_v13 = vmax.f32 %v1905_v46, 0.0  ;;  %v1922_v9 = vmax.f32 %v1906_v60, 0.0  ;;  %v1842_v18 = vmul.f32 %v8856_v7, %v9266_v0  ;;  %v1875_v1 = vmul.f32 %v8861_v59, %v9273_v57  ;;  %v9398_v3 = vpop.xlane.xlu0 %957 }
 0x174   : > { %v1890_v62 = vadd.f32 %v1874_v44, %v1856_v33  ;;  %v1907_v19 = vadd.f32 %v9284_v38, %v1889_v61  ;;  %v1857_v15 = vadd.f32 %v1841_v58, %v1823_v52  ;;  %v1876_v23 = vmul.f32 %v8866_v55, %v9273_v57  ;;  %v9378_v55 = vpop.xlane.xlu1 %960  ;;  %15093 = vst [vmem:[#allocation29_spill] sm:$0xff] %v9398_v3  ;;  %v9414_v52 = vld [vmem:[%s8017_s9 + $0x30] sm:$0xff]  ;;  %v9605_v3 = vld [vmem:[%s8017_s9 + $0x100] sm:$0xff] }
 0x175   : > { %v1940_v36 = vadd.f32 %v1922_v9, %v1921_v13  ;;  %v1858_v24 = vadd.f32 %v1842_v18, %v1824_v35  ;;  %v1825_v56 = vmul.f32 %v8945_v4, %v9256_v10  ;;  %v1826_v7 = vmul.f32 %v8950_v27, %v9256_v10  ;;  %15092 = vst [vmem:[#allocation16_spill] sm:$0xff] %v9378_v55  ;;  %v9428_v9 = vld [vmem:[%s8017_s9 + $0x40] sm:$0xff] }
 0x176   : > { %v1908_v59 = vadd.f32 %v9284_v38, %v1890_v62  ;;  %v1923_v2 = vmax.f32 %v1907_v19, 0.0  ;;  %v1891_v6 = vadd.f32 %v1875_v1, %v1857_v15  ;;  %v1843_v40 = vmul.f32 %v8955_v17, %v9266_v0  ;;  %15096 = vst [vmem:[#allocation34_spill] sm:$0xff] %v9428_v9  ;;  %v9433_v1 = vld [vmem:[%s8017_s9 + $0x48] sm:$0xff]  ;;  %15115 = vst [vmem:[#allocation46_spill] sm:$0xff] %v9605_v3 }
 0x177   : > { %1941 = vadd.xlane.f32.xlu0 %v1940_v36  ;;  %v1892_v11 = vadd.f32 %v1876_v23, %v1858_v24  ;;  %v1844_v16 = vmul.f32 %v15081_v34, %v9266_v0  ;;  %v1877_v4 = vmul.f32 %v15083_v43, %v9273_v57  ;;  %v1878_v27 = vmul.f32 %v15084_v45, %v9273_v57  ;;  %v9437_v19 = vpop.xlane.xlu0 %963  ;;  %v9447_v24 = vld [vmem:[%s8017_s9] sm:$0xff] }
 0x178   : > { %v1924_v42 = vmax.f32 %v1908_v59, 0.0  ;;  %v1909_v30 = vadd.f32 %v9284_v38, %v1891_v6  ;;  %v1859_v29 = vadd.f32 %v1843_v40, %v1825_v56  ;;  %v1827_v17 = vmul.f32 %v15065_v5, %v9256_v10  ;;  %v9410_v46 = vpop.xlane.xlu1 %966  ;;  %15097 = vst [vmem:[#allocation35_spill] sm:$0xff] %v9433_v1  ;;  %15098 = vst [vmem:[#allocation22_spill] sm:$0xff] %v9437_v19  ;;  %v9600_v19 = vld [vmem:[%s8017_s9 + $0xf8] sm:$0xff] }
 0x179   : > { %v1910_v14 = vadd.f32 %v9284_v38, %v1892_v11  ;;  %v1860_v34 = vadd.f32 %v1844_v16, %v1826_v7  ;;  %v1828_v43 = vmul.f32 %v15066_v21, %v9256_v10  ;;  %v1845_v45 = vmul.f32 %v15067_v20, %v9266_v0  ;;  %15094 = vst [vmem:[#allocation33_spill] sm:$0xff] %v9410_v46  ;;  %v9452_v11 = vld [vmem:[%s8017_s9 + $0x50] sm:$0xff]  ;;  %v9457_v16 = vld [vmem:[%s8017_s9 + $0x58] sm:$0xff] }
 0x17a   : > { %v1943_v25 = vadd.f32 %v1924_v42, %v1923_v2  ;;  %v1925_v53 = vmax.f32 %v1909_v30, 0.0  ;;  %v1893_v5 = vadd.f32 %v1877_v4, %v1859_v29  ;;  %v1846_v41 = vmul.f32 %v15068_v26, %v9266_v0  ;;  %v9469_v29 = vld [vmem:[%s8017_s9 + $0x10] sm:$0xff]  ;;  %15114 = vst [vmem:[#allocation45_spill] sm:$0xff] %v9600_v19 }
 0x17b   : > { %v1926_v39 = vmax.f32 %v1910_v14, 0.0  ;;  %v1894_v32 = vadd.f32 %v1878_v27, %v1860_v34  ;;  %v1861_v49 = vadd.f32 %v1845_v45, %v1827_v17  ;;  %v1879_v44 = vmul.f32 %v15069_v48, %v9273_v57  ;;  %v9462_v27 = vld [vmem:[%s8017_s9 + $0x8] sm:$0xff]  ;;  %v9474_v14 = vld [vmem:[%s8017_s9 + $0x18] sm:$0xff] }
 0x17c   : > { %1944 = vadd.xlane.f32.xlu1 %v1943_v25  ;;  %v1911_v21 = vadd.f32 %v9284_v38, %v1893_v5  ;;  %v1862_v20 = vadd.f32 %v1846_v41, %v1828_v43  ;;  %v1880_v10 = vmul.f32 %v15070_v63, %v9273_v57  ;;  %v9408_v37 = vstv %s9367_s2  ;;  %v9419_v57 = vld [vmem:[%s8017_s9 + $0x38] sm:$0xff]  ;;  %v9466_v30 = vpop.xlane.xlu1 %972  ;;  %v9479_v43 = vld [vmem:[%s8017_s9 + $0x20] sm:$0xff]  ;;  %v9484_v25 = vld [vmem:[%s8017_s9 + $0x28] sm:$0xff]  ;;  %s7000_s2 = sld [smem:[#allocation7 + $0xa]] }
 0x17d   : > { %v1946_v26 = vadd.f32 %v1926_v39, %v1925_v53  ;;  %v1912_v0 = vadd.f32 %v9284_v38, %v1894_v32  ;;  %v1895_v60 = vadd.f32 %v1879_v44, %v1861_v49  ;;  %v2010_v48 = vmul.f32 %v9414_v52, %v9408_v37  ;;  %15095 = vst [vmem:[#allocation28_spill] sm:$0xff] %v9419_v57  ;;  %v9489_v32 = vld [vmem:[%s8017_s9 + $0x60] sm:$0xff] }
 0x17e   : > { %v1927_v33 = vmax.f32 %v1911_v21, 0.0  ;;  %v1896_v63 = vadd.f32 %v1880_v10, %v1862_v20  ;;  %v2011_v61 = vmul.f32 %v9419_v57, %v9408_v37  ;;  %v9424_v35 = vstv %s9376_s7  ;;  %15099 = vst [vmem:[#allocation23_spill] sm:$0xff] %v9466_v30  ;;  %v9494_v20 = vld [vmem:[%s8017_s9 + $0x68] sm:$0xff]  ;;  %s7001_s7 = sld [smem:[#allocation4 + $0xb]] }
 0x17f   : > { %1947 = vadd.xlane.f32.xlu0 %v1946_v26  ;;  %v1928_v58 = vmax.f32 %v1912_v0, 0.0  ;;  %v1913_v13 = vadd.f32 %v9284_v38, %v1895_v60  ;;  %v2028_v18 = vmul.f32 %v9428_v9, %v9424_v35  ;;  %v2029_v62 = vmul.f32 %v9433_v1, %v9424_v35  ;;  %v9499_v26 = vld [vmem:[%s8017_s9 + $0x70] sm:$0xff]  ;;  %v9503_v60 = vpop.xlane.xlu0 %969 }
 0x180   : > { %v1914_v15 = vadd.f32 %v9284_v38, %v1896_v63  ;;  %v9441_v23 = vstv %s9389_s17  ;;  %v9444_v36 = vstv %s9391_s30  ;;  %v2008_v56 = vmul.f32 %v9447_v24, %v9408_v37  ;;  %15100 = vst [vmem:[#allocation24_spill] sm:$0xff] %v9503_v60  ;;  %v9508_v63 = vld [vmem:[%s8017_s9 + $0x78] sm:$0xff]  ;;  %s7002_s17 = sld [smem:[#allocation4 + $0x8b]] }
 0x181   : > { %v1949_v7 = vadd.f32 %v1928_v58, %v1927_v33  ;;  %v1929_v59 = vmax.f32 %v1913_v13, 0.0  ;;  %v2044_v2 = vadd.f32 %v2028_v18, %v2010_v48  ;;  %v2045_v6 = vadd.f32 %v2029_v62, %v2011_v61  ;;  %v9513_v58 = vld [vmem:[%s8017_s9 + $0x80] sm:$0xff]  ;;  %s7003_s30 = sld [smem:[#allocation4 + $0x10b]] }
 0x182   : > { %v1930_v40 = vmax.f32 %v1914_v15, 0.0  ;;  %v2062_v38 = vmul.f32 %v9452_v11, %v9441_v23  ;;  %v2063_v4 = vmul.f32 %v9457_v16, %v9441_v23  ;;  %v2009_v42 = vmul.f32 %v9462_v27, %v9408_v37 }
 0x183   : > { %1950 = vadd.xlane.f32.xlu1 %v1949_v7  ;;  %v2026_v17 = vmul.f32 %v9469_v29, %v9424_v35  ;;  %v2027_v34 = vmul.f32 %v9474_v14, %v9424_v35  ;;  %v2060_v45 = vmul.f32 %v9479_v43, %v9441_v23  ;;  %v2061_v53 = vmul.f32 %v9484_v25, %v9441_v23 }
 0x184   : > { %v1952_v5 = vadd.f32 %v1930_v40, %v1929_v59  ;;  %v2078_v41 = vadd.f32 %v2062_v38, %v2044_v2  ;;  %v2079_v39 = vadd.f32 %v2063_v4, %v2045_v6  ;;  %v2012_v49 = vmul.f32 %v9489_v32, %v9408_v37  ;;  %v9523_v40 = vld [vmem:[%s8017_s9 + $0x90] sm:$0xff]  ;;  %v9527_v4 = vpop.xlane.xlu1 %978 }
 0x185   : > { %v2042_v44 = vadd.f32 %v2026_v17, %v2008_v56  ;;  %v2043_v21 = vadd.f32 %v2027_v34, %v2009_v42  ;;  %v2013_v10 = vmul.f32 %v9494_v20, %v9408_v37  ;;  %v2030_v0 = vmul.f32 %v9499_v26, %v9424_v35  ;;  %v9518_v56 = vld [vmem:[%s8017_s9 + $0x88] sm:$0xff]  ;;  %15101 = vst [vmem:[#allocation25_spill] sm:$0xff] %v9523_v40 }
 0x186   : > { %1953 = vadd.xlane.f32.xlu0 %v1952_v5  ;;  %v2096_v48 = vadd.f32 %v9444_v36, %v2078_v41  ;;  %v2097_v33 = vadd.f32 %v9444_v36, %v2079_v39  ;;  %v2031_v61 = vmul.f32 %v9508_v63, %v9424_v35  ;;  %v2064_v13 = vmul.f32 %v9513_v58, %v9441_v23  ;;  %v9537_v39 = vld [vmem:[%s8017_s9 + $0xa0] sm:$0xff] }
 0x187   : > { %v2076_v18 = vadd.f32 %v2060_v45, %v2042_v44  ;;  %v2077_v62 = vadd.f32 %v2061_v53, %v2043_v21  ;;  %v2046_v15 = vadd.f32 %v2030_v0, %v2012_v49  ;;  %v2065_v7 = vmul.f32 %v9518_v56, %v9441_v23  ;;  %15102 = vst [vmem:[#allocation30_spill] sm:$0xff] %v9527_v4  ;;  %v9532_v45 = vld [vmem:[%s8017_s9 + $0x98] sm:$0xff]  ;;  %v9542_v44 = vld [vmem:[%s8017_s9 + $0xa8] sm:$0xff] }
 0x188   : > { %v2112_v59 = vmax.f32 %v2096_v48, 0.0  ;;  %v2113_v2 = vmax.f32 %v2097_v33, 0.0  ;;  %v2047_v6 = vadd.f32 %v2031_v61, %v2013_v10  ;;  %v2014_v38 = vmul.f32 %v9523_v40, %v9408_v37  ;;  %15103 = vst [vmem:[#allocation31_spill] sm:$0xff] %v9532_v45  ;;  %15104 = vst [vmem:[#allocation32_spill] sm:$0xff] %v9537_v39  ;;  %v9548_v33 = vld [vmem:[%s8017_s9 + $0xb0] sm:$0xff] }
 0x189   : > { %v2094_v42 = vadd.f32 %v9444_v36, %v2076_v18  ;;  %v2095_v17 = vadd.f32 %v9444_v36, %v2077_v62  ;;  %v2080_v34 = vadd.f32 %v2064_v13, %v2046_v15  ;;  %v2015_v53 = vmul.f32 %v9532_v45, %v9408_v37  ;;  %15105 = vst [vmem:[#allocation36_spill] sm:$0xff] %v9542_v44  ;;  %v9552_v13 = vpop.xlane.xlu0 %975 }
 0x18a   : > { %v2129_v5 = vadd.f32 %v2113_v2, %v2112_v59  ;;  %v2081_v41 = vadd.f32 %v2065_v7, %v2047_v6  ;;  %v2032_v49 = vmul.f32 %v9537_v39, %v9424_v35  ;;  %v2033_v21 = vmul.f32 %v9542_v44, %v9424_v35  ;;  %15106 = vst [vmem:[#allocation37_spill] sm:$0xff] %v9548_v33  ;;  %v9556_v7 = vld [vmem:[%s8017_s9 + $0xb8] sm:$0xff] }
 0x18b   : > { %v2110_v10 = vmax.f32 %v2094_v42, 0.0  ;;  %v2111_v0 = vmax.f32 %v2095_v17, 0.0  ;;  %v2098_v48 = vadd.f32 %v9444_v36, %v2080_v34  ;;  %v2066_v61 = vmul.f32 %v9548_v33, %v9441_v23  ;;  %15107 = vst [vmem:[#allocation38_spill] sm:$0xff] %v9552_v13  ;;  %v9561_v42 = vld [vmem:[%s8017_s9 + $0xc0] sm:$0xff]  ;;  %v9566_v34 = vld [vmem:[%s8017_s9 + $0xc8] sm:$0xff] }
 0x18c   : > { %2130 = vadd.xlane.f32.xlu1 %v2129_v5  ;;  %v2099_v18 = vadd.f32 %v9444_v36, %v2081_v41  ;;  %v2048_v62 = vadd.f32 %v2032_v49, %v2014_v38  ;;  %v2049_v15 = vadd.f32 %v2033_v21, %v2015_v53  ;;  %v2067_v59 = vmul.f32 %v9556_v7, %v9441_v23  ;;  %v9571_v49 = vld [vmem:[%s8017_s9 + $0xd0] sm:$0xff]  ;;  %v9583_v13 = vld [vmem:[%s8017_s9 + $0xe0] sm:$0xff] }
 0x18d   : > { %v2126_v2 = vadd.f32 %v2111_v0, %v2110_v10  ;;  %v2114_v6 = vmax.f32 %v2098_v48, 0.0  ;;  %v2016_v17 = vmul.f32 %v9561_v42, %v9408_v37  ;;  %v2017_v38 = vmul.f32 %v9566_v34, %v9408_v37  ;;  %15108 = vst [vmem:[#allocation39_spill] sm:$0xff] %v9571_v49  ;;  %v9575_v10 = vpop.xlane.xlu1 %1152  ;;  %v9578_v0 = vld [vmem:[%s8017_s9 + $0xd8] sm:$0xff]  ;;  %15111 = vst [vmem:[#allocation42_spill] sm:$0xff] %v9583_v13 }
 0x18e   : > { %v2115_v53 = vmax.f32 %v2099_v18, 0.0  ;;  %v2082_v5 = vadd.f32 %v2066_v61, %v2048_v62  ;;  %v2083_v41 = vadd.f32 %v2067_v59, %v2049_v15  ;;  %v2034_v21 = vmul.f32 %v9571_v49, %v9424_v35  ;;  %15109 = vst [vmem:[#allocation40_spill] sm:$0xff] %v9575_v10  ;;  %15110 = vst [vmem:[#allocation41_spill] sm:$0xff] %v9578_v0  ;;  %v9588_v18 = vld [vmem:[%s8017_s9 + $0xe8] sm:$0xff]  ;;  %v9593_v15 = vld [vmem:[%s8017_s9 + $0xf0] sm:$0xff] }
 0x18f   : > { %2127 = vadd.xlane.f32.xlu0 %v2126_v2  ;;  %v2035_v48 = vmul.f32 %v9578_v0, %v9424_v35  ;;  %v2068_v61 = vmul.f32 %v9583_v13, %v9441_v23  ;;  %15112 = vst [vmem:[#allocation43_spill] sm:$0xff] %v9588_v18  ;;  %v2069_v62 = vmul.f32 %v9588_v18, %v9441_v23  ;;  %15113 = vst [vmem:[#allocation44_spill] sm:$0xff] %v9593_v15  ;;  %v9622_v18 = vld [vmem:[%s8017_s9 + $0x118] sm:$0xff]  ;;  %vm634_vm7 = vcmask 1047559  }
 0x190   : > { %v2018_v59 = vmul.f32 %v9593_v15, %v9408_v37  ;;  %v2132_v2 = vadd.f32 %v2115_v53, %v2114_v6  ;;  %v2100_v10 = vadd.f32 %v9444_v36, %v2082_v5  ;;  %v2101_v4 = vadd.f32 %v9444_v36, %v2083_v41  ;;  %v9610_v15 = vld [vmem:[%s8017_s9 + $0x108] sm:$0xff]  ;;  %v9614_v53 = vpop.xlane.xlu0 %1155  ;;  %v9617_v41 = vld [vmem:[%s8017_s9 + $0x110] sm:$0xff]  ;;  %15119 = vst [vmem:[#allocation50_spill] sm:$0xff] %v9622_v18 }
 0x191   : > { %v2050_v60 = vadd.f32 %v2034_v21, %v2016_v17  ;;  %v2051_v30 = vadd.f32 %v2035_v48, %v2017_v38  ;;  %v2019_v46 = vmul.f32 %v9600_v19, %v9408_v37  ;;  %v2036_v55 = vmul.f32 %v9605_v3, %v9424_v35  ;;  %15116 = vst [vmem:[#allocation47_spill] sm:$0xff] %v9610_v15 }
 0x192   : > { %v2037_v6 = vmul.f32 %v9610_v15, %v9424_v35  ;;  %15117 = vst [vmem:[#allocation48_spill] sm:$0xff] %v9614_v53  ;;  %v2116_v17 = vmax.f32 %v2100_v10, 0.0  ;;  %v2117_v38 = vmax.f32 %v2101_v4, 0.0  ;;  %15118 = vst [vmem:[#allocation49_spill] sm:$0xff] %v9617_v41  ;;  %v2070_v21 = vmul.f32 %v9617_v41, %v9441_v23  ;;  %v9628_v4 = vld [vmem:[%s8017_s9 + $0x120] sm:$0xff]  ;;  %v9670_v41 = vld [vmem:[%s8017_s9 + $0x158] sm:$0xff] }
 0x193   : > { %v2084_v5 = vadd.f32 %v2068_v61, %v2050_v60  ;;  %2133 = vadd.xlane.f32.xlu0 %v2132_v2  ;;  %v2085_v48 = vadd.f32 %v2069_v62, %v2051_v30  ;;  %v2052_v3 = vadd.f32 %v2036_v55, %v2018_v59  ;;  %v2071_v15 = vmul.f32 %v9622_v18, %v9441_v23  ;;  %v9633_v61 = vld [vmem:[%s8017_s9 + $0x128] sm:$0xff]  ;;  %v9641_v2 = vld [vmem:[%s8017_s9 + $0x130] sm:$0xff] }
 0x194   : > { %v2053_v19 = vadd.f32 %v2037_v6, %v2019_v46  ;;  %v2135_v53 = vadd.f32 %v2117_v38, %v2116_v17  ;;  %15120 = vst [vmem:[#allocation51_spill] sm:$0xff] %v9628_v4  ;;  %v2020_v10 = vmul.f32 %v9628_v4, %v9408_v37  ;;  %15121 = vst [vmem:[#allocation52_spill] sm:$0xff] %v9633_v61  ;;  %v9637_v46 = vpop.xlane.xlu1 %1158  ;;  %v9646_v38 = vld [vmem:[%s8017_s9 + $0x138] sm:$0xff]  ;;  %v588_v4 = vlaneseq  ;;  %v9665_v18 = vld [vmem:[%s8017_s9 + $0x150] sm:$0xff] }
 0x195   : > { %v2102_v60 = vadd.f32 %v9444_v36, %v2084_v5  ;;  %v2021_v55 = vmul.f32 %v9633_v61, %v9408_v37  ;;  %15122 = vst [vmem:[#allocation53_spill] sm:$0xff] %v9637_v46  ;;  %v2103_v30 = vadd.f32 %v9444_v36, %v2085_v48  ;;  %v2086_v62 = vadd.f32 %v2070_v21, %v2052_v3  ;;  %v9651_v61 = vld [vmem:[%s8017_s9 + $0x140] sm:$0xff] }
 0x196   : > { %v2087_v59 = vadd.f32 %v2071_v15, %v2053_v19  ;;  %15123 = vst [vmem:[#allocation54_spill] sm:$0xff] %v9641_v2  ;;  %v2038_v6 = vmul.f32 %v9641_v2, %v9424_v35  ;;  %2136 = vadd.xlane.f32.xlu1 %v2135_v53  ;;  %15124 = vst [vmem:[#allocation55_spill] sm:$0xff] %v9646_v38  ;;  %v2039_v5 = vmul.f32 %v9646_v38, %v9424_v35  ;;  %v9656_v19 = vld [vmem:[%s8017_s9 + $0x148] sm:$0xff]  ;;  %v9662_v2 = vpop.xlane.xlu0 %1161  ;;  %vm637_vm8 = vcmask 64512  }
 0x197   : > { %v2118_v17 = vmax.f32 %v2102_v60, 0.0  ;;  %15125 = vst [vmem:[#allocation56_spill] sm:$0xff] %v9651_v61  ;;  %v2072_v3 = vmul.f32 %v9651_v61, %v9441_v23  ;;  %15126 = vst [vmem:[#allocation57_spill] sm:$0xff] %v9656_v19  ;;  %v2073_v15 = vmul.f32 %v9656_v19, %v9441_v23  ;;  %v2119_v21 = vmax.f32 %v2103_v30, 0.0 }
 0x198   : > { %v2104_v53 = vadd.f32 %v9444_v36, %v2086_v62  ;;  %v2105_v48 = vadd.f32 %v9444_v36, %v2087_v59  ;;  %v2054_v60 = vadd.f32 %v2038_v6, %v2020_v10  ;;  %15127 = vst [vmem:[#allocation58_spill] sm:$0xff] %v9662_v2  ;;  %v2055_v38 = vadd.f32 %v2039_v5, %v2021_v55  ;;  %v9677_v2 = vld [vmem:[%s8017_s9 + $0x160] sm:$0xff]  ;;  %v9681_v46 = vpop.xlane.xlu1 %1164 }
 0x199   : > { %15128 = vst [vmem:[#allocation59_spill] sm:$0xff] %v9665_v18  ;;  %v2022_v61 = vmul.f32 %v9665_v18, %v9408_v37  ;;  %v2023_v30 = vmul.f32 %v9670_v41, %v9408_v37  ;;  %v2138_v62 = vadd.f32 %v2119_v21, %v2118_v17  ;;  %v589_v5 = vand.u32 127, %v588_v4  ;;  %v9685_v21 = vld [vmem:[%s8017_s9 + $0x168] sm:$0xff] }
 0x19a   : > { %v2120_v59 = vmax.f32 %v2104_v53, 0.0  ;;  %v2121_v10 = vmax.f32 %v2105_v48, 0.0  ;;  %v2088_v6 = vadd.f32 %v2072_v3, %v2054_v60  ;;  %v2089_v55 = vadd.f32 %v2073_v15, %v2055_v38  ;;  %v9690_v38 = vld [vmem:[%s8017_s9 + $0x170] sm:$0xff]  ;;  %v9702_v60 = vld [vmem:[%s8017_s9 + $0x178] sm:$0xff] }
 0x19b   : > { %v591_v19 = vshrl.u32 %v588_v4, 7  ;;  %v2040_v18 = vmul.f32 %v9677_v2, %v9424_v35  ;;  %2139 = vadd.xlane.f32.xlu0 %v2138_v62  ;;  %v2041_v3 = vmul.f32 %v9685_v21, %v9424_v35  ;;  %15129 = vst [vmem:[#allocation60_spill] sm:$0xff] %v9690_v38  ;;  %v2074_v4 = vmul.f32 %v9690_v38, %v9441_v23 }
 0x19c   : > { %v2141_v37 = vadd.f32 %v2121_v10, %v2120_v59  ;;  %v2106_v17 = vadd.f32 %v9444_v36, %v2088_v6  ;;  %v2107_v15 = vadd.f32 %v9444_v36, %v2089_v55  ;;  %15131 = vst [vmem:[#allocation62_spill] sm:$0xff] %v9702_v60  ;;  %v2075_v62 = vmul.f32 %v9702_v60, %v9441_v23  ;;  %v9708_v10 = vpop.xlane.xlu0 %1167  ;;  %v15132_v55 = vld [vmem:[#allocation20_spill] sm:$0xff]  ;;  %v15134_v23 = vld [vmem:[#allocation18_spill] sm:$0xff] }
 0x19d   : > { %v9699_v53 = vsub.s32 %v589_v5, %v591_v19  ;;  %v2056_v48 = vadd.f32 %v2040_v18, %v2022_v61  ;;  %v2057_v59 = vadd.f32 %v2041_v3, %v2023_v30  ;;  %v15133_v61 = vld [vmem:[#allocation21_spill] sm:$0xff]  ;;  %vm6687_vm9 = vcmask 7168  }
 0x19e   : > { %2142 = vadd.xlane.f32.xlu1 %v2141_v37  ;;  %v2122_v35 = vmax.f32 %v2106_v17, 0.0  ;;  %v2123_v6 = vmax.f32 %v2107_v15, 0.0  ;;  %v15135_v17 = vld [vmem:[#allocation19_spill] sm:$0xff]  ;;  %vm6689_vm10 = vcmask 15360   ;;  %vm6691_vm11 = vcmask 23552  }
 0x19f   : > { %15130 = vst [vmem:[#allocation61_spill] sm:$0xff] %v9699_v53  ;;  %v601_v19 = vrot.slane %v15132_v55, %v9699_v53  ;;  %v2090_v18 = vadd.f32 %v2074_v4, %v2056_v48  ;;  %v593_v5 = vrot.slane %v15133_v61, %v9699_v53  ;;  %v2091_v38 = vadd.f32 %v2075_v62, %v2057_v59  ;;  %v9721_v4 = vpop.xlane.xlu1 %1170  ;;  %v15136_v59 = vld [vmem:[#allocation26_spill] sm:$0xff] }
 0x1a0   : > { %v605_v37 = vrot.slane %v15134_v23, %v9699_v53  ;;  %v597_v30 = vrot.slane %v9188_v51, %v9699_v53  ;;  %v613_v3 = vrot.slane %v15135_v17, %v9699_v53  ;;  %v2144_v60 = vadd.f32 %v2123_v6, %v2122_v35 }
 0x1a1   : > { %v2108_v15 = vadd.f32 %v9444_v36, %v2090_v18  ;;  %v2109_v48 = vadd.f32 %v9444_v36, %v2091_v38  ;;  %v609_v55 = vrot.slane %v15136_v59, %v9699_v53  ;;  %v9728_v51 = vstv %s9674_s13  ;;  %s7004_s13 = sld [smem:[#allocation7 + $0xb]] }
 0x1a2   : > { %v623_v62 = vsel %vm622_vm1, %v597_v30, %v593_v5  ;;  %2145 = vadd.xlane.f32.xlu0 %v2144_v60  ;;  %v2205_v18 = vmul.f32 %v9414_v52, %v9728_v51  ;;  %v2206_v61 = vmul.f32 %v9419_v57, %v9728_v51  ;;  %v9737_v38 = vstv %s9694_s10  ;;  %v9742_v30 = vpop.xlane.xlu0 %1173  ;;  %s7005_s10 = sld [smem:[#allocation4 + $0xc]] }
 0x1a3   : > { %v2124_v35 = vmax.f32 %v2108_v15, 0.0  ;;  %v625_v6 = vsel %vm624_vm2, %v601_v19, %v623_v62  ;;  %v2125_v23 = vmax.f32 %v2109_v48, 0.0  ;;  %v9740_v5 = vstv %s9696_s8  ;;  %v15137_v62 = vld [vmem:[#allocation27_spill] sm:$0xff]  ;;  %v9762_v57 = vpop.xlane.xlu1 %1350  ;;  %s7006_s8 = sld [smem:[#allocation4 + $0x8c]] }
 0x1a4   : > { %v627_v36 = vsel %vm626_vm3, %v605_v37, %v625_v6  ;;  %v2223_v19 = vmul.f32 %v9428_v9, %v9737_v38  ;;  %v2224_v52 = vmul.f32 %v9433_v1, %v9737_v38  ;;  %v2257_v17 = vmul.f32 %v9452_v11, %v9740_v5 }
 0x1a5   : > { %v629_v60 = vsel %vm628_vm4, %v609_v55, %v627_v36  ;;  %v2147_v15 = vadd.f32 %v2125_v23, %v2124_v35  ;;  %v2258_v37 = vmul.f32 %v9457_v16, %v9740_v5  ;;  %v9754_v48 = vstv %s9706_s12  ;;  %v15138_v36 = vld [vmem:[#allocation17_spill] sm:$0xff]  ;;  %s7007_s12 = sld [smem:[#allocation4 + $0x10c]] }
 0x1a6   : > { %v621_v59 = vrot.slane %v15137_v62, %v9699_v53  ;;  %v2239_v6 = vadd.f32 %v2223_v19, %v2205_v18  ;;  %v2240_v55 = vadd.f32 %v2224_v52, %v2206_v61  ;;  %v617_v9 = vrot.slane %v15138_v36, %v9699_v53 }
 0x1a7   : > { %v2209_v1 = vmul.f32 %v9523_v40, %v9728_v51  ;;  %2148 = vadd.xlane.f32.xlu1 %v2147_v15  ;;  %v2210_v35 = vmul.f32 %v9532_v45, %v9728_v51  ;;  %v2227_v23 = vmul.f32 %v9537_v39, %v9737_v38  ;;  %v2228_v62 = vmul.f32 %v9542_v44, %v9737_v38  ;;  %v9778_v39 = vpop.xlane.xlu0 %1347 }
 0x1a8   : > { %v2261_v18 = vmul.f32 %v9548_v33, %v9740_v5  ;;  %v2273_v61 = vadd.f32 %v2257_v17, %v2239_v6  ;;  %v2274_v19 = vadd.f32 %v2258_v37, %v2240_v55  ;;  %v2262_v52 = vmul.f32 %v9556_v7, %v9740_v5 }
 0x1a9   : > { %v796_v15 = vrot.slane %v9263_v50, %v9699_v53  ;;  %v2243_v36 = vadd.f32 %v2227_v23, %v2209_v1  ;;  %v2244_v40 = vadd.f32 %v2228_v62, %v2210_v35  ;;  %v800_v45 = vrot.slane %v9281_v12, %v9699_v53  ;;  %v9785_v12 = vpop.xlane.xlu1 %1356 }
 0x1aa   : > { %v2291_v44 = vadd.f32 %v9754_v48, %v2273_v61  ;;  %v2292_v33 = vadd.f32 %v9754_v48, %v2274_v19  ;;  %v631_v17 = vsel %vm630_vm5, %v613_v3, %v629_v60  ;;  %v804_v3 = vrot.slane %v9294_v54, %v9699_v53 }
 0x1ab   : > { %v2277_v37 = vadd.f32 %v2261_v18, %v2243_v36  ;;  %v2278_v6 = vadd.f32 %v2262_v52, %v2244_v40  ;;  %v825_v55 = vsel %vm622_vm1, %v800_v45, %v796_v15  ;;  %v633_v50 = vsel %vm632_vm6, %v617_v9, %v631_v17 }
 0x1ac   : > { %v2307_v1 = vmax.f32 %v2291_v44, 0.0  ;;  %v2308_v35 = vmax.f32 %v2292_v33, 0.0  ;;  %v635_v61 = vsel %vm634_vm7, %v621_v59, %v633_v50  ;;  %v808_v9 = vrot.slane %v9312_v28, %v9699_v53  ;;  %v9800_v59 = vpop.xlane.xlu0 %1353 }
 0x1ad   : > { %v2295_v23 = vadd.f32 %v9754_v48, %v2277_v37  ;;  %v2296_v62 = vadd.f32 %v9754_v48, %v2278_v6  ;;  %v638_v45 = vsel %vm637_vm8, %v635_v61, 0.0  ;;  %v2203_v44 = vmul.f32 %v9447_v24, %v9728_v51 }
 0x1ae   : > { %v2324_v40 = vadd.f32 %v2308_v35, %v2307_v1  ;;  %v826_v18 = vsel %vm624_vm2, %v804_v3, %v825_v55  ;;  %v2204_v19 = vmul.f32 %v9462_v27, %v9728_v51  ;;  %v2221_v52 = vmul.f32 %v9469_v29, %v9737_v38 }
 0x1af   : > { %v2311_v33 = vmax.f32 %v2295_v23, 0.0  ;;  %v2312_v60 = vmax.f32 %v2296_v62, 0.0  ;;  %v827_v54 = vsel %vm626_vm3, %v808_v9, %v826_v18  ;;  %v2222_v28 = vmul.f32 %v9474_v14, %v9737_v38  ;;  %v9819_v23 = vpop.xlane.xlu1 %1362 }
 0x1b0   : > { %2325 = vadd.xlane.f32.xlu0 %v2324_v40  ;;  %v2255_v15 = vmul.f32 %v9479_v43, %v9740_v5  ;;  %v2256_v17 = vmul.f32 %v9484_v25, %v9740_v5  ;;  %v812_v37 = vrot.slane %v9322_v22, %v9699_v53  ;;  %v816_v6 = vrot.slane %v9334_v8, %v9699_v53 }
 0x1b1   : > { %v2330_v36 = vadd.f32 %v2312_v60, %v2311_v33  ;;  %v2237_v55 = vadd.f32 %v2221_v52, %v2203_v44  ;;  %v2238_v50 = vadd.f32 %v2222_v28, %v2204_v19  ;;  %v2207_v1 = vmul.f32 %v9489_v32, %v9728_v51 }
 0x1b2   : > { %v2208_v35 = vmul.f32 %v9494_v20, %v9728_v51  ;;  %v828_v62 = vsel %vm628_vm4, %v812_v37, %v827_v54  ;;  %v2225_v61 = vmul.f32 %v9499_v26, %v9737_v38  ;;  %v2226_v22 = vmul.f32 %v9508_v63, %v9737_v38  ;;  %v9836_v54 = vpop.xlane.xlu0 %1359 }
 0x1b3   : > { %v2259_v8 = vmul.f32 %v9513_v58, %v9740_v5  ;;  %v2271_v3 = vadd.f32 %v2255_v15, %v2237_v55  ;;  %v2272_v40 = vadd.f32 %v2256_v17, %v2238_v50  ;;  %v2260_v9 = vmul.f32 %v9518_v56, %v9740_v5 }
 0x1b4   : > { %2331 = vadd.xlane.f32.xlu0 %v2330_v36  ;;  %v820_v44 = vrot.slane %v9348_v47, %v9699_v53  ;;  %v2241_v33 = vadd.f32 %v2225_v61, %v2207_v1  ;;  %v2242_v60 = vadd.f32 %v2226_v22, %v2208_v35  ;;  %v824_v18 = vrot.slane %v9362_v31, %v9699_v53  ;;  %v15139_v35 = vld [vmem:[#allocation43_spill] sm:$0xff]  ;;  %v9850_v22 = vpop.xlane.xlu1 %1368 }
 0x1b5   : > { %v2211_v19 = vmul.f32 %v9561_v42, %v9728_v51  ;;  %v2289_v52 = vadd.f32 %v9754_v48, %v2271_v3  ;;  %v2290_v28 = vadd.f32 %v9754_v48, %v2272_v40  ;;  %v2212_v15 = vmul.f32 %v9566_v34, %v9728_v51 }
 0x1b6   : > { %v2229_v47 = vmul.f32 %v9571_v49, %v9737_v38  ;;  %v2275_v36 = vadd.f32 %v2259_v8, %v2241_v33  ;;  %v2276_v17 = vadd.f32 %v2260_v9, %v2242_v60  ;;  %v2230_v31 = vmul.f32 %v9578_v0, %v9737_v38  ;;  %v15140_v9 = vld [vmem:[#allocation16_spill] sm:$0xff] }
 0x1b7   : > { %v2263_v37 = vmul.f32 %v9583_v13, %v9740_v5  ;;  %v2305_v55 = vmax.f32 %v2289_v52, 0.0  ;;  %v2306_v50 = vmax.f32 %v2290_v28, 0.0  ;;  %v2264_v61 = vmul.f32 %v15139_v35, %v9740_v5  ;;  %v9860_v49 = vpop.xlane.xlu0 %1365 }
 0x1b8   : > { %639 = vadd.xlane.f32.xlu0 %v638_v45  ;;  %v2245_v1 = vadd.f32 %v2229_v47, %v2211_v19  ;;  %v2293_v3 = vadd.f32 %v9754_v48, %v2275_v36  ;;  %v2294_v8 = vadd.f32 %v9754_v48, %v2276_v17  ;;  %v2246_v40 = vadd.f32 %v2230_v31, %v2212_v15  ;;  %v15141_v45 = vld [vmem:[#allocation29_spill] sm:$0xff] }
 0x1b9   : > { %v995_v33 = vrot.slane %v15140_v9, %v9699_v53  ;;  %v2321_v60 = vadd.f32 %v2306_v50, %v2305_v55  ;;  %v991_v52 = vrot.slane %v15141_v45, %v9699_v53  ;;  %v829_v19 = vsel %vm630_vm5, %v816_v6, %v828_v62  ;;  %v15142_v31 = vld [vmem:[#allocation33_spill] sm:$0xff]  ;;  %v15143_v50 = vld [vmem:[#allocation22_spill] sm:$0xff]  ;;  %v15148_v45 = vld [vmem:[#allocation40_spill] sm:$0xff] }
 0x1ba   : > { %v2279_v0 = vadd.f32 %v2263_v37, %v2245_v1  ;;  %v2309_v28 = vmax.f32 %v2293_v3, 0.0  ;;  %v2310_v47 = vmax.f32 %v2294_v8, 0.0  ;;  %v2280_v35 = vadd.f32 %v2264_v61, %v2246_v40  ;;  %v15144_v61 = vld [vmem:[#allocation23_spill] sm:$0xff] }
 0x1bb   : > { %v830_v13 = vsel %vm632_vm6, %v820_v44, %v829_v19  ;;  %2322 = vadd.xlane.f32.xlu1 %v2321_v60  ;;  %v1020_v36 = vsel %vm622_vm1, %v995_v33, %v991_v52  ;;  %v1003_v37 = vrot.slane %v15142_v31, %v9699_v53  ;;  %v999_v44 = vrot.slane %v15143_v50, %v9699_v53  ;;  %v15151_v31 = vld [vmem:[#allocation58_spill] sm:$0xff] }
 0x1bc   : > { %v2297_v15 = vadd.f32 %v9754_v48, %v2279_v0  ;;  %v831_v17 = vsel %vm634_vm7, %v824_v18, %v830_v13  ;;  %v2327_v55 = vadd.f32 %v2310_v47, %v2309_v28  ;;  %v2298_v6 = vadd.f32 %v9754_v48, %v2280_v35  ;;  %v15145_v0 = vld [vmem:[#allocation24_spill] sm:$0xff]  ;;  %v15146_v13 = vld [vmem:[#allocation30_spill] sm:$0xff]  ;;  %v1543_v40 = vpop.xlane.xlu1 %1542 }
 0x1bd   : > { %v833_v62 = vsel %vm637_vm8, %v831_v17, 0.0  ;;  %v1011_v3 = vrot.slane %v15144_v61, %v9699_v53  ;;  %v1007_v8 = vrot.slane %v15145_v0, %v9699_v53  ;;  %v1019_v18 = vrot.slane %v15146_v13, %v9699_v53  ;;  %v15147_v35 = vld [vmem:[#allocation38_spill] sm:$0xff]  ;;  %v15149_v28 = vld [vmem:[#allocation48_spill] sm:$0xff] }
 0x1be   : > { %v2313_v1 = vmax.f32 %v2297_v15, 0.0  ;;  %v2314_v9 = vmax.f32 %v2298_v6, 0.0  ;;  %v1021_v33 = vsel %vm624_vm2, %v999_v44, %v1020_v36  ;;  %v1015_v60 = vrot.slane %v15147_v35, %v9699_v53  ;;  %v15150_v15 = vld [vmem:[#allocation53_spill] sm:$0xff] }
 0x1bf   : > { %v1186_v52 = vrot.slane %v15148_v45, %v9699_v53  ;;  %2328 = vadd.xlane.f32.xlu1 %v2327_v55  ;;  %v1022_v19 = vsel %vm626_vm3, %v1003_v37, %v1021_v33  ;;  %v1190_v47 = vrot.slane %v15149_v28, %v9699_v53  ;;  %v1194_v17 = vrot.slane %v15150_v15, %v9699_v53  ;;  %v1546_v61 = vpop.xlane.xlu0 %1545 }
 0x1c0   : > { %v1198_v6 = vrot.slane %v15151_v31, %v9699_v53  ;;  %v2333_v50 = vadd.f32 %v2314_v9, %v2313_v1  ;;  %v1023_v36 = vsel %vm628_vm4, %v1007_v8, %v1022_v19  ;;  %v1202_v44 = vrot.slane %v9681_v46, %v9699_v53 }
 0x1c1   : > { %v1206_v55 = vrot.slane %v9708_v10, %v9699_v53  ;;  %v1215_v37 = vsel %vm622_vm1, %v1190_v47, %v1186_v52  ;;  %v1024_v0 = vsel %vm630_vm5, %v1011_v3, %v1023_v36  ;;  %v1210_v13 = vrot.slane %v9721_v4, %v9699_v53 }
 0x1c2   : > { %v1214_v33 = vrot.slane %v9742_v30, %v9699_v53  ;;  %v1025_v1 = vsel %vm632_vm6, %v1015_v60, %v1024_v0  ;;  %v1216_v8 = vsel %vm624_vm2, %v1194_v17, %v1215_v37  ;;  %v1385_v46 = vrot.slane %v9762_v57, %v9699_v53  ;;  %v1549_v35 = vpop.xlane.xlu1 %1548  ;;  %v15153_v37 = vld [vmem:[#allocation45_spill] sm:$0xff] }
 0x1c3   : > { %v1381_v10 = vrot.slane %v9778_v39, %v9699_v53  ;;  %2334 = vadd.xlane.f32.xlu1 %v2333_v50  ;;  %v1026_v9 = vsel %vm634_vm7, %v1019_v18, %v1025_v1  ;;  %v1217_v3 = vsel %vm626_vm3, %v1198_v6, %v1216_v8  ;;  %v1393_v4 = vrot.slane %v9785_v12, %v9699_v53 }
 0x1c4   : > { %v1389_v30 = vrot.slane %v9800_v59, %v9699_v53  ;;  %v1028_v60 = vsel %vm637_vm8, %v1026_v9, 0.0  ;;  %v1218_v45 = vsel %vm628_vm4, %v1202_v44, %v1217_v3  ;;  %v1401_v39 = vrot.slane %v9819_v23, %v9699_v53 }
 0x1c5   : > { %v1410_v57 = vsel %vm622_vm1, %v1385_v46, %v1381_v10  ;;  %1029 = vadd.xlane.f32.xlu0 %v1028_v60  ;;  %v1219_v18 = vsel %vm630_vm5, %v1206_v55, %v1218_v45  ;;  %v1397_v12 = vrot.slane %v9836_v54, %v9699_v53  ;;  %v1409_v59 = vrot.slane %v9850_v22, %v9699_v53  ;;  %v15155_v46 = vld [vmem:[#allocation47_spill] sm:$0xff]  ;;  %v15157_v45 = vld [vmem:[#allocation50_spill] sm:$0xff] }
 0x1c6   : > { %v1411_v52 = vsel %vm624_vm2, %v1389_v30, %v1410_v57  ;;  %v1220_v19 = vsel %vm632_vm6, %v1210_v13, %v1219_v18  ;;  %v1405_v47 = vrot.slane %v9860_v49, %v9699_v53  ;;  %v1576_v23 = vrot.slane %v1543_v40, %v9699_v53  ;;  %v15152_v49 = vld [vmem:[#allocation44_spill] sm:$0xff] }
 0x1c7   : > { %v1412_v28 = vsel %vm626_vm3, %v1393_v4, %v1411_v52  ;;  %v1552_v15 = vpop.xlane.xlu0 %1551  ;;  %834 = vadd.xlane.f32.xlu1 %v833_v62  ;;  %v1221_v17 = vsel %vm634_vm7, %v1214_v33, %v1220_v19  ;;  %v1580_v54 = vrot.slane %v1546_v61, %v9699_v53  ;;  %v1584_v6 = vrot.slane %v1549_v35, %v9699_v53  ;;  %v15154_v61 = vld [vmem:[#allocation46_spill] sm:$0xff]  ;;  %v15156_v4 = vld [vmem:[#allocation49_spill] sm:$0xff] }
 0x1c8   : > { %v1413_v31 = vsel %vm628_vm4, %v1397_v12, %v1412_v28  ;;  %v1223_v22 = vsel %vm637_vm8, %v1221_v17, 0.0  ;;  %v1588_v36 = vrot.slane %v1552_v15, %v9699_v53  ;;  %v2213_v44 = vmul.f32 %v15152_v49, %v9728_v51  ;;  %v15160_v28 = vld [vmem:[#allocation54_spill] sm:$0xff] }
 0x1c9   : > { %v1414_v50 = vsel %vm630_vm5, %v1401_v39, %v1413_v31  ;;  %v1605_v40 = vsel %vm622_vm1, %v1580_v54, %v1576_v23  ;;  %v2214_v0 = vmul.f32 %v15153_v37, %v9728_v51  ;;  %v2231_v13 = vmul.f32 %v15154_v61, %v9737_v38  ;;  %v15158_v39 = vld [vmem:[#allocation51_spill] sm:$0xff]  ;;  %v15162_v54 = vld [vmem:[#allocation56_spill] sm:$0xff] }
 0x1ca   : > { %v1415_v62 = vsel %vm632_vm6, %v1405_v47, %v1414_v50  ;;  %v1555_v55 = vpop.xlane.xlu1 %1554  ;;  %v1606_v1 = vsel %vm624_vm2, %v1584_v6, %v1605_v40  ;;  %v2232_v10 = vmul.f32 %v15155_v46, %v9737_v38  ;;  %v2265_v30 = vmul.f32 %v15156_v4, %v9740_v5  ;;  %v15161_v23 = vld [vmem:[#allocation55_spill] sm:$0xff] }
 0x1cb   : > { %v1416_v33 = vsel %vm634_vm7, %v1409_v59, %v1415_v62  ;;  %v1592_v8 = vrot.slane %v1555_v55, %v9699_v53  ;;  %1224 = vadd.xlane.f32.xlu1 %v1223_v22  ;;  %v2247_v3 = vadd.f32 %v2231_v13, %v2213_v44  ;;  %v1607_v35 = vsel %vm626_vm3, %v1588_v36, %v1606_v1  ;;  %v15159_v59 = vld [vmem:[#allocation52_spill] sm:$0xff]  ;;  %v15163_v22 = vld [vmem:[#allocation57_spill] sm:$0xff]  ;;  %v15164_v62 = vld [vmem:[#allocation59_spill] sm:$0xff] }
 0x1cc   : > { %v1418_v9 = vsel %vm637_vm8, %v1416_v33, 0.0  ;;  %v2248_v60 = vadd.f32 %v2232_v10, %v2214_v0  ;;  %v2266_v57 = vmul.f32 %v15157_v45, %v9740_v5  ;;  %v2215_v18 = vmul.f32 %v15158_v39, %v9728_v51 }
 0x1cd   : > { %1419 = vadd.xlane.f32.xlu0 %v1418_v9  ;;  %v2281_v12 = vadd.f32 %v2265_v30, %v2247_v3  ;;  %v2216_v19 = vmul.f32 %v15159_v59, %v9728_v51  ;;  %v2233_v47 = vmul.f32 %v15160_v28, %v9737_v38  ;;  %v2234_v15 = vmul.f32 %v15161_v23, %v9737_v38 }
 0x1ce   : > { %v1558_v52 = vpop.xlane.xlu0 %1557  ;;  %v1608_v17 = vsel %vm628_vm4, %v1592_v8, %v1607_v35  ;;  %v2282_v31 = vadd.f32 %v2266_v57, %v2248_v60  ;;  %v2267_v6 = vmul.f32 %v15162_v54, %v9740_v5  ;;  %v2268_v50 = vmul.f32 %v15163_v22, %v9740_v5 }
 0x1cf   : > { %v2299_v36 = vadd.f32 %v9754_v48, %v2281_v12  ;;  %v2249_v44 = vadd.f32 %v2233_v47, %v2215_v18  ;;  %v2250_v40 = vadd.f32 %v2234_v15, %v2216_v19  ;;  %v2217_v55 = vmul.f32 %v15164_v62, %v9728_v51  ;;  %v15165_v18 = vld [vmem:[#allocation60_spill] sm:$0xff]  ;;  %v15166_v19 = vld [vmem:[#allocation62_spill] sm:$0xff] }
 0x1d0   : > { %v1596_v0 = vrot.slane %v1558_v52, %v9699_v53  ;;  %v2300_v33 = vadd.f32 %v9754_v48, %v2282_v31  ;;  %v2218_v1 = vmul.f32 %v9670_v41, %v9728_v51  ;;  %v2235_v8 = vmul.f32 %v9677_v2, %v9737_v38 }
 0x1d1   : > { %v1561_v13 = vpop.xlane.xlu1 %1560  ;;  %v2315_v9 = vmax.f32 %v2299_v36, 0.0  ;;  %v2283_v3 = vadd.f32 %v2267_v6, %v2249_v44  ;;  %v2284_v30 = vadd.f32 %v2268_v50, %v2250_v40  ;;  %v2236_v60 = vmul.f32 %v9685_v21, %v9737_v38 }
 0x1d2   : > { %v1600_v10 = vrot.slane %v1561_v13, %v9699_v53  ;;  %v2316_v35 = vmax.f32 %v2300_v33, 0.0  ;;  %v2251_v57 = vadd.f32 %v2235_v8, %v2217_v55  ;;  %v2269_v52 = vmul.f32 %v15165_v18, %v9740_v5 }
 0x1d3   : > { %v2301_v12 = vadd.f32 %v9754_v48, %v2283_v3  ;;  %v2302_v51 = vadd.f32 %v9754_v48, %v2284_v30  ;;  %v2270_v47 = vmul.f32 %v15166_v19, %v9740_v5  ;;  %v1609_v15 = vsel %vm630_vm5, %v1596_v0, %v1608_v17 }
 0x1d4   : > { %v9986_v31 = vadd.f32 %v2316_v35, %v2315_v9  ;;  %v2252_v6 = vadd.f32 %v2236_v60, %v2218_v1  ;;  %v2285_v50 = vadd.f32 %v2269_v52, %v2251_v57  ;;  %v1610_v38 = vsel %vm632_vm6, %v1600_v10, %v1609_v15 }
 0x1d5   : > { %v2317_v44 = vmax.f32 %v2301_v12, 0.0  ;;  %v2318_v40 = vmax.f32 %v2302_v51, 0.0  ;;  %vm6693_vm12 = vcmask 31744   ;;  %vm6695_vm13 = vcmask 39936  }
 0x1d6   : > { %v1564_v36 = vpop.xlane.xlu0 %1563  ;;  %v2286_v13 = vadd.f32 %v2270_v47, %v2252_v6  ;;  %v2303_v33 = vadd.f32 %v9754_v48, %v2285_v50  ;;  %vm6697_vm14 = vcmask 48128   ;;  %vm6699_vm15 = vcmask 56320  }
 0x1d7   : > { %v1604_v55 = vrot.slane %v1564_v36, %v9699_v53  ;;  %v2339_v8 = vadd.f32 %v2318_v40, %v2317_v44  ;;  %vm6702_vm0 = vcmask 72704  }
 0x1d8   : > { %v2304_v5 = vadd.f32 %v9754_v48, %v2286_v13  ;;  %v2319_v17 = vmax.f32 %v2303_v33, 0.0 }
 0x1d9   : > { %v1611_v3 = vsel %vm634_vm7, %v1604_v55, %v1610_v38 }
 0x1da   : > { %v1613_v0 = vsel %vm637_vm8, %v1611_v3, 0.0  ;;  %v2320_v1 = vmax.f32 %v2304_v5, 0.0  ;;  %v1741_v10 = vpop.xlane.xlu1 %1740 }
 0x1db   : > { %1614 = vadd.xlane.f32.xlu1 %v1613_v0  ;;  %v1775_v57 = vrot.slane %v1741_v10, %v9699_v53 }
 0x1dc   : > { %v9994_v9 = vadd.f32 %v2320_v1, %v2319_v17 }
 0x1de   : > { %v1738_v30 = vpop.xlane.xlu0 %1737 }
 0x1df   : > { %v1771_v52 = vrot.slane %v1738_v30, %v9699_v53 }
 0x1e1   : > { %v1747_v35 = vpop.xlane.xlu1 %1746  ;;  %v1800_v48 = vsel %vm622_vm1, %v1775_v57, %v1771_v52 }
 0x1e2   : > { %v1783_v15 = vrot.slane %v1747_v35, %v9699_v53 }
 0x1e6   : > { %v1744_v60 = vpop.xlane.xlu0 %1743 }
 0x1e7   : > { %v1779_v12 = vrot.slane %v1744_v60, %v9699_v53 }
 0x1e9   : > { %v1753_v51 = vpop.xlane.xlu1 %1752  ;;  %v1801_v6 = vsel %vm624_vm2, %v1779_v12, %v1800_v48 }
 0x1ea   : > { %v1791_v38 = vrot.slane %v1753_v51, %v9699_v53  ;;  %v1802_v44 = vsel %vm626_vm3, %v1783_v15, %v1801_v6 }
 0x1ed   : > { %v1750_v47 = vpop.xlane.xlu0 %1749 }
 0x1ee   : > { %v1787_v50 = vrot.slane %v1750_v47, %v9699_v53 }
 0x1f0   : > { %v1803_v40 = vsel %vm628_vm4, %v1787_v50, %v1802_v44 }
 0x1f1   : > { %v1759_v36 = vpop.xlane.xlu1 %1758  ;;  %v1804_v3 = vsel %vm630_vm5, %v1791_v38, %v1803_v40 }
 0x1f2   : > { %v1799_v55 = vrot.slane %v1759_v36, %v9699_v53 }
 0x1f4   : > { %v1756_v13 = vpop.xlane.xlu0 %1755 }
 0x1f5   : > { %v1795_v33 = vrot.slane %v1756_v13, %v9699_v53 }
 0x1f7   : > { %v1805_v5 = vsel %vm632_vm6, %v1795_v33, %v1804_v3 }
 0x1f8   : > { %v1806_v17 = vsel %vm634_vm7, %v1799_v55, %v1805_v5 }
 0x1f9   : > { %v1808_v0 = vsel %vm637_vm8, %v1806_v17, 0.0  ;;  %v1933_v1 = vpop.xlane.xlu1 %1932 }
 0x1fa   : > { %1809 = vadd.xlane.f32.xlu0 %v1808_v0  ;;  %v1966_v35 = vrot.slane %v1933_v1, %v9699_v53 }
 0x1fd   : > { %v1936_v10 = vpop.xlane.xlu0 %1935 }
 0x1fe   : > { %v1970_v60 = vrot.slane %v1936_v10, %v9699_v53 }
 0x200   : > { %v1939_v30 = vpop.xlane.xlu1 %1938  ;;  %v1995_v51 = vsel %vm622_vm1, %v1970_v60, %v1966_v35 }
 0x201   : > { %v1974_v52 = vrot.slane %v1939_v30, %v9699_v53 }
 0x203   : > { %v1996_v48 = vsel %vm624_vm2, %v1974_v52, %v1995_v51 }
 0x204   : > { %v1942_v57 = vpop.xlane.xlu0 %1941 }
 0x205   : > { %v1978_v47 = vrot.slane %v1942_v57, %v9699_v53 }
 0x207   : > { %v1997_v50 = vsel %vm626_vm3, %v1978_v47, %v1996_v48 }
 0x209   : > { %v1945_v12 = vpop.xlane.xlu1 %1944 }
 0x20a   : > { %v1982_v15 = vrot.slane %v1945_v12, %v9699_v53 }
 0x20c   : > { %v1948_v6 = vpop.xlane.xlu0 %1947  ;;  %v1998_v38 = vsel %vm628_vm4, %v1982_v15, %v1997_v50 }
 0x20d   : > { %v1986_v36 = vrot.slane %v1948_v6, %v9699_v53 }
 0x20f   : > { %v1999_v55 = vsel %vm630_vm5, %v1986_v36, %v1998_v38 }
 0x210   : > { %v1951_v44 = vpop.xlane.xlu1 %1950 }
 0x211   : > { %v1990_v40 = vrot.slane %v1951_v44, %v9699_v53 }
 0x213   : > { %v1954_v13 = vpop.xlane.xlu0 %1953  ;;  %v2000_v33 = vsel %vm632_vm6, %v1990_v40, %v1999_v55 }
 0x214   : > { %v1994_v3 = vrot.slane %v1954_v13, %v9699_v53 }
 0x216   : > { %v2001_v5 = vsel %vm634_vm7, %v1994_v3, %v2000_v33 }
 0x217   : > { %v2003_v17 = vsel %vm637_vm8, %v2001_v5, 0.0  ;;  %v10046_v5 = vstv %s6997_s28  ;;  %s7008_s28 = sld [smem:[#allocation7 + $0xc]] }
 0x218   : > { %2004 = vadd.xlane.f32.xlu1 %v2003_v17  ;;  %v10048_v17 = vstv %s6998_s6  ;;  %s7009_s6 = sld [smem:[#allocation4 + $0xd]] }
 0x219   : > { %v2131_v1 = vpop.xlane.xlu1 %2130 }
 0x21a   : > { %v2165_v35 = vrot.slane %v2131_v1, %v9699_v53  ;;  %v2399_v1 = vmul.f32 %v9462_v27, %v10046_v5 }
 0x21c   : > { %2340 = vadd.xlane.f32.xlu1 %v2339_v8  ;;  %v2128_v0 = vpop.xlane.xlu0 %2127 }
 0x21d   : > { %v2161_v60 = vrot.slane %v2128_v0, %v9699_v53  ;;  %v2398_v0 = vmul.f32 %v9447_v24, %v10046_v5  ;;  %v10065_v24 = vld [vmem:[%s8017_s9 + $0x30] sm:$0xff] }
 0x21e   : > { %v2400_v27 = vmul.f32 %v10065_v24, %v10046_v5 }
 0x21f   : > { %v2190_v12 = vsel %vm622_vm1, %v2165_v35, %v2161_v60 }
 0x220   : > { %v2134_v10 = vpop.xlane.xlu0 %2133 }
 0x221   : > { %v2169_v57 = vrot.slane %v2134_v10, %v9699_v53  ;;  %v10058_v10 = vstv %s6999_s1  ;;  %s7010_s1 = sld [smem:[#allocation4 + $0x8d]] }
 0x222   : > { %v2450_v60 = vmul.f32 %v9479_v43, %v10058_v10  ;;  %v2402_v43 = vmul.f32 %v9489_v32, %v10046_v5  ;;  %v2420_v32 = vmul.f32 %v9499_v26, %v10048_v17  ;;  %v2455_v26 = vmul.f32 %v9518_v56, %v10058_v10 }
 0x223   : > { %v2137_v30 = vpop.xlane.xlu1 %2136  ;;  %v2191_v47 = vsel %vm624_vm2, %v2169_v57, %v2190_v12  ;;  %v2451_v57 = vmul.f32 %v9484_v25, %v10058_v10  ;;  %v10077_v25 = vstv %s7000_s2  ;;  %s7011_s2 = sld [smem:[#allocation4 + $0x10d]] }
 0x224   : > { %v2173_v51 = vrot.slane %v2137_v30, %v9699_v53 }
 0x226   : > { %v2192_v15 = vsel %vm626_vm3, %v2173_v51, %v2191_v47  ;;  %v15169_v47 = vld [vmem:[#allocation35_spill] sm:$0xff] }
 0x228   : > { %v2140_v52 = vpop.xlane.xlu0 %2139 }
 0x229   : > { %v2177_v48 = vrot.slane %v2140_v52, %v9699_v53 }
 0x22b   : > { %v2143_v8 = vpop.xlane.xlu1 %2142  ;;  %v2193_v36 = vsel %vm628_vm4, %v2177_v48, %v2192_v15  ;;  %v2419_v48 = vmul.f32 %v15169_v47, %v10048_v17  ;;  %v15174_v47 = vld [vmem:[#allocation37_spill] sm:$0xff] }
 0x22c   : > { %v2181_v6 = vrot.slane %v2143_v8, %v9699_v53 }
 0x22e   : > { %v2194_v44 = vsel %vm630_vm5, %v2181_v6, %v2193_v36  ;;  %v2452_v6 = vmul.f32 %v9452_v11, %v10058_v10  ;;  %v2421_v11 = vmul.f32 %v9508_v63, %v10048_v17 }
 0x22f   : > { %v2146_v50 = vpop.xlane.xlu0 %2145 }
 0x230   : > { %v2185_v38 = vrot.slane %v2146_v50, %v9699_v53 }
 0x232   : > { %v2195_v55 = vsel %vm632_vm6, %v2185_v38, %v2194_v44  ;;  %v2453_v38 = vmul.f32 %v9457_v16, %v10058_v10 }
 0x234   : > { %v2149_v40 = vpop.xlane.xlu1 %2148 }
 0x235   : > { %v2189_v13 = vrot.slane %v2149_v40, %v9699_v53 }
 0x237   : > { %v2196_v33 = vsel %vm634_vm7, %v2189_v13, %v2195_v55  ;;  %v2403_v55 = vmul.f32 %v9494_v20, %v10046_v5 }
 0x238   : > { %v2198_v3 = vsel %vm637_vm8, %v2196_v33, 0.0 }
 0x239   : > { %2199 = vadd.xlane.f32.xlu0 %v2198_v3 }
 0x23d   : > { %2337 = vadd.xlane.f32.xlu0 %v9986_v31  ;;  %v2416_v31 = vmul.f32 %v9469_v29, %v10048_v17  ;;  %v15167_v29 = vld [vmem:[#allocation28_spill] sm:$0xff] }
 0x23e   : > { %v2401_v52 = vmul.f32 %v15167_v29, %v10046_v5 }
 0x23f   : > { %v2432_v30 = vadd.f32 %v2416_v31, %v2398_v0  ;;  %v2437_v31 = vadd.f32 %v2421_v11, %v2403_v55  ;;  %v15176_v11 = vld [vmem:[#allocation41_spill] sm:$0xff] }
 0x240   : > { %v2435_v36 = vadd.f32 %v2419_v48, %v2401_v52  ;;  %v2456_v48 = vmul.f32 %v15174_v47, %v10058_v10 }
 0x241   : > { %2343 = vadd.xlane.f32.xlu0 %v9994_v9  ;;  %v2417_v9 = vmul.f32 %v9474_v14, %v10048_v17  ;;  %v15168_v14 = vld [vmem:[#allocation34_spill] sm:$0xff]  ;;  %v2466_v51 = vadd.f32 %v2450_v60, %v2432_v30  ;;  %v2471_v52 = vadd.f32 %v2455_v26, %v2437_v31  ;;  %v2408_v26 = vmul.f32 %v15152_v49, %v10046_v5 }
 0x242   : > { %v2418_v12 = vmul.f32 %v15168_v14, %v10048_v17  ;;  %v2469_v33 = vadd.f32 %v2453_v38, %v2435_v36  ;;  %v15172_v14 = vld [vmem:[#allocation32_spill] sm:$0xff]  ;;  %v2406_v38 = vmul.f32 %v9561_v42, %v10046_v5  ;;  %v2461_v49 = vmul.f32 %v15157_v45, %v10058_v10 }
 0x243   : > { %v2433_v35 = vadd.f32 %v2417_v9, %v2399_v1  ;;  %v2484_v50 = vadd.f32 %v10077_v25, %v2466_v51  ;;  %v2436_v1 = vadd.f32 %v2420_v32, %v2402_v43  ;;  %v2454_v9 = vmul.f32 %v9513_v58, %v10058_v10  ;;  %v15173_v58 = vld [vmem:[#allocation36_spill] sm:$0xff] }
 0x244   : > { %v2434_v15 = vadd.f32 %v2418_v12, %v2400_v27  ;;  %v2487_v16 = vadd.f32 %v10077_v25, %v2469_v33  ;;  %v15171_v27 = vld [vmem:[#allocation31_spill] sm:$0xff]  ;;  %v2422_v12 = vmul.f32 %v15172_v14, %v10048_v17  ;;  %v2423_v51 = vmul.f32 %v15173_v58, %v10048_v17 }
 0x245   : > { %v2467_v8 = vadd.f32 %v2451_v57, %v2433_v35  ;;  %v2500_v13 = vmax.f32 %v2484_v50, 0.0  ;;  %v15170_v35 = vld [vmem:[#allocation25_spill] sm:$0xff]  ;;  %v2470_v63 = vadd.f32 %v2454_v9, %v2436_v1  ;;  %v2405_v29 = vmul.f32 %v15171_v27, %v10046_v5 }
 0x246   : > { %v2468_v40 = vadd.f32 %v2452_v6, %v2434_v15  ;;  %v2404_v60 = vmul.f32 %v15170_v35, %v10046_v5  ;;  %v2503_v57 = vmax.f32 %v2487_v16, 0.0  ;;  %v2489_v15 = vadd.f32 %v10077_v25, %v2471_v52  ;;  %v15178_v16 = vld [vmem:[#allocation43_spill] sm:$0xff] }
 0x247   : > { %v2485_v44 = vadd.f32 %v10077_v25, %v2467_v8  ;;  %v2488_v43 = vadd.f32 %v10077_v25, %v2470_v63  ;;  %v2457_v8 = vmul.f32 %v9556_v7, %v10058_v10  ;;  %v2439_v50 = vadd.f32 %v2423_v51, %v2405_v29 }
 0x248   : > { %v2486_v0 = vadd.f32 %v10077_v25, %v2468_v40  ;;  %v2438_v6 = vadd.f32 %v2422_v12, %v2404_v60  ;;  %v15175_v40 = vld [vmem:[#allocation39_spill] sm:$0xff]  ;;  %v2505_v32 = vmax.f32 %v2489_v15, 0.0  ;;  %v2425_v7 = vmul.f32 %v15176_v11, %v10048_v17 }
 0x249   : > { %v2501_v3 = vmax.f32 %v2485_v44, 0.0  ;;  %v2504_v36 = vmax.f32 %v2488_v43, 0.0  ;;  %v2407_v44 = vmul.f32 %v9566_v34, %v10046_v5  ;;  %v2424_v55 = vmul.f32 %v15175_v40, %v10048_v17 }
 0x24a   : > { %v2502_v20 = vmax.f32 %v2486_v0, 0.0  ;;  %v2473_v33 = vadd.f32 %v2457_v8, %v2439_v50  ;;  %v15177_v0 = vld [vmem:[#allocation42_spill] sm:$0xff]  ;;  %v2459_v31 = vmul.f32 %v15178_v16, %v10058_v10  ;;  %v2409_v35 = vmul.f32 %v15153_v37, %v10046_v5 }
 0x24b   : > { %v2516_v30 = vadd.f32 %v2501_v3, %v2500_v13  ;;  %v2472_v13 = vadd.f32 %v2456_v48, %v2438_v6  ;;  %v2440_v3 = vadd.f32 %v2424_v55, %v2406_v38  ;;  %v2458_v1 = vmul.f32 %v15177_v0, %v10058_v10 }
 0x24c   : > { %v10107_v56 = vadd.f32 %v2503_v57, %v2502_v20  ;;  %v2522_v42 = vadd.f32 %v2505_v32, %v2504_v36  ;;  %v2491_v34 = vadd.f32 %v10077_v25, %v2473_v33  ;;  %v2426_v63 = vmul.f32 %v15154_v61, %v10048_v17 }
 0x24d   : > { %2517 = vadd.xlane.f32.xlu0 %v2516_v30  ;;  %v2490_v9 = vadd.f32 %v10077_v25, %v2472_v13  ;;  %v2441_v30 = vadd.f32 %v2425_v7, %v2407_v44  ;;  %v2474_v20 = vadd.f32 %v2458_v1, %v2440_v3  ;;  %v2427_v27 = vmul.f32 %v15155_v46, %v10048_v17 }
 0x24e   : > { %v2507_v57 = vmax.f32 %v2491_v34, 0.0  ;;  %v2460_v14 = vmul.f32 %v15156_v4, %v10058_v10  ;;  %v2442_v37 = vadd.f32 %v2426_v63, %v2408_v26  ;;  %v2410_v51 = vmul.f32 %v15158_v39, %v10046_v5  ;;  %v2326_v34 = vpop.xlane.xlu0 %2325 }
 0x24f   : > { %v2506_v60 = vmax.f32 %v2490_v9, 0.0  ;;  %v2475_v29 = vadd.f32 %v2459_v31, %v2441_v30  ;;  %v2492_v52 = vadd.f32 %v10077_v25, %v2474_v20  ;;  %v2443_v58 = vadd.f32 %v2427_v27, %v2409_v35  ;;  %v2323_v9 = vpop.xlane.xlu1 %2322 }
 0x250   : > { %v2411_v46 = vmul.f32 %v15159_v59, %v10046_v5  ;;  %v2428_v48 = vmul.f32 %v15160_v28, %v10048_v17  ;;  %v2476_v4 = vadd.f32 %v2460_v14, %v2442_v37  ;;  %v2429_v45 = vmul.f32 %v15161_v23, %v10048_v17 }
 0x251   : > { %2523 = vadd.xlane.f32.xlu0 %v2522_v42  ;;  %v10140_v12 = vadd.f32 %v2507_v57, %v2506_v60  ;;  %v2493_v61 = vadd.f32 %v10077_v25, %v2475_v29  ;;  %v2508_v47 = vmax.f32 %v2492_v52, 0.0  ;;  %v2477_v43 = vadd.f32 %v2461_v49, %v2443_v58 }
 0x252   : > { %v2462_v8 = vmul.f32 %v15162_v54, %v10058_v10  ;;  %v2444_v6 = vadd.f32 %v2428_v48, %v2410_v51  ;;  %v2463_v39 = vmul.f32 %v15163_v22, %v10058_v10  ;;  %v2412_v50 = vmul.f32 %v15164_v62, %v10046_v5 }
 0x253   : > { %v2509_v15 = vmax.f32 %v2493_v61, 0.0  ;;  %v2494_v59 = vadd.f32 %v10077_v25, %v2476_v4  ;;  %v2495_v28 = vadd.f32 %v10077_v25, %v2477_v43  ;;  %v2445_v36 = vadd.f32 %v2429_v45, %v2411_v46  ;;  %v2329_v30 = vpop.xlane.xlu1 %2328 }
 0x254   : > { %v2413_v38 = vmul.f32 %v9670_v41, %v10046_v5  ;;  %v2478_v44 = vadd.f32 %v2462_v8, %v2444_v6  ;;  %v2430_v54 = vmul.f32 %v9677_v2, %v10048_v17  ;;  %v2431_v40 = vmul.f32 %v9685_v21, %v10048_v17 }
 0x255   : > { %v2528_v23 = vadd.f32 %v2509_v15, %v2508_v47  ;;  %v2510_v22 = vmax.f32 %v2494_v59, 0.0  ;;  %v2511_v55 = vmax.f32 %v2495_v28, 0.0  ;;  %v2479_v32 = vadd.f32 %v2463_v39, %v2445_v36 }
 0x256   : > { %v2464_v62 = vmul.f32 %v15165_v18, %v10058_v10  ;;  %v2496_v13 = vadd.f32 %v10077_v25, %v2478_v44  ;;  %v2446_v33 = vadd.f32 %v2430_v54, %v2412_v50  ;;  %v2447_v11 = vadd.f32 %v2431_v40, %v2413_v38  ;;  %v10214_v38 = vld [vmem:[%s8017_s9] sm:$0xff]  ;;  %v10224_v44 = vld [vmem:[%s8017_s9 + $0x10] sm:$0xff]  ;;  %v10229_v40 = vld [vmem:[%s8017_s9 + $0x18] sm:$0xff] }
 0x257   : > { %2529 = vadd.xlane.f32.xlu0 %v2528_v23  ;;  %v2465_v41 = vmul.f32 %v15166_v19, %v10058_v10  ;;  %v2531_v5 = vadd.f32 %v2511_v55, %v2510_v22  ;;  %v2497_v2 = vadd.f32 %v10077_v25, %v2479_v32  ;;  %v2332_v19 = vpop.xlane.xlu0 %2331  ;;  %v2335_v10 = vpop.xlane.xlu1 %2334  ;;  %v2356_v63 = vrot.slane %v2323_v9, %v9699_v53  ;;  %v10219_v23 = vld [vmem:[%s8017_s9 + $0x8] sm:$0xff] }
 0x258   : > { %v2512_v7 = vmax.f32 %v2496_v13, 0.0  ;;  %v2480_v3 = vadd.f32 %v2464_v62, %v2446_v33  ;;  %v2364_v29 = vrot.slane %v2329_v30, %v9699_v53  ;;  %v2368_v49 = vrot.slane %v2332_v19, %v9699_v53  ;;  %v10236_v13 = vld [vmem:[%s8017_s9 + $0x20] sm:$0xff] }
 0x259   : > { %v2481_v21 = vadd.f32 %v2465_v41, %v2447_v11  ;;  %v2513_v17 = vmax.f32 %v2497_v2, 0.0  ;;  %v2372_v61 = vrot.slane %v2335_v10, %v9699_v53  ;;  %v10209_v28 = vstv %s7001_s7  ;;  %v10241_v11 = vld [vmem:[%s8017_s9 + $0x28] sm:$0xff]  ;;  %v10248_v2 = vld [vmem:[%s8017_s9 + $0x38] sm:$0xff]  ;;  %v10275_v10 = vld [vmem:[%s8017_s9 + $0x50] sm:$0xff]  ;;  %s7012_s7 = sld [smem:[#allocation7 + $0xd]] }
 0x25a   : > { %v2498_v0 = vadd.f32 %v10077_v25, %v2480_v3  ;;  %v10211_v36 = vstv %s7002_s17  ;;  %v10233_v55 = vstv %s7003_s30  ;;  %v10253_v3 = vld [vmem:[%s8017_s9 + $0x40] sm:$0xff]  ;;  %s7013_s17 = sld [smem:[#allocation4 + $0xe]] }
 0x25b   : > { %v2499_v1 = vadd.f32 %v10077_v25, %v2481_v21  ;;  %v2534_v18 = vadd.f32 %v2513_v17, %v2512_v7  ;;  %v10173_v20 = vpop.xlane.xlu0 %639  ;;  %v10175_v26 = vpop.xlane.xlu1 %834  ;;  %v2360_v25 = vrot.slane %v2326_v34, %v9699_v53  ;;  %v2611_v54 = vmul.f32 %v10224_v44, %v10211_v36  ;;  %v10258_v17 = vld [vmem:[%s8017_s9 + $0x48] sm:$0xff]  ;;  %s7014_s30 = sld [smem:[#allocation4 + $0x8e]] }
 0x25c   : > { %v2514_v16 = vmax.f32 %v2498_v0, 0.0  ;;  %15179 = vst [vmem:[#allocation20_spill] sm:$0xff] %v10173_v20  ;;  %15180 = vst [vmem:[#allocation21_spill] sm:$0xff] %v10175_v26  ;;  %v2612_v22 = vmul.f32 %v10229_v40, %v10211_v36  ;;  %v2645_v33 = vmul.f32 %v10236_v13, %v10233_v55  ;;  %v2646_v41 = vmul.f32 %v10241_v11, %v10233_v55  ;;  %v10440_v20 = vld [vmem:[%s8017_s9 + $0x150] sm:$0xff] }
 0x25d   : > { %v2515_v31 = vmax.f32 %v2499_v1, 0.0  ;;  %2535 = vadd.xlane.f32.xlu0 %v2534_v18  ;;  %v2385_v14 = vsel %vm622_vm1, %v2360_v25, %v2356_v63  ;;  %v2596_v7 = vmul.f32 %v10248_v2, %v10209_v28  ;;  %v2613_v21 = vmul.f32 %v10253_v3, %v10211_v36  ;;  %15200 = vst [vmem:[#allocation46_spill] sm:$0xff] %v10440_v20 }
 0x25e   : > { %v2386_v58 = vsel %vm624_vm2, %v2364_v29, %v2385_v14  ;;  %v2614_v0 = vmul.f32 %v10258_v17, %v10211_v36  ;;  %v10272_v34 = vstv %s7004_s13  ;;  %v2647_v25 = vmul.f32 %v10275_v10, %v10233_v55  ;;  %v10282_v14 = vld [vmem:[%s8017_s9 + $0x58] sm:$0xff]  ;;  %s7015_s13 = sld [smem:[#allocation4 + $0x10e]] }
 0x25f   : > { %v2537_v42 = vadd.f32 %v2515_v31, %v2514_v16  ;;  %v10177_v35 = vpop.xlane.xlu0 %1029  ;;  %v10179_v60 = vpop.xlane.xlu1 %1224  ;;  %v2387_v47 = vsel %vm626_vm3, %v2368_v49, %v2386_v58  ;;  %v10263_v16 = vld [vmem:[%s8017_s9 + $0x60] sm:$0xff]  ;;  %v2648_v49 = vmul.f32 %v10282_v14, %v10233_v55  ;;  %v10287_v58 = vld [vmem:[%s8017_s9 + $0x70] sm:$0xff]  ;;  %v2607_v26 = vmul.f32 %v10440_v20, %v10209_v28 }
 0x260   : > { %15181 = vst [vmem:[#allocation18_spill] sm:$0xff] %v10177_v35  ;;  %15182 = vst [vmem:[#allocation19_spill] sm:$0xff] %v10179_v60  ;;  %v2388_v43 = vsel %vm628_vm4, %v2372_v61, %v2387_v47  ;;  %v2597_v31 = vmul.f32 %v10263_v16, %v10209_v28  ;;  %v2630_v19 = vadd.f32 %v2614_v0, %v2596_v7  ;;  %v10419_v60 = vld [vmem:[%s8017_s9 + $0x130] sm:$0xff]  ;;  %v10429_v35 = vld [vmem:[%s8017_s9 + $0x140] sm:$0xff] }
 0x261   : > { %v2615_v61 = vmul.f32 %v10287_v58, %v10211_v36  ;;  %15196 = vst [vmem:[#allocation53_spill] sm:$0xff] %v10419_v60  ;;  %15198 = vst [vmem:[#allocation44_spill] sm:$0xff] %v10429_v35 }
 0x263   : > { %v10181_v57 = vpop.xlane.xlu0 %1419 }
 0x264   : > { %15183 = vst [vmem:[#allocation26_spill] sm:$0xff] %v10181_v57 }
 0x268   : > { %v10185_v27 = vpop.xlane.xlu1 %1614 }
 0x269   : > { %15184 = vst [vmem:[#allocation27_spill] sm:$0xff] %v10185_v27  ;;  %v10408_v27 = vld [vmem:[%s8017_s9 + $0x120] sm:$0xff] }
 0x26a   : > { %15194 = vst [vmem:[#allocation40_spill] sm:$0xff] %v10408_v27  ;;  %v2605_v57 = vmul.f32 %v10408_v27, %v10209_v28  ;;  %v10456_v27 = vld [vmem:[%s8017_s9 + $0x168] sm:$0xff] }
 0x26b   : > { %15203 = vst [vmem:[#allocation50_spill] sm:$0xff] %v10456_v27 }
 0x287   : > { %v10188_v52 = vpop.xlane.xlu0 %1809 }
 0x288   : > { %15185 = vst [vmem:[#allocation17_spill] sm:$0xff] %v10188_v52 }
 0x2a5   : > { %v10192_v37 = vpop.xlane.xlu1 %2004 }
 0x2a6   : > { %15186 = vst [vmem:[#allocation16_spill] sm:$0xff] %v10192_v37 }
 0x2a9   : > { %v2341_v46 = vpop.xlane.xlu1 %2340 }
 0x2aa   : > { %v2380_v45 = vrot.slane %v2341_v46, %v9699_v53  ;;  %v10292_v46 = vld [vmem:[%s8017_s9 + $0x78] sm:$0xff] }
 0x2c6   : > { %v10195_v51 = vpop.xlane.xlu0 %2199 }
 0x2c7   : > { %15187 = vst [vmem:[#allocation29_spill] sm:$0xff] %v10195_v51 }
 0x2ca   : > { %v2338_v48 = vpop.xlane.xlu0 %2337 }
 0x2cb   : > { %v2376_v4 = vrot.slane %v2338_v48, %v9699_v53  ;;  %v2616_v48 = vmul.f32 %v10292_v46, %v10211_v36 }
 0x2cd   : > { %v2389_v8 = vsel %vm630_vm5, %v2376_v4, %v2388_v43  ;;  %v10297_v4 = vld [vmem:[%s8017_s9 + $0x80] sm:$0xff] }
 0x2ce   : > { %v2344_v15 = vpop.xlane.xlu0 %2343  ;;  %v2390_v39 = vsel %vm632_vm6, %v2380_v45, %v2389_v8  ;;  %v2649_v43 = vmul.f32 %v10297_v4, %v10233_v55  ;;  %v10302_v45 = vld [vmem:[%s8017_s9 + $0x88] sm:$0xff] }
 0x2cf   : > { %v2384_v6 = vrot.slane %v2344_v15, %v9699_v53  ;;  %v2650_v8 = vmul.f32 %v10302_v45, %v10233_v55 }
 0x2d1   : > { %v2391_v50 = vsel %vm634_vm7, %v2384_v6, %v2390_v39  ;;  %v2664_v39 = vadd.f32 %v2648_v49, %v2630_v19 }
 0x2d2   : > { %v2393_v59 = vsel %vm637_vm8, %v2391_v50, 0.0  ;;  %v2631_v50 = vadd.f32 %v2615_v61, %v2597_v31 }
 0x2d3   : > { %2394 = vadd.xlane.f32.xlu1 %v2393_v59 }
 0x2d7   : > { %2520 = vadd.xlane.f32.xlu1 %v10107_v56  ;;  %v2593_v56 = vmul.f32 %v10214_v38, %v10209_v28 }
 0x2d9   : > { %v2627_v32 = vadd.f32 %v2611_v54, %v2593_v56 }
 0x2db   : > { %2526 = vadd.xlane.f32.xlu1 %v10140_v12  ;;  %v2594_v12 = vmul.f32 %v10219_v23, %v10209_v28  ;;  %v2661_v1 = vadd.f32 %v2645_v33, %v2627_v32  ;;  %v2682_v33 = vadd.f32 %v10272_v34, %v2664_v39  ;;  %v10353_v39 = vld [vmem:[%s8017_s9 + $0xd0] sm:$0xff] }
 0x2dd   : > { %v2628_v62 = vadd.f32 %v2612_v22, %v2594_v12  ;;  %v2679_v63 = vadd.f32 %v10272_v34, %v2661_v1  ;;  %v10308_v12 = vld [vmem:[%s8017_s9 + $0x90] sm:$0xff]  ;;  %v10313_v22 = vld [vmem:[%s8017_s9 + $0x98] sm:$0xff]  ;;  %v10324_v1 = vld [vmem:[%s8017_s9 + $0xa8] sm:$0xff]  ;;  %v2698_v31 = vmax.f32 %v2682_v33, 0.0 }
 0x2de   : > { %v2599_v54 = vmul.f32 %v10308_v12, %v10209_v28  ;;  %v2600_v32 = vmul.f32 %v10313_v22, %v10209_v28 }
 0x2df   : > { %2532 = vadd.xlane.f32.xlu1 %v2531_v5  ;;  %v2595_v5 = vmul.f32 %v10065_v24, %v10209_v28  ;;  %v2662_v18 = vadd.f32 %v2646_v41, %v2628_v62  ;;  %v2695_v15 = vmax.f32 %v2679_v63, 0.0  ;;  %v2665_v41 = vadd.f32 %v2649_v43, %v2631_v50 }
 0x2e0   : > { %v2619_v50 = vmul.f32 %v10353_v39, %v10211_v36 }
 0x2e1   : > { %v2629_v30 = vadd.f32 %v2613_v21, %v2595_v5  ;;  %v2680_v29 = vadd.f32 %v10272_v34, %v2662_v18  ;;  %v10319_v21 = vld [vmem:[%s8017_s9 + $0xa0] sm:$0xff]  ;;  %v2618_v18 = vmul.f32 %v10324_v1, %v10211_v36 }
 0x2e2   : > { %v2617_v0 = vmul.f32 %v10319_v21, %v10211_v36 }
 0x2e3   : > { %2538 = vadd.xlane.f32.xlu1 %v2537_v42  ;;  %v10268_v42 = vld [vmem:[%s8017_s9 + $0x68] sm:$0xff]  ;;  %v2663_v47 = vadd.f32 %v2647_v25, %v2629_v30  ;;  %v2696_v6 = vmax.f32 %v2680_v29, 0.0  ;;  %v10330_v30 = vld [vmem:[%s8017_s9 + $0xb0] sm:$0xff]  ;;  %v10335_v25 = vld [vmem:[%s8017_s9 + $0xb8] sm:$0xff]  ;;  %v2634_v61 = vadd.f32 %v2618_v18, %v2600_v32 }
 0x2e4   : > { %v2598_v9 = vmul.f32 %v10268_v42, %v10209_v28  ;;  %v2651_v19 = vmul.f32 %v10330_v30, %v10233_v55  ;;  %v2652_v63 = vmul.f32 %v10335_v25, %v10233_v55  ;;  %v2633_v49 = vadd.f32 %v2617_v0, %v2599_v54  ;;  %v10358_v32 = vld [vmem:[%s8017_s9 + $0xd8] sm:$0xff]  ;;  %v10373_v18 = vld [vmem:[%s8017_s9 + $0xf0] sm:$0xff] }
 0x2e5   : > { %v2681_v59 = vadd.f32 %v10272_v34, %v2663_v47  ;;  %v2711_v62 = vadd.f32 %v2696_v6, %v2695_v15  ;;  %v10341_v47 = vld [vmem:[%s8017_s9 + $0xc0] sm:$0xff]  ;;  %v10348_v15 = vld [vmem:[%s8017_s9 + $0xc8] sm:$0xff]  ;;  %15188 = vst [vmem:[#allocation33_spill] sm:$0xff] %v10373_v18 }
 0x2e6   : > { %v2632_v56 = vadd.f32 %v2616_v48, %v2598_v9  ;;  %v2683_v9 = vadd.f32 %v10272_v34, %v2665_v41  ;;  %v2601_v48 = vmul.f32 %v10341_v47, %v10209_v28  ;;  %v2602_v6 = vmul.f32 %v10348_v15, %v10209_v28  ;;  %v10363_v41 = vld [vmem:[%s8017_s9 + $0xe0] sm:$0xff] }
 0x2e7   : > { %v2697_v5 = vmax.f32 %v2681_v59, 0.0  ;;  %2712 = vadd.xlane.f32.xlu1 %v2711_v62  ;;  %v2668_v54 = vadd.f32 %v2652_v63, %v2634_v61  ;;  %v2620_v62 = vmul.f32 %v10358_v32, %v10211_v36  ;;  %v10380_v61 = vld [vmem:[%s8017_s9 + $0xf8] sm:$0xff] }
 0x2e8   : > { %v2666_v7 = vadd.f32 %v2650_v8, %v2632_v56  ;;  %v2699_v8 = vmax.f32 %v2683_v9, 0.0  ;;  %v2667_v56 = vadd.f32 %v2651_v19, %v2633_v49  ;;  %v2635_v33 = vadd.f32 %v2619_v50, %v2601_v48  ;;  %15189 = vst [vmem:[#allocation22_spill] sm:$0xff] %v10380_v61  ;;  %v10385_v50 = vld [vmem:[%s8017_s9 + $0x100] sm:$0xff] }
 0x2e9   : > { %v10345_v43 = vadd.f32 %v2698_v31, %v2697_v5  ;;  %v2653_v5 = vmul.f32 %v10363_v41, %v10233_v55  ;;  %v2603_v31 = vmul.f32 %v10373_v18, %v10209_v28  ;;  %v2686_v63 = vadd.f32 %v10272_v34, %v2668_v54  ;;  %15190 = vst [vmem:[#allocation23_spill] sm:$0xff] %v10385_v50  ;;  %v10395_v54 = vld [vmem:[%s8017_s9 + $0x110] sm:$0xff] }
 0x2ea   : > { %v2684_v29 = vadd.f32 %v10272_v34, %v2666_v7  ;;  %v10368_v7 = vld [vmem:[%s8017_s9 + $0xe8] sm:$0xff]  ;;  %v2685_v19 = vadd.f32 %v10272_v34, %v2667_v56  ;;  %v2604_v48 = vmul.f32 %v10380_v61, %v10209_v28  ;;  %v2621_v51 = vmul.f32 %v10385_v50, %v10211_v36  ;;  %15192 = vst [vmem:[#allocation30_spill] sm:$0xff] %v10395_v54 }
 0x2eb   : > { %v2654_v0 = vmul.f32 %v10368_v7, %v10233_v55  ;;  %v2669_v49 = vadd.f32 %v2653_v5, %v2635_v33  ;;  %v10390_v56 = vld [vmem:[%s8017_s9 + $0x108] sm:$0xff] }
 0x2ec   : > { %v2700_v59 = vmax.f32 %v2684_v29, 0.0  ;;  %v2636_v29 = vadd.f32 %v2620_v62, %v2602_v6  ;;  %15191 = vst [vmem:[#allocation24_spill] sm:$0xff] %v10390_v56  ;;  %v2622_v6 = vmul.f32 %v10390_v56, %v10211_v36  ;;  %v2655_v62 = vmul.f32 %v10395_v54, %v10233_v55 }
 0x2ed   : > { %v2687_v5 = vadd.f32 %v10272_v34, %v2669_v49  ;;  %v2637_v37 = vadd.f32 %v2621_v51, %v2603_v31 }
 0x2ee   : > { %v2717_v9 = vadd.f32 %v2700_v59, %v2699_v8  ;;  %v2701_v8 = vmax.f32 %v2685_v19, 0.0  ;;  %v2702_v59 = vmax.f32 %v2686_v63, 0.0  ;;  %v2670_v33 = vadd.f32 %v2654_v0, %v2636_v29  ;;  %v10413_v0 = vld [vmem:[%s8017_s9 + $0x128] sm:$0xff] }
 0x2ef   : > { %v2638_v52 = vadd.f32 %v2622_v6, %v2604_v48  ;;  %15195 = vst [vmem:[#allocation48_spill] sm:$0xff] %v10413_v0  ;;  %v2606_v51 = vmul.f32 %v10413_v0, %v10209_v28  ;;  %v2703_v29 = vmax.f32 %v2687_v5, 0.0  ;;  %v2671_v49 = vadd.f32 %v2655_v62, %v2637_v37  ;;  %v10434_v5 = vld [vmem:[%s8017_s9 + $0x148] sm:$0xff] }
 0x2f0   : > { %2718 = vadd.xlane.f32.xlu1 %v2717_v9  ;;  %v10401_v9 = vld [vmem:[%s8017_s9 + $0x118] sm:$0xff]  ;;  %v10405_v63 = vadd.f32 %v2702_v59, %v2701_v8  ;;  %v2688_v31 = vadd.f32 %v10272_v34, %v2670_v33  ;;  %v2623_v48 = vmul.f32 %v10419_v60, %v10211_v36  ;;  %v2657_v33 = vmul.f32 %v10429_v35, %v10233_v55 }
 0x2f1   : > { %15193 = vst [vmem:[#allocation38_spill] sm:$0xff] %v10401_v9  ;;  %v2656_v19 = vmul.f32 %v10401_v9, %v10233_v55  ;;  %v10424_v59 = vld [vmem:[%s8017_s9 + $0x138] sm:$0xff]  ;;  %15199 = vst [vmem:[#allocation45_spill] sm:$0xff] %v10434_v5  ;;  %v2658_v37 = vmul.f32 %v10434_v5, %v10233_v55  ;;  %v10451_v5 = vld [vmem:[%s8017_s9 + $0x160] sm:$0xff] }
 0x2f2   : > { %15197 = vst [vmem:[#allocation58_spill] sm:$0xff] %v10424_v59  ;;  %v2624_v6 = vmul.f32 %v10424_v59, %v10211_v36  ;;  %v2704_v62 = vmax.f32 %v2688_v31, 0.0  ;;  %v10446_v35 = vld [vmem:[%s8017_s9 + $0x158] sm:$0xff]  ;;  %15202 = vst [vmem:[#allocation49_spill] sm:$0xff] %v10451_v5  ;;  %v10461_v9 = vld [vmem:[%s8017_s9 + $0x170] sm:$0xff] }
 0x2f3   : > { %v2672_v8 = vadd.f32 %v2656_v19, %v2638_v52  ;;  %v2689_v52 = vadd.f32 %v10272_v34, %v2671_v49  ;;  %v2639_v19 = vadd.f32 %v2623_v48, %v2605_v57  ;;  %15201 = vst [vmem:[#allocation47_spill] sm:$0xff] %v10446_v35  ;;  %v2608_v0 = vmul.f32 %v10446_v35, %v10209_v28 }
 0x2f4   : > { %v2640_v60 = vadd.f32 %v2624_v6, %v2606_v51  ;;  %v2625_v57 = vmul.f32 %v10451_v5, %v10211_v36  ;;  %v2723_v31 = vadd.f32 %v2704_v62, %v2703_v29  ;;  %15204 = vst [vmem:[#allocation51_spill] sm:$0xff] %v10461_v9  ;;  %v2659_v28 = vmul.f32 %v10461_v9, %v10233_v55  ;;  %v10467_v29 = vld [vmem:[%s8017_s9 + $0x178] sm:$0xff] }
 0x2f5   : > { %v2690_v59 = vadd.f32 %v10272_v34, %v2672_v8  ;;  %v2705_v49 = vmax.f32 %v2689_v52, 0.0  ;;  %v2673_v48 = vadd.f32 %v2657_v33, %v2639_v19  ;;  %v2626_v8 = vmul.f32 %v10456_v27, %v10211_v36 }
 0x2f6   : > { %v2674_v6 = vadd.f32 %v2658_v37, %v2640_v60  ;;  %v2641_v20 = vadd.f32 %v2625_v57, %v2607_v26  ;;  %2724 = vadd.xlane.f32.xlu1 %v2723_v31  ;;  %v2660_v33 = vmul.f32 %v10467_v29, %v10233_v55 }
 0x2f7   : > { %v2706_v51 = vmax.f32 %v2690_v59, 0.0  ;;  %v2691_v35 = vadd.f32 %v10272_v34, %v2673_v48  ;;  %v2642_v5 = vadd.f32 %v2626_v8, %v2608_v0  ;;  %v2518_v8 = vpop.xlane.xlu0 %2517 }
 0x2f8   : > { %v2692_v36 = vadd.f32 %v10272_v34, %v2674_v6  ;;  %v2675_v59 = vadd.f32 %v2659_v28, %v2641_v20  ;;  %v2551_v55 = vrot.slane %v2518_v8, %v9699_v53 }
 0x2f9   : > { %v2726_v62 = vadd.f32 %v2706_v51, %v2705_v49  ;;  %v2707_v60 = vmax.f32 %v2691_v35, 0.0  ;;  %v2676_v26 = vadd.f32 %v2660_v33, %v2642_v5 }
 0x2fa   : > { %v2708_v37 = vmax.f32 %v2692_v36, 0.0  ;;  %v2693_v52 = vadd.f32 %v10272_v34, %v2675_v59 }
 0x2fb   : > { %v2694_v19 = vadd.f32 %v10272_v34, %v2676_v26  ;;  %v2524_v9 = vpop.xlane.xlu0 %2523 }
 0x2fc   : > { %v2729_v57 = vadd.f32 %v2708_v37, %v2707_v60  ;;  %v2709_v31 = vmax.f32 %v2693_v52, 0.0  ;;  %v2559_v5 = vrot.slane %v2524_v9, %v9699_v53 }
 0x2fd   : > { %v2710_v48 = vmax.f32 %v2694_v19, 0.0 }
 0x2fe   : > { %2730 = vadd.xlane.f32.xlu1 %v2729_v57 }
 0x2ff   : > { %v2732_v0 = vadd.f32 %v2710_v48, %v2709_v31  ;;  %v2530_v35 = vpop.xlane.xlu0 %2529 }
 0x300   : > { %v2567_v33 = vrot.slane %v2530_v35, %v9699_v53 }
 0x303   : > { %v2536_v59 = vpop.xlane.xlu0 %2535 }
 0x304   : > { %v2575_v52 = vrot.slane %v2536_v59, %v9699_v53 }
 0x360   : > { %v10474_v27 = vpop.xlane.xlu1 %2394 }
 0x361   : > { %15205 = vst [vmem:[#allocation52_spill] sm:$0xff] %v10474_v27 }
 0x364   : > { %v2521_v49 = vpop.xlane.xlu1 %2520 }
 0x365   : > { %v2555_v20 = vrot.slane %v2521_v49, %v9699_v53  ;;  %v10496_v49 = vstv %s7006_s8  ;;  %s7017_s8 = sld [smem:[#allocation4 + $0xf]] }
 0x367   : > { %v2580_v51 = vsel %vm622_vm1, %v2555_v20, %v2551_v55  ;;  %v10494_v55 = vstv %s7005_s10  ;;  %s7016_s10 = sld [smem:[#allocation7 + $0xe]] }
 0x368   : > { %v2527_v34 = vpop.xlane.xlu1 %2526  ;;  %v2581_v28 = vsel %vm624_vm2, %v2559_v5, %v2580_v51  ;;  %v2788_v20 = vmul.f32 %v10214_v38, %v10494_v55  ;;  %v2789_v35 = vmul.f32 %v10219_v23, %v10494_v55 }
 0x369   : > { %v2563_v6 = vrot.slane %v2527_v34, %v9699_v53 }
 0x36b   : > { %v2582_v36 = vsel %vm626_vm3, %v2563_v6, %v2581_v28  ;;  %v2790_v6 = vmul.f32 %v10065_v24, %v10494_v55  ;;  %v2791_v28 = vmul.f32 %v10248_v2, %v10494_v55 }
 0x36c   : > { %v2533_v60 = vpop.xlane.xlu1 %2532  ;;  %v2583_v37 = vsel %vm628_vm4, %v2567_v33, %v2582_v36  ;;  %v2808_v33 = vmul.f32 %v10253_v3, %v10496_v49  ;;  %v2809_v36 = vmul.f32 %v10258_v17, %v10496_v49 }
 0x36d   : > { %v2571_v26 = vrot.slane %v2533_v60, %v9699_v53 }
 0x36f   : > { %v2584_v9 = vsel %vm630_vm5, %v2571_v26, %v2583_v37  ;;  %v2792_v26 = vmul.f32 %v10263_v16, %v10494_v55  ;;  %v2793_v37 = vmul.f32 %v10268_v42, %v10494_v55 }
 0x370   : > { %v2539_v19 = vpop.xlane.xlu1 %2538  ;;  %v2585_v31 = vsel %vm632_vm6, %v2575_v52, %v2584_v9  ;;  %v10524_v52 = vstv %s7008_s28  ;;  %v2824_v9 = vadd.f32 %v2808_v33, %v2790_v6  ;;  %s7019_s28 = sld [smem:[#allocation4 + $0x10f]] }
 0x371   : > { %v2579_v57 = vrot.slane %v2539_v19, %v9699_v53  ;;  %v2825_v19 = vadd.f32 %v2809_v36, %v2791_v28  ;;  %v2794_v36 = vmul.f32 %v10308_v12, %v10494_v55 }
 0x373   : > { %v2586_v48 = vsel %vm634_vm7, %v2579_v57, %v2585_v31 }
 0x374   : > { %v2588_v8 = vsel %vm637_vm8, %v2586_v48, 0.0 }
 0x375   : > { %2589 = vadd.xlane.f32.xlu0 %v2588_v8 }
 0x379   : > { %2715 = vadd.xlane.f32.xlu0 %v10345_v43  ;;  %v2806_v43 = vmul.f32 %v10224_v44, %v10496_v49 }
 0x37d   : > { %2721 = vadd.xlane.f32.xlu0 %v10405_v63  ;;  %v2807_v63 = vmul.f32 %v10229_v40, %v10496_v49 }
 0x37f   : > { %v2823_v5 = vadd.f32 %v2807_v63, %v2789_v35 }
 0x381   : > { %2727 = vadd.xlane.f32.xlu0 %v2726_v62  ;;  %v10506_v62 = vstv %s7007_s12  ;;  %s7018_s12 = sld [smem:[#allocation4 + $0x8f]] }
 0x382   : > { %v2840_v51 = vmul.f32 %v10236_v13, %v10506_v62  ;;  %v2841_v34 = vmul.f32 %v10241_v11, %v10506_v62  ;;  %v2842_v57 = vmul.f32 %v10275_v10, %v10506_v62  ;;  %v2843_v8 = vmul.f32 %v10282_v14, %v10506_v62 }
 0x383   : > { %v2844_v63 = vmul.f32 %v10297_v4, %v10506_v62 }
 0x384   : > { %v2857_v60 = vadd.f32 %v2841_v34, %v2823_v5  ;;  %v2858_v35 = vadd.f32 %v2842_v57, %v2824_v9  ;;  %v2859_v34 = vadd.f32 %v2843_v8, %v2825_v19  ;;  %v2795_v9 = vmul.f32 %v10313_v22, %v10494_v55 }
 0x385   : > { %2733 = vadd.xlane.f32.xlu0 %v2732_v0  ;;  %v2822_v0 = vadd.f32 %v2806_v43, %v2788_v20  ;;  %v2810_v20 = vmul.f32 %v10287_v58, %v10496_v49  ;;  %v2811_v43 = vmul.f32 %v10292_v46, %v10496_v49  ;;  %v2812_v57 = vmul.f32 %v10319_v21, %v10496_v49 }
 0x386   : > { %v2875_v48 = vadd.f32 %v10524_v52, %v2857_v60  ;;  %v2876_v6 = vadd.f32 %v10524_v52, %v2858_v35  ;;  %v2877_v60 = vadd.f32 %v10524_v52, %v2859_v34  ;;  %v2813_v19 = vmul.f32 %v10324_v1, %v10496_v49 }
 0x387   : > { %v2856_v59 = vadd.f32 %v2840_v51, %v2822_v0  ;;  %v2845_v0 = vmul.f32 %v10302_v45, %v10506_v62  ;;  %v2826_v28 = vadd.f32 %v2810_v20, %v2792_v26  ;;  %v2827_v33 = vadd.f32 %v2811_v43, %v2793_v37 }
 0x388   : > { %v2891_v51 = vmax.f32 %v2875_v48, 0.0  ;;  %v2892_v27 = vmax.f32 %v2876_v6, 0.0  ;;  %v2893_v26 = vmax.f32 %v2877_v60, 0.0  ;;  %v2828_v37 = vadd.f32 %v2812_v57, %v2794_v36 }
 0x389   : > { %v2874_v31 = vadd.f32 %v10524_v52, %v2856_v59  ;;  %v2861_v48 = vadd.f32 %v2845_v0, %v2827_v33  ;;  %v2846_v8 = vmul.f32 %v10330_v30, %v10506_v62  ;;  %v2847_v20 = vmul.f32 %v10335_v25, %v10506_v62 }
 0x38a   : > { %v10558_v0 = vadd.f32 %v2893_v26, %v2892_v27  ;;  %v2797_v34 = vmul.f32 %v10348_v15, %v10494_v55  ;;  %v2814_v6 = vmul.f32 %v10353_v39, %v10496_v49  ;;  %v2815_v60 = vmul.f32 %v10358_v32, %v10496_v49 }
 0x38b   : > { %v2890_v5 = vmax.f32 %v2874_v31, 0.0  ;;  %v2860_v31 = vadd.f32 %v2844_v63, %v2826_v28  ;;  %v2879_v43 = vadd.f32 %v10524_v52, %v2861_v48  ;;  %v2796_v63 = vmul.f32 %v10341_v47, %v10494_v55 }
 0x38c   : > { %v2848_v27 = vmul.f32 %v10363_v41, %v10506_v62  ;;  %v2849_v48 = vmul.f32 %v10368_v7, %v10506_v62 }
 0x38d   : > { %v2906_v59 = vadd.f32 %v2891_v51, %v2890_v5  ;;  %v2878_v35 = vadd.f32 %v10524_v52, %v2860_v31  ;;  %v2829_v5 = vadd.f32 %v2813_v19, %v2795_v9  ;;  %v2862_v51 = vadd.f32 %v2846_v8, %v2828_v37 }
 0x38e   : > { %v2895_v33 = vmax.f32 %v2879_v43, 0.0  ;;  %v2830_v9 = vadd.f32 %v2814_v6, %v2796_v63  ;;  %v2798_v19 = vmul.f32 %v10373_v18, %v10494_v55  ;;  %v2831_v37 = vadd.f32 %v2815_v60, %v2797_v34  ;;  %v15206_v34 = vld [vmem:[#allocation38_spill] sm:$0xff] }
 0x38f   : > { %2907 = vadd.xlane.f32.xlu0 %v2906_v59  ;;  %v2894_v28 = vmax.f32 %v2878_v35, 0.0  ;;  %v2863_v36 = vadd.f32 %v2847_v20, %v2829_v5  ;;  %v2880_v59 = vadd.f32 %v10524_v52, %v2862_v51  ;;  %v2799_v20 = vmul.f32 %v10380_v61, %v10494_v55 }
 0x390   : > { %v2864_v8 = vadd.f32 %v2848_v27, %v2830_v9  ;;  %v2816_v43 = vmul.f32 %v10385_v50, %v10496_v49  ;;  %v2817_v5 = vmul.f32 %v10390_v56, %v10496_v49  ;;  %v2850_v63 = vmul.f32 %v10395_v54, %v10506_v62  ;;  %v15208_v27 = vld [vmem:[#allocation48_spill] sm:$0xff] }
 0x391   : > { %v2912_v57 = vadd.f32 %v2895_v33, %v2894_v28  ;;  %v2881_v31 = vadd.f32 %v10524_v52, %v2863_v36  ;;  %v2896_v26 = vmax.f32 %v2880_v59, 0.0  ;;  %v2865_v51 = vadd.f32 %v2849_v48, %v2831_v37  ;;  %v15207_v33 = vld [vmem:[#allocation40_spill] sm:$0xff]  ;;  %v15209_v48 = vld [vmem:[#allocation53_spill] sm:$0xff] }
 0x392   : > { %v2882_v6 = vadd.f32 %v10524_v52, %v2864_v8  ;;  %v2851_v28 = vmul.f32 %v15206_v34, %v10506_v62  ;;  %v2800_v36 = vmul.f32 %v15207_v33, %v10494_v55  ;;  %v2832_v60 = vadd.f32 %v2816_v43, %v2798_v19  ;;  %v15210_v8 = vld [vmem:[#allocation58_spill] sm:$0xff]  ;;  %v15211_v33 = vld [vmem:[#allocation44_spill] sm:$0xff]  ;;  %v15212_v19 = vld [vmem:[#allocation45_spill] sm:$0xff] }
 0x393   : > { %2913 = vadd.xlane.f32.xlu0 %v2912_v57  ;;  %v2897_v35 = vmax.f32 %v2881_v31, 0.0  ;;  %v2833_v9 = vadd.f32 %v2817_v5, %v2799_v20  ;;  %v2801_v57 = vmul.f32 %v15208_v27, %v10494_v55  ;;  %v2883_v31 = vadd.f32 %v10524_v52, %v2865_v51  ;;  %v15213_v51 = vld [vmem:[#allocation46_spill] sm:$0xff] }
 0x394   : > { %v2898_v56 = vmax.f32 %v2882_v6, 0.0  ;;  %v2818_v37 = vmul.f32 %v15209_v48, %v10496_v49  ;;  %v2819_v54 = vmul.f32 %v15210_v8, %v10496_v49  ;;  %v2866_v34 = vadd.f32 %v2850_v63, %v2832_v60  ;;  %v15214_v8 = vld [vmem:[#allocation47_spill] sm:$0xff] }
 0x395   : > { %v10587_v59 = vadd.f32 %v2897_v35, %v2896_v26  ;;  %v2867_v50 = vadd.f32 %v2851_v28, %v2833_v9  ;;  %v2852_v26 = vmul.f32 %v15211_v33, %v10506_v62  ;;  %v2853_v20 = vmul.f32 %v15212_v19, %v10506_v62  ;;  %v15215_v28 = vld [vmem:[#allocation49_spill] sm:$0xff] }
 0x396   : > { %v2899_v35 = vmax.f32 %v2883_v31, 0.0  ;;  %v2834_v43 = vadd.f32 %v2818_v37, %v2800_v36  ;;  %v2835_v5 = vadd.f32 %v2819_v54, %v2801_v57  ;;  %v2802_v6 = vmul.f32 %v15213_v51, %v10494_v55  ;;  %v15216_v31 = vld [vmem:[#allocation50_spill] sm:$0xff]  ;;  %v15217_v51 = vld [vmem:[#allocation51_spill] sm:$0xff] }
 0x397   : > { %v2884_v27 = vadd.f32 %v10524_v52, %v2866_v34  ;;  %v2885_v48 = vadd.f32 %v10524_v52, %v2867_v50  ;;  %v2803_v63 = vmul.f32 %v15214_v8, %v10494_v55  ;;  %v2820_v60 = vmul.f32 %v15215_v28, %v10496_v49 }
 0x398   : > { %v2918_v9 = vadd.f32 %v2899_v35, %v2898_v56  ;;  %v2868_v33 = vadd.f32 %v2852_v26, %v2834_v43  ;;  %v2869_v61 = vadd.f32 %v2853_v20, %v2835_v5  ;;  %v2821_v36 = vmul.f32 %v15216_v31, %v10496_v49 }
 0x399   : > { %v2900_v54 = vmax.f32 %v2884_v27, 0.0  ;;  %v2901_v57 = vmax.f32 %v2885_v48, 0.0  ;;  %v2836_v37 = vadd.f32 %v2820_v60, %v2802_v6  ;;  %v2854_v34 = vmul.f32 %v15217_v51, %v10506_v62 }
 0x39a   : > { %2919 = vadd.xlane.f32.xlu0 %v2918_v9  ;;  %v2886_v50 = vadd.f32 %v10524_v52, %v2868_v33  ;;  %v2887_v55 = vadd.f32 %v10524_v52, %v2869_v61  ;;  %v2837_v8 = vadd.f32 %v2821_v36, %v2803_v63  ;;  %v2855_v56 = vmul.f32 %v10467_v29, %v10506_v62  ;;  %v2713_v9 = vpop.xlane.xlu1 %2712 }
 0x39b   : > { %v2921_v26 = vadd.f32 %v2901_v57, %v2900_v54  ;;  %v2870_v20 = vadd.f32 %v2854_v34, %v2836_v37  ;;  %v2746_v62 = vrot.slane %v2713_v9, %v9699_v53 }
 0x39c   : > { %v2902_v35 = vmax.f32 %v2886_v50, 0.0  ;;  %v2903_v43 = vmax.f32 %v2887_v55, 0.0  ;;  %v2871_v49 = vadd.f32 %v2855_v56, %v2837_v8 }
 0x39d   : > { %v2888_v27 = vadd.f32 %v10524_v52, %v2870_v20 }
 0x39e   : > { %v2924_v48 = vadd.f32 %v2903_v43, %v2902_v35  ;;  %v2889_v5 = vadd.f32 %v10524_v52, %v2871_v49  ;;  %v2719_v61 = vpop.xlane.xlu1 %2718 }
 0x39f   : > { %v2904_v6 = vmax.f32 %v2888_v27, 0.0  ;;  %v2754_v8 = vrot.slane %v2719_v61, %v9699_v53 }
 0x3a0   : > { %2925 = vadd.xlane.f32.xlu0 %v2924_v48  ;;  %v2905_v60 = vmax.f32 %v2889_v5, 0.0 }
 0x3a2   : > { %v2927_v33 = vadd.f32 %v2905_v60, %v2904_v6  ;;  %v2725_v57 = vpop.xlane.xlu1 %2724 }
 0x3a3   : > { %v2762_v55 = vrot.slane %v2725_v57, %v9699_v53 }
 0x3a6   : > { %v2731_v20 = vpop.xlane.xlu1 %2730 }
 0x3a7   : > { %v2770_v27 = vrot.slane %v2731_v20, %v9699_v53 }
 0x402   : > { %v10618_v63 = vpop.xlane.xlu0 %2589 }
 0x403   : > { %15218 = vst [vmem:[#allocation54_spill] sm:$0xff] %v10618_v63  ;;  %v15221_v63 = vld [vmem:[#allocation24_spill] sm:$0xff] }
 0x406   : > { %v2716_v36 = vpop.xlane.xlu0 %2715 }
 0x407   : > { %v2750_v54 = vrot.slane %v2716_v36, %v9699_v53  ;;  %v10640_v36 = vstv %s7010_s1  ;;  %s7021_s1 = sld [smem:[#allocation4 + $0x10]] }
 0x409   : > { %v2775_v37 = vsel %vm622_vm1, %v2750_v54, %v2746_v62  ;;  %v10638_v62 = vstv %s7009_s6  ;;  %s7020_s6 = sld [smem:[#allocation7 + $0xf]] }
 0x40a   : > { %v2722_v34 = vpop.xlane.xlu0 %2721  ;;  %v2776_v50 = vsel %vm624_vm2, %v2754_v8, %v2775_v37  ;;  %v2983_v54 = vmul.f32 %v10214_v38, %v10638_v62  ;;  %v2984_v57 = vmul.f32 %v10219_v23, %v10638_v62 }
 0x40b   : > { %v2758_v52 = vrot.slane %v2722_v34, %v9699_v53 }
 0x40d   : > { %v2777_v56 = vsel %vm626_vm3, %v2758_v52, %v2776_v50  ;;  %v2985_v52 = vmul.f32 %v10065_v24, %v10638_v62  ;;  %v2986_v50 = vmul.f32 %v10248_v2, %v10638_v62 }
 0x40e   : > { %v2728_v35 = vpop.xlane.xlu0 %2727  ;;  %v2778_v49 = vsel %vm628_vm4, %v2762_v55, %v2777_v56  ;;  %v3003_v55 = vmul.f32 %v10253_v3, %v10640_v36  ;;  %v3004_v56 = vmul.f32 %v10258_v17, %v10640_v36 }
 0x40f   : > { %v2766_v43 = vrot.slane %v2728_v35, %v9699_v53 }
 0x410   : > { %v3019_v24 = vadd.f32 %v3003_v55, %v2985_v52  ;;  %v2989_v55 = vmul.f32 %v10308_v12, %v10638_v62 }
 0x411   : > { %v2779_v48 = vsel %vm630_vm5, %v2766_v43, %v2778_v49  ;;  %v2987_v43 = vmul.f32 %v10263_v16, %v10638_v62  ;;  %v2988_v49 = vmul.f32 %v10268_v42, %v10638_v62 }
 0x412   : > { %v2734_v5 = vpop.xlane.xlu0 %2733  ;;  %v2780_v60 = vsel %vm632_vm6, %v2770_v27, %v2779_v48  ;;  %v10668_v27 = vstv %s7012_s7  ;;  %v3020_v48 = vadd.f32 %v3004_v56, %v2986_v50  ;;  %s7023_s7 = sld [smem:[#allocation4 + $0x110]] }
 0x413   : > { %v2774_v6 = vrot.slane %v2734_v5, %v9699_v53 }
 0x415   : > { %v2781_v9 = vsel %vm634_vm7, %v2774_v6, %v2780_v60 }
 0x416   : > { %v2783_v61 = vsel %vm637_vm8, %v2781_v9, 0.0 }
 0x417   : > { %2784 = vadd.xlane.f32.xlu1 %v2783_v61  ;;  %v3005_v61 = vmul.f32 %v10287_v58, %v10640_v36 }
 0x419   : > { %v3021_v52 = vadd.f32 %v3005_v61, %v2987_v43 }
 0x41b   : > { %2910 = vadd.xlane.f32.xlu1 %v10558_v0  ;;  %v3001_v0 = vmul.f32 %v10224_v44, %v10640_v36 }
 0x41f   : > { %2916 = vadd.xlane.f32.xlu1 %v10587_v59  ;;  %v3002_v59 = vmul.f32 %v10229_v40, %v10640_v36 }
 0x421   : > { %v3018_v8 = vadd.f32 %v3002_v59, %v2984_v57  ;;  %v3006_v57 = vmul.f32 %v10292_v46, %v10640_v36 }
 0x423   : > { %2922 = vadd.xlane.f32.xlu1 %v2921_v26  ;;  %v10650_v26 = vstv %s7011_s2  ;;  %v3022_v50 = vadd.f32 %v3006_v57, %v2988_v49  ;;  %s7022_s2 = sld [smem:[#allocation4 + $0x90]] }
 0x424   : > { %v3035_v37 = vmul.f32 %v10236_v13, %v10650_v26  ;;  %v3036_v34 = vmul.f32 %v10241_v11, %v10650_v26  ;;  %v3037_v5 = vmul.f32 %v10275_v10, %v10650_v26  ;;  %v3038_v9 = vmul.f32 %v10282_v14, %v10650_v26 }
 0x425   : > { %v3040_v59 = vmul.f32 %v10302_v45, %v10650_v26  ;;  %v3042_v61 = vmul.f32 %v10335_v25, %v10650_v26 }
 0x426   : > { %v3052_v35 = vadd.f32 %v3036_v34, %v3018_v8 }
 0x427   : > { %2928 = vadd.xlane.f32.xlu1 %v2927_v33  ;;  %v3017_v33 = vadd.f32 %v3001_v0, %v2983_v54  ;;  %v3053_v54 = vadd.f32 %v3037_v5, %v3019_v24  ;;  %v3039_v0 = vmul.f32 %v10297_v4, %v10650_v26  ;;  %v3007_v24 = vmul.f32 %v10319_v21, %v10640_v36 }
 0x428   : > { %v3070_v60 = vadd.f32 %v10668_v27, %v3052_v35  ;;  %v2990_v35 = vmul.f32 %v10313_v22, %v10638_v62 }
 0x429   : > { %v3051_v20 = vadd.f32 %v3035_v37, %v3017_v33  ;;  %v3054_v37 = vadd.f32 %v3038_v9, %v3020_v48  ;;  %v3071_v34 = vadd.f32 %v10668_v27, %v3053_v54  ;;  %v3008_v48 = vmul.f32 %v10324_v1, %v10640_v36 }
 0x42a   : > { %v3086_v8 = vmax.f32 %v3070_v60, 0.0  ;;  %v3056_v60 = vadd.f32 %v3040_v59, %v3022_v50  ;;  %v3023_v49 = vadd.f32 %v3007_v24, %v2989_v55  ;;  %v3041_v9 = vmul.f32 %v10330_v30, %v10650_v26 }
 0x42b   : > { %v3069_v6 = vadd.f32 %v10668_v27, %v3051_v20  ;;  %v3072_v20 = vadd.f32 %v10668_v27, %v3054_v37  ;;  %v3087_v5 = vmax.f32 %v3071_v34, 0.0  ;;  %v2992_v37 = vmul.f32 %v10348_v15, %v10638_v62 }
 0x42c   : > { %v3074_v57 = vadd.f32 %v10668_v27, %v3056_v60  ;;  %v3009_v55 = vmul.f32 %v10353_v39, %v10640_v36  ;;  %v3044_v24 = vmul.f32 %v10368_v7, %v10650_v26 }
 0x42d   : > { %v3085_v33 = vmax.f32 %v3069_v6, 0.0  ;;  %v3055_v6 = vadd.f32 %v3039_v0, %v3021_v52  ;;  %v3088_v43 = vmax.f32 %v3072_v20, 0.0  ;;  %v2991_v0 = vmul.f32 %v10341_v47, %v10638_v62 }
 0x42e   : > { %v3090_v52 = vmax.f32 %v3074_v57, 0.0  ;;  %v3010_v20 = vmul.f32 %v10358_v32, %v10640_v36 }
 0x42f   : > { %v3101_v56 = vadd.f32 %v3086_v8, %v3085_v33  ;;  %v3073_v54 = vadd.f32 %v10668_v27, %v3055_v6  ;;  %v3024_v33 = vadd.f32 %v3008_v48, %v2990_v35  ;;  %v10702_v59 = vadd.f32 %v3088_v43, %v3087_v5 }
 0x430   : > { %v3057_v8 = vadd.f32 %v3041_v9, %v3023_v49  ;;  %v3043_v35 = vmul.f32 %v10363_v41, %v10650_v26  ;;  %v3025_v60 = vadd.f32 %v3009_v55, %v2991_v0  ;;  %v2993_v48 = vmul.f32 %v10373_v18, %v10638_v62  ;;  %v15219_v9 = vld [vmem:[#allocation22_spill] sm:$0xff] }
 0x431   : > { %3102 = vadd.xlane.f32.xlu1 %v3101_v56  ;;  %v3089_v34 = vmax.f32 %v3073_v54, 0.0  ;;  %v3058_v50 = vadd.f32 %v3042_v61, %v3024_v33  ;;  %v3026_v49 = vadd.f32 %v3010_v20, %v2992_v37  ;;  %v2994_v61 = vmul.f32 %v15219_v9, %v10638_v62  ;;  %v15220_v54 = vld [vmem:[#allocation23_spill] sm:$0xff]  ;;  %v15224_v20 = vld [vmem:[#allocation40_spill] sm:$0xff] }
 0x432   : > { %v3075_v56 = vadd.f32 %v10668_v27, %v3057_v8  ;;  %v3011_v57 = vmul.f32 %v15220_v54, %v10640_v36  ;;  %v3059_v8 = vadd.f32 %v3043_v35, %v3025_v60  ;;  %v2995_v9 = vmul.f32 %v15224_v20, %v10638_v62  ;;  %v15225_v35 = vld [vmem:[#allocation48_spill] sm:$0xff] }
 0x433   : > { %v3107_v5 = vadd.f32 %v3090_v52, %v3089_v34  ;;  %v3076_v6 = vadd.f32 %v10668_v27, %v3058_v50  ;;  %v3012_v34 = vmul.f32 %v15221_v63, %v10640_v36  ;;  %v15222_v52 = vld [vmem:[#allocation30_spill] sm:$0xff]  ;;  %v3060_v50 = vadd.f32 %v3044_v24, %v3026_v49  ;;  %v15226_v24 = vld [vmem:[#allocation53_spill] sm:$0xff] }
 0x434   : > { %v3091_v43 = vmax.f32 %v3075_v56, 0.0  ;;  %v3045_v0 = vmul.f32 %v15222_v52, %v10650_v26  ;;  %v3027_v55 = vadd.f32 %v3011_v57, %v2993_v48  ;;  %v15223_v56 = vld [vmem:[#allocation38_spill] sm:$0xff]  ;;  %v2996_v60 = vmul.f32 %v15225_v35, %v10638_v62 }
 0x435   : > { %3108 = vadd.xlane.f32.xlu1 %v3107_v5  ;;  %v3092_v33 = vmax.f32 %v3076_v6, 0.0  ;;  %v3046_v37 = vmul.f32 %v15223_v56, %v10650_v26  ;;  %v3077_v5 = vadd.f32 %v10668_v27, %v3059_v8  ;;  %v3028_v6 = vadd.f32 %v3012_v34, %v2994_v61  ;;  %v15227_v49 = vld [vmem:[#allocation58_spill] sm:$0xff] }
 0x436   : > { %v3078_v63 = vadd.f32 %v10668_v27, %v3060_v50  ;;  %v3061_v54 = vadd.f32 %v3045_v0, %v3027_v55  ;;  %v3013_v48 = vmul.f32 %v15226_v24, %v10640_v36  ;;  %v3014_v57 = vmul.f32 %v15227_v49, %v10640_v36  ;;  %v15229_v55 = vld [vmem:[#allocation46_spill] sm:$0xff]  ;;  %v15230_v49 = vld [vmem:[#allocation47_spill] sm:$0xff] }
 0x437   : > { %v10730_v18 = vadd.f32 %v3092_v33, %v3091_v43  ;;  %v3093_v56 = vmax.f32 %v3077_v5, 0.0  ;;  %v3062_v52 = vadd.f32 %v3046_v37, %v3028_v6  ;;  %v15228_v43 = vld [vmem:[#allocation44_spill] sm:$0xff]  ;;  %v3048_v61 = vmul.f32 %v15212_v19, %v10650_v26 }
 0x438   : > { %v3047_v33 = vmul.f32 %v15228_v43, %v10650_v26  ;;  %v3094_v8 = vmax.f32 %v3078_v63, 0.0  ;;  %v3079_v34 = vadd.f32 %v10668_v27, %v3061_v54  ;;  %v3029_v35 = vadd.f32 %v3013_v48, %v2995_v9 }
 0x439   : > { %v3030_v50 = vadd.f32 %v3014_v57, %v2996_v60  ;;  %v3080_v0 = vadd.f32 %v10668_v27, %v3062_v52  ;;  %v2997_v24 = vmul.f32 %v15229_v55, %v10638_v62  ;;  %v2998_v5 = vmul.f32 %v15230_v49, %v10638_v62 }
 0x43a   : > { %v3015_v37 = vmul.f32 %v15215_v28, %v10640_v36  ;;  %v3113_v6 = vadd.f32 %v3094_v8, %v3093_v56  ;;  %v3095_v43 = vmax.f32 %v3079_v34, 0.0  ;;  %v3063_v20 = vadd.f32 %v3047_v33, %v3029_v35 }
 0x43b   : > { %v3064_v19 = vadd.f32 %v3048_v61, %v3030_v50  ;;  %v3096_v63 = vmax.f32 %v3080_v0, 0.0  ;;  %v3016_v9 = vmul.f32 %v15216_v31, %v10640_v36  ;;  %v3049_v52 = vmul.f32 %v15217_v51, %v10650_v26 }
 0x43c   : > { %v3031_v54 = vadd.f32 %v3015_v37, %v2997_v24  ;;  %3114 = vadd.xlane.f32.xlu1 %v3113_v6  ;;  %v3081_v60 = vadd.f32 %v10668_v27, %v3063_v20  ;;  %v3050_v48 = vmul.f32 %v10467_v29, %v10650_v26  ;;  %v2908_v37 = vpop.xlane.xlu0 %2907 }
 0x43d   : > { %v3082_v62 = vadd.f32 %v10668_v27, %v3064_v19  ;;  %v3116_v56 = vadd.f32 %v3096_v63, %v3095_v43  ;;  %v3032_v57 = vadd.f32 %v3016_v9, %v2998_v5  ;;  %v2941_v26 = vrot.slane %v2908_v37, %v9699_v53 }
 0x43e   : > { %v3065_v35 = vadd.f32 %v3049_v52, %v3031_v54  ;;  %v3097_v33 = vmax.f32 %v3081_v60, 0.0 }
 0x43f   : > { %v3098_v61 = vmax.f32 %v3082_v62, 0.0  ;;  %v3066_v8 = vadd.f32 %v3050_v48, %v3032_v57 }
 0x440   : > { %v3083_v36 = vadd.f32 %v10668_v27, %v3065_v35  ;;  %v2914_v19 = vpop.xlane.xlu0 %2913 }
 0x441   : > { %v3119_v24 = vadd.f32 %v3098_v61, %v3097_v33  ;;  %v3084_v34 = vadd.f32 %v10668_v27, %v3066_v8  ;;  %v2949_v9 = vrot.slane %v2914_v19, %v9699_v53  ;;  %v10782_v19 = vstv %s7013_s17  ;;  %s7024_s17 = sld [smem:[#allocation7 + $0x10]] }
 0x442   : > { %v3099_v50 = vmax.f32 %v3083_v36, 0.0 }
 0x443   : > { %3120 = vadd.xlane.f32.xlu1 %v3119_v24  ;;  %v3100_v0 = vmax.f32 %v3084_v34, 0.0 }
 0x444   : > { %v2920_v63 = vpop.xlane.xlu0 %2919 }
 0x445   : > { %v3122_v20 = vadd.f32 %v3100_v0, %v3099_v50  ;;  %v2957_v62 = vrot.slane %v2920_v63, %v9699_v53 }
 0x448   : > { %v2926_v57 = vpop.xlane.xlu0 %2925 }
 0x449   : > { %v2965_v8 = vrot.slane %v2926_v57, %v9699_v53 }
 0x4a4   : > { %v10762_v6 = vpop.xlane.xlu1 %2784 }
 0x4a5   : > { %15231 = vst [vmem:[#allocation55_spill] sm:$0xff] %v10762_v6 }
 0x4a8   : > { %v2911_v43 = vpop.xlane.xlu1 %2910 }
 0x4a9   : > { %v2945_v5 = vrot.slane %v2911_v43, %v9699_v53  ;;  %v3178_v43 = vmul.f32 %v10214_v38, %v10782_v19  ;;  %v10801_v38 = vld [vmem:[%s8017_s9 + $0x30] sm:$0xff] }
 0x4ab   : > { %v2970_v54 = vsel %vm622_vm1, %v2945_v5, %v2941_v26  ;;  %v10784_v26 = vstv %s7014_s30  ;;  %v3179_v5 = vmul.f32 %v10219_v23, %v10782_v19  ;;  %v3180_v23 = vmul.f32 %v10801_v38, %v10782_v19  ;;  %s7025_s30 = sld [smem:[#allocation4 + $0x11]] }
 0x4ac   : > { %v2917_v52 = vpop.xlane.xlu1 %2916  ;;  %v2971_v60 = vsel %vm624_vm2, %v2949_v9, %v2970_v54 }
 0x4ad   : > { %v2953_v27 = vrot.slane %v2917_v52, %v9699_v53  ;;  %v3199_v52 = vmul.f32 %v10258_v17, %v10784_v26 }
 0x4af   : > { %v2972_v48 = vsel %vm626_vm3, %v2953_v27, %v2971_v60 }
 0x4b0   : > { %v2923_v35 = vpop.xlane.xlu1 %2922  ;;  %v2973_v61 = vsel %vm628_vm4, %v2957_v62, %v2972_v48  ;;  %v10815_v62 = vstv %s7016_s10  ;;  %s7027_s10 = sld [smem:[#allocation4 + $0x111]] }
 0x4b1   : > { %v2961_v33 = vrot.slane %v2923_v35, %v9699_v53 }
 0x4b3   : > { %v2974_v36 = vsel %vm630_vm5, %v2961_v33, %v2973_v61 }
 0x4b4   : > { %v2929_v24 = vpop.xlane.xlu1 %2928  ;;  %v2975_v50 = vsel %vm632_vm6, %v2965_v8, %v2974_v36 }
 0x4b5   : > { %v2969_v34 = vrot.slane %v2929_v24, %v9699_v53 }
 0x4b7   : > { %v2976_v0 = vsel %vm634_vm7, %v2969_v34, %v2975_v50 }
 0x4b8   : > { %v2978_v37 = vsel %vm637_vm8, %v2976_v0, 0.0 }
 0x4b9   : > { %2979 = vadd.xlane.f32.xlu0 %v2978_v37 }
 0x4bd   : > { %3105 = vadd.xlane.f32.xlu0 %v10702_v59  ;;  %v3197_v59 = vmul.f32 %v10229_v40, %v10784_v26  ;;  %v3198_v40 = vmul.f32 %v10253_v3, %v10784_v26 }
 0x4bf   : > { %v3213_v63 = vadd.f32 %v3197_v59, %v3179_v5  ;;  %v3214_v48 = vadd.f32 %v3198_v40, %v3180_v23 }
 0x4c1   : > { %3111 = vadd.xlane.f32.xlu0 %v10730_v18  ;;  %v3196_v18 = vmul.f32 %v10224_v44, %v10784_v26  ;;  %v3181_v44 = vmul.f32 %v10248_v2, %v10782_v19 }
 0x4c3   : > { %v3215_v57 = vadd.f32 %v3199_v52, %v3181_v44  ;;  %v3187_v44 = vmul.f32 %v10348_v15, %v10782_v19 }
 0x4c5   : > { %3117 = vadd.xlane.f32.xlu0 %v3116_v56  ;;  %v10794_v56 = vstv %s7015_s13  ;;  %s7026_s13 = sld [smem:[#allocation4 + $0x91]] }
 0x4c6   : > { %v3230_v9 = vmul.f32 %v10236_v13, %v10794_v56  ;;  %v3231_v54 = vmul.f32 %v10241_v11, %v10794_v56  ;;  %v3182_v13 = vmul.f32 %v10263_v16, %v10782_v19  ;;  %v3183_v11 = vmul.f32 %v10268_v42, %v10782_v19 }
 0x4c7   : > { %v3232_v2 = vmul.f32 %v10275_v10, %v10794_v56  ;;  %v3233_v17 = vmul.f32 %v10282_v14, %v10794_v56  ;;  %v3200_v16 = vmul.f32 %v10287_v58, %v10784_v26  ;;  %v3201_v42 = vmul.f32 %v10292_v46, %v10784_v26 }
 0x4c8   : > { %v3247_v60 = vadd.f32 %v3231_v54, %v3213_v63  ;;  %v3234_v61 = vmul.f32 %v10297_v4, %v10794_v56  ;;  %v3235_v10 = vmul.f32 %v10302_v45, %v10794_v56  ;;  %v3184_v58 = vmul.f32 %v10308_v12, %v10782_v19 }
 0x4c9   : > { %3123 = vadd.xlane.f32.xlu0 %v3122_v20  ;;  %v3212_v20 = vadd.f32 %v3196_v18, %v3178_v43  ;;  %v3248_v33 = vadd.f32 %v3232_v2, %v3214_v48  ;;  %v3249_v24 = vadd.f32 %v3233_v17, %v3215_v57  ;;  %v3216_v50 = vadd.f32 %v3200_v16, %v3182_v13  ;;  %v15232_v57 = vld [vmem:[#allocation33_spill] sm:$0xff] }
 0x4ca   : > { %v3265_v35 = vadd.f32 %v10815_v62, %v3247_v60  ;;  %v3217_v14 = vadd.f32 %v3201_v42, %v3183_v11  ;;  %v3185_v46 = vmul.f32 %v10313_v22, %v10782_v19  ;;  %v3202_v4 = vmul.f32 %v10319_v21, %v10784_v26 }
 0x4cb   : > { %v3246_v27 = vadd.f32 %v3230_v9, %v3212_v20  ;;  %v3266_v34 = vadd.f32 %v10815_v62, %v3248_v33  ;;  %v3267_v37 = vadd.f32 %v10815_v62, %v3249_v24  ;;  %v3250_v43 = vadd.f32 %v3234_v61, %v3216_v50  ;;  %v15236_v61 = vld [vmem:[#allocation30_spill] sm:$0xff]  ;;  %v15238_v50 = vld [vmem:[#allocation40_spill] sm:$0xff] }
 0x4cc   : > { %v3281_v36 = vmax.f32 %v3265_v35, 0.0  ;;  %v3251_v5 = vadd.f32 %v3235_v10, %v3217_v14  ;;  %v3203_v18 = vmul.f32 %v10324_v1, %v10784_v26  ;;  %v3218_v20 = vadd.f32 %v3202_v4, %v3184_v58  ;;  %v15233_v35 = vld [vmem:[#allocation22_spill] sm:$0xff] }
 0x4cd   : > { %v3264_v3 = vadd.f32 %v10815_v62, %v3246_v27  ;;  %v3282_v45 = vmax.f32 %v3266_v34, 0.0  ;;  %v3283_v59 = vmax.f32 %v3267_v37, 0.0  ;;  %v3236_v12 = vmul.f32 %v10330_v30, %v10794_v56  ;;  %v15237_v24 = vld [vmem:[#allocation38_spill] sm:$0xff] }
 0x4ce   : > { %v3237_v63 = vmul.f32 %v10335_v25, %v10794_v56  ;;  %v3268_v22 = vadd.f32 %v10815_v62, %v3250_v43  ;;  %v3269_v9 = vadd.f32 %v10815_v62, %v3251_v5  ;;  %v3219_v21 = vadd.f32 %v3203_v18, %v3185_v46  ;;  %v15239_v46 = vld [vmem:[#allocation48_spill] sm:$0xff]  ;;  %v15240_v5 = vld [vmem:[#allocation53_spill] sm:$0xff] }
 0x4cf   : > { %v3280_v8 = vmax.f32 %v3264_v3, 0.0  ;;  %v3186_v54 = vmul.f32 %v10341_v47, %v10782_v19  ;;  %v10849_v23 = vadd.f32 %v3283_v59, %v3282_v45  ;;  %v3252_v1 = vadd.f32 %v3236_v12, %v3218_v20  ;;  %v15241_v59 = vld [vmem:[#allocation58_spill] sm:$0xff] }
 0x4d0   : > { %v3284_v40 = vmax.f32 %v3268_v22, 0.0  ;;  %v3285_v52 = vmax.f32 %v3269_v9, 0.0  ;;  %v3253_v30 = vadd.f32 %v3237_v63, %v3219_v21  ;;  %v3204_v25 = vmul.f32 %v10353_v39, %v10784_v26  ;;  %v15242_v22 = vld [vmem:[#allocation44_spill] sm:$0xff]  ;;  %v15243_v21 = vld [vmem:[#allocation45_spill] sm:$0xff] }
 0x4d1   : > { %v3296_v0 = vadd.f32 %v3281_v36, %v3280_v8  ;;  %v3270_v27 = vadd.f32 %v10815_v62, %v3252_v1  ;;  %v3205_v60 = vmul.f32 %v10358_v32, %v10784_v26  ;;  %v3238_v47 = vmul.f32 %v10363_v41, %v10794_v56  ;;  %v15234_v32 = vld [vmem:[#allocation23_spill] sm:$0xff] }
 0x4d2   : > { %v3239_v13 = vmul.f32 %v10368_v7, %v10794_v56  ;;  %v3302_v11 = vadd.f32 %v3285_v52, %v3284_v40  ;;  %v3271_v15 = vadd.f32 %v10815_v62, %v3253_v30  ;;  %v3220_v48 = vadd.f32 %v3204_v25, %v3186_v54  ;;  %v15235_v7 = vld [vmem:[#allocation24_spill] sm:$0xff] }
 0x4d3   : > { %3297 = vadd.xlane.f32.xlu0 %v3296_v0  ;;  %v3188_v2 = vmul.f32 %v15232_v57, %v10782_v19  ;;  %v3286_v3 = vmax.f32 %v3270_v27, 0.0  ;;  %v3221_v39 = vadd.f32 %v3205_v60, %v3187_v44  ;;  %v3189_v17 = vmul.f32 %v15233_v35, %v10782_v19 }
 0x4d4   : > { %v3206_v16 = vmul.f32 %v15234_v32, %v10784_v26  ;;  %v3287_v41 = vmax.f32 %v3271_v15, 0.0  ;;  %v3254_v33 = vadd.f32 %v3238_v47, %v3220_v48  ;;  %v3207_v42 = vmul.f32 %v15235_v7, %v10784_v26 }
 0x4d5   : > { %v3240_v10 = vmul.f32 %v15236_v61, %v10794_v56  ;;  %v3255_v8 = vadd.f32 %v3239_v13, %v3221_v39  ;;  %v3241_v34 = vmul.f32 %v15237_v24, %v10794_v56  ;;  %v3190_v14 = vmul.f32 %v15238_v50, %v10782_v19 }
 0x4d6   : > { %v3222_v36 = vadd.f32 %v3206_v16, %v3188_v2  ;;  %v10877_v58 = vadd.f32 %v3287_v41, %v3286_v3  ;;  %v3272_v0 = vadd.f32 %v10815_v62, %v3254_v33  ;;  %v3223_v37 = vadd.f32 %v3207_v42, %v3189_v17  ;;  %v3103_v42 = vpop.xlane.xlu1 %3102 }
 0x4d7   : > { %3303 = vadd.xlane.f32.xlu0 %v3302_v11  ;;  %v3191_v4 = vmul.f32 %v15239_v46, %v10782_v19  ;;  %v3273_v45 = vadd.f32 %v10815_v62, %v3255_v8  ;;  %v3208_v18 = vmul.f32 %v15240_v5, %v10784_v26  ;;  %v3209_v20 = vmul.f32 %v15241_v59, %v10784_v26 }
 0x4d8   : > { %v3256_v43 = vadd.f32 %v3240_v10, %v3222_v36  ;;  %v3288_v12 = vmax.f32 %v3272_v0, 0.0  ;;  %v3257_v63 = vadd.f32 %v3241_v34, %v3223_v37  ;;  %v3242_v9 = vmul.f32 %v15242_v22, %v10794_v56 }
 0x4d9   : > { %v3243_v54 = vmul.f32 %v15243_v21, %v10794_v56  ;;  %v3289_v1 = vmax.f32 %v3273_v45, 0.0  ;;  %v3224_v40 = vadd.f32 %v3208_v18, %v3190_v14  ;;  %v3225_v52 = vadd.f32 %v3209_v20, %v3191_v4 }
 0x4da   : > { %v3274_v44 = vadd.f32 %v10815_v62, %v3256_v43  ;;  %v3275_v30 = vadd.f32 %v10815_v62, %v3257_v63  ;;  %v3192_v25 = vmul.f32 %v15229_v55, %v10782_v19  ;;  %v3193_v27 = vmul.f32 %v15230_v49, %v10782_v19  ;;  %v3109_v61 = vpop.xlane.xlu1 %3108 }
 0x4db   : > { %v3210_v60 = vmul.f32 %v15215_v28, %v10784_v26  ;;  %v3308_v47 = vadd.f32 %v3289_v1, %v3288_v12  ;;  %v3258_v11 = vadd.f32 %v3242_v9, %v3224_v40  ;;  %v3259_v15 = vadd.f32 %v3243_v54, %v3225_v52  ;;  %v10934_v54 = vld [vmem:[%s8017_s9] sm:$0xff]  ;;  %v10939_v1 = vld [vmem:[%s8017_s9 + $0x8] sm:$0xff]  ;;  %v10949_v52 = vld [vmem:[%s8017_s9 + $0x18] sm:$0xff] }
 0x4dc   : > { %v3290_v13 = vmax.f32 %v3274_v44, 0.0  ;;  %v3291_v48 = vmax.f32 %v3275_v30, 0.0  ;;  %v3211_v57 = vmul.f32 %v15216_v31, %v10784_v26  ;;  %v3244_v3 = vmul.f32 %v15217_v51, %v10794_v56  ;;  %v10944_v44 = vld [vmem:[%s8017_s9 + $0x10] sm:$0xff] }
 0x4dd   : > { %v3226_v2 = vadd.f32 %v3210_v60, %v3192_v25  ;;  %3309 = vadd.xlane.f32.xlu0 %v3308_v47  ;;  %v3276_v55 = vadd.f32 %v10815_v62, %v3258_v11  ;;  %v3277_v49 = vadd.f32 %v10815_v62, %v3259_v15  ;;  %v3245_v28 = vmul.f32 %v10467_v29, %v10794_v56  ;;  %v10956_v47 = vld [vmem:[%s8017_s9 + $0x20] sm:$0xff]  ;;  %v10961_v11 = vld [vmem:[%s8017_s9 + $0x28] sm:$0xff] }
 0x4de   : > { %v3311_v19 = vadd.f32 %v3291_v48, %v3290_v13  ;;  %v3227_v39 = vadd.f32 %v3211_v57, %v3193_v27  ;;  %v3136_v29 = vrot.slane %v3103_v42, %v9699_v53  ;;  %v3115_v36 = vpop.xlane.xlu1 %3114  ;;  %v3144_v24 = vrot.slane %v3109_v61, %v9699_v53  ;;  %v10968_v57 = vld [vmem:[%s8017_s9 + $0x38] sm:$0xff] }
 0x4df   : > { %v3260_v35 = vadd.f32 %v3244_v3, %v3226_v2  ;;  %v3292_v17 = vmax.f32 %v3276_v55, 0.0  ;;  %v3293_v32 = vmax.f32 %v3277_v49, 0.0  ;;  %v3152_v0 = vrot.slane %v3115_v36, %v9699_v53  ;;  %v10973_v3 = vld [vmem:[%s8017_s9 + $0x40] sm:$0xff]  ;;  %v10978_v49 = vld [vmem:[%s8017_s9 + $0x48] sm:$0xff]  ;;  %v11002_v61 = vld [vmem:[%s8017_s9 + $0x58] sm:$0xff] }
 0x4e0   : > { %v3261_v16 = vadd.f32 %v3245_v28, %v3227_v39  ;;  %v10929_v9 = vstv %s7017_s8  ;;  %v10931_v21 = vstv %s7018_s12  ;;  %v10953_v25 = vstv %s7019_s28  ;;  %s7028_s8 = sld [smem:[#allocation7 + $0x11]]  ;;  %s7029_s12 = sld [smem:[#allocation4 + $0x12]] }
 0x4e1   : > { %v3278_v31 = vadd.f32 %v10815_v62, %v3260_v35  ;;  %v3314_v26 = vadd.f32 %v3293_v32, %v3292_v17  ;;  %v3391_v40 = vmul.f32 %v10944_v44, %v10931_v21  ;;  %v3392_v30 = vmul.f32 %v10949_v52, %v10931_v21  ;;  %v10983_v35 = vld [vmem:[%s8017_s9 + $0x60] sm:$0xff]  ;;  %v10988_v32 = vld [vmem:[%s8017_s9 + $0x68] sm:$0xff]  ;;  %s7030_s28 = sld [smem:[#allocation4 + $0x92]] }
 0x4e2   : > { %v3279_v41 = vadd.f32 %v10815_v62, %v3261_v16  ;;  %v3121_v46 = vpop.xlane.xlu1 %3120  ;;  %v3425_v13 = vmul.f32 %v10956_v47, %v10953_v25  ;;  %v3426_v15 = vmul.f32 %v10961_v11, %v10953_v25  ;;  %v3375_v48 = vmul.f32 %v10801_v38, %v10929_v9 }
 0x4e3   : > { %v3294_v51 = vmax.f32 %v3278_v31, 0.0  ;;  %3315 = vadd.xlane.f32.xlu0 %v3314_v26  ;;  %v3160_v5 = vrot.slane %v3121_v46, %v9699_v53  ;;  %v3376_v2 = vmul.f32 %v10968_v57, %v10929_v9  ;;  %v3393_v55 = vmul.f32 %v10973_v3, %v10931_v21 }
 0x4e4   : > { %v3295_v33 = vmax.f32 %v3279_v41, 0.0  ;;  %v3394_v28 = vmul.f32 %v10978_v49, %v10931_v21  ;;  %v3377_v17 = vmul.f32 %v10983_v35, %v10929_v9  ;;  %v3378_v16 = vmul.f32 %v10988_v32, %v10929_v9 }
 0x4e5   : > { %v10992_v31 = vstv %s7020_s6  ;;  %v3409_v26 = vadd.f32 %v3393_v55, %v3375_v48  ;;  %s7031_s6 = sld [smem:[#allocation4 + $0x112]] }
 0x4e6   : > { %v3317_v7 = vadd.f32 %v3295_v33, %v3294_v51  ;;  %v3410_v41 = vadd.f32 %v3394_v28, %v3376_v2  ;;  %v10995_v51 = vld [vmem:[%s8017_s9 + $0x50] sm:$0xff]  ;;  %v11054_v28 = vld [vmem:[%s8017_s9 + $0xb8] sm:$0xff] }
 0x4e7   : > { %v3427_v33 = vmul.f32 %v10995_v51, %v10953_v25  ;;  %v11049_v2 = vld [vmem:[%s8017_s9 + $0xb0] sm:$0xff] }
 0x4e8   : > { %v3431_v55 = vmul.f32 %v11049_v2, %v10953_v25 }
 0x4e9   : > { %v3443_v36 = vadd.f32 %v3427_v33, %v3409_v26  ;;  %v11061_v26 = vld [vmem:[%s8017_s9 + $0xc0] sm:$0xff] }
 0x546   : > { %v10909_v10 = vpop.xlane.xlu0 %2979 }
 0x547   : > { %15244 = vst [vmem:[#allocation56_spill] sm:$0xff] %v10909_v10 }
 0x54a   : > { %v3106_v56 = vpop.xlane.xlu0 %3105 }
 0x54b   : > { %v3140_v8 = vrot.slane %v3106_v56, %v9699_v53  ;;  %v11007_v56 = vld [vmem:[%s8017_s9 + $0x70] sm:$0xff] }
 0x54d   : > { %v3165_v34 = vsel %vm622_vm1, %v3140_v8, %v3136_v29  ;;  %v3428_v29 = vmul.f32 %v11002_v61, %v10953_v25  ;;  %v3395_v8 = vmul.f32 %v11007_v56, %v10931_v21 }
 0x54e   : > { %v3112_v50 = vpop.xlane.xlu0 %3111  ;;  %v3166_v14 = vsel %vm624_vm2, %v3144_v24, %v3165_v34  ;;  %v11012_v24 = vld [vmem:[%s8017_s9 + $0x78] sm:$0xff] }
 0x54f   : > { %v3148_v62 = vrot.slane %v3112_v50, %v9699_v53  ;;  %v3396_v34 = vmul.f32 %v11012_v24, %v10931_v21  ;;  %v11017_v50 = vld [vmem:[%s8017_s9 + $0x80] sm:$0xff] }
 0x551   : > { %v3167_v37 = vsel %vm626_vm3, %v3148_v62, %v3166_v14  ;;  %v3429_v62 = vmul.f32 %v11017_v50, %v10953_v25  ;;  %v11022_v14 = vld [vmem:[%s8017_s9 + $0x88] sm:$0xff] }
 0x552   : > { %v3118_v4 = vpop.xlane.xlu0 %3117  ;;  %v3168_v43 = vsel %vm628_vm4, %v3152_v0, %v3167_v37  ;;  %v3430_v0 = vmul.f32 %v11022_v14, %v10953_v25 }
 0x553   : > { %v3156_v45 = vrot.slane %v3118_v4, %v9699_v53  ;;  %v3444_v4 = vadd.f32 %v3428_v29, %v3410_v41  ;;  %v3381_v41 = vmul.f32 %v11061_v26, %v10929_v9 }
 0x555   : > { %v3169_v18 = vsel %vm630_vm5, %v3156_v45, %v3168_v43  ;;  %v3461_v45 = vadd.f32 %v10992_v31, %v3443_v36  ;;  %v3411_v43 = vadd.f32 %v3395_v8, %v3377_v17 }
 0x556   : > { %v3124_v59 = vpop.xlane.xlu0 %3123  ;;  %v3170_v12 = vsel %vm632_vm6, %v3160_v5, %v3169_v18  ;;  %v3412_v5 = vadd.f32 %v3396_v34, %v3378_v16  ;;  %v11028_v18 = vld [vmem:[%s8017_s9 + $0x90] sm:$0xff] }
 0x557   : > { %v3164_v20 = vrot.slane %v3124_v59, %v9699_v53  ;;  %v3379_v59 = vmul.f32 %v11028_v18, %v10929_v9 }
 0x559   : > { %v3171_v63 = vsel %vm634_vm7, %v3164_v20, %v3170_v12  ;;  %v3462_v12 = vadd.f32 %v10992_v31, %v3444_v4 }
 0x55a   : > { %v3173_v22 = vsel %vm637_vm8, %v3171_v63, 0.0  ;;  %v11034_v63 = vld [vmem:[%s8017_s9 + $0x98] sm:$0xff] }
 0x55b   : > { %3174 = vadd.xlane.f32.xlu1 %v3173_v22  ;;  %v3380_v22 = vmul.f32 %v11034_v63, %v10929_v9 }
 0x55f   : > { %3300 = vadd.xlane.f32.xlu1 %v10849_v23  ;;  %v3373_v23 = vmul.f32 %v10934_v54, %v10929_v9 }
 0x561   : > { %v3407_v27 = vadd.f32 %v3391_v40, %v3373_v23  ;;  %v11039_v23 = vld [vmem:[%s8017_s9 + $0xa0] sm:$0xff]  ;;  %v3477_v40 = vmax.f32 %v3461_v45, 0.0 }
 0x562   : > { %v11084_v45 = vld [vmem:[%s8017_s9 + $0xe0] sm:$0xff] }
 0x563   : > { %3306 = vadd.xlane.f32.xlu1 %v10877_v58  ;;  %v3374_v58 = vmul.f32 %v10939_v1, %v10929_v9 }
 0x565   : > { %v3408_v60 = vadd.f32 %v3392_v30, %v3374_v58  ;;  %v3397_v58 = vmul.f32 %v11039_v23, %v10931_v21  ;;  %v3445_v30 = vadd.f32 %v3429_v62, %v3411_v43  ;;  %v11073_v62 = vld [vmem:[%s8017_s9 + $0xd0] sm:$0xff]  ;;  %v3433_v43 = vmul.f32 %v11084_v45, %v10953_v25 }
 0x567   : > { %3312 = vadd.xlane.f32.xlu1 %v3311_v19  ;;  %v3441_v19 = vadd.f32 %v3425_v13, %v3407_v27  ;;  %v3442_v39 = vadd.f32 %v3426_v15, %v3408_v60  ;;  %v3446_v27 = vadd.f32 %v3430_v0, %v3412_v5  ;;  %v11044_v60 = vld [vmem:[%s8017_s9 + $0xa8] sm:$0xff]  ;;  %v3478_v15 = vmax.f32 %v3462_v12, 0.0 }
 0x568   : > { %v3398_v13 = vmul.f32 %v11044_v60, %v10931_v21  ;;  %v3413_v48 = vadd.f32 %v3397_v58, %v3379_v59  ;;  %v3399_v0 = vmul.f32 %v11073_v62, %v10931_v21  ;;  %v11089_v5 = vld [vmem:[%s8017_s9 + $0xe8] sm:$0xff]  ;;  %v11095_v58 = vld [vmem:[%s8017_s9 + $0xf0] sm:$0xff] }
 0x569   : > { %v3460_v42 = vadd.f32 %v10992_v31, %v3442_v39  ;;  %v3463_v39 = vadd.f32 %v10992_v31, %v3445_v30  ;;  %v3464_v17 = vadd.f32 %v10992_v31, %v3446_v27  ;;  %v11065_v33 = vadd.f32 %v3478_v15, %v3477_v40 }
 0x56a   : > { %v3414_v16 = vadd.f32 %v3398_v13, %v3380_v22  ;;  %v3434_v59 = vmul.f32 %v11089_v5, %v10953_v25  ;;  %v3415_v22 = vadd.f32 %v3399_v0, %v3381_v41  ;;  %v3383_v40 = vmul.f32 %v11095_v58, %v10929_v9  ;;  %v11100_v13 = vld [vmem:[%s8017_s9 + $0xf8] sm:$0xff]  ;;  %v11115_v41 = vld [vmem:[%s8017_s9 + $0x110] sm:$0xff]  ;;  %v11125_v0 = vld [vmem:[%s8017_s9 + $0x120] sm:$0xff] }
 0x56b   : > { %3318 = vadd.xlane.f32.xlu1 %v3317_v7  ;;  %v3459_v7 = vadd.f32 %v10992_v31, %v3441_v19  ;;  %v3476_v46 = vmax.f32 %v3460_v42, 0.0  ;;  %v3432_v19 = vmul.f32 %v11054_v28, %v10953_v25  ;;  %v11068_v42 = vld [vmem:[%s8017_s9 + $0xc8] sm:$0xff]  ;;  %v3479_v8 = vmax.f32 %v3463_v39, 0.0  ;;  %15245 = vst [vmem:[#allocation57_spill] sm:$0xff] %v11100_v13  ;;  %15248 = vst [vmem:[#allocation62_spill] sm:$0xff] %v11115_v41 }
 0x56c   : > { %v3382_v29 = vmul.f32 %v11068_v42, %v10929_v9  ;;  %v3480_v36 = vmax.f32 %v3464_v17, 0.0  ;;  %v3384_v15 = vmul.f32 %v11100_v13, %v10929_v9  ;;  %v3449_v39 = vadd.f32 %v3433_v43, %v3415_v22  ;;  %v11110_v17 = vld [vmem:[%s8017_s9 + $0x108] sm:$0xff]  ;;  %15250 = vst [vmem:[#allocation34_spill] sm:$0xff] %v11125_v0 }
 0x56d   : > { %v3475_v37 = vmax.f32 %v3459_v7, 0.0  ;;  %v3447_v7 = vadd.f32 %v3431_v55, %v3413_v48  ;;  %v3448_v34 = vadd.f32 %v3432_v19, %v3414_v16  ;;  %v11105_v48 = vld [vmem:[%s8017_s9 + $0x100] sm:$0xff]  ;;  %15247 = vst [vmem:[#allocation60_spill] sm:$0xff] %v11110_v17  ;;  %v3402_v16 = vmul.f32 %v11110_v17, %v10931_v21 }
 0x56e   : > { %15246 = vst [vmem:[#allocation59_spill] sm:$0xff] %v11105_v48  ;;  %v3401_v55 = vmul.f32 %v11105_v48, %v10931_v21  ;;  %v3467_v43 = vadd.f32 %v10992_v31, %v3449_v39 }
 0x56f   : > { %v3491_v20 = vadd.f32 %v3476_v46, %v3475_v37  ;;  %v3465_v37 = vadd.f32 %v10992_v31, %v3447_v7  ;;  %v11079_v46 = vld [vmem:[%s8017_s9 + $0xd8] sm:$0xff]  ;;  %v3466_v12 = vadd.f32 %v10992_v31, %v3448_v34  ;;  %v3435_v7 = vmul.f32 %v11115_v41, %v10953_v25 }
 0x570   : > { %v3400_v4 = vmul.f32 %v11079_v46, %v10931_v21 }
 0x571   : > { %3492 = vadd.xlane.f32.xlu1 %v3491_v20  ;;  %v3497_v20 = vadd.f32 %v3480_v36, %v3479_v8  ;;  %v3481_v30 = vmax.f32 %v3465_v37, 0.0  ;;  %v3482_v19 = vmax.f32 %v3466_v12, 0.0  ;;  %v3417_v8 = vadd.f32 %v3401_v55, %v3383_v40  ;;  %v11120_v36 = vld [vmem:[%s8017_s9 + $0x118] sm:$0xff]  ;;  %v11133_v12 = vld [vmem:[%s8017_s9 + $0x128] sm:$0xff] }
 0x572   : > { %v3416_v27 = vadd.f32 %v3400_v4, %v3382_v29  ;;  %15249 = vst [vmem:[#allocation28_spill] sm:$0xff] %v11120_v36  ;;  %v3436_v34 = vmul.f32 %v11120_v36, %v10953_v25  ;;  %v3385_v37 = vmul.f32 %v11125_v0, %v10929_v9  ;;  %15251 = vst [vmem:[#allocation35_spill] sm:$0xff] %v11133_v12  ;;  %v11181_v36 = vld [vmem:[%s8017_s9 + $0x170] sm:$0xff] }
 0x573   : > { %v11129_v4 = vadd.f32 %v3482_v19, %v3481_v30  ;;  %v3451_v40 = vadd.f32 %v3435_v7, %v3417_v8  ;;  %v11144_v30 = vld [vmem:[%s8017_s9 + $0x138] sm:$0xff]  ;;  %v3483_v19 = vmax.f32 %v3467_v43, 0.0  ;;  %15260 = vst [vmem:[#allocation43_spill] sm:$0xff] %v11181_v36 }
 0x574   : > { %v3450_v29 = vadd.f32 %v3434_v59, %v3416_v27  ;;  %v3386_v59 = vmul.f32 %v11133_v12, %v10929_v9  ;;  %v11139_v27 = vld [vmem:[%s8017_s9 + $0x130] sm:$0xff]  ;;  %15253 = vst [vmem:[#allocation31_spill] sm:$0xff] %v11144_v30 }
 0x575   : > { %3498 = vadd.xlane.f32.xlu1 %v3497_v20  ;;  %v3418_v20 = vadd.f32 %v3402_v16, %v3384_v15  ;;  %15252 = vst [vmem:[#allocation25_spill] sm:$0xff] %v11139_v27  ;;  %v3403_v55 = vmul.f32 %v11139_v27, %v10931_v21  ;;  %v3404_v15 = vmul.f32 %v11144_v30, %v10931_v21  ;;  %v11149_v16 = vld [vmem:[%s8017_s9 + $0x140] sm:$0xff] }
 0x576   : > { %v3468_v22 = vadd.f32 %v10992_v31, %v3450_v29  ;;  %15254 = vst [vmem:[#allocation32_spill] sm:$0xff] %v11149_v16  ;;  %v3437_v7 = vmul.f32 %v11149_v16, %v10953_v25  ;;  %v11154_v29 = vld [vmem:[%s8017_s9 + $0x148] sm:$0xff]  ;;  %v3469_v6 = vadd.f32 %v10992_v31, %v3451_v40  ;;  %v11166_v16 = vld [vmem:[%s8017_s9 + $0x158] sm:$0xff] }
 0x577   : > { %v3452_v39 = vadd.f32 %v3436_v34, %v3418_v20  ;;  %15255 = vst [vmem:[#allocation36_spill] sm:$0xff] %v11154_v29  ;;  %v3438_v8 = vmul.f32 %v11154_v29, %v10953_v25  ;;  %v3419_v27 = vadd.f32 %v3403_v55, %v3385_v37  ;;  %v3420_v12 = vadd.f32 %v3404_v15, %v3386_v59  ;;  %v11161_v34 = vld [vmem:[%s8017_s9 + $0x150] sm:$0xff]  ;;  %v11176_v29 = vld [vmem:[%s8017_s9 + $0x168] sm:$0xff] }
 0x578   : > { %v3484_v10 = vmax.f32 %v3468_v22, 0.0  ;;  %15256 = vst [vmem:[#allocation37_spill] sm:$0xff] %v11161_v34  ;;  %v3387_v20 = vmul.f32 %v11161_v34, %v10929_v9  ;;  %15257 = vst [vmem:[#allocation39_spill] sm:$0xff] %v11166_v16  ;;  %v3388_v30 = vmul.f32 %v11166_v16, %v10929_v9  ;;  %v11171_v22 = vld [vmem:[%s8017_s9 + $0x160] sm:$0xff]  ;;  %v3485_v40 = vmax.f32 %v3469_v6, 0.0  ;;  %v11188_v6 = vld [vmem:[%s8017_s9 + $0x178] sm:$0xff] }
 0x579   : > { %v3470_v43 = vadd.f32 %v10992_v31, %v3452_v39  ;;  %15258 = vst [vmem:[#allocation41_spill] sm:$0xff] %v11171_v22  ;;  %v3405_v37 = vmul.f32 %v11171_v22, %v10931_v21  ;;  %v3453_v55 = vadd.f32 %v3437_v7, %v3419_v27  ;;  %v3454_v15 = vadd.f32 %v3438_v8, %v3420_v12 }
 0x57a   : > { %v3503_v59 = vadd.f32 %v3484_v10, %v3483_v19  ;;  %15259 = vst [vmem:[#allocation42_spill] sm:$0xff] %v11176_v29  ;;  %v3406_v34 = vmul.f32 %v11176_v29, %v10931_v21  ;;  %v3439_v9 = vmul.f32 %v11181_v36, %v10953_v25  ;;  %v3440_v12 = vmul.f32 %v11188_v6, %v10953_v25  ;;  %v3298_v29 = vpop.xlane.xlu0 %3297 }
 0x57b   : > { %v3486_v39 = vmax.f32 %v3470_v43, 0.0  ;;  %v3421_v0 = vadd.f32 %v3405_v37, %v3387_v20  ;;  %v3471_v16 = vadd.f32 %v10992_v31, %v3453_v55  ;;  %v3472_v10 = vadd.f32 %v10992_v31, %v3454_v15 }
 0x57c   : > { %3504 = vadd.xlane.f32.xlu1 %v3503_v59  ;;  %v3422_v19 = vadd.f32 %v3406_v34, %v3388_v30  ;;  %v3331_v25 = vrot.slane %v3298_v29, %v9699_v53 }
 0x57d   : > { %v3506_v27 = vadd.f32 %v3486_v39, %v3485_v40  ;;  %v3455_v7 = vadd.f32 %v3439_v9, %v3421_v0  ;;  %v3487_v21 = vmax.f32 %v3471_v16, 0.0  ;;  %v3488_v8 = vmax.f32 %v3472_v10, 0.0 }
 0x57e   : > { %v3456_v43 = vadd.f32 %v3440_v12, %v3422_v19  ;;  %v3304_v22 = vpop.xlane.xlu0 %3303 }
 0x57f   : > { %v3473_v20 = vadd.f32 %v10992_v31, %v3455_v7  ;;  %v3509_v37 = vadd.f32 %v3488_v8, %v3487_v21  ;;  %v3339_v34 = vrot.slane %v3304_v22, %v9699_v53 }
 0x580   : > { %v3474_v59 = vadd.f32 %v10992_v31, %v3456_v43 }
 0x581   : > { %v3489_v36 = vmax.f32 %v3473_v20, 0.0  ;;  %3510 = vadd.xlane.f32.xlu1 %v3509_v37 }
 0x582   : > { %v3490_v55 = vmax.f32 %v3474_v59, 0.0  ;;  %v3310_v16 = vpop.xlane.xlu0 %3309 }
 0x584   : > { %v3512_v15 = vadd.f32 %v3490_v55, %v3489_v36  ;;  %v3347_v36 = vrot.slane %v3310_v16, %v9699_v53  ;;  %v11214_v55 = vstv %s7021_s1  ;;  %s7032_s1 = sld [smem:[#allocation7 + $0x12]] }
 0x586   : > { %v3316_v12 = vpop.xlane.xlu0 %3315 }
 0x587   : > { %v3355_v21 = vrot.slane %v3316_v12, %v9699_v53 }
 0x5e8   : > { %v11194_v41 = vpop.xlane.xlu1 %3174 }
 0x5e9   : > { %15261 = vst [vmem:[#allocation49_spill] sm:$0xff] %v11194_v41 }
 0x5ec   : > { %v3301_v30 = vpop.xlane.xlu1 %3300 }
 0x5ed   : > { %v3335_v0 = vrot.slane %v3301_v30, %v9699_v53  ;;  %v3568_v30 = vmul.f32 %v10934_v54, %v11214_v55 }
 0x5ef   : > { %v3360_v40 = vsel %vm622_vm1, %v3335_v0, %v3331_v25  ;;  %v11216_v25 = vstv %s7022_s2  ;;  %v3569_v0 = vmul.f32 %v10939_v1, %v11214_v55  ;;  %s7033_s2 = sld [smem:[#allocation4 + $0x13]] }
 0x5f0   : > { %v3307_v39 = vpop.xlane.xlu1 %3306  ;;  %v3361_v9 = vsel %vm624_vm2, %v3339_v34, %v3360_v40 }
 0x5f1   : > { %v3343_v31 = vrot.slane %v3307_v39, %v9699_v53  ;;  %v3570_v39 = vmul.f32 %v10801_v38, %v11214_v55 }
 0x5f3   : > { %v3362_v10 = vsel %vm626_vm3, %v3343_v31, %v3361_v9  ;;  %v3571_v31 = vmul.f32 %v10968_v57, %v11214_v55  ;;  %v3588_v9 = vmul.f32 %v10973_v3, %v11216_v25 }
 0x5f4   : > { %v3313_v19 = vpop.xlane.xlu1 %3312  ;;  %v3363_v7 = vsel %vm628_vm4, %v3347_v36, %v3362_v10  ;;  %v3589_v36 = vmul.f32 %v10978_v49, %v11216_v25 }
 0x5f5   : > { %v3351_v29 = vrot.slane %v3313_v19, %v9699_v53  ;;  %v3572_v19 = vmul.f32 %v10983_v35, %v11214_v55 }
 0x5f7   : > { %v3364_v22 = vsel %vm630_vm5, %v3351_v29, %v3363_v7  ;;  %v3573_v29 = vmul.f32 %v10988_v32, %v11214_v55  ;;  %v11244_v7 = vstv %s7024_s17  ;;  %s7035_s17 = sld [smem:[#allocation4 + $0x113]] }
 0x5f8   : > { %v3319_v8 = vpop.xlane.xlu1 %3318  ;;  %v3365_v20 = vsel %vm632_vm6, %v3355_v21, %v3364_v22  ;;  %v3604_v21 = vadd.f32 %v3588_v9, %v3570_v39  ;;  %v3605_v22 = vadd.f32 %v3589_v36, %v3571_v31  ;;  %v3574_v9 = vmul.f32 %v11028_v18, %v11214_v55 }
 0x5f9   : > { %v3359_v43 = vrot.slane %v3319_v8, %v9699_v53 }
 0x5fb   : > { %v3366_v37 = vsel %vm634_vm7, %v3359_v43, %v3365_v20 }
 0x5fc   : > { %v3368_v59 = vsel %vm637_vm8, %v3366_v37, 0.0 }
 0x5fd   : > { %3369 = vadd.xlane.f32.xlu0 %v3368_v59  ;;  %v3590_v59 = vmul.f32 %v11007_v56, %v11216_v25 }
 0x5ff   : > { %v3606_v39 = vadd.f32 %v3590_v59, %v3572_v19 }
 0x601   : > { %3495 = vadd.xlane.f32.xlu0 %v11065_v33  ;;  %v3586_v33 = vmul.f32 %v10944_v44, %v11216_v25 }
 0x605   : > { %3501 = vadd.xlane.f32.xlu0 %v11129_v4  ;;  %v3587_v4 = vmul.f32 %v10949_v52, %v11216_v25 }
 0x607   : > { %v3603_v16 = vadd.f32 %v3587_v4, %v3569_v0  ;;  %v3591_v0 = vmul.f32 %v11012_v24, %v11216_v25 }
 0x609   : > { %3507 = vadd.xlane.f32.xlu0 %v3506_v27  ;;  %v11226_v27 = vstv %s7023_s7  ;;  %v3607_v31 = vadd.f32 %v3591_v0, %v3573_v29  ;;  %s7034_s7 = sld [smem:[#allocation4 + $0x93]] }
 0x60a   : > { %v3620_v34 = vmul.f32 %v10956_v47, %v11226_v27  ;;  %v3621_v40 = vmul.f32 %v10961_v11, %v11226_v27  ;;  %v3622_v8 = vmul.f32 %v10995_v51, %v11226_v27  ;;  %v3623_v37 = vmul.f32 %v11002_v61, %v11226_v27 }
 0x60b   : > { %v3625_v4 = vmul.f32 %v11022_v14, %v11226_v27  ;;  %v3627_v59 = vmul.f32 %v11054_v28, %v11226_v27 }
 0x60c   : > { %v3637_v12 = vadd.f32 %v3621_v40, %v3603_v16 }
 0x60d   : > { %3513 = vadd.xlane.f32.xlu0 %v3512_v15  ;;  %v3602_v15 = vadd.f32 %v3586_v33, %v3568_v30  ;;  %v3638_v30 = vadd.f32 %v3622_v8, %v3604_v21  ;;  %v3624_v33 = vmul.f32 %v11017_v50, %v11226_v27  ;;  %v3592_v21 = vmul.f32 %v11039_v23, %v11216_v25 }
 0x60e   : > { %v3655_v20 = vadd.f32 %v11244_v7, %v3637_v12  ;;  %v3575_v12 = vmul.f32 %v11034_v63, %v11214_v55 }
 0x60f   : > { %v3636_v10 = vadd.f32 %v3620_v34, %v3602_v15  ;;  %v3639_v34 = vadd.f32 %v3623_v37, %v3605_v22  ;;  %v3656_v40 = vadd.f32 %v11244_v7, %v3638_v30  ;;  %v3593_v22 = vmul.f32 %v11044_v60, %v11216_v25 }
 0x610   : > { %v3671_v16 = vmax.f32 %v3655_v20, 0.0  ;;  %v3641_v20 = vadd.f32 %v3625_v4, %v3607_v31  ;;  %v3608_v29 = vadd.f32 %v3592_v21, %v3574_v9  ;;  %v3626_v37 = vmul.f32 %v11049_v2, %v11226_v27 }
 0x611   : > { %v3654_v43 = vadd.f32 %v11244_v7, %v3636_v10  ;;  %v3657_v10 = vadd.f32 %v11244_v7, %v3639_v34  ;;  %v3672_v8 = vmax.f32 %v3656_v40, 0.0  ;;  %v3577_v34 = vmul.f32 %v11068_v42, %v11214_v55 }
 0x612   : > { %v3659_v0 = vadd.f32 %v11244_v7, %v3641_v20  ;;  %v3594_v9 = vmul.f32 %v11073_v62, %v11216_v25  ;;  %v3629_v21 = vmul.f32 %v11089_v5, %v11226_v27 }
 0x613   : > { %v3670_v15 = vmax.f32 %v3654_v43, 0.0  ;;  %v3640_v43 = vadd.f32 %v3624_v33, %v3606_v39  ;;  %v3673_v19 = vmax.f32 %v3657_v10, 0.0  ;;  %v3576_v33 = vmul.f32 %v11061_v26, %v11214_v55 }
 0x614   : > { %v3675_v39 = vmax.f32 %v3659_v0, 0.0  ;;  %v3595_v10 = vmul.f32 %v11079_v46, %v11216_v25 }
 0x615   : > { %v3686_v36 = vadd.f32 %v3671_v16, %v3670_v15  ;;  %v3658_v30 = vadd.f32 %v11244_v7, %v3640_v43  ;;  %v3609_v15 = vadd.f32 %v3593_v22, %v3575_v12  ;;  %v11278_v4 = vadd.f32 %v3673_v19, %v3672_v8 }
 0x616   : > { %v3642_v16 = vadd.f32 %v3626_v37, %v3608_v29  ;;  %v3628_v12 = vmul.f32 %v11084_v45, %v11226_v27  ;;  %v3610_v20 = vadd.f32 %v3594_v9, %v3576_v33  ;;  %v3578_v22 = vmul.f32 %v11095_v58, %v11214_v55  ;;  %v15264_v9 = vld [vmem:[#allocation34_spill] sm:$0xff] }
 0x617   : > { %3687 = vadd.xlane.f32.xlu0 %v3686_v36  ;;  %v3674_v40 = vmax.f32 %v3658_v30, 0.0  ;;  %v3643_v31 = vadd.f32 %v3627_v59, %v3609_v15  ;;  %v3611_v29 = vadd.f32 %v3595_v10, %v3577_v34  ;;  %v3579_v37 = vmul.f32 %v11100_v13, %v11214_v55 }
 0x618   : > { %v3660_v36 = vadd.f32 %v11244_v7, %v3642_v16  ;;  %v3596_v59 = vmul.f32 %v11105_v48, %v11216_v25  ;;  %v3644_v0 = vadd.f32 %v3628_v12, %v3610_v20  ;;  %v3597_v15 = vmul.f32 %v11110_v17, %v11216_v25  ;;  %v15262_v16 = vld [vmem:[#allocation62_spill] sm:$0xff]  ;;  %v15265_v12 = vld [vmem:[#allocation35_spill] sm:$0xff] }
 0x619   : > { %v3692_v8 = vadd.f32 %v3675_v39, %v3674_v40  ;;  %v3661_v43 = vadd.f32 %v11244_v7, %v3643_v31  ;;  %v3630_v33 = vmul.f32 %v15262_v16, %v11226_v27  ;;  %v3645_v40 = vadd.f32 %v3629_v21, %v3611_v29  ;;  %v15263_v31 = vld [vmem:[#allocation28_spill] sm:$0xff]  ;;  %v15266_v21 = vld [vmem:[#allocation25_spill] sm:$0xff]  ;;  %v15267_v29 = vld [vmem:[#allocation31_spill] sm:$0xff] }
 0x61a   : > { %v3676_v19 = vmax.f32 %v3660_v36, 0.0  ;;  %v3612_v39 = vadd.f32 %v3596_v59, %v3578_v22  ;;  %v3631_v34 = vmul.f32 %v15263_v31, %v11226_v27  ;;  %v3580_v36 = vmul.f32 %v15264_v9, %v11214_v55 }
 0x61b   : > { %3693 = vadd.xlane.f32.xlu0 %v3692_v8  ;;  %v3677_v30 = vmax.f32 %v3661_v43, 0.0  ;;  %v3662_v8 = vadd.f32 %v11244_v7, %v3644_v0  ;;  %v3613_v43 = vadd.f32 %v3597_v15, %v3579_v37  ;;  %v3581_v20 = vmul.f32 %v15265_v12, %v11214_v55  ;;  %v15269_v0 = vld [vmem:[#allocation36_spill] sm:$0xff] }
 0x61c   : > { %v3663_v41 = vadd.f32 %v11244_v7, %v3645_v40  ;;  %v3646_v17 = vadd.f32 %v3630_v33, %v3612_v39  ;;  %v3598_v22 = vmul.f32 %v15266_v21, %v11216_v25  ;;  %v3599_v59 = vmul.f32 %v15267_v29, %v11216_v25  ;;  %v15270_v39 = vld [vmem:[#allocation37_spill] sm:$0xff]  ;;  %v15271_v29 = vld [vmem:[#allocation39_spill] sm:$0xff] }
 0x61d   : > { %v11306_v10 = vadd.f32 %v3677_v30, %v3676_v19  ;;  %v3678_v31 = vmax.f32 %v3662_v8, 0.0  ;;  %v3647_v16 = vadd.f32 %v3631_v34, %v3613_v43  ;;  %v15268_v19 = vld [vmem:[#allocation32_spill] sm:$0xff]  ;;  %v3633_v37 = vmul.f32 %v15269_v0, %v11226_v27  ;;  %v15272_v34 = vld [vmem:[#allocation41_spill] sm:$0xff] }
 0x61e   : > { %v3632_v30 = vmul.f32 %v15268_v19, %v11226_v27  ;;  %v3679_v15 = vmax.f32 %v3663_v41, 0.0  ;;  %v3664_v12 = vadd.f32 %v11244_v7, %v3646_v17  ;;  %v3614_v9 = vadd.f32 %v3598_v22, %v3580_v36  ;;  %v15273_v17 = vld [vmem:[#allocation42_spill] sm:$0xff] }
 0x61f   : > { %v3615_v40 = vadd.f32 %v3599_v59, %v3581_v20  ;;  %v3665_v33 = vadd.f32 %v11244_v7, %v3647_v16  ;;  %v3582_v21 = vmul.f32 %v15270_v39, %v11214_v55  ;;  %v3583_v8 = vmul.f32 %v15271_v29, %v11214_v55  ;;  %v15274_v16 = vld [vmem:[#allocation43_spill] sm:$0xff] }
 0x620   : > { %v3600_v43 = vmul.f32 %v15272_v34, %v11216_v25  ;;  %v3698_v19 = vadd.f32 %v3679_v15, %v3678_v31  ;;  %v3680_v48 = vmax.f32 %v3664_v12, 0.0  ;;  %v3648_v13 = vadd.f32 %v3632_v30, %v3614_v9 }
 0x621   : > { %v3649_v0 = vadd.f32 %v3633_v37, %v3615_v40  ;;  %v3681_v41 = vmax.f32 %v3665_v33, 0.0  ;;  %v3601_v36 = vmul.f32 %v15273_v17, %v11216_v25  ;;  %v3634_v22 = vmul.f32 %v15274_v16, %v11226_v27 }
 0x622   : > { %v3616_v20 = vadd.f32 %v3600_v43, %v3582_v21  ;;  %3699 = vadd.xlane.f32.xlu0 %v3698_v19  ;;  %v3666_v59 = vadd.f32 %v11244_v7, %v3648_v13  ;;  %v3635_v34 = vmul.f32 %v11188_v6, %v11226_v27  ;;  %v3493_v43 = vpop.xlane.xlu1 %3492 }
 0x623   : > { %v3667_v55 = vadd.f32 %v11244_v7, %v3649_v0  ;;  %v3701_v31 = vadd.f32 %v3681_v41, %v3680_v48  ;;  %v3617_v12 = vadd.f32 %v3601_v36, %v3583_v8  ;;  %v3526_v48 = vrot.slane %v3493_v43, %v9699_v53 }
 0x624   : > { %v3650_v9 = vadd.f32 %v3634_v22, %v3616_v20  ;;  %v3682_v30 = vmax.f32 %v3666_v59, 0.0 }
 0x625   : > { %v3683_v37 = vmax.f32 %v3667_v55, 0.0  ;;  %v3651_v15 = vadd.f32 %v3635_v34, %v3617_v12 }
 0x626   : > { %v3668_v25 = vadd.f32 %v11244_v7, %v3650_v9  ;;  %v3499_v0 = vpop.xlane.xlu1 %3498 }
 0x627   : > { %v3704_v21 = vadd.f32 %v3683_v37, %v3682_v30  ;;  %v3669_v40 = vadd.f32 %v11244_v7, %v3651_v15  ;;  %v3534_v34 = vrot.slane %v3499_v0, %v9699_v53  ;;  %v11358_v0 = vstv %s7025_s30  ;;  %s7036_s30 = sld [smem:[#allocation7 + $0x13]] }
 0x628   : > { %v3684_v33 = vmax.f32 %v3668_v25, 0.0 }
 0x629   : > { %3705 = vadd.xlane.f32.xlu0 %v3704_v21  ;;  %v3685_v19 = vmax.f32 %v3669_v40, 0.0 }
 0x62a   : > { %v3505_v41 = vpop.xlane.xlu1 %3504 }
 0x62b   : > { %v3707_v13 = vadd.f32 %v3685_v19, %v3684_v33  ;;  %v3542_v59 = vrot.slane %v3505_v41, %v9699_v53 }
 0x62e   : > { %v3511_v12 = vpop.xlane.xlu1 %3510 }
 0x62f   : > { %v3550_v15 = vrot.slane %v3511_v12, %v9699_v53 }
 0x68a   : > { %v11338_v16 = vpop.xlane.xlu0 %3369 }
 0x68b   : > { %15275 = vst [vmem:[#allocation50_spill] sm:$0xff] %v11338_v16 }
 0x68e   : > { %v3496_v27 = vpop.xlane.xlu0 %3495 }
 0x68f   : > { %v3530_v8 = vrot.slane %v3496_v27, %v9699_v53  ;;  %v3763_v27 = vmul.f32 %v10934_v54, %v11358_v0 }
 0x691   : > { %v3555_v36 = vsel %vm622_vm1, %v3530_v8, %v3526_v48  ;;  %v11360_v48 = vstv %s7026_s13  ;;  %v3764_v8 = vmul.f32 %v10939_v1, %v11358_v0  ;;  %s7037_s13 = sld [smem:[#allocation4 + $0x14]] }
 0x692   : > { %v3502_v20 = vpop.xlane.xlu0 %3501  ;;  %v3556_v22 = vsel %vm624_vm2, %v3534_v34, %v3555_v36 }
 0x693   : > { %v3538_v7 = vrot.slane %v3502_v20, %v9699_v53  ;;  %v3765_v20 = vmul.f32 %v10801_v38, %v11358_v0 }
 0x695   : > { %v3557_v55 = vsel %vm626_vm3, %v3538_v7, %v3556_v22  ;;  %v3766_v7 = vmul.f32 %v10968_v57, %v11358_v0  ;;  %v3783_v22 = vmul.f32 %v10973_v3, %v11360_v48 }
 0x696   : > { %v3508_v9 = vpop.xlane.xlu0 %3507  ;;  %v3558_v37 = vsel %vm628_vm4, %v3542_v59, %v3557_v55  ;;  %v3784_v59 = vmul.f32 %v10978_v49, %v11360_v48 }
 0x697   : > { %v3546_v30 = vrot.slane %v3508_v9, %v9699_v53  ;;  %v3767_v9 = vmul.f32 %v10983_v35, %v11358_v0  ;;  %v3799_v38 = vadd.f32 %v3783_v22, %v3765_v20 }
 0x699   : > { %v3559_v25 = vsel %vm630_vm5, %v3546_v30, %v3558_v37  ;;  %v3768_v30 = vmul.f32 %v10988_v32, %v11358_v0  ;;  %v11388_v37 = vstv %s7028_s8  ;;  %s7039_s8 = sld [smem:[#allocation4 + $0x114]] }
 0x69a   : > { %v3514_v21 = vpop.xlane.xlu0 %3513  ;;  %v3560_v33 = vsel %vm632_vm6, %v3550_v15, %v3559_v25  ;;  %v3800_v15 = vadd.f32 %v3784_v59, %v3766_v7  ;;  %v3769_v7 = vmul.f32 %v11028_v18, %v11358_v0 }
 0x69b   : > { %v3554_v40 = vrot.slane %v3514_v21, %v9699_v53 }
 0x69d   : > { %v3561_v19 = vsel %vm634_vm7, %v3554_v40, %v3560_v33 }
 0x69e   : > { %v3563_v43 = vsel %vm637_vm8, %v3561_v19, 0.0  ;;  %v3785_v19 = vmul.f32 %v11007_v56, %v11360_v48 }
 0x69f   : > { %3564 = vadd.xlane.f32.xlu1 %v3563_v43 }
 0x6a3   : > { %3690 = vadd.xlane.f32.xlu1 %v11278_v4  ;;  %v3781_v4 = vmul.f32 %v10944_v44, %v11360_v48 }
 0x6a7   : > { %3696 = vadd.xlane.f32.xlu1 %v11306_v10  ;;  %v3782_v10 = vmul.f32 %v10949_v52, %v11360_v48 }
 0x6a9   : > { %v3798_v41 = vadd.f32 %v3782_v10, %v3764_v8 }
 0x6ab   : > { %3702 = vadd.xlane.f32.xlu1 %v3701_v31  ;;  %v11370_v31 = vstv %s7027_s10  ;;  %s7038_s10 = sld [smem:[#allocation4 + $0x94]] }
 0x6ac   : > { %v3815_v34 = vmul.f32 %v10956_v47, %v11370_v31  ;;  %v3816_v36 = vmul.f32 %v10961_v11, %v11370_v31  ;;  %v3817_v25 = vmul.f32 %v10995_v51, %v11370_v31  ;;  %v3818_v33 = vmul.f32 %v11002_v61, %v11370_v31 }
 0x6ad   : > { %v3819_v8 = vmul.f32 %v11017_v50, %v11370_v31 }
 0x6ae   : > { %v3832_v12 = vadd.f32 %v3816_v36, %v3798_v41  ;;  %v3833_v43 = vadd.f32 %v3817_v25, %v3799_v38  ;;  %v3834_v41 = vadd.f32 %v3818_v33, %v3800_v15  ;;  %v3801_v36 = vadd.f32 %v3785_v19, %v3767_v9 }
 0x6af   : > { %3708 = vadd.xlane.f32.xlu1 %v3707_v13  ;;  %v3797_v13 = vadd.f32 %v3781_v4, %v3763_v27  ;;  %v3786_v27 = vmul.f32 %v11012_v24, %v11360_v48  ;;  %v3820_v4 = vmul.f32 %v11022_v14, %v11370_v31  ;;  %v3788_v15 = vmul.f32 %v11044_v60, %v11360_v48 }
 0x6b0   : > { %v3850_v40 = vadd.f32 %v11388_v37, %v3832_v12  ;;  %v3852_v59 = vadd.f32 %v11388_v37, %v3834_v41  ;;  %v3787_v12 = vmul.f32 %v11039_v23, %v11360_v48  ;;  %v3835_v25 = vadd.f32 %v3819_v8, %v3801_v36 }
 0x6b1   : > { %v3831_v55 = vadd.f32 %v3815_v34, %v3797_v13  ;;  %v3851_v34 = vadd.f32 %v11388_v37, %v3833_v43  ;;  %v3802_v20 = vadd.f32 %v3786_v27, %v3768_v30  ;;  %v3822_v33 = vmul.f32 %v11054_v28, %v11370_v31 }
 0x6b2   : > { %v3866_v13 = vmax.f32 %v3850_v40, 0.0  ;;  %v3868_v9 = vmax.f32 %v3852_v59, 0.0  ;;  %v3803_v30 = vadd.f32 %v3787_v12, %v3769_v7  ;;  %v3821_v40 = vmul.f32 %v11049_v2, %v11370_v31 }
 0x6b3   : > { %v3849_v21 = vadd.f32 %v11388_v37, %v3831_v55  ;;  %v3770_v55 = vmul.f32 %v11034_v63, %v11358_v0  ;;  %v3867_v38 = vmax.f32 %v3851_v34, 0.0  ;;  %v3853_v19 = vadd.f32 %v11388_v37, %v3835_v25 }
 0x6b4   : > { %v3771_v8 = vmul.f32 %v11061_v26, %v11358_v0  ;;  %v3823_v59 = vmul.f32 %v11084_v45, %v11370_v31 }
 0x6b5   : > { %v3865_v10 = vmax.f32 %v3849_v21, 0.0  ;;  %v3836_v21 = vadd.f32 %v3820_v4, %v3802_v20  ;;  %v3804_v27 = vadd.f32 %v3788_v15, %v3770_v55  ;;  %v11422_v4 = vadd.f32 %v3868_v9, %v3867_v38 }
 0x6b6   : > { %v3869_v41 = vmax.f32 %v3853_v19, 0.0  ;;  %v3789_v20 = vmul.f32 %v11073_v62, %v11360_v48  ;;  %v3824_v55 = vmul.f32 %v11089_v5, %v11370_v31 }
 0x6b7   : > { %v3881_v22 = vadd.f32 %v3866_v13, %v3865_v10  ;;  %v3854_v43 = vadd.f32 %v11388_v37, %v3836_v21  ;;  %v3837_v10 = vadd.f32 %v3821_v40, %v3803_v30  ;;  %v3772_v13 = vmul.f32 %v11068_v42, %v11358_v0  ;;  %v15276_v30 = vld [vmem:[#allocation57_spill] sm:$0xff] }
 0x6b8   : > { %v3838_v36 = vadd.f32 %v3822_v33, %v3804_v27  ;;  %v3805_v25 = vadd.f32 %v3789_v20, %v3771_v8  ;;  %v3773_v21 = vmul.f32 %v11095_v58, %v11358_v0  ;;  %v3774_v40 = vmul.f32 %v15276_v30, %v11358_v0  ;;  %v15277_v33 = vld [vmem:[#allocation59_spill] sm:$0xff] }
 0x6b9   : > { %3882 = vadd.xlane.f32.xlu1 %v3881_v22  ;;  %v3870_v34 = vmax.f32 %v3854_v43, 0.0  ;;  %v3855_v7 = vadd.f32 %v11388_v37, %v3837_v10  ;;  %v3790_v22 = vmul.f32 %v11079_v46, %v11360_v48  ;;  %v3791_v19 = vmul.f32 %v15277_v33, %v11360_v48  ;;  %v15278_v10 = vld [vmem:[#allocation60_spill] sm:$0xff] }
 0x6ba   : > { %v3856_v38 = vadd.f32 %v11388_v37, %v3838_v36  ;;  %v3839_v27 = vadd.f32 %v3823_v59, %v3805_v25  ;;  %v15282_v59 = vld [vmem:[#allocation35_spill] sm:$0xff] }
 0x6bb   : > { %v3887_v12 = vadd.f32 %v3870_v34, %v3869_v41  ;;  %v3871_v15 = vmax.f32 %v3855_v7, 0.0  ;;  %v3806_v9 = vadd.f32 %v3790_v22, %v3772_v13  ;;  %v3792_v41 = vmul.f32 %v15278_v10, %v11360_v48  ;;  %v15279_v34 = vld [vmem:[#allocation62_spill] sm:$0xff]  ;;  %v15280_v7 = vld [vmem:[#allocation28_spill] sm:$0xff] }
 0x6bc   : > { %v3872_v43 = vmax.f32 %v3856_v38, 0.0  ;;  %v3825_v8 = vmul.f32 %v15279_v34, %v11370_v31  ;;  %v3807_v20 = vadd.f32 %v3791_v19, %v3773_v21  ;;  %v3826_v13 = vmul.f32 %v15280_v7, %v11370_v31  ;;  %v15281_v22 = vld [vmem:[#allocation34_spill] sm:$0xff] }
 0x6bd   : > { %3888 = vadd.xlane.f32.xlu1 %v3887_v12  ;;  %v3840_v36 = vadd.f32 %v3824_v55, %v3806_v9  ;;  %v3775_v16 = vmul.f32 %v15281_v22, %v11358_v0  ;;  %v3857_v12 = vadd.f32 %v11388_v37, %v3839_v27  ;;  %v3808_v38 = vadd.f32 %v3792_v41, %v3774_v40  ;;  %v15283_v55 = vld [vmem:[#allocation25_spill] sm:$0xff]  ;;  %v15284_v9 = vld [vmem:[#allocation31_spill] sm:$0xff]  ;;  %v15286_v27 = vld [vmem:[#allocation36_spill] sm:$0xff] }
 0x6be   : > { %v11450_v30 = vadd.f32 %v3872_v43, %v3871_v15  ;;  %v3776_v25 = vmul.f32 %v15282_v59, %v11358_v0  ;;  %v3841_v33 = vadd.f32 %v3825_v8, %v3807_v20  ;;  %v3793_v21 = vmul.f32 %v15283_v55, %v11360_v48  ;;  %v15285_v15 = vld [vmem:[#allocation32_spill] sm:$0xff] }
 0x6bf   : > { %v3858_v10 = vadd.f32 %v11388_v37, %v3840_v36  ;;  %v3794_v19 = vmul.f32 %v15284_v9, %v11360_v48  ;;  %v3873_v7 = vmax.f32 %v3857_v12, 0.0  ;;  %v3842_v34 = vadd.f32 %v3826_v13, %v3808_v38  ;;  %v15287_v13 = vld [vmem:[#allocation41_spill] sm:$0xff] }
 0x6c0   : > { %v3827_v43 = vmul.f32 %v15285_v15, %v11370_v31  ;;  %v3828_v40 = vmul.f32 %v15286_v27, %v11370_v31  ;;  %v3859_v59 = vadd.f32 %v11388_v37, %v3841_v33  ;;  %v3809_v22 = vadd.f32 %v3793_v21, %v3775_v16 }
 0x6c1   : > { %v3874_v41 = vmax.f32 %v3858_v10, 0.0  ;;  %v3810_v36 = vadd.f32 %v3794_v19, %v3776_v25  ;;  %v3860_v8 = vadd.f32 %v11388_v37, %v3842_v34  ;;  %v3777_v20 = vmul.f32 %v15270_v39, %v11358_v0  ;;  %v15288_v34 = vld [vmem:[#allocation43_spill] sm:$0xff] }
 0x6c2   : > { %v3778_v12 = vmul.f32 %v15271_v29, %v11358_v0  ;;  %v3795_v38 = vmul.f32 %v15287_v13, %v11360_v48  ;;  %v3875_v9 = vmax.f32 %v3859_v59, 0.0  ;;  %v3843_v55 = vadd.f32 %v3827_v43, %v3809_v22 }
 0x6c3   : > { %v3893_v15 = vadd.f32 %v3874_v41, %v3873_v7  ;;  %v3844_v27 = vadd.f32 %v3828_v40, %v3810_v36  ;;  %v3876_v10 = vmax.f32 %v3860_v8, 0.0  ;;  %v3796_v16 = vmul.f32 %v15273_v17, %v11360_v48 }
 0x6c4   : > { %v3811_v33 = vadd.f32 %v3795_v38, %v3777_v20  ;;  %v3829_v25 = vmul.f32 %v15288_v34, %v11370_v31  ;;  %v3861_v21 = vadd.f32 %v11388_v37, %v3843_v55  ;;  %v3830_v19 = vmul.f32 %v11188_v6, %v11370_v31  ;;  %v3688_v38 = vpop.xlane.xlu0 %3687 }
 0x6c5   : > { %3894 = vadd.xlane.f32.xlu1 %v3893_v15  ;;  %v3862_v0 = vadd.f32 %v11388_v37, %v3844_v27  ;;  %v3896_v7 = vadd.f32 %v3876_v10, %v3875_v9  ;;  %v3812_v59 = vadd.f32 %v3796_v16, %v3778_v12  ;;  %v3721_v31 = vrot.slane %v3688_v38, %v9699_v53 }
 0x6c6   : > { %v3845_v22 = vadd.f32 %v3829_v25, %v3811_v33  ;;  %v3877_v43 = vmax.f32 %v3861_v21, 0.0 }
 0x6c7   : > { %v3878_v40 = vmax.f32 %v3862_v0, 0.0  ;;  %v3846_v41 = vadd.f32 %v3830_v19, %v3812_v59 }
 0x6c8   : > { %v3863_v48 = vadd.f32 %v11388_v37, %v3845_v22  ;;  %v3694_v27 = vpop.xlane.xlu0 %3693 }
 0x6c9   : > { %v3899_v36 = vadd.f32 %v3878_v40, %v3877_v43  ;;  %v3864_v8 = vadd.f32 %v11388_v37, %v3846_v41  ;;  %v3729_v16 = vrot.slane %v3694_v27, %v9699_v53  ;;  %v11502_v27 = vstv %s7029_s12  ;;  %s7040_s12 = sld [smem:[#allocation7 + $0x14]] }
 0x6ca   : > { %v3879_v20 = vmax.f32 %v3863_v48, 0.0 }
 0x6cb   : > { %3900 = vadd.xlane.f32.xlu1 %v3899_v36  ;;  %v3880_v15 = vmax.f32 %v3864_v8, 0.0 }
 0x6cc   : > { %v3700_v10 = vpop.xlane.xlu0 %3699 }
 0x6cd   : > { %v3902_v55 = vadd.f32 %v3880_v15, %v3879_v20  ;;  %v3737_v0 = vrot.slane %v3700_v10, %v9699_v53 }
 0x6d0   : > { %v3706_v59 = vpop.xlane.xlu0 %3705 }
 0x6d1   : > { %v3745_v41 = vrot.slane %v3706_v59, %v9699_v53 }
 0x72c   : > { %v11482_v34 = vpop.xlane.xlu1 %3564 }
 0x72d   : > { %15289 = vst [vmem:[#allocation51_spill] sm:$0xff] %v11482_v34 }
 0x730   : > { %v3691_v9 = vpop.xlane.xlu1 %3690 }
 0x731   : > { %v3725_v12 = vrot.slane %v3691_v9, %v9699_v53  ;;  %v3958_v9 = vmul.f32 %v10934_v54, %v11502_v27  ;;  %v11521_v54 = vld [vmem:[%s8017_s9 + $0x30] sm:$0xff] }
 0x733   : > { %v3750_v33 = vsel %vm622_vm1, %v3725_v12, %v3721_v31  ;;  %v11504_v31 = vstv %s7030_s28  ;;  %v3959_v12 = vmul.f32 %v10939_v1, %v11502_v27  ;;  %v3960_v1 = vmul.f32 %v11521_v54, %v11502_v27  ;;  %s7041_s28 = sld [smem:[#allocation4 + $0x15]] }
 0x734   : > { %v3697_v25 = vpop.xlane.xlu1 %3696  ;;  %v3751_v21 = vsel %vm624_vm2, %v3729_v16, %v3750_v33 }
 0x735   : > { %v3733_v37 = vrot.slane %v3697_v25, %v9699_v53  ;;  %v3979_v25 = vmul.f32 %v10978_v49, %v11504_v31 }
 0x737   : > { %v3752_v19 = vsel %vm626_vm3, %v3733_v37, %v3751_v21 }
 0x738   : > { %v3703_v22 = vpop.xlane.xlu1 %3702  ;;  %v3753_v40 = vsel %vm628_vm4, %v3737_v0, %v3752_v19  ;;  %v11535_v0 = vstv %s7032_s1  ;;  %s7043_s1 = sld [smem:[#allocation4 + $0x115]] }
 0x739   : > { %v3741_v43 = vrot.slane %v3703_v22, %v9699_v53 }
 0x73b   : > { %v3754_v48 = vsel %vm630_vm5, %v3741_v43, %v3753_v40 }
 0x73c   : > { %v3709_v36 = vpop.xlane.xlu1 %3708  ;;  %v3755_v20 = vsel %vm632_vm6, %v3745_v41, %v3754_v48 }
 0x73d   : > { %v3749_v8 = vrot.slane %v3709_v36, %v9699_v53 }
 0x73f   : > { %v3756_v15 = vsel %vm634_vm7, %v3749_v8, %v3755_v20 }
 0x740   : > { %v3758_v38 = vsel %vm637_vm8, %v3756_v15, 0.0 }
 0x741   : > { %3759 = vadd.xlane.f32.xlu0 %v3758_v38 }
 0x745   : > { %3885 = vadd.xlane.f32.xlu0 %v11422_v4  ;;  %v3976_v4 = vmul.f32 %v10944_v44, %v11504_v31  ;;  %v3961_v44 = vmul.f32 %v10968_v57, %v11502_v27 }
 0x747   : > { %v3995_v59 = vadd.f32 %v3979_v25, %v3961_v44  ;;  %v3967_v44 = vmul.f32 %v11068_v42, %v11502_v27 }
 0x749   : > { %3891 = vadd.xlane.f32.xlu0 %v11450_v30  ;;  %v3977_v30 = vmul.f32 %v10949_v52, %v11504_v31  ;;  %v3978_v52 = vmul.f32 %v10973_v3, %v11504_v31 }
 0x74b   : > { %v3993_v10 = vadd.f32 %v3977_v30, %v3959_v12  ;;  %v3994_v19 = vadd.f32 %v3978_v52, %v3960_v1 }
 0x74d   : > { %3897 = vadd.xlane.f32.xlu0 %v3896_v7  ;;  %v11514_v7 = vstv %s7031_s6  ;;  %s7042_s6 = sld [smem:[#allocation4 + $0x95]] }
 0x74e   : > { %v4010_v16 = vmul.f32 %v10956_v47, %v11514_v7  ;;  %v4011_v33 = vmul.f32 %v10961_v11, %v11514_v7  ;;  %v3962_v47 = vmul.f32 %v10983_v35, %v11502_v27  ;;  %v3963_v11 = vmul.f32 %v10988_v32, %v11502_v27 }
 0x74f   : > { %v4012_v57 = vmul.f32 %v10995_v51, %v11514_v7  ;;  %v4013_v49 = vmul.f32 %v11002_v61, %v11514_v7  ;;  %v3980_v35 = vmul.f32 %v11007_v56, %v11504_v31  ;;  %v3981_v32 = vmul.f32 %v11012_v24, %v11504_v31 }
 0x750   : > { %v4027_v21 = vadd.f32 %v4011_v33, %v3993_v10  ;;  %v4014_v40 = vmul.f32 %v11017_v50, %v11514_v7  ;;  %v4015_v51 = vmul.f32 %v11022_v14, %v11514_v7  ;;  %v3964_v56 = vmul.f32 %v11028_v18, %v11502_v27 }
 0x751   : > { %3903 = vadd.xlane.f32.xlu0 %v3902_v55  ;;  %v3992_v55 = vadd.f32 %v3976_v4, %v3958_v9  ;;  %v4028_v43 = vadd.f32 %v4012_v57, %v3994_v19  ;;  %v4029_v36 = vadd.f32 %v4013_v49, %v3995_v59  ;;  %v3996_v20 = vadd.f32 %v3980_v35, %v3962_v47 }
 0x752   : > { %v4045_v22 = vadd.f32 %v11535_v0, %v4027_v21  ;;  %v3997_v61 = vadd.f32 %v3981_v32, %v3963_v11  ;;  %v3965_v24 = vmul.f32 %v11034_v63, %v11502_v27  ;;  %v3982_v50 = vmul.f32 %v11039_v23, %v11504_v31  ;;  %v15293_v32 = vld [vmem:[#allocation62_spill] sm:$0xff] }
 0x753   : > { %v4026_v37 = vadd.f32 %v4010_v16, %v3992_v55  ;;  %v4046_v8 = vadd.f32 %v11535_v0, %v4028_v43  ;;  %v4047_v38 = vadd.f32 %v11535_v0, %v4029_v36  ;;  %v4030_v9 = vadd.f32 %v4014_v40, %v3996_v20  ;;  %v15295_v36 = vld [vmem:[#allocation34_spill] sm:$0xff] }
 0x754   : > { %v4061_v48 = vmax.f32 %v4045_v22, 0.0  ;;  %v4031_v12 = vadd.f32 %v4015_v51, %v3997_v61  ;;  %v3983_v4 = vmul.f32 %v11044_v60, %v11504_v31  ;;  %v3998_v55 = vadd.f32 %v3982_v50, %v3964_v56 }
 0x755   : > { %v4044_v3 = vadd.f32 %v11535_v0, %v4026_v37  ;;  %v4062_v14 = vmax.f32 %v4046_v8, 0.0  ;;  %v4063_v30 = vmax.f32 %v4047_v38, 0.0  ;;  %v4016_v18 = vmul.f32 %v11049_v2, %v11514_v7 }
 0x756   : > { %v4017_v10 = vmul.f32 %v11054_v28, %v11514_v7  ;;  %v4048_v63 = vadd.f32 %v11535_v0, %v4030_v9  ;;  %v4049_v16 = vadd.f32 %v11535_v0, %v4031_v12  ;;  %v3999_v23 = vadd.f32 %v3983_v4, %v3965_v24  ;;  %v15298_v12 = vld [vmem:[#allocation31_spill] sm:$0xff] }
 0x757   : > { %v4060_v41 = vmax.f32 %v4044_v3, 0.0  ;;  %v3966_v33 = vmul.f32 %v11061_v26, %v11502_v27  ;;  %v11569_v1 = vadd.f32 %v4063_v30, %v4062_v14  ;;  %v4032_v60 = vadd.f32 %v4016_v18, %v3998_v55  ;;  %v15290_v3 = vld [vmem:[#allocation57_spill] sm:$0xff]  ;;  %v15299_v18 = vld [vmem:[#allocation32_spill] sm:$0xff] }
 0x758   : > { %v4064_v52 = vmax.f32 %v4048_v63, 0.0  ;;  %v4065_v25 = vmax.f32 %v4049_v16, 0.0  ;;  %v4033_v2 = vadd.f32 %v4017_v10, %v3999_v23  ;;  %v3984_v28 = vmul.f32 %v11073_v62, %v11504_v31  ;;  %v15297_v14 = vld [vmem:[#allocation25_spill] sm:$0xff]  ;;  %v15300_v63 = vld [vmem:[#allocation36_spill] sm:$0xff] }
 0x759   : > { %v4076_v15 = vadd.f32 %v4061_v48, %v4060_v41  ;;  %v4050_v37 = vadd.f32 %v11535_v0, %v4032_v60  ;;  %v3985_v21 = vmul.f32 %v11079_v46, %v11504_v31  ;;  %v4018_v26 = vmul.f32 %v11084_v45, %v11514_v7  ;;  %v15291_v46 = vld [vmem:[#allocation59_spill] sm:$0xff] }
 0x75a   : > { %v4019_v47 = vmul.f32 %v11089_v5, %v11514_v7  ;;  %v4082_v11 = vadd.f32 %v4065_v25, %v4064_v52  ;;  %v4051_v42 = vadd.f32 %v11535_v0, %v4033_v2  ;;  %v4000_v19 = vadd.f32 %v3984_v28, %v3966_v33  ;;  %v15292_v5 = vld [vmem:[#allocation60_spill] sm:$0xff] }
 0x75b   : > { %4077 = vadd.xlane.f32.xlu0 %v4076_v15  ;;  %v3968_v59 = vmul.f32 %v11095_v58, %v11502_v27  ;;  %v4066_v57 = vmax.f32 %v4050_v37, 0.0  ;;  %v4001_v62 = vadd.f32 %v3985_v21, %v3967_v44  ;;  %v3969_v22 = vmul.f32 %v15290_v3, %v11502_v27  ;;  %v15294_v58 = vld [vmem:[#allocation28_spill] sm:$0xff]  ;;  %v15296_v15 = vld [vmem:[#allocation35_spill] sm:$0xff] }
 0x75c   : > { %v3986_v49 = vmul.f32 %v15291_v46, %v11504_v31  ;;  %v4067_v45 = vmax.f32 %v4051_v42, 0.0  ;;  %v4034_v35 = vadd.f32 %v4018_v26, %v4000_v19  ;;  %v3987_v43 = vmul.f32 %v15292_v5, %v11504_v31 }
 0x75d   : > { %v4020_v40 = vmul.f32 %v15293_v32, %v11514_v7  ;;  %v4035_v51 = vadd.f32 %v4019_v47, %v4001_v62  ;;  %v4021_v48 = vmul.f32 %v15294_v58, %v11514_v7  ;;  %v3970_v8 = vmul.f32 %v15295_v36, %v11502_v27  ;;  %v3883_v32 = vpop.xlane.xlu1 %3882 }
 0x75e   : > { %v4002_v41 = vadd.f32 %v3986_v49, %v3968_v59  ;;  %v11597_v20 = vadd.f32 %v4067_v45, %v4066_v57  ;;  %v4052_v61 = vadd.f32 %v11535_v0, %v4034_v35  ;;  %v4003_v56 = vadd.f32 %v3987_v43, %v3969_v22  ;;  %v15301_v59 = vld [vmem:[#allocation43_spill] sm:$0xff] }
 0x75f   : > { %4083 = vadd.xlane.f32.xlu0 %v4082_v11  ;;  %v3971_v38 = vmul.f32 %v15296_v15, %v11502_v27  ;;  %v4053_v24 = vadd.f32 %v11535_v0, %v4035_v51  ;;  %v3988_v9 = vmul.f32 %v15297_v14, %v11504_v31  ;;  %v3989_v4 = vmul.f32 %v15298_v12, %v11504_v31 }
 0x760   : > { %v4036_v50 = vadd.f32 %v4020_v40, %v4002_v41  ;;  %v4068_v30 = vmax.f32 %v4052_v61, 0.0  ;;  %v4037_v55 = vadd.f32 %v4021_v48, %v4003_v56  ;;  %v4022_v10 = vmul.f32 %v15299_v18, %v11514_v7 }
 0x761   : > { %v4023_v16 = vmul.f32 %v15300_v63, %v11514_v7  ;;  %v4069_v23 = vmax.f32 %v4053_v24, 0.0  ;;  %v4004_v60 = vadd.f32 %v3988_v9, %v3970_v8  ;;  %v4005_v44 = vadd.f32 %v3989_v4, %v3971_v38  ;;  %v3889_v40 = vpop.xlane.xlu1 %3888 }
 0x762   : > { %v4054_v33 = vadd.f32 %v11535_v0, %v4036_v50  ;;  %v4055_v52 = vadd.f32 %v11535_v0, %v4037_v55  ;;  %v3972_v25 = vmul.f32 %v15270_v39, %v11502_v27  ;;  %v3973_v2 = vmul.f32 %v15271_v29, %v11502_v27 }
 0x763   : > { %v3990_v28 = vmul.f32 %v15287_v13, %v11504_v31  ;;  %v4088_v37 = vadd.f32 %v4069_v23, %v4068_v30  ;;  %v4038_v26 = vadd.f32 %v4022_v10, %v4004_v60  ;;  %v4039_v47 = vadd.f32 %v4023_v16, %v4005_v44  ;;  %v11654_v23 = vld [vmem:[%s8017_s9] sm:$0xff]  ;;  %v11664_v60 = vld [vmem:[%s8017_s9 + $0x10] sm:$0xff] }
 0x764   : > { %v4070_v21 = vmax.f32 %v4054_v33, 0.0  ;;  %v4071_v11 = vmax.f32 %v4055_v52, 0.0  ;;  %v3991_v42 = vmul.f32 %v15273_v17, %v11504_v31  ;;  %v4024_v57 = vmul.f32 %v15301_v59, %v11514_v7  ;;  %v11659_v33 = vld [vmem:[%s8017_s9 + $0x8] sm:$0xff]  ;;  %v11669_v52 = vld [vmem:[%s8017_s9 + $0x18] sm:$0xff] }
 0x765   : > { %v4006_v19 = vadd.f32 %v3990_v28, %v3972_v25  ;;  %4089 = vadd.xlane.f32.xlu0 %v4088_v37  ;;  %v4056_v39 = vadd.f32 %v11535_v0, %v4038_v26  ;;  %v4057_v29 = vadd.f32 %v11535_v0, %v4039_v47  ;;  %v4025_v13 = vmul.f32 %v11188_v6, %v11514_v7  ;;  %v3895_v58 = vpop.xlane.xlu1 %3894  ;;  %v11681_v47 = vld [vmem:[%s8017_s9 + $0x28] sm:$0xff] }
 0x766   : > { %v4091_v27 = vadd.f32 %v4071_v11, %v4070_v21  ;;  %v4007_v62 = vadd.f32 %v3991_v42, %v3973_v2  ;;  %v3916_v6 = vrot.slane %v3883_v32, %v9699_v53  ;;  %v3924_v48 = vrot.slane %v3889_v40, %v9699_v53  ;;  %v11676_v21 = vld [vmem:[%s8017_s9 + $0x20] sm:$0xff]  ;;  %v11722_v40 = vld [vmem:[%s8017_s9 + $0x58] sm:$0xff] }
 0x767   : > { %v4040_v3 = vadd.f32 %v4024_v57, %v4006_v19  ;;  %v4072_v22 = vmax.f32 %v4056_v39, 0.0  ;;  %v4073_v46 = vmax.f32 %v4057_v29, 0.0  ;;  %v3932_v56 = vrot.slane %v3895_v58, %v9699_v53  ;;  %v11688_v19 = vld [vmem:[%s8017_s9 + $0x38] sm:$0xff]  ;;  %v11693_v57 = vld [vmem:[%s8017_s9 + $0x40] sm:$0xff]  ;;  %v11698_v29 = vld [vmem:[%s8017_s9 + $0x48] sm:$0xff]  ;;  %15304 = vst [vmem:[#allocation33_spill] sm:$0xff] %v11722_v40 }
 0x768   : > { %v4041_v49 = vadd.f32 %v4025_v13, %v4007_v62  ;;  %v11649_v63 = vstv %s7033_s2  ;;  %v11651_v16 = vstv %s7034_s7  ;;  %v11673_v2 = vstv %s7035_s17  ;;  %s7044_s2 = sld [smem:[#allocation7 + $0x15]]  ;;  %s7045_s7 = sld [smem:[#allocation4 + $0x16]] }
 0x769   : > { %v4058_v17 = vadd.f32 %v11535_v0, %v4040_v3  ;;  %v4094_v31 = vadd.f32 %v4073_v46, %v4072_v22  ;;  %v3901_v38 = vpop.xlane.xlu1 %3900  ;;  %v4171_v44 = vmul.f32 %v11664_v60, %v11651_v16  ;;  %v4172_v25 = vmul.f32 %v11669_v52, %v11651_v16  ;;  %v11703_v3 = vld [vmem:[%s8017_s9 + $0x60] sm:$0xff]  ;;  %v11708_v46 = vld [vmem:[%s8017_s9 + $0x68] sm:$0xff]  ;;  %s11967_s17 = sld [smem:[#allocation4 + $0x96]] }
 0x76a   : > { %v4059_v45 = vadd.f32 %v11535_v0, %v4041_v49  ;;  %v3940_v9 = vrot.slane %v3901_v38, %v9699_v53  ;;  %v4205_v26 = vmul.f32 %v11676_v21, %v11673_v2  ;;  %v4206_v11 = vmul.f32 %v11681_v47, %v11673_v2 }
 0x76b   : > { %v4074_v35 = vmax.f32 %v4058_v17, 0.0  ;;  %4095 = vadd.xlane.f32.xlu0 %v4094_v31  ;;  %v4155_v42 = vmul.f32 %v11521_v54, %v11649_v63  ;;  %v4156_v59 = vmul.f32 %v11688_v19, %v11649_v63  ;;  %v4173_v39 = vmul.f32 %v11693_v57, %v11651_v16 }
 0x76c   : > { %v4075_v5 = vmax.f32 %v4059_v45, 0.0  ;;  %v4174_v13 = vmul.f32 %v11698_v29, %v11651_v16  ;;  %v4157_v22 = vmul.f32 %v11703_v3, %v11649_v63  ;;  %v4158_v49 = vmul.f32 %v11708_v46, %v11649_v63 }
 0x76d   : > { %v11712_v17 = vstv %s7036_s30  ;;  %v4189_v31 = vadd.f32 %v4173_v39, %v4155_v42  ;;  %s7047_s30 = sld [smem:[#allocation4 + $0x116]] }
 0x76e   : > { %v4097_v43 = vadd.f32 %v4075_v5, %v4074_v35  ;;  %v4190_v45 = vadd.f32 %v4174_v13, %v4156_v59  ;;  %v11715_v35 = vld [vmem:[%s8017_s9 + $0x50] sm:$0xff]  ;;  %v11774_v13 = vld [vmem:[%s8017_s9 + $0xb8] sm:$0xff] }
 0x76f   : > { %15303 = vst [vmem:[#allocation47_spill] sm:$0xff] %v11715_v35  ;;  %v4207_v5 = vmul.f32 %v11715_v35, %v11673_v2  ;;  %v11769_v59 = vld [vmem:[%s8017_s9 + $0xb0] sm:$0xff] }
 0x770   : > { %v4211_v39 = vmul.f32 %v11769_v59, %v11673_v2 }
 0x771   : > { %v4223_v58 = vadd.f32 %v4207_v5, %v4189_v31  ;;  %v11781_v31 = vld [vmem:[%s8017_s9 + $0xc0] sm:$0xff] }
 0x7ce   : > { %v11629_v51 = vpop.xlane.xlu0 %3759 }
 0x7cf   : > { %15302 = vst [vmem:[#allocation46_spill] sm:$0xff] %v11629_v51 }
 0x7d2   : > { %v3886_v7 = vpop.xlane.xlu0 %3885 }
 0x7d3   : > { %v3920_v41 = vrot.slane %v3886_v7, %v9699_v53  ;;  %v11727_v7 = vld [vmem:[%s8017_s9 + $0x70] sm:$0xff] }
 0x7d5   : > { %v3945_v36 = vsel %vm622_vm1, %v3920_v41, %v3916_v6  ;;  %v4208_v6 = vmul.f32 %v11722_v40, %v11673_v2  ;;  %v4175_v41 = vmul.f32 %v11727_v7, %v11651_v16 }
 0x7d6   : > { %v3892_v8 = vpop.xlane.xlu0 %3891  ;;  %v3946_v61 = vsel %vm624_vm2, %v3924_v48, %v3945_v36  ;;  %v11732_v48 = vld [vmem:[%s8017_s9 + $0x78] sm:$0xff] }
 0x7d7   : > { %v3928_v0 = vrot.slane %v3892_v8, %v9699_v53  ;;  %15305 = vst [vmem:[#allocation22_spill] sm:$0xff] %v11732_v48  ;;  %v4176_v36 = vmul.f32 %v11732_v48, %v11651_v16  ;;  %v11737_v8 = vld [vmem:[%s8017_s9 + $0x80] sm:$0xff] }
 0x7d8   : > { %15306 = vst [vmem:[#allocation23_spill] sm:$0xff] %v11737_v8 }
 0x7d9   : > { %v3947_v15 = vsel %vm626_vm3, %v3928_v0, %v3946_v61  ;;  %v4209_v0 = vmul.f32 %v11737_v8, %v11673_v2  ;;  %v11742_v61 = vld [vmem:[%s8017_s9 + $0x88] sm:$0xff] }
 0x7da   : > { %v3898_v24 = vpop.xlane.xlu0 %3897  ;;  %v3948_v14 = vsel %vm628_vm4, %v3932_v56, %v3947_v15  ;;  %15307 = vst [vmem:[#allocation24_spill] sm:$0xff] %v11742_v61  ;;  %v4210_v56 = vmul.f32 %v11742_v61, %v11673_v2 }
 0x7db   : > { %v3936_v50 = vrot.slane %v3898_v24, %v9699_v53  ;;  %v4224_v24 = vadd.f32 %v4208_v6, %v4190_v45  ;;  %v4161_v45 = vmul.f32 %v11781_v31, %v11649_v63 }
 0x7dd   : > { %v3949_v12 = vsel %vm630_vm5, %v3936_v50, %v3948_v14  ;;  %v4241_v50 = vadd.f32 %v11712_v17, %v4223_v58  ;;  %v4191_v14 = vadd.f32 %v4175_v41, %v4157_v22 }
 0x7de   : > { %v3904_v4 = vpop.xlane.xlu0 %3903  ;;  %v3950_v55 = vsel %vm632_vm6, %v3940_v9, %v3949_v12  ;;  %v4192_v9 = vadd.f32 %v4176_v36, %v4158_v49  ;;  %v11748_v12 = vld [vmem:[%s8017_s9 + $0x90] sm:$0xff] }
 0x7df   : > { %v3944_v30 = vrot.slane %v3904_v4, %v9699_v53  ;;  %v4159_v4 = vmul.f32 %v11748_v12, %v11649_v63 }
 0x7e1   : > { %v3951_v18 = vsel %vm634_vm7, %v3944_v30, %v3950_v55  ;;  %v4242_v55 = vadd.f32 %v11712_v17, %v4224_v24 }
 0x7e2   : > { %v3953_v10 = vsel %vm637_vm8, %v3951_v18, 0.0  ;;  %v11754_v18 = vld [vmem:[%s8017_s9 + $0x98] sm:$0xff] }
 0x7e3   : > { %3954 = vadd.xlane.f32.xlu1 %v3953_v10  ;;  %v4160_v10 = vmul.f32 %v11754_v18, %v11649_v63 }
 0x7e7   : > { %4080 = vadd.xlane.f32.xlu1 %v11569_v1  ;;  %v4153_v1 = vmul.f32 %v11654_v23, %v11649_v63 }
 0x7e9   : > { %v4187_v28 = vadd.f32 %v4171_v44, %v4153_v1  ;;  %v11759_v1 = vld [vmem:[%s8017_s9 + $0xa0] sm:$0xff]  ;;  %v4257_v44 = vmax.f32 %v4241_v50, 0.0 }
 0x7ea   : > { %v11804_v50 = vld [vmem:[%s8017_s9 + $0xe0] sm:$0xff] }
 0x7eb   : > { %4086 = vadd.xlane.f32.xlu1 %v11597_v20  ;;  %v4154_v20 = vmul.f32 %v11659_v33, %v11649_v63  ;;  %15309 = vst [vmem:[#allocation38_spill] sm:$0xff] %v11804_v50 }
 0x7ed   : > { %v4188_v37 = vadd.f32 %v4172_v25, %v4154_v20  ;;  %v4177_v20 = vmul.f32 %v11759_v1, %v11651_v16  ;;  %v4225_v25 = vadd.f32 %v4209_v0, %v4191_v14  ;;  %v11793_v0 = vld [vmem:[%s8017_s9 + $0xd0] sm:$0xff]  ;;  %v4213_v14 = vmul.f32 %v11804_v50, %v11673_v2 }
 0x7ef   : > { %4092 = vadd.xlane.f32.xlu1 %v4091_v27  ;;  %v4221_v27 = vadd.f32 %v4205_v26, %v4187_v28  ;;  %v4222_v62 = vadd.f32 %v4206_v11, %v4188_v37  ;;  %v4226_v28 = vadd.f32 %v4210_v56, %v4192_v9  ;;  %v11764_v37 = vld [vmem:[%s8017_s9 + $0xa8] sm:$0xff]  ;;  %v4258_v11 = vmax.f32 %v4242_v55, 0.0 }
 0x7f0   : > { %v4178_v26 = vmul.f32 %v11764_v37, %v11651_v16  ;;  %v4193_v42 = vadd.f32 %v4177_v20, %v4159_v4  ;;  %v4179_v56 = vmul.f32 %v11793_v0, %v11651_v16  ;;  %v11809_v9 = vld [vmem:[%s8017_s9 + $0xe8] sm:$0xff]  ;;  %v11815_v20 = vld [vmem:[%s8017_s9 + $0xf0] sm:$0xff] }
 0x7f1   : > { %v4240_v32 = vadd.f32 %v11712_v17, %v4222_v62  ;;  %v4243_v62 = vadd.f32 %v11712_v17, %v4225_v25  ;;  %v4244_v22 = vadd.f32 %v11712_v17, %v4226_v28  ;;  %v11785_v5 = vadd.f32 %v4258_v11, %v4257_v44  ;;  %15310 = vst [vmem:[#allocation40_spill] sm:$0xff] %v11809_v9 }
 0x7f2   : > { %v4194_v49 = vadd.f32 %v4178_v26, %v4160_v10  ;;  %v4214_v4 = vmul.f32 %v11809_v9, %v11673_v2  ;;  %v4195_v10 = vadd.f32 %v4179_v56, %v4161_v45  ;;  %v4163_v44 = vmul.f32 %v11815_v20, %v11649_v63  ;;  %v11820_v26 = vld [vmem:[%s8017_s9 + $0xf8] sm:$0xff]  ;;  %v11835_v45 = vld [vmem:[%s8017_s9 + $0x110] sm:$0xff]  ;;  %v11845_v56 = vld [vmem:[%s8017_s9 + $0x120] sm:$0xff] }
 0x7f3   : > { %4098 = vadd.xlane.f32.xlu1 %v4097_v43  ;;  %v4239_v43 = vadd.f32 %v11712_v17, %v4221_v27  ;;  %v4256_v38 = vmax.f32 %v4240_v32, 0.0  ;;  %v4212_v27 = vmul.f32 %v11774_v13, %v11673_v2  ;;  %v11788_v32 = vld [vmem:[%s8017_s9 + $0xc8] sm:$0xff]  ;;  %v4259_v41 = vmax.f32 %v4243_v62, 0.0  ;;  %15311 = vst [vmem:[#allocation48_spill] sm:$0xff] %v11845_v56 }
 0x7f4   : > { %v4162_v6 = vmul.f32 %v11788_v32, %v11649_v63  ;;  %v4260_v58 = vmax.f32 %v4244_v22, 0.0  ;;  %v4164_v11 = vmul.f32 %v11820_v26, %v11649_v63  ;;  %v4229_v62 = vadd.f32 %v4213_v14, %v4195_v10  ;;  %v11830_v22 = vld [vmem:[%s8017_s9 + $0x108] sm:$0xff] }
 0x7f5   : > { %v4255_v15 = vmax.f32 %v4239_v43, 0.0  ;;  %v4227_v43 = vadd.f32 %v4211_v39, %v4193_v42  ;;  %v4228_v36 = vadd.f32 %v4212_v27, %v4194_v49  ;;  %v11825_v42 = vld [vmem:[%s8017_s9 + $0x100] sm:$0xff]  ;;  %v4182_v49 = vmul.f32 %v11830_v22, %v11651_v16 }
 0x7f6   : > { %v4181_v39 = vmul.f32 %v11825_v42, %v11651_v16  ;;  %v4247_v14 = vadd.f32 %v11712_v17, %v4229_v62 }
 0x7f7   : > { %v4271_v30 = vadd.f32 %v4256_v38, %v4255_v15  ;;  %v4245_v15 = vadd.f32 %v11712_v17, %v4227_v43  ;;  %v11799_v38 = vld [vmem:[%s8017_s9 + $0xd8] sm:$0xff]  ;;  %v4246_v55 = vadd.f32 %v11712_v17, %v4228_v36  ;;  %v4215_v43 = vmul.f32 %v11835_v45, %v11673_v2 }
 0x7f8   : > { %15308 = vst [vmem:[#allocation30_spill] sm:$0xff] %v11799_v38  ;;  %v4180_v24 = vmul.f32 %v11799_v38, %v11651_v16 }
 0x7f9   : > { %4272 = vadd.xlane.f32.xlu1 %v4271_v30  ;;  %v4277_v30 = vadd.f32 %v4260_v58, %v4259_v41  ;;  %v4261_v25 = vmax.f32 %v4245_v15, 0.0  ;;  %v4262_v27 = vmax.f32 %v4246_v55, 0.0  ;;  %v4197_v41 = vadd.f32 %v4181_v39, %v4163_v44  ;;  %v11840_v58 = vld [vmem:[%s8017_s9 + $0x118] sm:$0xff]  ;;  %v11853_v55 = vld [vmem:[%s8017_s9 + $0x128] sm:$0xff] }
 0x7fa   : > { %v4196_v28 = vadd.f32 %v4180_v24, %v4162_v6  ;;  %v4216_v36 = vmul.f32 %v11840_v58, %v11673_v2  ;;  %v4165_v15 = vmul.f32 %v11845_v56, %v11649_v63  ;;  %15312 = vst [vmem:[#allocation53_spill] sm:$0xff] %v11853_v55  ;;  %v7467_v56 = vld [vmem:[%s8017_s9 + $0x160] sm:$0xff] }
 0x7fb   : > { %v11849_v24 = vadd.f32 %v4262_v27, %v4261_v25  ;;  %v4231_v44 = vadd.f32 %v4215_v43, %v4197_v41  ;;  %v11864_v25 = vld [vmem:[%s8017_s9 + $0x138] sm:$0xff]  ;;  %v4263_v27 = vmax.f32 %v4247_v14, 0.0  ;;  %v4185_v9 = vmul.f32 %v7467_v56, %v11651_v16 }
 0x7fc   : > { %v4230_v6 = vadd.f32 %v4214_v4, %v4196_v28  ;;  %v4166_v4 = vmul.f32 %v11853_v55, %v11649_v63  ;;  %v11859_v28 = vld [vmem:[%s8017_s9 + $0x130] sm:$0xff]  ;;  %15314 = vst [vmem:[#allocation44_spill] sm:$0xff] %v11864_v25 }
 0x7fd   : > { %4278 = vadd.xlane.f32.xlu1 %v4277_v30  ;;  %v4198_v30 = vadd.f32 %v4182_v49, %v4164_v11  ;;  %15313 = vst [vmem:[#allocation58_spill] sm:$0xff] %v11859_v28  ;;  %v4183_v39 = vmul.f32 %v11859_v28, %v11651_v16  ;;  %v4184_v11 = vmul.f32 %v11864_v25, %v11651_v16  ;;  %v11869_v49 = vld [vmem:[%s8017_s9 + $0x140] sm:$0xff]  ;;  %v7466_v25 = vld [vmem:[%s8017_s9 + $0x158] sm:$0xff] }
 0x7fe   : > { %v4248_v10 = vadd.f32 %v11712_v17, %v4230_v6  ;;  %15315 = vst [vmem:[#allocation45_spill] sm:$0xff] %v11869_v49  ;;  %v4217_v43 = vmul.f32 %v11869_v49, %v11673_v2  ;;  %v11874_v6 = vld [vmem:[%s8017_s9 + $0x148] sm:$0xff]  ;;  %v4249_v51 = vadd.f32 %v11712_v17, %v4231_v44  ;;  %v4168_v49 = vmul.f32 %v7466_v25, %v11649_v63  ;;  %v7470_v25 = vld [vmem:[%s8017_s9 + $0x178] sm:$0xff] }
 0x7ff   : > { %v4232_v62 = vadd.f32 %v4216_v36, %v4198_v30  ;;  %15316 = vst [vmem:[#allocation37_spill] sm:$0xff] %v11874_v6  ;;  %v4218_v41 = vmul.f32 %v11874_v6, %v11673_v2  ;;  %v4199_v28 = vadd.f32 %v4183_v39, %v4165_v15  ;;  %v4200_v55 = vadd.f32 %v4184_v11, %v4166_v4  ;;  %v7465_v36 = vld [vmem:[%s8017_s9 + $0x150] sm:$0xff]  ;;  %v7468_v15 = vld [vmem:[%s8017_s9 + $0x168] sm:$0xff] }
 0x800   : > { %v4264_v34 = vmax.f32 %v4248_v10, 0.0  ;;  %v4167_v30 = vmul.f32 %v7465_v36, %v11649_v63  ;;  %v4265_v10 = vmax.f32 %v4249_v51, 0.0  ;;  %v4186_v4 = vmul.f32 %v7468_v15, %v11651_v16  ;;  %v7469_v11 = vld [vmem:[%s8017_s9 + $0x170] sm:$0xff] }
 0x801   : > { %v4250_v14 = vadd.f32 %v11712_v17, %v4232_v62  ;;  %v4233_v50 = vadd.f32 %v4217_v43, %v4199_v28  ;;  %v4234_v38 = vadd.f32 %v4218_v41, %v4200_v55  ;;  %v4219_v62 = vmul.f32 %v7469_v11, %v11673_v2 }
 0x802   : > { %v4283_v6 = vadd.f32 %v4264_v34, %v4263_v27  ;;  %v4201_v39 = vadd.f32 %v4185_v9, %v4167_v30  ;;  %v4220_v56 = vmul.f32 %v7470_v25, %v11673_v2  ;;  %v4202_v51 = vadd.f32 %v4186_v4, %v4168_v49 }
 0x803   : > { %v4266_v44 = vmax.f32 %v4250_v14, 0.0  ;;  %v4251_v36 = vadd.f32 %v11712_v17, %v4233_v50  ;;  %v4252_v63 = vadd.f32 %v11712_v17, %v4234_v38  ;;  %v4078_v38 = vpop.xlane.xlu0 %4077 }
 0x804   : > { %4284 = vadd.xlane.f32.xlu1 %v4283_v6  ;;  %v4235_v55 = vadd.f32 %v4219_v62, %v4201_v39  ;;  %v4236_v43 = vadd.f32 %v4220_v56, %v4202_v51  ;;  %v4111_v49 = vrot.slane %v4078_v38, %v9699_v53  ;;  %v11920_v38 = vstv %s7038_s10  ;;  %s12019_s10 = sld [smem:[#allocation4 + $0x17]] }
 0x805   : > { %v11894_v34 = vadd.f32 %v4266_v44, %v4265_v10  ;;  %v4267_v28 = vmax.f32 %v4251_v36, 0.0  ;;  %v4268_v27 = vmax.f32 %v4252_v63, 0.0 }
 0x806   : > { %v4253_v16 = vadd.f32 %v11712_v17, %v4235_v55  ;;  %v4254_v41 = vadd.f32 %v11712_v17, %v4236_v43 }
 0x807   : > { %v4289_v9 = vadd.f32 %v4268_v27, %v4267_v28  ;;  %v4084_v30 = vpop.xlane.xlu0 %4083 }
 0x808   : > { %v4269_v6 = vmax.f32 %v4253_v16, 0.0  ;;  %v4270_v50 = vmax.f32 %v4254_v41, 0.0  ;;  %v4119_v4 = vrot.slane %v4084_v30, %v9699_v53 }
 0x809   : > { %4290 = vadd.xlane.f32.xlu1 %v4289_v9 }
 0x80a   : > { %v11898_v14 = vadd.f32 %v4270_v50, %v4269_v6  ;;  %v11918_v50 = vstv %s7037_s13  ;;  %s7048_s13 = sld [smem:[#allocation7 + $0x16]] }
 0x80b   : > { %v4090_v15 = vpop.xlane.xlu0 %4089  ;;  %v4348_v30 = vmul.f32 %v11654_v23, %v11918_v50 }
 0x80c   : > { %v4127_v36 = vrot.slane %v4090_v15, %v9699_v53  ;;  %v11931_v15 = vstv %s7039_s8  ;;  %s12021_s8 = sld [smem:[#allocation4 + $0x97]] }
 0x80f   : > { %v4096_v25 = vpop.xlane.xlu0 %4095 }
 0x810   : > { %v4135_v28 = vrot.slane %v4096_v25, %v9699_v53  ;;  %v11942_v25 = vstv %s7040_s12  ;;  %s12035_s12 = sld [smem:[#allocation4 + $0x117]] }
 0x870   : > { %v11900_v2 = vpop.xlane.xlu1 %3954 }
 0x871   : > { %15317 = vst [vmem:[#allocation39_spill] sm:$0xff] %v11900_v2 }
 0x874   : > { %v4081_v10 = vpop.xlane.xlu1 %4080 }
 0x875   : > { %v4115_v44 = vrot.slane %v4081_v10, %v9699_v53  ;;  %v4366_v10 = vmul.f32 %v11664_v60, %v11920_v38 }
 0x877   : > { %v4140_v39 = vsel %vm622_vm1, %v4115_v44, %v4111_v49  ;;  %v4349_v49 = vmul.f32 %v11659_v33, %v11918_v50  ;;  %v4367_v44 = vmul.f32 %v11669_v52, %v11920_v38 }
 0x878   : > { %v4087_v17 = vpop.xlane.xlu1 %4086  ;;  %v4141_v62 = vsel %vm624_vm2, %v4119_v4, %v4140_v39  ;;  %v4382_v4 = vadd.f32 %v4366_v10, %v4348_v30 }
 0x879   : > { %v4123_v11 = vrot.slane %v4087_v17, %v9699_v53  ;;  %v4383_v39 = vadd.f32 %v4367_v44, %v4349_v49  ;;  %v4401_v17 = vmul.f32 %v11681_v47, %v11931_v15 }
 0x87b   : > { %v4142_v63 = vsel %vm626_vm3, %v4123_v11, %v4141_v62  ;;  %v4417_v62 = vadd.f32 %v4401_v17, %v4383_v39 }
 0x87c   : > { %v4093_v56 = vpop.xlane.xlu1 %4092  ;;  %v4143_v55 = vsel %vm628_vm4, %v4127_v36, %v4142_v63  ;;  %v4352_v36 = vmul.f32 %v11703_v3, %v11918_v50  ;;  %v4353_v63 = vmul.f32 %v11708_v46, %v11918_v50 }
 0x87d   : > { %v4131_v51 = vrot.slane %v4093_v56, %v9699_v53  ;;  %v4370_v56 = vmul.f32 %v11727_v7, %v11920_v38 }
 0x87f   : > { %v4144_v27 = vsel %vm630_vm5, %v4131_v51, %v4143_v55  ;;  %v4371_v51 = vmul.f32 %v11732_v48, %v11920_v38 }
 0x880   : > { %v4099_v43 = vpop.xlane.xlu1 %4098  ;;  %v4145_v9 = vsel %vm632_vm6, %v4135_v28, %v4144_v27  ;;  %v4404_v28 = vmul.f32 %v11737_v8, %v11931_v15  ;;  %v4405_v27 = vmul.f32 %v11742_v61, %v11931_v15 }
 0x881   : > { %v4139_v16 = vrot.slane %v4099_v43, %v9699_v53  ;;  %v4386_v43 = vadd.f32 %v4370_v56, %v4352_v36  ;;  %v12279_v53 = vld [vmem:[%s8017_s9 + $0x30] sm:$0xff] }
 0x883   : > { %v4146_v41 = vsel %vm634_vm7, %v4139_v16, %v4145_v9  ;;  %v4387_v16 = vadd.f32 %v4371_v51, %v4353_v63  ;;  %v11954_v9 = vstv %s7041_s28  ;;  %v4420_v44 = vadd.f32 %v4404_v28, %v4386_v43  ;;  %s12045_s28 = sld [smem:[#allocation7 + $0x17]] }
 0x884   : > { %v4148_v6 = vsel %vm637_vm8, %v4146_v41, 0.0  ;;  %15318 = vst [vmem:[#allocation42_spill] sm:$0xff] %v11954_v9  ;;  %v11956_v41 = vstv %s7042_s6  ;;  %v4545_v49 = vmul.f32 %v11521_v54, %v11954_v9  ;;  %v4546_v10 = vmul.f32 %v11688_v19, %v11954_v9  ;;  %s12134_s6 = sld [smem:[#allocation4 + $0x18]] }
 0x885   : > { %4149 = vadd.xlane.f32.xlu0 %v4148_v6  ;;  %15319 = vst [vmem:[#allocation41_spill] sm:$0xff] %v11956_v41  ;;  %v4563_v39 = vmul.f32 %v11693_v57, %v11956_v41  ;;  %v4548_v43 = vmul.f32 %v11708_v46, %v11954_v9 }
 0x887   : > { %v4579_v36 = vadd.f32 %v4563_v39, %v4545_v49 }
 0x889   : > { %4275 = vadd.xlane.f32.xlu0 %v11785_v5  ;;  %v4400_v5 = vmul.f32 %v11676_v21, %v11931_v15 }
 0x88b   : > { %v4416_v11 = vadd.f32 %v4400_v5, %v4382_v4  ;;  %v4421_v4 = vadd.f32 %v4405_v27, %v4387_v16  ;;  %v4564_v5 = vmul.f32 %v11698_v29, %v11956_v41  ;;  %v11980_v27 = vstv %s7044_s2  ;;  %s12151_s2 = sld [smem:[#allocation4 + $0x118]] }
 0x88c   : > { %15321 = vst [vmem:[#allocation59_spill] sm:$0xff] %v11980_v27 }
 0x88d   : > { %4281 = vadd.xlane.f32.xlu0 %v11849_v24  ;;  %v4434_v55 = vadd.f32 %v11942_v25, %v4416_v11  ;;  %v4435_v24 = vadd.f32 %v11942_v25, %v4417_v62  ;;  %v4438_v11 = vadd.f32 %v11942_v25, %v4420_v44  ;;  %v4439_v62 = vadd.f32 %v11942_v25, %v4421_v4 }
 0x88e   : > { %v4580_v63 = vadd.f32 %v4564_v5, %v4546_v10  ;;  %v11992_v4 = vstv %s7045_s7  ;;  %s12167_s7 = sld [smem:[#allocation7 + $0x18]] }
 0x88f   : > { %v4450_v6 = vmax.f32 %v4434_v55, 0.0  ;;  %v4451_v30 = vmax.f32 %v4435_v24, 0.0  ;;  %v4547_v55 = vmul.f32 %v11703_v3, %v11954_v9  ;;  %v4454_v24 = vmax.f32 %v4438_v11, 0.0  ;;  %15322 = vst [vmem:[#allocation60_spill] sm:$0xff] %v11992_v4 }
 0x890   : > { %v4455_v28 = vmax.f32 %v4439_v62, 0.0 }
 0x891   : > { %4287 = vadd.xlane.f32.xlu0 %v11894_v34  ;;  %v11969_v34 = vstv %s7043_s1  ;;  %v4466_v17 = vadd.f32 %v4451_v30, %v4450_v6  ;;  %v4565_v6 = vmul.f32 %v11727_v7, %v11956_v41  ;;  %v4566_v30 = vmul.f32 %v11732_v48, %v11956_v41  ;;  %s12143_s1 = sld [smem:[#allocation4 + $0x98]] }
 0x892   : > { %15320 = vst [vmem:[#allocation57_spill] sm:$0xff] %v11969_v34  ;;  %v4597_v56 = vmul.f32 %v11715_v35, %v11969_v34  ;;  %v4598_v51 = vmul.f32 %v11722_v40, %v11969_v34  ;;  %v4472_v49 = vadd.f32 %v4455_v28, %v4454_v24  ;;  %v4599_v10 = vmul.f32 %v11737_v8, %v11969_v34 }
 0x893   : > { %v4600_v44 = vmul.f32 %v11742_v61, %v11969_v34  ;;  %v4581_v11 = vadd.f32 %v4565_v6, %v4547_v55  ;;  %v4582_v62 = vadd.f32 %v4566_v30, %v4548_v43  ;;  %v4350_v61 = vmul.f32 %v11521_v54, %v11918_v50 }
 0x894   : > { %v4613_v16 = vadd.f32 %v4597_v56, %v4579_v36  ;;  %v4740_v36 = vmul.f32 %v11521_v54, %v11992_v4  ;;  %v12001_v56 = vstv %s11967_s17  ;;  %v4369_v54 = vmul.f32 %v11698_v29, %v11920_v38  ;;  %s12313_s17 = sld [smem:[#allocation4 + $0x19]] }
 0x895   : > { %4293 = vadd.xlane.f32.xlu0 %v11898_v14  ;;  %v4614_v14 = vadd.f32 %v4598_v51, %v4580_v63  ;;  %v4741_v63 = vmul.f32 %v11688_v19, %v11992_v4  ;;  %15323 = vst [vmem:[#allocation62_spill] sm:$0xff] %v12001_v56  ;;  %v12003_v51 = vstv %s7047_s30  ;;  %v4615_v2 = vadd.f32 %v4599_v10, %v4581_v11  ;;  %s12322_s30 = sld [smem:[#allocation4 + $0x99]] }
 0x896   : > { %v4631_v39 = vadd.f32 %v11980_v27, %v4613_v16  ;;  %15324 = vst [vmem:[#allocation28_spill] sm:$0xff] %v12003_v51  ;;  %v4758_v16 = vmul.f32 %v11693_v57, %v12001_v56  ;;  %v4759_v55 = vmul.f32 %v11698_v29, %v12001_v56  ;;  %v4792_v43 = vmul.f32 %v11715_v35, %v12003_v51 }
 0x897   : > { %v4632_v5 = vadd.f32 %v11980_v27, %v4614_v14  ;;  %v4633_v6 = vadd.f32 %v11980_v27, %v4615_v2  ;;  %v4793_v30 = vmul.f32 %v11722_v40, %v12003_v51  ;;  %v4549_v10 = vmul.f32 %v11748_v12, %v11954_v9 }
 0x898   : > { %v4647_v24 = vmax.f32 %v4631_v39, 0.0  ;;  %v4774_v39 = vadd.f32 %v4758_v16, %v4740_v36  ;;  %v12017_v11 = vstv %s7048_s13  ;;  %v4550_v2 = vmul.f32 %v11754_v18, %v11954_v9  ;;  %s12326_s13 = sld [smem:[#allocation4 + $0x119]] }
 0x899   : > { %4467 = vadd.xlane.f32.xlu0 %v4466_v17  ;;  %v4648_v28 = vmax.f32 %v4632_v5, 0.0  ;;  %v4616_v17 = vadd.f32 %v4600_v44, %v4582_v62  ;;  %v4775_v5 = vadd.f32 %v4759_v55, %v4741_v63  ;;  %15325 = vst [vmem:[#allocation34_spill] sm:$0xff] %v12017_v11  ;;  %v4567_v62 = vmul.f32 %v11759_v1, %v11956_v41 }
 0x89a   : > { %v4601_v63 = vmul.f32 %v11769_v59, %v11969_v34 }
 0x89b   : > { %v4664_v14 = vadd.f32 %v4648_v28, %v4647_v24  ;;  %v4634_v44 = vadd.f32 %v11980_v27, %v4616_v17  ;;  %v4568_v24 = vmul.f32 %v11764_v37, %v11956_v41  ;;  %v4808_v17 = vadd.f32 %v4792_v43, %v4774_v39 }
 0x89c   : > { %v4809_v36 = vadd.f32 %v4793_v30, %v4775_v5  ;;  %v4583_v16 = vadd.f32 %v4567_v62, %v4549_v10  ;;  %v4351_v30 = vmul.f32 %v11688_v19, %v11918_v50  ;;  %v4368_v10 = vmul.f32 %v11693_v57, %v11920_v38 }
 0x89d   : > { %4473 = vadd.xlane.f32.xlu0 %v4472_v49  ;;  %v4649_v49 = vmax.f32 %v4633_v6, 0.0  ;;  %v4650_v28 = vmax.f32 %v4634_v44, 0.0  ;;  %v4584_v55 = vadd.f32 %v4568_v24, %v4550_v2  ;;  %v4602_v6 = vmul.f32 %v11774_v13, %v11969_v34 }
 0x89e   : > { %v4826_v48 = vadd.f32 %v12017_v11, %v4808_v17  ;;  %v4827_v43 = vadd.f32 %v12017_v11, %v4809_v36  ;;  %v4617_v44 = vadd.f32 %v4601_v63, %v4583_v16  ;;  %v4384_v24 = vadd.f32 %v4368_v10, %v4350_v61  ;;  %v12051_v17 = vpop.xlane.xlu1 %4272 }
 0x89f   : > { %v4667_v8 = vadd.f32 %v4650_v28, %v4649_v49  ;;  %v4402_v49 = vmul.f32 %v11715_v35, %v11931_v15  ;;  %v4385_v28 = vadd.f32 %v4369_v54, %v4351_v30  ;;  %15326 = vst [vmem:[#allocation35_spill] sm:$0xff] %v12051_v17  ;;  %v4403_v63 = vmul.f32 %v11722_v40, %v11931_v15 }
 0x8a0   : > { %v4842_v39 = vmax.f32 %v4826_v48, 0.0  ;;  %v4843_v5 = vmax.f32 %v4827_v43, 0.0  ;;  %v4635_v2 = vadd.f32 %v11980_v27, %v4617_v44  ;;  %v12056_v16 = vstv %s12019_s10  ;;  %s12342_s10 = sld [smem:[#allocation7 + $0x19]] }
 0x8a1   : > { %4665 = vadd.xlane.f32.xlu0 %v4664_v14  ;;  %v4618_v14 = vadd.f32 %v4602_v6, %v4584_v55  ;;  %15327 = vst [vmem:[#allocation25_spill] sm:$0xff] %v12056_v16  ;;  %v12059_v48 = vstv %s12021_s8  ;;  %v4933_v43 = vmul.f32 %v11654_v23, %v12056_v16  ;;  %v4419_v61 = vadd.f32 %v4403_v63, %v4385_v28  ;;  %s12549_s8 = sld [smem:[#allocation4 + $0x1a]] }
 0x8a2   : > { %v4859_v36 = vadd.f32 %v4843_v5, %v4842_v39  ;;  %15328 = vst [vmem:[#allocation31_spill] sm:$0xff] %v12059_v48  ;;  %v4651_v55 = vmax.f32 %v4635_v2, 0.0  ;;  %v4934_v30 = vmul.f32 %v11659_v33, %v12056_v16  ;;  %v4951_v44 = vmul.f32 %v11664_v60, %v12059_v48  ;;  %v12086_v63 = vpop.xlane.xlu1 %4278 }
 0x8a3   : > { %v4636_v62 = vadd.f32 %v11980_v27, %v4618_v14  ;;  %v4952_v14 = vmul.f32 %v11669_v52, %v12059_v48  ;;  %v12070_v54 = vstv %s12035_s12  ;;  %v12082_v28 = vstv %s12045_s28  ;;  %15331 = vst [vmem:[#allocation43_spill] sm:$0xff] %v12086_v63  ;;  %s12565_s12 = sld [smem:[#allocation4 + $0x9a]] }
 0x8a4   : > { %15329 = vst [vmem:[#allocation32_spill] sm:$0xff] %v12070_v54  ;;  %15330 = vst [vmem:[#allocation36_spill] sm:$0xff] %v12082_v28  ;;  %v4596_v39 = vmul.f32 %v11681_v47, %v11969_v34  ;;  %s12571_s28 = sld [smem:[#allocation4 + $0x11a]] }
 0x8a5   : > { %4668 = vadd.xlane.f32.xlu0 %v4667_v8  ;;  %v4652_v6 = vmax.f32 %v4636_v62, 0.0  ;;  %v4418_v8 = vadd.f32 %v4402_v49, %v4384_v24  ;;  %v4967_v49 = vadd.f32 %v4951_v44, %v4933_v43  ;;  %v4968_v2 = vadd.f32 %v4952_v14, %v4934_v30 }
 0x8a6   : > { %v4985_v62 = vmul.f32 %v11676_v21, %v12070_v54  ;;  %v4986_v24 = vmul.f32 %v11681_v47, %v12070_v54  ;;  %v4562_v43 = vmul.f32 %v11669_v52, %v11956_v41  ;;  %v4595_v14 = vmul.f32 %v11676_v21, %v11969_v34 }
 0x8a7   : > { %v4670_v10 = vadd.f32 %v4652_v6, %v4651_v55  ;;  %v12075_v5 = vadd.f32 %v11942_v25, %v4418_v8  ;;  %v12089_v55 = vadd.f32 %v11942_v25, %v4419_v61  ;;  %v4544_v6 = vmul.f32 %v11659_v33, %v11954_v9 }
 0x8a8   : > { %v4561_v8 = vmul.f32 %v11664_v60, %v11956_v41  ;;  %v5001_v30 = vadd.f32 %v4985_v62, %v4967_v49  ;;  %v5002_v44 = vadd.f32 %v4986_v24, %v4968_v2  ;;  %v4376_v49 = vmul.f32 %v11825_v42, %v11920_v38 }
 0x8a9   : > { %4860 = vadd.xlane.f32.xlu0 %v4859_v36  ;;  %v4543_v36 = vmul.f32 %v11654_v23, %v11954_v9  ;;  %v4452_v61 = vmax.f32 %v12075_v5, 0.0  ;;  %v4578_v40 = vadd.f32 %v4562_v43, %v4544_v6  ;;  %v4358_v9 = vmul.f32 %v11815_v20, %v11918_v50 }
 0x8aa   : > { %v5019_v35 = vadd.f32 %v12082_v28, %v5001_v30  ;;  %v5020_v41 = vadd.f32 %v12082_v28, %v5002_v44  ;;  %v4377_v24 = vmul.f32 %v11830_v22, %v11920_v38  ;;  %v4411_v43 = vmul.f32 %v11840_v58, %v11931_v15  ;;  %v12116_v30 = vpop.xlane.xlu1 %4284 }
 0x8ab   : > { %v4577_v17 = vadd.f32 %v4561_v8, %v4543_v36  ;;  %v4612_v62 = vadd.f32 %v4596_v39, %v4578_v40  ;;  %v4410_v36 = vmul.f32 %v11835_v45, %v11931_v15  ;;  %v4392_v8 = vadd.f32 %v4376_v49, %v4358_v9  ;;  %15332 = vst [vmem:[#allocation63_spill] sm:$0xff] %v12116_v30 }
 0x8ac   : > { %v5035_v6 = vmax.f32 %v5019_v35, 0.0  ;;  %v5036_v20 = vmax.f32 %v5020_v41, 0.0  ;;  %v4354_v40 = vmul.f32 %v11748_v12, %v11918_v50  ;;  %v4355_v35 = vmul.f32 %v11754_v18, %v11918_v50 }
 0x8ad   : > { %4671 = vadd.xlane.f32.xlu0 %v4670_v10  ;;  %v4359_v10 = vmul.f32 %v11820_v26, %v11918_v50  ;;  %v4611_v2 = vadd.f32 %v4595_v14, %v4577_v17  ;;  %v4630_v42 = vadd.f32 %v11980_v27, %v4612_v62  ;;  %v4426_v39 = vadd.f32 %v4410_v36, %v4392_v8 }
 0x8ae   : > { %v5051_v22 = vadd.f32 %v5036_v20, %v5035_v6  ;;  %v4372_v45 = vmul.f32 %v11759_v1, %v11920_v38  ;;  %v4453_v58 = vmax.f32 %v12089_v55, 0.0  ;;  %v4373_v44 = vmul.f32 %v11764_v37, %v11920_v38 }
 0x8af   : > { %v4629_v26 = vadd.f32 %v11980_v27, %v4611_v2  ;;  %v4393_v17 = vadd.f32 %v4377_v24, %v4359_v10  ;;  %v4444_v14 = vadd.f32 %v11942_v25, %v4426_v39  ;;  %v4406_v49 = vmul.f32 %v11769_v59, %v11931_v15 }
 0x8b0   : > { %v4388_v10 = vadd.f32 %v4372_v45, %v4354_v40  ;;  %v4407_v2 = vmul.f32 %v11774_v13, %v11931_v15  ;;  %v4646_v62 = vmax.f32 %v4630_v42, 0.0  ;;  %v4389_v24 = vadd.f32 %v4373_v44, %v4355_v35 }
 0x8b1   : > { %v4645_v9 = vmax.f32 %v4629_v26, 0.0  ;;  %v4427_v41 = vadd.f32 %v4411_v43, %v4393_v17  ;;  %5052 = vadd.xlane.f32.xlu0 %v5051_v22  ;;  %v4744_v36 = vmul.f32 %v11748_v12, %v11992_v4  ;;  %v4460_v6 = vmax.f32 %v4444_v14, 0.0  ;;  %v12145_v26 = vpop.xlane.xlu1 %4290 }
 0x8b2   : > { %v4422_v20 = vadd.f32 %v4406_v49, %v4388_v10  ;;  %v4745_v8 = vmul.f32 %v11754_v18, %v11992_v4  ;;  %v4762_v43 = vmul.f32 %v11759_v1, %v12001_v56  ;;  %15333 = vst [vmem:[#allocation64_spill] sm:$0xff] %v12145_v26  ;;  %v4423_v42 = vadd.f32 %v4407_v2, %v4389_v24 }
 0x8b3   : > { %v4445_v55 = vadd.f32 %v11942_v25, %v4427_v41  ;;  %v4763_v40 = vmul.f32 %v11764_v37, %v12001_v56  ;;  %v4796_v12 = vmul.f32 %v11769_v59, %v12003_v51  ;;  %v4797_v39 = vmul.f32 %v11774_v13, %v12003_v51 }
 0x8b4   : > { %v4440_v22 = vadd.f32 %v11942_v25, %v4422_v20  ;;  %v4778_v1 = vadd.f32 %v4762_v43, %v4744_v36  ;;  %v4441_v37 = vadd.f32 %v11942_v25, %v4423_v42  ;;  %v4738_v14 = vmul.f32 %v11654_v23, %v11992_v4 }
 0x8b5   : > { %v4461_v17 = vmax.f32 %v4445_v55, 0.0  ;;  %v4779_v41 = vadd.f32 %v4763_v40, %v4745_v8  ;;  %v4756_v10 = vmul.f32 %v11664_v60, %v12001_v56  ;;  %v12171_v13 = vadd.f32 %v4453_v58, %v4452_v61 }
 0x8b6   : > { %v4812_v44 = vadd.f32 %v4796_v12, %v4778_v1  ;;  %v12173_v49 = vadd.f32 %v4646_v62, %v4645_v9  ;;  %v4739_v55 = vmul.f32 %v11659_v33, %v11992_v4  ;;  %v4456_v24 = vmax.f32 %v4440_v22, 0.0 }
 0x8b7   : > { %v4481_v45 = vadd.f32 %v4461_v17, %v4460_v6  ;;  %15334 = vst [vmem:[#allocation65_spill] sm:$0xff] %v12171_v13  ;;  %v4813_v2 = vadd.f32 %v4797_v39, %v4779_v41  ;;  %v4757_v6 = vmul.f32 %v11669_v52, %v12001_v56  ;;  %v12181_v20 = vstv %s12134_s6  ;;  %s12597_s6 = sld [smem:[#allocation7 + $0x1a]] }
 0x8b8   : > { %15335 = vst [vmem:[#allocation66_spill] sm:$0xff] %v12173_v49  ;;  %v4830_v36 = vadd.f32 %v12017_v11, %v4812_v44  ;;  %15336 = vst [vmem:[#allocation67_spill] sm:$0xff] %v12181_v20  ;;  %v4457_v5 = vmax.f32 %v4441_v37, 0.0  ;;  %v5128_v58 = vmul.f32 %v11654_v23, %v12181_v20  ;;  %v5129_v9 = vmul.f32 %v11659_v33, %v12181_v20 }
 0x8b9   : > { %4482 = vadd.xlane.f32.xlu0 %v4481_v45  ;;  %v4831_v61 = vadd.f32 %v12017_v11, %v4813_v2  ;;  %v4772_v8 = vadd.f32 %v4756_v10, %v4738_v14  ;;  %v4790_v43 = vmul.f32 %v11676_v21, %v12003_v51  ;;  %v12191_v17 = vstv %s12143_s1  ;;  %s12781_s1 = sld [smem:[#allocation4 + $0x1b]] }
 0x8ba   : > { %v4846_v62 = vmax.f32 %v4830_v36, 0.0  ;;  %15337 = vst [vmem:[#allocation68_spill] sm:$0xff] %v12191_v17  ;;  %v5146_v40 = vmul.f32 %v11664_v60, %v12191_v17  ;;  %v5147_v12 = vmul.f32 %v11669_v52, %v12191_v17  ;;  %v12198_v22 = vstv %s12151_s2  ;;  %s12790_s2 = sld [smem:[#allocation4 + $0x9b]] }
 0x8bb   : > { %v4847_v42 = vmax.f32 %v4831_v61, 0.0  ;;  %15338 = vst [vmem:[#allocation69_spill] sm:$0xff] %v12198_v22  ;;  %v4773_v23 = vadd.f32 %v4757_v6, %v4739_v55  ;;  %v4791_v33 = vmul.f32 %v11681_v47, %v12003_v51  ;;  %v5180_v1 = vmul.f32 %v11676_v21, %v12198_v22  ;;  %v15341_v55 = vld [vmem:[#allocation30_spill] sm:$0xff]  ;;  %v15343_v61 = vld [vmem:[#allocation40_spill] sm:$0xff] }
 0x8bc   : > { %v5181_v39 = vmul.f32 %v11681_v47, %v12198_v22  ;;  %v12206_v45 = vadd.f32 %v4457_v5, %v4456_v24  ;;  %v5162_v41 = vadd.f32 %v5146_v40, %v5128_v58  ;;  %v5163_v60 = vadd.f32 %v5147_v12, %v5129_v9  ;;  %v15342_v6 = vld [vmem:[#allocation38_spill] sm:$0xff]  ;;  %v15344_v9 = vld [vmem:[#allocation48_spill] sm:$0xff]  ;;  %v15345_v12 = vld [vmem:[#allocation53_spill] sm:$0xff] }
 0x8bd   : > { %v4865_v37 = vadd.f32 %v4847_v42, %v4846_v62  ;;  %v4806_v44 = vadd.f32 %v4790_v43, %v4772_v8  ;;  %v12209_v14 = vstv %s12167_s7  ;;  %v4356_v52 = vmul.f32 %v11781_v31, %v11918_v50  ;;  %s12796_s7 = sld [smem:[#allocation4 + $0x11b]] }
 0x8be   : > { %15339 = vst [vmem:[#allocation70_spill] sm:$0xff] %v12206_v45  ;;  %15340 = vst [vmem:[#allocation71_spill] sm:$0xff] %v12209_v14  ;;  %v4357_v10 = vmul.f32 %v11788_v32, %v11918_v50  ;;  %v5196_v2 = vadd.f32 %v5180_v1, %v5162_v41  ;;  %v5197_v21 = vadd.f32 %v5181_v39, %v5163_v60  ;;  %v15347_v39 = vld [vmem:[#allocation44_spill] sm:$0xff]  ;;  %v15348_v41 = vld [vmem:[#allocation45_spill] sm:$0xff] }
 0x8bf   : > { %4866 = vadd.xlane.f32.xlu0 %v4865_v37  ;;  %v4374_v47 = vmul.f32 %v11793_v0, %v11920_v38  ;;  %v4375_v24 = vmul.f32 %v15341_v55, %v11920_v38  ;;  %v4807_v36 = vadd.f32 %v4791_v33, %v4773_v23  ;;  %v4408_v5 = vmul.f32 %v15342_v6, %v11931_v15  ;;  %v15346_v23 = vld [vmem:[#allocation58_spill] sm:$0xff] }
 0x8c0   : > { %v4409_v58 = vmul.f32 %v15343_v61, %v11931_v15  ;;  %v4360_v62 = vmul.f32 %v15344_v9, %v11918_v50  ;;  %v5214_v8 = vadd.f32 %v12209_v14, %v5196_v2  ;;  %v5215_v43 = vadd.f32 %v12209_v14, %v5197_v21 }
 0x8c1   : > { %v4390_v42 = vadd.f32 %v4374_v47, %v4356_v52  ;;  %v4391_v40 = vadd.f32 %v4375_v24, %v4357_v10  ;;  %v4361_v1 = vmul.f32 %v15345_v12, %v11918_v50  ;;  %v4378_v33 = vmul.f32 %v15346_v23, %v11920_v38  ;;  %v15349_v47 = vld [vmem:[#allocation37_spill] sm:$0xff] }
 0x8c2   : > { %v4379_v37 = vmul.f32 %v15347_v39, %v11920_v38  ;;  %v4412_v60 = vmul.f32 %v15348_v41, %v11931_v15  ;;  %v12236_v59 = vadd.f32 %v12017_v11, %v4806_v44  ;;  %v5230_v2 = vmax.f32 %v5214_v8, 0.0 }
 0x8c3   : > { %v5231_v35 = vmax.f32 %v5215_v43, 0.0  ;;  %v4424_v21 = vadd.f32 %v4408_v5, %v4390_v42  ;;  %v4394_v52 = vadd.f32 %v4378_v33, %v4360_v62  ;;  %v4413_v24 = vmul.f32 %v15349_v47, %v11931_v15  ;;  %v15350_v62 = vld [vmem:[#allocation22_spill] sm:$0xff] }
 0x8c4   : > { %v4395_v10 = vadd.f32 %v4379_v37, %v4361_v1  ;;  %v4742_v18 = vmul.f32 %v11703_v3, %v11992_v4  ;;  %v12243_v45 = vadd.f32 %v12017_v11, %v4807_v36  ;;  %v4425_v13 = vadd.f32 %v4409_v58, %v4391_v40  ;;  %v15352_v58 = vld [vmem:[#allocation24_spill] sm:$0xff] }
 0x8c5   : > { %v5246_v49 = vadd.f32 %v5231_v35, %v5230_v2  ;;  %v4743_v44 = vmul.f32 %v11708_v46, %v11992_v4  ;;  %v4428_v26 = vadd.f32 %v4412_v60, %v4394_v52  ;;  %v4760_v5 = vmul.f32 %v11727_v7, %v12001_v56  ;;  %v15351_v35 = vld [vmem:[#allocation23_spill] sm:$0xff] }
 0x8c6   : > { %v4429_v8 = vadd.f32 %v4413_v24, %v4395_v10  ;;  %v4761_v43 = vmul.f32 %v15350_v62, %v12001_v56  ;;  %v12253_v1 = vadd.f32 %v11942_v25, %v4424_v21  ;;  %v4794_v36 = vmul.f32 %v15351_v35, %v12003_v51 }
 0x8c7   : > { %5247 = vadd.xlane.f32.xlu0 %v5246_v49  ;;  %v4795_v40 = vmul.f32 %v15352_v58, %v12003_v51  ;;  %v4446_v33 = vadd.f32 %v11942_v25, %v4428_v26  ;;  %v4776_v60 = vadd.f32 %v4760_v5, %v4742_v18  ;;  %v4841_v52 = vmax.f32 %v12243_v45, 0.0 }
 0x8c8   : > { %v4447_v37 = vadd.f32 %v11942_v25, %v4429_v8  ;;  %v4777_v2 = vadd.f32 %v4761_v43, %v4743_v44  ;;  %v4746_v49 = vmul.f32 %v11781_v31, %v11992_v4  ;;  %v4747_v21 = vmul.f32 %v11788_v32, %v11992_v4 }
 0x8c9   : > { %v4764_v10 = vmul.f32 %v11793_v0, %v12001_v56  ;;  %v12269_v24 = vadd.f32 %v11942_v25, %v4425_v13  ;;  %v4462_v26 = vmax.f32 %v4446_v33, 0.0  ;;  %v4810_v8 = vadd.f32 %v4794_v36, %v4776_v60 }
 0x8ca   : > { %v4463_v42 = vmax.f32 %v4447_v37, 0.0  ;;  %v4765_v18 = vmul.f32 %v15341_v55, %v12001_v56  ;;  %v4798_v45 = vmul.f32 %v15342_v6, %v12003_v51  ;;  %v4799_v5 = vmul.f32 %v15343_v61, %v12003_v51 }
 0x8cb   : > { %v4780_v44 = vadd.f32 %v4764_v10, %v4746_v49  ;;  %v4458_v43 = vmax.f32 %v12253_v1, 0.0  ;;  %v4811_v63 = vadd.f32 %v4795_v40, %v4777_v2  ;;  %v4935_v13 = vmul.f32 %v12279_v53, %v12056_v16  ;;  %v15353_v40 = vld [vmem:[#allocation47_spill] sm:$0xff] }
 0x8cc   : > { %v4484_v30 = vadd.f32 %v4463_v42, %v4462_v26  ;;  %v4781_v36 = vadd.f32 %v4765_v18, %v4747_v21  ;;  %v4936_v37 = vmul.f32 %v11688_v19, %v12056_v16  ;;  %v4953_v60 = vmul.f32 %v11693_v57, %v12059_v48  ;;  %v15354_v19 = vld [vmem:[#allocation33_spill] sm:$0xff] }
 0x8cd   : > { %v4814_v33 = vadd.f32 %v4798_v45, %v4780_v44  ;;  %v4459_v49 = vmax.f32 %v12269_v24, 0.0  ;;  %v4828_v1 = vadd.f32 %v12017_v11, %v4810_v8  ;;  %v4954_v42 = vmul.f32 %v11698_v29, %v12059_v48  ;;  %v15355_v24 = vld [vmem:[#allocation42_spill] sm:$0xff] }
 0x8ce   : > { %4485 = vadd.xlane.f32.xlu0 %v4484_v30  ;;  %v4987_v2 = vmul.f32 %v15353_v40, %v12070_v54  ;;  %v4815_v10 = vadd.f32 %v4799_v5, %v4781_v36  ;;  %v4969_v26 = vadd.f32 %v4953_v60, %v4935_v13  ;;  %v4988_v18 = vmul.f32 %v15354_v19, %v12070_v54  ;;  %v15356_v5 = vld [vmem:[#allocation41_spill] sm:$0xff] }
 0x8cf   : > { %v4832_v21 = vadd.f32 %v12017_v11, %v4814_v33  ;;  %v4829_v57 = vadd.f32 %v12017_v11, %v4811_v63  ;;  %v4970_v44 = vadd.f32 %v4954_v42, %v4936_v37  ;;  %v4551_v30 = vmul.f32 %v11781_v31, %v15355_v24 }
 0x8d0   : > { %v4552_v8 = vmul.f32 %v11788_v32, %v15355_v24  ;;  %v4833_v29 = vadd.f32 %v12017_v11, %v4815_v10  ;;  %v5003_v40 = vadd.f32 %v4987_v2, %v4969_v26  ;;  %v4569_v36 = vmul.f32 %v11793_v0, %v15356_v5 }
 0x8d1   : > { %v4848_v45 = vmax.f32 %v4832_v21, 0.0  ;;  %v5004_v13 = vadd.f32 %v4988_v18, %v4970_v44  ;;  %v4570_v33 = vmul.f32 %v15341_v55, %v15356_v5  ;;  %v4603_v63 = vmul.f32 %v15342_v6, %v11969_v34 }
 0x8d2   : > { %v4604_v31 = vmul.f32 %v15343_v61, %v11969_v34  ;;  %v4849_v37 = vmax.f32 %v4833_v29, 0.0  ;;  %v5021_v32 = vadd.f32 %v12082_v28, %v5003_v40  ;;  %v4585_v60 = vadd.f32 %v4569_v36, %v4551_v30 }
 0x8d3   : > { %v5132_v42 = vmul.f32 %v11703_v3, %v12181_v20  ;;  %v5022_v0 = vadd.f32 %v12082_v28, %v5004_v13  ;;  %v4586_v2 = vadd.f32 %v4570_v33, %v4552_v8  ;;  %v5133_v55 = vmul.f32 %v11708_v46, %v12181_v20 }
 0x8d4   : > { %v5150_v6 = vmul.f32 %v11727_v7, %v12191_v17  ;;  %v4844_v10 = vmax.f32 %v4828_v1, 0.0  ;;  %v4868_v61 = vadd.f32 %v4849_v37, %v4848_v45  ;;  %v4619_v21 = vadd.f32 %v4603_v63, %v4585_v60  ;;  %v12348_v37 = vld [vmem:[%s8017_s9 + $0x68] sm:$0xff] }
 0x8d5   : > { %v5151_v26 = vmul.f32 %v15350_v62, %v12191_v17  ;;  %v4845_v19 = vmax.f32 %v4829_v57, 0.0  ;;  %v4620_v18 = vadd.f32 %v4604_v31, %v4586_v2  ;;  %v5184_v30 = vmul.f32 %v15351_v35, %v12198_v22  ;;  %15361 = vst [vmem:[#allocation48_spill] sm:$0xff] %v12348_v37  ;;  %v12363_v2 = vld [vmem:[%s8017_s9 + $0x38] sm:$0xff] }
 0x8d6   : > { %v5166_v44 = vadd.f32 %v5150_v6, %v5132_v42  ;;  %v15357_v46 = vmax.f32 %v12236_v59, 0.0  ;;  %4869 = vadd.xlane.f32.xlu0 %v4868_v61  ;;  %v4637_v1 = vadd.f32 %v11980_v27, %v4619_v21  ;;  %v5185_v45 = vmul.f32 %v15352_v58, %v12198_v22  ;;  %15364 = vst [vmem:[#allocation44_spill] sm:$0xff] %v12363_v2  ;;  %v12368_v61 = vld [vmem:[%s8017_s9 + $0x80] sm:$0xff] }
 0x8d7   : > { %v5167_v29 = vadd.f32 %v5151_v26, %v5133_v55  ;;  %v5037_v57 = vmax.f32 %v5021_v32, 0.0  ;;  %v5038_v40 = vmax.f32 %v5022_v0, 0.0  ;;  %v4638_v36 = vadd.f32 %v11980_v27, %v4620_v18  ;;  %15365 = vst [vmem:[#allocation45_spill] sm:$0xff] %v12368_v61  ;;  %v12376_v26 = vld [vmem:[%s8017_s9 + $0x88] sm:$0xff]  ;;  %v12381_v18 = vld [vmem:[%s8017_s9 + $0x40] sm:$0xff] }
 0x8d8   : > { %v12330_v8 = vadd.f32 %v4841_v52, %v15357_v46  ;;  %v5200_v35 = vadd.f32 %v5184_v30, %v5166_v44  ;;  %v12336_v13 = vadd.f32 %v4459_v49, %v4458_v43  ;;  %v4937_v59 = vmul.f32 %v11703_v3, %v12056_v16  ;;  %15367 = vst [vmem:[#allocation22_spill] sm:$0xff] %v12376_v26  ;;  %v12386_v30 = vld [vmem:[%s8017_s9 + $0x48] sm:$0xff] }
 0x8d9   : > { %v5201_v33 = vadd.f32 %v5185_v45, %v5167_v29  ;;  %v4955_v52 = vmul.f32 %v11727_v7, %v12059_v48  ;;  %v12344_v63 = vadd.f32 %v4845_v19, %v4844_v10  ;;  %v4653_v58 = vmax.f32 %v4637_v1, 0.0  ;;  %15368 = vst [vmem:[#allocation23_spill] sm:$0xff] %v12381_v18  ;;  %15369 = vst [vmem:[#allocation24_spill] sm:$0xff] %v12386_v30 }
 0x8da   : > { %15358 = vst [vmem:[#allocation30_spill] sm:$0xff] %v12330_v8  ;;  %15359 = vst [vmem:[#allocation38_spill] sm:$0xff] %v12336_v13  ;;  %v5218_v31 = vadd.f32 %v12209_v14, %v5200_v35  ;;  %v4938_v43 = vmul.f32 %v12348_v37, %v12056_v16  ;;  %v4654_v49 = vmax.f32 %v4638_v36, 0.0  ;;  %v4956_v7 = vmul.f32 %v15350_v62, %v12059_v48  ;;  %v12502_v13 = vld [vmem:[%s8017_s9 + $0xe0] sm:$0xff] }
 0x8db   : > { %15360 = vst [vmem:[#allocation40_spill] sm:$0xff] %v12344_v63  ;;  %v5219_v3 = vadd.f32 %v12209_v14, %v5201_v33  ;;  %v12356_v32 = vstv %s12313_s17  ;;  %v12358_v60 = vadd.f32 %v5038_v40, %v5037_v57  ;;  %v4971_v10 = vadd.f32 %v4955_v52, %v4937_v59  ;;  %v12396_v40 = vld [vmem:[%s8017_s9 + $0x50] sm:$0xff]  ;;  %v12401_v59 = vld [vmem:[%s8017_s9 + $0x58] sm:$0xff]  ;;  %s12816_s17 = sld [smem:[#allocation7 + $0x1b]] }
 0x8dc   : > { %15362 = vst [vmem:[#allocation53_spill] sm:$0xff] %v12356_v32  ;;  %v5234_v42 = vmax.f32 %v5218_v31, 0.0  ;;  %v5325_v0 = vmul.f32 %v12279_v53, %v12356_v32  ;;  %v5326_v55 = vmul.f32 %v12363_v2, %v12356_v32  ;;  %v4989_v62 = vmul.f32 %v12368_v61, %v12070_v54  ;;  %15372 = vst [vmem:[#allocation72_spill] sm:$0xff] %v12396_v40 }
 0x8dd   : > { %15363 = vst [vmem:[#allocation58_spill] sm:$0xff] %v12358_v60  ;;  %v5235_v6 = vmax.f32 %v5219_v3, 0.0  ;;  %v12373_v21 = vstv %s12322_s30  ;;  %v4990_v19 = vmul.f32 %v12376_v26, %v12070_v54  ;;  %v12391_v1 = vstv %s12326_s13  ;;  %15373 = vst [vmem:[#allocation73_spill] sm:$0xff] %v12401_v59  ;;  %v12496_v60 = vld [vmem:[%s8017_s9 + $0xd8] sm:$0xff]  ;;  %s12954_s30 = sld [smem:[#allocation4 + $0x1c]] }
 0x8de   : > { %15366 = vst [vmem:[#allocation37_spill] sm:$0xff] %v12373_v21  ;;  %v5343_v44 = vmul.f32 %v12381_v18, %v12373_v21  ;;  %v5344_v46 = vmul.f32 %v12386_v30, %v12373_v21  ;;  %15370 = vst [vmem:[#allocation47_spill] sm:$0xff] %v12391_v1  ;;  %v12393_v29 = vadd.f32 %v4654_v49, %v4653_v58  ;;  %v12408_v49 = vstv %s12342_s10  ;;  %s12964_s13 = sld [smem:[#allocation4 + $0x9c]] }
 0x8df   : > { %v5252_v45 = vadd.f32 %v5235_v6, %v5234_v42  ;;  %v4972_v57 = vadd.f32 %v4956_v7, %v4938_v43  ;;  %v5377_v36 = vmul.f32 %v12396_v40, %v12391_v1  ;;  %v5378_v52 = vmul.f32 %v12401_v59, %v12391_v1  ;;  %15374 = vst [vmem:[#allocation74_spill] sm:$0xff] %v12408_v49  ;;  %s12976_s10 = sld [smem:[#allocation4 + $0x11c]] }
 0x8e0   : > { %15371 = vst [vmem:[#allocation33_spill] sm:$0xff] %v12393_v29  ;;  %v5359_v35 = vadd.f32 %v5343_v44, %v5325_v0  ;;  %v5360_v33 = vadd.f32 %v5344_v46, %v5326_v55  ;;  %v5130_v31 = vmul.f32 %v12279_v53, %v12181_v20  ;;  %v5005_v58 = vadd.f32 %v4989_v62, %v4971_v10 }
 0x8e1   : > { %5253 = vadd.xlane.f32.xlu0 %v5252_v45  ;;  %v5131_v43 = vmul.f32 %v12363_v2, %v12181_v20  ;;  %v5148_v3 = vmul.f32 %v12381_v18, %v12191_v17  ;;  %v5149_v0 = vmul.f32 %v12386_v30, %v12191_v17  ;;  %v5182_v55 = vmul.f32 %v12396_v40, %v12198_v22 }
 0x8e2   : > { %v5393_v7 = vadd.f32 %v5377_v36, %v5359_v35  ;;  %v5394_v42 = vadd.f32 %v5378_v52, %v5360_v33  ;;  %v5006_v6 = vadd.f32 %v4990_v19, %v4972_v57  ;;  %v5183_v10 = vmul.f32 %v12401_v59, %v12198_v22 }
 0x8e3   : > { %v5164_v44 = vadd.f32 %v5148_v3, %v5130_v31  ;;  %v4555_v62 = vmul.f32 %v15344_v9, %v15355_v24  ;;  %v5165_v36 = vadd.f32 %v5149_v0, %v5131_v43  ;;  %v4556_v35 = vmul.f32 %v15345_v12, %v15355_v24  ;;  %v12446_v0 = vld [vmem:[%s8017_s9 + $0xf8] sm:$0xff] }
 0x8e4   : > { %v5411_v46 = vadd.f32 %v12408_v49, %v5393_v7  ;;  %v5412_v45 = vadd.f32 %v12408_v49, %v5394_v42  ;;  %v12427_v33 = vadd.f32 %v12082_v28, %v5005_v58  ;;  %v4573_v19 = vmul.f32 %v15346_v23, %v15356_v5  ;;  %v12441_v23 = vld [vmem:[%s8017_s9 + $0xf0] sm:$0xff] }
 0x8e5   : > { %v4574_v9 = vmul.f32 %v15347_v39, %v15356_v5  ;;  %v4607_v57 = vmul.f32 %v15348_v41, %v11969_v34  ;;  %v5198_v43 = vadd.f32 %v5182_v55, %v5164_v44  ;;  %v4608_v12 = vmul.f32 %v15349_v47, %v11969_v34  ;;  %v12451_v47 = vld [vmem:[%s8017_s9 + $0x100] sm:$0xff]  ;;  %v12491_v44 = vld [vmem:[%s8017_s9 + $0xd0] sm:$0xff] }
 0x8e6   : > { %v5427_v52 = vmax.f32 %v5411_v46, 0.0  ;;  %v5428_v31 = vmax.f32 %v5412_v45, 0.0  ;;  %v12438_v58 = vadd.f32 %v12082_v28, %v5006_v6  ;;  %v4589_v3 = vadd.f32 %v4573_v19, %v4555_v62  ;;  %v12457_v45 = vld [vmem:[%s8017_s9 + $0x108] sm:$0xff]  ;;  %v12465_v19 = vld [vmem:[%s8017_s9 + $0x110] sm:$0xff] }
 0x8e7   : > { %v4590_v7 = vadd.f32 %v4574_v9, %v4556_v35  ;;  %v4553_v39 = vmul.f32 %v12441_v23, %v15355_v24  ;;  %v5199_v41 = vadd.f32 %v5183_v10, %v5165_v36  ;;  %v4554_v55 = vmul.f32 %v12446_v0, %v15355_v24  ;;  %v12518_v24 = vld [vmem:[%s8017_s9 + $0x98] sm:$0xff] }
 0x8e8   : > { %v5444_v42 = vadd.f32 %v5428_v31, %v5427_v52  ;;  %v4571_v6 = vmul.f32 %v12451_v47, %v15356_v5  ;;  %v4623_v62 = vadd.f32 %v4607_v57, %v4589_v3  ;;  %v4572_v10 = vmul.f32 %v12457_v45, %v15356_v5  ;;  %v12470_v52 = vld [vmem:[%s8017_s9 + $0x118] sm:$0xff]  ;;  %v12512_v5 = vld [vmem:[%s8017_s9 + $0x90] sm:$0xff] }
 0x8e9   : > { %v4624_v46 = vadd.f32 %v4608_v12, %v4590_v7  ;;  %v12462_v36 = vadd.f32 %v12209_v14, %v5198_v43  ;;  %v4605_v9 = vmul.f32 %v12465_v19, %v11969_v34  ;;  %v4606_v57 = vmul.f32 %v12470_v52, %v11969_v34  ;;  %v12477_v43 = vld [vmem:[%s8017_s9 + $0xc0] sm:$0xff]  ;;  %v12507_v34 = vld [vmem:[%s8017_s9 + $0xe8] sm:$0xff] }
 0x8ea   : > { %5445 = vadd.xlane.f32.xlu0 %v5444_v42  ;;  %v4587_v35 = vadd.f32 %v4571_v6, %v4553_v39  ;;  %v4641_v31 = vadd.f32 %v11980_v27, %v4623_v62  ;;  %v4588_v3 = vadd.f32 %v4572_v10, %v4554_v55  ;;  %v4941_v7 = vmul.f32 %v12477_v43, %v12056_v16  ;;  %v12486_v6 = vld [vmem:[%s8017_s9 + $0xc8] sm:$0xff] }
 0x8eb   : > { %v4642_v12 = vadd.f32 %v11980_v27, %v4624_v46  ;;  %v5040_v39 = vmax.f32 %v12438_v58, 0.0  ;;  %v12483_v42 = vadd.f32 %v12209_v14, %v5199_v41  ;;  %v4942_v62 = vmul.f32 %v12486_v6, %v12056_v16  ;;  %15375 = vst [vmem:[#allocation75_spill] sm:$0xff] %v12507_v34 }
 0x8ec   : > { %v4959_v55 = vmul.f32 %v12491_v44, %v12059_v48  ;;  %v4657_v46 = vmax.f32 %v4641_v31, 0.0  ;;  %v4621_v29 = vadd.f32 %v4605_v9, %v4587_v35  ;;  %v4960_v58 = vmul.f32 %v12496_v60, %v12059_v48 }
 0x8ed   : > { %v4658_v10 = vmax.f32 %v4642_v12, 0.0  ;;  %v4993_v8 = vmul.f32 %v12502_v13, %v12070_v54  ;;  %v4994_v35 = vmul.f32 %v12507_v34, %v12070_v54  ;;  %v4622_v31 = vadd.f32 %v4606_v57, %v4588_v3  ;;  %v12523_v34 = vld [vmem:[%s8017_s9 + $0xa0] sm:$0xff] }
 0x8ee   : > { %v4975_v63 = vadd.f32 %v4959_v55, %v4941_v7  ;;  %v4976_v12 = vadd.f32 %v4960_v58, %v4942_v62  ;;  %v4939_v7 = vmul.f32 %v12512_v5, %v12056_v16  ;;  %v5233_v55 = vmax.f32 %v12483_v42, 0.0 }
 0x8ef   : > { %v4679_v9 = vadd.f32 %v4658_v10, %v4657_v46  ;;  %v4940_v14 = vmul.f32 %v12518_v24, %v12056_v16  ;;  %v4957_v57 = vmul.f32 %v12523_v34, %v12059_v48  ;;  %v4639_v3 = vadd.f32 %v11980_v27, %v4621_v29  ;;  %v12529_v46 = vld [vmem:[%s8017_s9 + $0xa8] sm:$0xff]  ;;  %v12540_v16 = vld [vmem:[%s8017_s9 + $0xb8] sm:$0xff] }
 0x8f0   : > { %v5009_v41 = vadd.f32 %v4993_v8, %v4975_v63  ;;  %v5010_v62 = vadd.f32 %v4994_v35, %v4976_v12  ;;  %15376 = vst [vmem:[#allocation76_spill] sm:$0xff] %v12529_v46  ;;  %v4958_v8 = vmul.f32 %v12529_v46, %v12059_v48  ;;  %v12534_v63 = vld [vmem:[%s8017_s9 + $0xb0] sm:$0xff]  ;;  %15378 = vst [vmem:[#allocation78_spill] sm:$0xff] %v12540_v16  ;;  %v12545_v35 = vld [vmem:[%s8017_s9 + $0x60] sm:$0xff] }
 0x8f1   : > { %4680 = vadd.xlane.f32.xlu0 %v4679_v9  ;;  %15377 = vst [vmem:[#allocation77_spill] sm:$0xff] %v12534_v63  ;;  %v4991_v42 = vmul.f32 %v12534_v63, %v12070_v54  ;;  %v4973_v58 = vadd.f32 %v4957_v57, %v4939_v7  ;;  %v4992_v29 = vmul.f32 %v12540_v16, %v12070_v54  ;;  %v12556_v46 = vld [vmem:[%s8017_s9 + $0x70] sm:$0xff]  ;;  %v12561_v16 = vld [vmem:[%s8017_s9 + $0x78] sm:$0xff] }
 0x8f2   : > { %v5027_v10 = vadd.f32 %v12082_v28, %v5009_v41  ;;  %v5327_v9 = vmul.f32 %v12545_v35, %v12356_v32  ;;  %v4640_v12 = vadd.f32 %v11980_v27, %v4622_v31  ;;  %v5028_v48 = vadd.f32 %v12082_v28, %v5010_v62  ;;  %15379 = vst [vmem:[#allocation79_spill] sm:$0xff] %v12556_v46 }
 0x8f3   : > { %v4974_v63 = vadd.f32 %v4958_v8, %v4940_v14  ;;  %v5328_v41 = vmul.f32 %v12348_v37, %v12356_v32  ;;  %v5007_v57 = vadd.f32 %v4991_v42, %v4973_v58  ;;  %v5345_v54 = vmul.f32 %v12556_v46, %v12373_v21  ;;  %15380 = vst [vmem:[#allocation80_spill] sm:$0xff] %v12561_v16  ;;  %v12578_v46 = vld [vmem:[%s8017_s9] sm:$0xff]  ;;  %v12588_v37 = vld [vmem:[%s8017_s9 + $0x10] sm:$0xff] }
 0x8f4   : > { %v5043_v7 = vmax.f32 %v5027_v10, 0.0  ;;  %v5346_v31 = vmul.f32 %v12561_v16, %v12373_v21  ;;  %v5044_v14 = vmax.f32 %v5028_v48, 0.0  ;;  %v5379_v8 = vmul.f32 %v12368_v61, %v12391_v1  ;;  %v12583_v61 = vld [vmem:[%s8017_s9 + $0x8] sm:$0xff] }
 0x8f5   : > { %v5008_v62 = vadd.f32 %v4992_v29, %v4974_v63  ;;  %v5380_v42 = vmul.f32 %v12376_v26, %v12391_v1  ;;  %v15381_v10 = vmax.f32 %v12427_v33, 0.0  ;;  %v5361_v27 = vadd.f32 %v5345_v54, %v5327_v9 }
 0x8f6   : > { %v5362_v16 = vadd.f32 %v5346_v31, %v5328_v41  ;;  %v5323_v48 = vmul.f32 %v12578_v46, %v12356_v32  ;;  %v4655_v63 = vmax.f32 %v4639_v3, 0.0  ;;  %v5063_v29 = vadd.f32 %v5044_v14, %v5043_v7  ;;  %v12593_v41 = vld [vmem:[%s8017_s9 + $0x18] sm:$0xff] }
 0x8f7   : > { %v12575_v58 = vadd.f32 %v5040_v39, %v15381_v10  ;;  %v5324_v26 = vmul.f32 %v12583_v61, %v12356_v32  ;;  %v5341_v33 = vmul.f32 %v12588_v37, %v12373_v21  ;;  %v4656_v54 = vmax.f32 %v4640_v12, 0.0 }
 0x8f8   : > { %v5395_v39 = vadd.f32 %v5379_v8, %v5361_v27  ;;  %v5396_v9 = vadd.f32 %v5380_v42, %v5362_v16  ;;  %v5342_v3 = vmul.f32 %v12593_v41, %v12373_v21  ;;  %v15383_v7 = vmax.f32 %v12462_v36, 0.0  ;;  %5064 = vadd.xlane.f32.xlu0 %v5063_v29  ;;  %v12612_v42 = vld [vmem:[%s8017_s9 + $0x20] sm:$0xff] }
 0x8f9   : > { %15382 = vst [vmem:[#allocation81_spill] sm:$0xff] %v12575_v58  ;;  %v12604_v14 = vadd.f32 %v12082_v28, %v5007_v57  ;;  %v12607_v27 = vadd.f32 %v12082_v28, %v5008_v62  ;;  %v5357_v16 = vadd.f32 %v5341_v33, %v5323_v48  ;;  %v5375_v36 = vmul.f32 %v12612_v42, %v12391_v1  ;;  %v12620_v57 = vld [vmem:[%s8017_s9 + $0x28] sm:$0xff]  ;;  %v12650_v28 = vld [vmem:[%s8017_s9 + $0x150] sm:$0xff] }
 0x8fa   : > { %v12601_v31 = vadd.f32 %v5233_v55, %v15383_v7  ;;  %v5413_v12 = vadd.f32 %v12408_v49, %v5395_v39  ;;  %v5414_v8 = vadd.f32 %v12408_v49, %v5396_v9  ;;  %v12617_v55 = vstv %s12549_s8  ;;  %15390 = vst [vmem:[#allocation88_spill] sm:$0xff] %v12650_v28  ;;  %s12988_s8 = sld [smem:[#allocation7 + $0x1c]] }
 0x8fb   : > { %15385 = vst [vmem:[#allocation83_spill] sm:$0xff] %v12617_v55  ;;  %v5358_v10 = vadd.f32 %v5342_v3, %v5324_v26  ;;  %v5376_v62 = vmul.f32 %v12620_v57, %v12391_v1  ;;  %v5520_v48 = vmul.f32 %v12279_v53, %v12617_v55  ;;  %v5521_v29 = vmul.f32 %v12363_v2, %v12617_v55 }
 0x8fc   : > { %15384 = vst [vmem:[#allocation82_spill] sm:$0xff] %v12601_v31  ;;  %v12628_v33 = vadd.f32 %v4656_v54, %v4655_v63  ;;  %v5429_v39 = vmax.f32 %v5413_v12, 0.0  ;;  %v5430_v9 = vmax.f32 %v5414_v8, 0.0  ;;  %v12631_v7 = vstv %s12565_s12  ;;  %s13053_s12 = sld [smem:[#allocation4 + $0x1d]] }
 0x8fd   : > { %15387 = vst [vmem:[#allocation85_spill] sm:$0xff] %v12631_v7  ;;  %v5538_v3 = vmul.f32 %v12381_v18, %v12631_v7  ;;  %v5539_v31 = vmul.f32 %v12386_v30, %v12631_v7  ;;  %v12639_v58 = vstv %s12571_s28  ;;  %v5391_v54 = vadd.f32 %v5375_v36, %v5357_v16  ;;  %v12655_v36 = vld [vmem:[%s8017_s9 + $0x158] sm:$0xff]  ;;  %s13125_s28 = sld [smem:[#allocation4 + $0x9d]] }
 0x8fe   : > { %15386 = vst [vmem:[#allocation84_spill] sm:$0xff] %v12628_v33  ;;  %15388 = vst [vmem:[#allocation86_spill] sm:$0xff] %v12639_v58  ;;  %v5447_v63 = vadd.f32 %v5430_v9, %v5429_v39  ;;  %v5572_v12 = vmul.f32 %v12396_v40, %v12639_v58  ;;  %v5573_v8 = vmul.f32 %v12401_v59, %v12639_v58  ;;  %v5042_v26 = vmax.f32 %v12607_v27, 0.0  ;;  %v12660_v27 = vld [vmem:[%s8017_s9 + $0x160] sm:$0xff]  ;;  %v12670_v9 = vld [vmem:[%s8017_s9 + $0x170] sm:$0xff] }
 0x8ff   : > { %v5392_v33 = vadd.f32 %v5376_v62, %v5358_v10  ;;  %v5554_v1 = vadd.f32 %v5538_v3, %v5520_v48  ;;  %v5555_v21 = vadd.f32 %v5539_v31, %v5521_v29  ;;  %v12647_v32 = vstv %s12597_s6  ;;  %15391 = vst [vmem:[#allocation89_spill] sm:$0xff] %v12655_v36  ;;  %15392 = vst [vmem:[#allocation90_spill] sm:$0xff] %v12660_v27  ;;  %v12665_v48 = vld [vmem:[%s8017_s9 + $0x168] sm:$0xff]  ;;  %s13147_s6 = sld [smem:[#allocation4 + $0x11d]] }
 0x900   : > { %5448 = vadd.xlane.f32.xlu0 %v5447_v63  ;;  %15389 = vst [vmem:[#allocation87_spill] sm:$0xff] %v12647_v32  ;;  %v4362_v16 = vmul.f32 %v12650_v28, %v11918_v50  ;;  %v4363_v39 = vmul.f32 %v12655_v36, %v11918_v50  ;;  %v4380_v31 = vmul.f32 %v12660_v27, %v11920_v38  ;;  %15393 = vst [vmem:[#allocation91_spill] sm:$0xff] %v12665_v48  ;;  %v12676_v27 = vld [vmem:[%s8017_s9 + $0x178] sm:$0xff]  ;;  %v12709_v36 = vld [vmem:[%s8017_s9 + $0x148] sm:$0xff] }
 0x901   : > { %v5588_v10 = vadd.f32 %v5572_v12, %v5554_v1  ;;  %v5589_v62 = vadd.f32 %v5573_v8, %v5555_v21  ;;  %v4381_v29 = vmul.f32 %v12665_v48, %v11920_v38  ;;  %15394 = vst [vmem:[#allocation92_spill] sm:$0xff] %v12670_v9  ;;  %v4414_v50 = vmul.f32 %v12670_v9, %v11931_v15  ;;  %v12681_v1 = vld [vmem:[%s8017_s9 + $0x120] sm:$0xff]  ;;  %v12688_v48 = vld [vmem:[%s8017_s9 + $0x128] sm:$0xff] }
 0x902   : > { %v5409_v3 = vadd.f32 %v12408_v49, %v5391_v54  ;;  %v4396_v63 = vadd.f32 %v4380_v31, %v4362_v16  ;;  %15395 = vst [vmem:[#allocation93_spill] sm:$0xff] %v12676_v27  ;;  %v4415_v21 = vmul.f32 %v12676_v27, %v11931_v15  ;;  %15396 = vst [vmem:[#allocation94_spill] sm:$0xff] %v12681_v1  ;;  %v12694_v31 = vld [vmem:[%s8017_s9 + $0x130] sm:$0xff]  ;;  %v12699_v27 = vld [vmem:[%s8017_s9 + $0x138] sm:$0xff] }
 0x903   : > { %v4750_v38 = vmul.f32 %v12681_v1, %v11992_v4  ;;  %v5606_v12 = vadd.f32 %v12647_v32, %v5588_v10  ;;  %v5607_v8 = vadd.f32 %v12647_v32, %v5589_v62  ;;  %v4397_v9 = vadd.f32 %v4381_v29, %v4363_v39  ;;  %15397 = vst [vmem:[#allocation95_spill] sm:$0xff] %v12688_v48  ;;  %v12704_v1 = vld [vmem:[%s8017_s9 + $0x140] sm:$0xff] }
 0x904   : > { %v4751_v54 = vmul.f32 %v12688_v48, %v11992_v4  ;;  %v5410_v16 = vadd.f32 %v12408_v49, %v5392_v33  ;;  %15398 = vst [vmem:[#allocation96_spill] sm:$0xff] %v12694_v31  ;;  %v4768_v15 = vmul.f32 %v12694_v31, %v12001_v56  ;;  %15399 = vst [vmem:[#allocation97_spill] sm:$0xff] %v12699_v27  ;;  %v5425_v49 = vmax.f32 %v5409_v3, 0.0 }
 0x905   : > { %v4769_v10 = vmul.f32 %v12699_v27, %v12001_v56  ;;  %15400 = vst [vmem:[#allocation98_spill] sm:$0xff] %v12704_v1  ;;  %v4802_v39 = vmul.f32 %v12704_v1, %v12003_v51  ;;  %v5622_v62 = vmax.f32 %v5606_v12, 0.0  ;;  %v5623_v29 = vmax.f32 %v5607_v8, 0.0  ;;  %15401 = vst [vmem:[#allocation99_spill] sm:$0xff] %v12709_v36 }
 0x906   : > { %v4430_v48 = vadd.f32 %v4414_v50, %v4396_v63  ;;  %v4803_v33 = vmul.f32 %v12709_v36, %v12003_v51  ;;  %v4784_v31 = vadd.f32 %v4768_v15, %v4750_v38  ;;  %v4748_v59 = vmul.f32 %v12441_v23, %v11992_v4 }
 0x907   : > { %v4785_v28 = vadd.f32 %v4769_v10, %v4751_v54  ;;  %v5639_v27 = vadd.f32 %v5623_v29, %v5622_v62  ;;  %v4431_v40 = vadd.f32 %v4415_v21, %v4397_v9  ;;  %v4749_v30 = vmul.f32 %v12446_v0, %v11992_v4 }
 0x908   : > { %v4766_v12 = vmul.f32 %v12451_v47, %v12001_v56  ;;  %v5426_v50 = vmax.f32 %v5410_v16, 0.0  ;;  %v4818_v63 = vadd.f32 %v4802_v39, %v4784_v31  ;;  %v4767_v36 = vmul.f32 %v12457_v45, %v12001_v56 }
 0x909   : > { %v4819_v8 = vadd.f32 %v4803_v33, %v4785_v28  ;;  %5640 = vadd.xlane.f32.xlu0 %v5639_v27  ;;  %v12722_v3 = vadd.f32 %v11942_v25, %v4430_v48  ;;  %v4800_v9 = vmul.f32 %v12465_v19, %v12003_v51  ;;  %v4801_v21 = vmul.f32 %v12470_v52, %v12003_v51 }
 0x90a   : > { %v4782_v38 = vadd.f32 %v4766_v12, %v4748_v59  ;;  %v4836_v54 = vadd.f32 %v12017_v11, %v4818_v63  ;;  %v4783_v31 = vadd.f32 %v4767_v36, %v4749_v30  ;;  %v5136_v28 = vmul.f32 %v12477_v43, %v12181_v20 }
 0x90b   : > { %v4837_v16 = vadd.f32 %v12017_v11, %v4819_v8  ;;  %v15402_v27 = vmax.f32 %v12604_v14, 0.0  ;;  %v4449_v59 = vadd.f32 %v11942_v25, %v4431_v40  ;;  %v5137_v48 = vmul.f32 %v12486_v6, %v12181_v20  ;;  %v15405_v25 = vld [vmem:[#allocation75_spill] sm:$0xff] }
 0x90c   : > { %v5154_v10 = vmul.f32 %v12491_v44, %v12191_v17  ;;  %v4852_v39 = vmax.f32 %v4836_v54, 0.0  ;;  %v4816_v29 = vadd.f32 %v4800_v9, %v4782_v38  ;;  %v5155_v30 = vmul.f32 %v12496_v60, %v12191_v17 }
 0x90d   : > { %v12734_v15 = vadd.f32 %v5042_v26, %v15402_v27  ;;  %v4853_v62 = vmax.f32 %v4837_v16, 0.0  ;;  %v4817_v33 = vadd.f32 %v4801_v21, %v4783_v31  ;;  %v5188_v26 = vmul.f32 %v12502_v13, %v12198_v22 }
 0x90e   : > { %v5170_v14 = vadd.f32 %v5154_v10, %v5136_v28  ;;  %v5189_v40 = vmul.f32 %v15405_v25, %v12198_v22  ;;  %v12749_v12 = vadd.f32 %v5426_v50, %v5425_v49  ;;  %v4464_v63 = vmax.f32 %v12722_v3, 0.0  ;;  %v15407_v50 = vld [vmem:[#allocation76_spill] sm:$0xff] }
 0x90f   : > { %15403 = vst [vmem:[#allocation100_spill] sm:$0xff] %v12734_v15  ;;  %v4874_v8 = vadd.f32 %v4853_v62, %v4852_v39  ;;  %v5171_v54 = vadd.f32 %v5155_v30, %v5137_v48  ;;  %v4465_v38 = vmax.f32 %v4449_v59, 0.0  ;;  %v5134_v16 = vmul.f32 %v12512_v5, %v12181_v20  ;;  %v15408_v48 = vld [vmem:[#allocation71_spill] sm:$0xff]  ;;  %v15409_v39 = vld [vmem:[#allocation77_spill] sm:$0xff] }
 0x910   : > { %15406 = vst [vmem:[#allocation75_spill] sm:$0xff] %v12749_v12  ;;  %v5204_v9 = vadd.f32 %v5188_v26, %v5170_v14  ;;  %v5135_v21 = vmul.f32 %v12518_v24, %v12181_v20  ;;  %v4834_v31 = vadd.f32 %v12017_v11, %v4816_v29  ;;  %v5152_v49 = vmul.f32 %v12523_v34, %v12191_v17  ;;  %v15410_v14 = vld [vmem:[#allocation61_spill] sm:$0xff] }
 0x911   : > { %4875 = vadd.xlane.f32.xlu0 %v4874_v8  ;;  %v5205_v28 = vadd.f32 %v5189_v40, %v5171_v54  ;;  %v5153_v3 = vmul.f32 %v15407_v50, %v12191_v17  ;;  %v4835_v59 = vadd.f32 %v12017_v11, %v4817_v33  ;;  %v5186_v62 = vmul.f32 %v15409_v39, %v12198_v22  ;;  %v15411_v8 = vld [vmem:[#allocation78_spill] sm:$0xff]  ;;  %v15412_v33 = vld [vmem:[#allocation48_spill] sm:$0xff]  ;;  %v15414_v17 = vld [vmem:[#allocation35_spill] sm:$0xff] }
 0x912   : > { %v12743_v36 = vpop.xlane.xlu0 %4149  ;;  %v5222_v10 = vadd.f32 %v15408_v48, %v5204_v9  ;;  %v5522_v30 = vmul.f32 %v12545_v35, %v12617_v55  ;;  %v5168_v40 = vadd.f32 %v5152_v49, %v5134_v16  ;;  %v5187_v54 = vmul.f32 %v15411_v8, %v12198_v22  ;;  %v15413_v9 = vld [vmem:[#allocation79_spill] sm:$0xff]  ;;  %v15416_v16 = vld [vmem:[#allocation80_spill] sm:$0xff]  ;;  %v15417_v22 = vld [vmem:[#allocation45_spill] sm:$0xff] }
 0x913   : > { %15404 = vst [vmem:[#allocation101_spill] sm:$0xff] %v12743_v36  ;;  %v5223_v26 = vadd.f32 %v15408_v48, %v5205_v28  ;;  %v5169_v12 = vadd.f32 %v5153_v3, %v5135_v21  ;;  %v5523_v15 = vmul.f32 %v15412_v33, %v12617_v55  ;;  %v5540_v11 = vmul.f32 %v15413_v9, %v12631_v7  ;;  %v15418_v9 = vld [vmem:[#allocation43_spill] sm:$0xff] }
 0x914   : > { %v5238_v36 = vmax.f32 %v5222_v10, 0.0  ;;  %v15415_v20 = vrot.slane %v15414_v17, %v15410_v14  ;;  %v5541_v28 = vmul.f32 %v15416_v16, %v12631_v7  ;;  %v4851_v21 = vmax.f32 %v4835_v59, 0.0  ;;  %v15420_v16 = vld [vmem:[#allocation22_spill] sm:$0xff] }
 0x915   : > { %v5239_v56 = vmax.f32 %v5223_v26, 0.0  ;;  %v5202_v3 = vadd.f32 %v5186_v62, %v5168_v40  ;;  %v5556_v10 = vadd.f32 %v5540_v11, %v5522_v30  ;;  %v5574_v4 = vmul.f32 %v15417_v22, %v12639_v58 }
 0x916   : > { %v4276_v27 = vpop.xlane.xlu0 %4275  ;;  %v15419_v33 = vrot.slane %v15418_v9, %v15410_v14  ;;  %v5203_v26 = vadd.f32 %v5187_v54, %v5169_v12  ;;  %v5575_v59 = vmul.f32 %v15420_v16, %v12639_v58  ;;  %v5518_v11 = vmul.f32 %v12578_v46, %v12617_v55 }
 0x917   : > { %v4310_v29 = vrot.slane %v4276_v27, %v15410_v14  ;;  %v4850_v27 = vmax.f32 %v4834_v31, 0.0  ;;  %v5258_v31 = vadd.f32 %v5239_v56, %v5238_v36  ;;  %v5590_v62 = vadd.f32 %v5574_v4, %v5556_v10 }
 0x918   : > { %v12799_v40 = vadd.f32 %v4465_v38, %v4464_v63  ;;  %v5519_v56 = vmul.f32 %v12583_v61, %v12617_v55  ;;  %v12808_v4 = vadd.f32 %v15408_v48, %v5202_v3  ;;  %v5537_v38 = vmul.f32 %v12593_v41, %v12631_v7 }
 0x919   : > { %v4335_v51 = vsel %vm622_vm1, %v4310_v29, %v15415_v20  ;;  %v5557_v29 = vadd.f32 %v5541_v28, %v5523_v15  ;;  %5259 = vadd.xlane.f32.xlu0 %v5258_v31  ;;  %v12805_v36 = vadd.f32 %v4851_v21, %v4850_v27  ;;  %v5608_v54 = vadd.f32 %v12647_v32, %v5590_v62  ;;  %v15423_v27 = vld [vmem:[#allocation63_spill] sm:$0xff] }
 0x91a   : > { %v4282_v49 = vpop.xlane.xlu0 %4281  ;;  %v4336_v17 = vsel %vm624_vm2, %v15419_v33, %v4335_v51  ;;  %15421 = vst [vmem:[#allocation76_spill] sm:$0xff] %v12799_v40  ;;  %v5536_v51 = vmul.f32 %v12588_v37, %v12631_v7  ;;  %v5570_v9 = vmul.f32 %v12612_v42, %v12639_v58  ;;  %v15424_v28 = vrot.slane %v15423_v27, %v15410_v14  ;;  %v15441_v7 = vld [vmem:[#allocation92_spill] sm:$0xff] }
 0x91b   : > { %v4318_v20 = vrot.slane %v4282_v49, %v15410_v14  ;;  %15422 = vst [vmem:[#allocation77_spill] sm:$0xff] %v12805_v36  ;;  %v5591_v12 = vadd.f32 %v5575_v59, %v5557_v29  ;;  %v12823_v21 = vadd.f32 %v15408_v48, %v5203_v26  ;;  %v5624_v10 = vmax.f32 %v5608_v54, 0.0  ;;  %v15442_v48 = vld [vmem:[#allocation93_spill] sm:$0xff] }
 0x91c   : > { %v5552_v33 = vadd.f32 %v5536_v51, %v5518_v11  ;;  %v5571_v31 = vmul.f32 %v12620_v57, %v12639_v58  ;;  %v12830_v29 = vstv %s12781_s1  ;;  %v12863_v40 = vstv %s12816_s17  ;;  %s13161_s1 = sld [smem:[#allocation7 + $0x1d]]  ;;  %s13408_s17 = sld [smem:[#allocation4 + $0x11e]] }
 0x91d   : > { %v4337_v30 = vsel %vm626_vm3, %v4318_v20, %v4336_v17  ;;  %v5609_v3 = vadd.f32 %v12647_v32, %v5591_v12  ;;  %v5553_v20 = vadd.f32 %v5537_v38, %v5519_v56  ;;  %15425 = vst [vmem:[#allocation78_spill] sm:$0xff] %v12830_v29  ;;  %v5715_v26 = vmul.f32 %v12279_v53, %v12830_v29 }
 0x91e   : > { %v4288_v15 = vpop.xlane.xlu0 %4287  ;;  %v4338_v49 = vsel %vm628_vm4, %v15424_v28, %v4337_v30  ;;  %v5716_v30 = vmul.f32 %v12363_v2, %v12830_v29  ;;  %v5586_v54 = vadd.f32 %v5570_v9, %v5552_v33  ;;  %v15429_v28 = vld [vmem:[#allocation24_spill] sm:$0xff]  ;;  %15433 = vst [vmem:[#allocation43_spill] sm:$0xff] %v12863_v40  ;;  %v15452_v2 = vld [vmem:[#allocation59_spill] sm:$0xff] }
 0x91f   : > { %v4326_v63 = vrot.slane %v4288_v15, %v15410_v14  ;;  %v5625_v11 = vmax.f32 %v5609_v3, 0.0  ;;  %v15426_v15 = vld [vmem:[#allocation64_spill] sm:$0xff]  ;;  %v12850_v3 = vstv %s12796_s7  ;;  %s13387_s7 = sld [smem:[#allocation4 + $0x9e]] }
 0x920   : > { %v15427_v56 = vrot.slane %v15426_v15, %v15410_v14  ;;  %15430 = vst [vmem:[#allocation45_spill] sm:$0xff] %v12850_v3  ;;  %v5587_v15 = vadd.f32 %v5571_v31, %v5553_v20  ;;  %v12860_v36 = vadd.f32 %v12647_v32, %v5586_v54  ;;  %v15436_v31 = vld [vmem:[#allocation89_spill] sm:$0xff] }
 0x921   : > { %v4339_v17 = vsel %vm630_vm5, %v4326_v63, %v4338_v49  ;;  %v12843_v63 = vstv %s12790_s2  ;;  %v5642_v38 = vadd.f32 %v5625_v11, %v5624_v10  ;;  %v15440_v54 = vld [vmem:[#allocation57_spill] sm:$0xff]  ;;  %s13368_s2 = sld [smem:[#allocation4 + $0x1e]] }
 0x922   : > { %v4294_v59 = vpop.xlane.xlu0 %4293  ;;  %v4340_v12 = vsel %vm632_vm6, %v15427_v56, %v4339_v17  ;;  %15428 = vst [vmem:[#allocation35_spill] sm:$0xff] %v12843_v63  ;;  %v5733_v27 = vmul.f32 %v12381_v18, %v12843_v63  ;;  %v5734_v49 = vmul.f32 %v15429_v28, %v12843_v63  ;;  %v15431_v17 = vld [vmem:[#allocation72_spill] sm:$0xff]  ;;  %v15432_v56 = vld [vmem:[#allocation73_spill] sm:$0xff]  ;;  %v4609_v55 = vmul.f32 %v15441_v7, %v15440_v54 }
 0x923   : > { %v4334_v51 = vrot.slane %v4294_v59, %v15410_v14  ;;  %v5767_v33 = vmul.f32 %v15431_v17, %v12850_v3  ;;  %5643 = vadd.xlane.f32.xlu0 %v5642_v38  ;;  %v5768_v14 = vmul.f32 %v15432_v56, %v12850_v3  ;;  %v15437_v38 = vld [vmem:[#allocation41_spill] sm:$0xff]  ;;  %v4610_v56 = vmul.f32 %v15442_v48, %v15440_v54  ;;  %v15450_v48 = vld [vmem:[#allocation32_spill] sm:$0xff] }
 0x924   : > { %v5749_v10 = vadd.f32 %v5733_v27, %v5715_v26  ;;  %v5750_v11 = vadd.f32 %v5734_v49, %v5716_v30  ;;  %v15438_v26 = vld [vmem:[#allocation90_spill] sm:$0xff]  ;;  %v15439_v27 = vld [vmem:[#allocation91_spill] sm:$0xff]  ;;  %v15443_v17 = vld [vmem:[#allocation25_spill] sm:$0xff] }
 0x925   : > { %v4341_v59 = vsel %vm634_vm7, %v4334_v51, %v4340_v12  ;;  %v15434_v51 = vld [vmem:[#allocation42_spill] sm:$0xff]  ;;  %v15435_v12 = vld [vmem:[#allocation88_spill] sm:$0xff]  ;;  %v4575_v30 = vmul.f32 %v15438_v26, %v15437_v38  ;;  %v4576_v49 = vmul.f32 %v15439_v27, %v15437_v38  ;;  %v15445_v26 = vld [vmem:[#allocation65_spill] sm:$0xff] }
 0x926   : > { %v4343_v9 = vsel %vm637_vm8, %v4341_v59, 0.0  ;;  %v4557_v20 = vmul.f32 %v15435_v12, %v15434_v51  ;;  %v4558_v62 = vmul.f32 %v15436_v31, %v15434_v51  ;;  %v5783_v58 = vadd.f32 %v5767_v33, %v5749_v10  ;;  %v15444_v12 = vld [vmem:[#allocation94_spill] sm:$0xff]  ;;  %v15448_v27 = vld [vmem:[#allocation96_spill] sm:$0xff]  ;;  %v15449_v31 = vld [vmem:[#allocation97_spill] sm:$0xff] }
 0x927   : > { %4344 = vadd.xlane.f32.xlu1 %v4343_v9  ;;  %v5784_v59 = vadd.f32 %v5768_v14, %v5750_v11  ;;  %v12874_v9 = vadd.f32 %v12647_v32, %v5587_v15  ;;  %v4945_v51 = vmul.f32 %v15444_v12, %v15443_v17  ;;  %v15446_v15 = vld [vmem:[#allocation95_spill] sm:$0xff]  ;;  %v4997_v12 = vmul.f32 %v12704_v1, %v15450_v48 }
 0x928   : > { %v5801_v14 = vadd.f32 %v12863_v40, %v5783_v58  ;;  %v4591_v10 = vadd.f32 %v4575_v30, %v4557_v20  ;;  %v4592_v11 = vadd.f32 %v4576_v49, %v4558_v62  ;;  %v4946_v38 = vmul.f32 %v15446_v15, %v15443_v17  ;;  %v15447_v32 = vld [vmem:[#allocation31_spill] sm:$0xff] }
 0x929   : > { %v5802_v33 = vadd.f32 %v12863_v40, %v5784_v59  ;;  %v4963_v7 = vmul.f32 %v15448_v27, %v15447_v32  ;;  %v4964_v54 = vmul.f32 %v15449_v31, %v15447_v32  ;;  %v4943_v49 = vmul.f32 %v12441_v23, %v15443_v17 }
 0x92a   : > { %v5817_v28 = vmax.f32 %v5801_v14, 0.0  ;;  %v4625_v18 = vadd.f32 %v4609_v55, %v4591_v10  ;;  %v4626_v59 = vadd.f32 %v4610_v56, %v4592_v11  ;;  %v4944_v14 = vmul.f32 %v12446_v0, %v15443_v17  ;;  %v15457_v10 = vld [vmem:[#allocation70_spill] sm:$0xff] }
 0x92b   : > { %4470 = vadd.xlane.f32.xlu1 %v15445_v26  ;;  %v5818_v58 = vmax.f32 %v5802_v33, 0.0  ;;  %v4979_v20 = vadd.f32 %v4963_v7, %v4945_v51  ;;  %v4980_v62 = vadd.f32 %v4964_v54, %v4946_v38  ;;  %v15451_v26 = vld [vmem:[#allocation99_spill] sm:$0xff]  ;;  %v15453_v33 = vld [vmem:[#allocation66_spill] sm:$0xff]  ;;  %v4961_v56 = vmul.f32 %v12451_v47, %v15447_v32 }
 0x92c   : > { %v4998_v30 = vmul.f32 %v15451_v26, %v15450_v48  ;;  %v12899_v31 = vadd.f32 %v15452_v2, %v4625_v18  ;;  %v4962_v51 = vmul.f32 %v12457_v45, %v15447_v32  ;;  %v4995_v18 = vmul.f32 %v12465_v19, %v15450_v48 }
 0x92d   : > { %v5834_v15 = vadd.f32 %v5818_v58, %v5817_v28  ;;  %v5013_v55 = vadd.f32 %v4997_v12, %v4979_v20  ;;  %v12910_v28 = vadd.f32 %v15452_v2, %v4626_v59  ;;  %v4996_v11 = vmul.f32 %v12470_v52, %v15450_v48  ;;  %v15454_v12 = vld [vmem:[#allocation36_spill] sm:$0xff]  ;;  %v15456_v59 = vld [vmem:[#allocation37_spill] sm:$0xff] }
 0x92e   : > { %v5014_v7 = vadd.f32 %v4998_v30, %v4980_v62  ;;  %v4977_v58 = vadd.f32 %v4961_v56, %v4943_v49  ;;  %v4978_v20 = vadd.f32 %v4962_v51, %v4944_v14  ;;  %v15455_v30 = vld [vmem:[#allocation53_spill] sm:$0xff]  ;;  %v5350_v49 = vmul.f32 %v12496_v60, %v15456_v59 }
 0x92f   : > { %4662 = vadd.xlane.f32.xlu1 %v15453_v33  ;;  %5835 = vadd.xlane.f32.xlu0 %v5834_v15  ;;  %v5031_v38 = vadd.f32 %v15454_v12, %v5013_v55  ;;  %v5331_v15 = vmul.f32 %v12477_v43, %v15455_v30  ;;  %v5332_v2 = vmul.f32 %v12486_v6, %v15455_v30 }
 0x930   : > { %v5032_v54 = vadd.f32 %v15454_v12, %v5014_v7  ;;  %v5349_v33 = vmul.f32 %v12491_v44, %v15456_v59  ;;  %v5011_v55 = vadd.f32 %v4995_v18, %v4977_v58  ;;  %v5012_v32 = vadd.f32 %v4996_v11, %v4978_v20  ;;  %v15458_v7 = vld [vmem:[#allocation47_spill] sm:$0xff]  ;;  %v15459_v20 = vld [vmem:[#allocation30_spill] sm:$0xff] }
 0x931   : > { %v5047_v27 = vmax.f32 %v5031_v38, 0.0  ;;  %v5383_v56 = vmul.f32 %v12502_v13, %v15458_v7  ;;  %v5384_v51 = vmul.f32 %v15405_v25, %v15458_v7  ;;  %v5329_v18 = vmul.f32 %v12512_v5, %v15455_v30 }
 0x932   : > { %v5048_v48 = vmax.f32 %v5032_v54, 0.0  ;;  %v5365_v14 = vadd.f32 %v5349_v33, %v5331_v15  ;;  %v12933_v17 = vadd.f32 %v15454_v12, %v5011_v55  ;;  %v5366_v11 = vadd.f32 %v5350_v49, %v5332_v2  ;;  %v15460_v33 = vld [vmem:[#allocation74_spill] sm:$0xff] }
 0x933   : > { %4476 = vadd.xlane.f32.xlu1 %v15457_v10  ;;  %v12936_v10 = vadd.f32 %v15454_v12, %v5012_v32  ;;  %v5330_v54 = vmul.f32 %v12518_v24, %v15455_v30  ;;  %v5347_v58 = vmul.f32 %v12523_v34, %v15456_v59  ;;  %v5348_v32 = vmul.f32 %v15407_v50, %v15456_v59 }
 0x934   : > { %v5069_v62 = vadd.f32 %v5048_v48, %v5047_v27  ;;  %v5399_v38 = vadd.f32 %v5383_v56, %v5365_v14  ;;  %v4660_v48 = vmax.f32 %v12910_v28, 0.0  ;;  %v5045_v27 = vmax.f32 %v12933_v17, 0.0  ;;  %v15461_v56 = vld [vmem:[#allocation48_spill] sm:$0xff] }
 0x935   : > { %v5381_v15 = vmul.f32 %v15409_v39, %v15458_v7  ;;  %v5400_v2 = vadd.f32 %v5384_v51, %v5366_v11  ;;  %v5363_v49 = vadd.f32 %v5347_v58, %v5329_v18  ;;  %v5382_v14 = vmul.f32 %v15411_v8, %v15458_v7  ;;  %v15462_v18 = vld [vmem:[#allocation79_spill] sm:$0xff]  ;;  %v15463_v58 = vld [vmem:[#allocation38_spill] sm:$0xff] }
 0x936   : > { %5070 = vadd.xlane.f32.xlu0 %v5069_v62  ;;  %v5417_v55 = vadd.f32 %v15460_v33, %v5399_v38  ;;  %v5046_v28 = vmax.f32 %v12936_v10, 0.0  ;;  %v5364_v62 = vadd.f32 %v5348_v32, %v5330_v54  ;;  %v5717_v17 = vmul.f32 %v12545_v35, %v12830_v29  ;;  %v15464_v10 = vld [vmem:[#allocation80_spill] sm:$0xff] }
 0x937   : > { %4857 = vadd.xlane.f32.xlu1 %v15459_v20  ;;  %v5718_v20 = vmul.f32 %v15461_v56, %v12830_v29  ;;  %v5418_v12 = vadd.f32 %v15460_v33, %v5400_v2  ;;  %v5397_v11 = vadd.f32 %v5381_v15, %v5363_v49  ;;  %v5735_v38 = vmul.f32 %v15462_v18, %v12843_v63 }
 0x938   : > { %v5433_v51 = vmax.f32 %v5417_v55, 0.0  ;;  %v5398_v7 = vadd.f32 %v5382_v14, %v5364_v62  ;;  %v5736_v54 = vmul.f32 %v15464_v10, %v12843_v63  ;;  %v5769_v32 = vmul.f32 %v15417_v22, %v12850_v3 }
 0x939   : > { %v5770_v56 = vmul.f32 %v15420_v16, %v12850_v3  ;;  %v5434_v2 = vmax.f32 %v5418_v12, 0.0  ;;  %v5415_v15 = vadd.f32 %v15460_v33, %v5397_v11  ;;  %v5751_v55 = vadd.f32 %v5735_v38, %v5717_v17  ;;  %v15465_v11 = vld [vmem:[#allocation40_spill] sm:$0xff] }
 0x93a   : > { %v5713_v49 = vmul.f32 %v12578_v46, %v12830_v29  ;;  %v5416_v14 = vadd.f32 %v15460_v33, %v5398_v7  ;;  %v5752_v62 = vadd.f32 %v5736_v54, %v5718_v20  ;;  %v5731_v22 = vmul.f32 %v12588_v37, %v12843_v63  ;;  %v15497_v33 = vld [vmem:[#allocation94_spill] sm:$0xff] }
 0x93b   : > { %4479 = vadd.xlane.f32.xlu1 %v15463_v58  ;;  %v5714_v58 = vmul.f32 %v12583_v61, %v12830_v29  ;;  %v5453_v16 = vadd.f32 %v5434_v2, %v5433_v51  ;;  %v5431_v12 = vmax.f32 %v5415_v15, 0.0  ;;  %v5785_v59 = vadd.f32 %v5769_v32, %v5751_v55  ;;  %v15496_v29 = vld [vmem:[#allocation67_spill] sm:$0xff] }
 0x93c   : > { %v5732_v17 = vmul.f32 %v12593_v41, %v12843_v63  ;;  %v5432_v38 = vmax.f32 %v5416_v14, 0.0  ;;  %v5786_v30 = vadd.f32 %v5770_v56, %v5752_v62  ;;  %v5747_v7 = vadd.f32 %v5731_v22, %v5713_v49 }
 0x93d   : > { %v5765_v20 = vmul.f32 %v12612_v42, %v12850_v3  ;;  %5454 = vadd.xlane.f32.xlu0 %v5453_v16  ;;  %v5803_v54 = vadd.f32 %v12863_v40, %v5785_v59  ;;  %v5766_v32 = vmul.f32 %v12620_v57, %v12850_v3  ;;  %v12994_v2 = vstv %s12954_s30  ;;  %s13430_s30 = sld [smem:[#allocation7 + $0x1e]] }
 0x93e   : > { %v5748_v51 = vadd.f32 %v5732_v17, %v5714_v58  ;;  %15466 = vst [vmem:[#allocation22_spill] sm:$0xff] %v12994_v2  ;;  %v15467_v15 = vmax.f32 %v12808_v4, 0.0  ;;  %v15468_v56 = vmax.f32 %v12823_v21, 0.0  ;;  %v15470_v49 = vmax.f32 %v12860_v36, 0.0  ;;  %v15473_v4 = vld [vmem:[#allocation44_spill] sm:$0xff] }
 0x93f   : > { %4863 = vadd.xlane.f32.xlu1 %v15465_v11  ;;  %v15471_v14 = vmax.f32 %v12874_v9, 0.0  ;;  %v5804_v59 = vadd.f32 %v12863_v40, %v5786_v30  ;;  %v5910_v58 = vmul.f32 %v12279_v53, %v12994_v2  ;;  %v5819_v22 = vmax.f32 %v5803_v54, 0.0  ;;  %v15475_v11 = vld [vmem:[#allocation58_spill] sm:$0xff] }
 0x940   : > { %v13000_v55 = vadd.f32 %v15468_v56, %v15467_v15  ;;  %v5781_v16 = vadd.f32 %v5765_v20, %v5747_v7  ;;  %v5911_v17 = vmul.f32 %v15473_v4, %v12994_v2  ;;  %v13014_v21 = vstv %s12964_s13  ;;  %v15478_v56 = vld [vmem:[#allocation23_spill] sm:$0xff]  ;;  %s13603_s13 = sld [smem:[#allocation4 + $0x1f]] }
 0x941   : > { %v13006_v62 = vadd.f32 %v15471_v14, %v15470_v49  ;;  %15474 = vst [vmem:[#allocation42_spill] sm:$0xff] %v13014_v21  ;;  %v15476_v36 = vmax.f32 %v12899_v31, 0.0  ;;  %v5820_v15 = vmax.f32 %v5804_v59, 0.0  ;;  %v5928_v30 = vmul.f32 %v15478_v56, %v13014_v21  ;;  %v15479_v49 = vld [vmem:[#allocation24_spill] sm:$0xff] }
 0x942   : > { %15469 = vst [vmem:[#allocation63_spill] sm:$0xff] %v13000_v55  ;;  %v5929_v53 = vmul.f32 %v15479_v49, %v13014_v21  ;;  %v13025_v7 = vadd.f32 %v5046_v28, %v5045_v27  ;;  %v13027_v20 = vadd.f32 %v5432_v38, %v5431_v12  ;;  %v5782_v54 = vadd.f32 %v5766_v32, %v5748_v51  ;;  %v15485_v56 = vld [vmem:[#allocation72_spill] sm:$0xff]  ;;  %v15486_v27 = vld [vmem:[#allocation73_spill] sm:$0xff] }
 0x943   : > { %15472 = vst [vmem:[#allocation64_spill] sm:$0xff] %v13006_v62  ;;  %5055 = vadd.xlane.f32.xlu1 %v15475_v11  ;;  %v13019_v9 = vadd.f32 %v4660_v48, %v15476_v36  ;;  %v13030_v14 = vstv %s12976_s10  ;;  %v5837_v4 = vadd.f32 %v5820_v15, %v5819_v22  ;;  %v5944_v11 = vadd.f32 %v5928_v30, %v5910_v58  ;;  %v15483_v48 = vld [vmem:[#allocation60_spill] sm:$0xff]  ;;  %v15487_v12 = vld [vmem:[#allocation89_spill] sm:$0xff]  ;;  %v15490_v58 = vld [vmem:[#allocation62_spill] sm:$0xff]  ;;  %s13614_s10 = sld [smem:[#allocation4 + $0x9f]] }
 0x944   : > { %15480 = vst [vmem:[#allocation57_spill] sm:$0xff] %v13025_v7  ;;  %15481 = vst [vmem:[#allocation65_spill] sm:$0xff] %v13027_v20  ;;  %v5945_v31 = vadd.f32 %v5929_v53, %v5911_v17  ;;  %v15484_v36 = vld [vmem:[#allocation88_spill] sm:$0xff]  ;;  %v13035_v3 = vadd.f32 %v12863_v40, %v5781_v16  ;;  %v5962_v63 = vmul.f32 %v15485_v56, %v13030_v14  ;;  %v15488_v51 = vld [vmem:[#allocation33_spill] sm:$0xff]  ;;  %v13045_v32 = vstv %s12988_s8  ;;  %s13616_s8 = sld [smem:[#allocation4 + $0x11f]] }
 0x945   : > { %15477 = vst [vmem:[#allocation41_spill] sm:$0xff] %v13019_v9  ;;  %15482 = vst [vmem:[#allocation59_spill] sm:$0xff] %v13030_v14  ;;  %v4752_v59 = vmul.f32 %v15484_v36, %v15483_v48  ;;  %v5963_v28 = vmul.f32 %v15486_v27, %v13030_v14  ;;  %v4753_v38 = vmul.f32 %v15487_v12, %v15483_v48  ;;  %5838 = vadd.xlane.f32.xlu0 %v5837_v4  ;;  %v15491_v22 = vld [vmem:[#allocation90_spill] sm:$0xff]  ;;  %v15492_v16 = vld [vmem:[#allocation91_spill] sm:$0xff] }
 0x946   : > { %15489 = vst [vmem:[#allocation66_spill] sm:$0xff] %v13045_v32  ;;  %v4770_v17 = vmul.f32 %v15491_v22, %v15490_v58  ;;  %v4771_v15 = vmul.f32 %v15492_v16, %v15490_v58  ;;  %v15493_v30 = vld [vmem:[#allocation28_spill] sm:$0xff]  ;;  %v5800_v56 = vadd.f32 %v12863_v40, %v5782_v54  ;;  %v5978_v27 = vadd.f32 %v5962_v63, %v5944_v11  ;;  %v15498_v62 = vld [vmem:[#allocation95_spill] sm:$0xff]  ;;  %v15501_v63 = vld [vmem:[#allocation97_spill] sm:$0xff] }
 0x947   : > { %4674 = vadd.xlane.f32.xlu1 %v15488_v51  ;;  %v15494_v49 = vld [vmem:[#allocation92_spill] sm:$0xff]  ;;  %v5979_v48 = vadd.f32 %v5963_v28, %v5945_v31  ;;  %v15495_v51 = vld [vmem:[#allocation93_spill] sm:$0xff]  ;;  %v5140_v9 = vmul.f32 %v15497_v33, %v15496_v29  ;;  %v5141_v58 = vmul.f32 %v15498_v62, %v15496_v29 }
 0x948   : > { %v4804_v53 = vmul.f32 %v15494_v49, %v15493_v30  ;;  %v4805_v4 = vmul.f32 %v15495_v51, %v15493_v30  ;;  %v4786_v20 = vadd.f32 %v4770_v17, %v4752_v59  ;;  %v4787_v7 = vadd.f32 %v4771_v15, %v4753_v38  ;;  %v15499_v16 = vld [vmem:[#allocation68_spill] sm:$0xff]  ;;  %v15502_v31 = vld [vmem:[#allocation81_spill] sm:$0xff] }
 0x949   : > { %v5996_v55 = vadd.f32 %v13045_v32, %v5978_v27  ;;  %v5997_v49 = vadd.f32 %v13045_v32, %v5979_v48  ;;  %v15500_v22 = vld [vmem:[#allocation96_spill] sm:$0xff]  ;;  %v5159_v11 = vmul.f32 %v15501_v63, %v15499_v16  ;;  %v5815_v59 = vmax.f32 %v13035_v3, 0.0  ;;  %v15503_v38 = vld [vmem:[#allocation69_spill] sm:$0xff] }
 0x94a   : > { %v5158_v54 = vmul.f32 %v15500_v22, %v15499_v16  ;;  %v4820_v28 = vadd.f32 %v4804_v53, %v4786_v20  ;;  %v5192_v17 = vmul.f32 %v12704_v1, %v15503_v38  ;;  %v5193_v15 = vmul.f32 %v15451_v26, %v15503_v38  ;;  %v15504_v26 = vld [vmem:[#allocation82_spill] sm:$0xff] }
 0x94b   : > { %5058 = vadd.xlane.f32.xlu1 %v15502_v31  ;;  %v6012_v30 = vmax.f32 %v5996_v55, 0.0  ;;  %v6013_v27 = vmax.f32 %v5997_v49, 0.0  ;;  %v5175_v40 = vadd.f32 %v5159_v11, %v5141_v58  ;;  %v5816_v22 = vmax.f32 %v5800_v56, 0.0  ;;  %v15505_v55 = vld [vmem:[#allocation34_spill] sm:$0xff] }
 0x94c   : > { %v5174_v48 = vadd.f32 %v5158_v54, %v5140_v9  ;;  %v4821_v62 = vadd.f32 %v4805_v4, %v4787_v7  ;;  %v5138_v63 = vmul.f32 %v12441_v23, %v15496_v29  ;;  %v5139_v3 = vmul.f32 %v12446_v0, %v15496_v29  ;;  %v15507_v0 = vld [vmem:[#allocation71_spill] sm:$0xff] }
 0x94d   : > { %v6029_v20 = vadd.f32 %v6013_v27, %v6012_v30  ;;  %v5209_v31 = vadd.f32 %v5193_v15, %v5175_v40  ;;  %v5156_v1 = vmul.f32 %v12451_v47, %v15499_v16  ;;  %v13082_v49 = vadd.f32 %v15505_v55, %v4820_v28  ;;  %v15508_v54 = vld [vmem:[#allocation83_spill] sm:$0xff]  ;;  %v15509_v15 = vld [vmem:[#allocation85_spill] sm:$0xff]  ;;  %v15510_v27 = vld [vmem:[#allocation84_spill] sm:$0xff] }
 0x94e   : > { %v5208_v53 = vadd.f32 %v5192_v17, %v5174_v48  ;;  %v5157_v9 = vmul.f32 %v12457_v45, %v15499_v16  ;;  %v5190_v23 = vmul.f32 %v12465_v19, %v15503_v38  ;;  %v13089_v7 = vstv %s13053_s12  ;;  %s13629_s12 = sld [smem:[#allocation7 + $0x1f]] }
 0x94f   : > { %5250 = vadd.xlane.f32.xlu1 %v15504_v26  ;;  %15506 = vst [vmem:[#allocation70_spill] sm:$0xff] %v13089_v7  ;;  %6030 = vadd.xlane.f32.xlu0 %v6029_v20  ;;  %v5227_v40 = vadd.f32 %v15507_v0, %v5209_v31  ;;  %v5172_v4 = vadd.f32 %v5156_v1, %v5138_v63 }
 0x950   : > { %v5226_v56 = vadd.f32 %v15507_v0, %v5208_v53  ;;  %v5191_v47 = vmul.f32 %v12470_v52, %v15503_v38  ;;  %v4839_v26 = vadd.f32 %v15505_v55, %v4821_v62  ;;  %v5173_v58 = vadd.f32 %v5157_v9, %v5139_v3  ;;  %v15511_v62 = vld [vmem:[#allocation86_spill] sm:$0xff] }
 0x951   : > { %v5526_v45 = vmul.f32 %v12477_v43, %v15508_v54  ;;  %v5527_v19 = vmul.f32 %v12486_v6, %v15508_v54  ;;  %v5243_v28 = vmax.f32 %v5227_v40, 0.0  ;;  %v5206_v17 = vadd.f32 %v5190_v23, %v5172_v4  ;;  %v13131_v4 = vld [vmem:[%s8017_s9 + $0x68] sm:$0xff] }
 0x952   : > { %v5242_v11 = vmax.f32 %v5226_v56, 0.0  ;;  %v5544_v30 = vmul.f32 %v12491_v44, %v15509_v15  ;;  %v5207_v1 = vadd.f32 %v5191_v47, %v5173_v58  ;;  %v5545_v52 = vmul.f32 %v12496_v60, %v15509_v15  ;;  %15514 = vst [vmem:[#allocation30_spill] sm:$0xff] %v13131_v4 }
 0x953   : > { %4677 = vadd.xlane.f32.xlu1 %v15510_v27  ;;  %v5578_v63 = vmul.f32 %v12502_v13, %v15511_v62  ;;  %v5579_v43 = vmul.f32 %v15405_v25, %v15511_v62  ;;  %v5224_v6 = vadd.f32 %v15507_v0, %v5206_v17  ;;  %v5524_v20 = vmul.f32 %v12512_v5, %v15508_v54  ;;  %v15512_v5 = vld [vmem:[#allocation100_spill] sm:$0xff]  ;;  %v15516_v17 = vld [vmem:[#allocation75_spill] sm:$0xff] }
 0x954   : > { %v5264_v48 = vadd.f32 %v5243_v28, %v5242_v11  ;;  %v5560_v3 = vadd.f32 %v5544_v30, %v5526_v45  ;;  %v13112_v44 = vadd.f32 %v5816_v22, %v5815_v59  ;;  %v5561_v53 = vadd.f32 %v5545_v52, %v5527_v19  ;;  %v13143_v11 = vld [vmem:[%s8017_s9 + $0x80] sm:$0xff] }
 0x955   : > { %v5525_v31 = vmul.f32 %v12518_v24, %v15508_v54  ;;  %v5542_v13 = vmul.f32 %v12523_v34, %v15509_v15  ;;  %v4854_v60 = vmax.f32 %v13082_v49, 0.0  ;;  %v5225_v25 = vadd.f32 %v15507_v0, %v5207_v1  ;;  %v15513_v49 = vld [vmem:[#allocation87_spill] sm:$0xff]  ;;  %15515 = vst [vmem:[#allocation48_spill] sm:$0xff] %v13143_v11 }
 0x956   : > { %5265 = vadd.xlane.f32.xlu0 %v5264_v48  ;;  %v5594_v55 = vadd.f32 %v5578_v63, %v5560_v3  ;;  %v5543_v9 = vmul.f32 %v15407_v50, %v15509_v15  ;;  %v4855_v22 = vmax.f32 %v4839_v26, 0.0  ;;  %v5595_v59 = vadd.f32 %v5579_v43, %v5561_v53  ;;  %v13151_v1 = vld [vmem:[%s8017_s9 + $0x88] sm:$0xff] }
 0x957   : > { %5061 = vadd.xlane.f32.xlu1 %v15512_v5  ;;  %v5558_v23 = vadd.f32 %v5542_v13, %v5524_v20  ;;  %v5576_v24 = vmul.f32 %v15409_v39, %v15511_v62  ;;  %v5240_v34 = vmax.f32 %v5224_v6, 0.0  ;;  %v5912_v40 = vmul.f32 %v12545_v35, %v12994_v2  ;;  %15517 = vst [vmem:[#allocation79_spill] sm:$0xff] %v13151_v1  ;;  %v13183_v5 = vld [vmem:[%s8017_s9 + $0x30] sm:$0xff] }
 0x958   : > { %v5612_v56 = vadd.f32 %v15513_v49, %v5594_v55  ;;  %v5913_v50 = vmul.f32 %v13131_v4, %v12994_v2  ;;  %v5613_v47 = vadd.f32 %v15513_v49, %v5595_v59  ;;  %v5559_v26 = vadd.f32 %v5543_v9, %v5525_v31  ;;  %15520 = vst [vmem:[#allocation80_spill] sm:$0xff] %v13183_v5 }
 0x959   : > { %v5577_v39 = vmul.f32 %v15411_v8, %v15511_v62  ;;  %v5930_v58 = vmul.f32 %v15462_v18, %v13014_v21  ;;  %v5241_v45 = vmax.f32 %v5225_v25, 0.0  ;;  %v5931_v35 = vmul.f32 %v15464_v10, %v13014_v21 }
 0x95a   : > { %v5628_v19 = vmax.f32 %v5612_v56, 0.0  ;;  %v5964_v28 = vmul.f32 %v13143_v11, %v13030_v14  ;;  %v5629_v30 = vmax.f32 %v5613_v47, 0.0  ;;  %v5592_v27 = vadd.f32 %v5576_v24, %v5558_v23  ;;  %v13191_v24 = vld [vmem:[%s8017_s9 + $0x38] sm:$0xff]  ;;  %v13196_v56 = vld [vmem:[%s8017_s9 + $0x40] sm:$0xff] }
 0x95b   : > { %5442 = vadd.xlane.f32.xlu1 %v15516_v17  ;;  %v5946_v8 = vadd.f32 %v5930_v58, %v5912_v40  ;;  %v5965_v18 = vmul.f32 %v13151_v1, %v13030_v14  ;;  %v13155_v52 = vadd.f32 %v4855_v22, %v4854_v60  ;;  %v5947_v10 = vadd.f32 %v5931_v35, %v5913_v50  ;;  %v13200_v40 = vpop.xlane.xlu0 %4467 }
 0x95c   : > { %v5908_v63 = vmul.f32 %v12578_v46, %v12994_v2  ;;  %v5909_v43 = vmul.f32 %v12583_v61, %v12994_v2  ;;  %v5648_v48 = vadd.f32 %v5629_v30, %v5628_v19  ;;  %v5593_v6 = vadd.f32 %v5577_v39, %v5559_v26  ;;  %v15518_v61 = vld [vmem:[#allocation76_spill] sm:$0xff]  ;;  %15521 = vst [vmem:[#allocation40_spill] sm:$0xff] %v13191_v24  ;;  %v13203_v26 = vld [vmem:[%s8017_s9 + $0x48] sm:$0xff]  ;;  %v13218_v30 = vld [vmem:[%s8017_s9 + $0x58] sm:$0xff] }
 0x95d   : > { %v5980_v3 = vadd.f32 %v5964_v28, %v5946_v8  ;;  %v5926_v20 = vmul.f32 %v12588_v37, %v13014_v21  ;;  %v13165_v53 = vadd.f32 %v5241_v45, %v5240_v34  ;;  %v5981_v31 = vadd.f32 %v5965_v18, %v5947_v10  ;;  %15522 = vst [vmem:[#allocation44_spill] sm:$0xff] %v13196_v56  ;;  %v15526_v45 = vld [vmem:[#allocation77_spill] sm:$0xff]  ;;  %v13213_v28 = vld [vmem:[%s8017_s9 + $0x50] sm:$0xff] }
 0x95e   : > { %v5927_v46 = vmul.f32 %v12593_v41, %v13014_v21  ;;  %v5960_v13 = vmul.f32 %v12612_v42, %v13030_v14  ;;  %5649 = vadd.xlane.f32.xlu0 %v5648_v48  ;;  %v13173_v60 = vadd.f32 %v15513_v49, %v5592_v27  ;;  %v13177_v55 = vstv %s13125_s28  ;;  %15523 = vst [vmem:[#allocation58_spill] sm:$0xff] %v13200_v40  ;;  %v13341_v21 = vld [vmem:[%s8017_s9 + $0x98] sm:$0xff] }
 0x95f   : > { %4488 = vadd.xlane.f32.xlu1 %v15518_v61  ;;  %v5998_v25 = vadd.f32 %v13045_v32, %v5980_v3  ;;  %v5942_v37 = vadd.f32 %v5926_v20, %v5908_v63  ;;  %15519 = vst [vmem:[#allocation38_spill] sm:$0xff] %v13177_v55  ;;  %v5999_v9 = vadd.f32 %v13045_v32, %v5981_v31  ;;  %15524 = vst [vmem:[#allocation23_spill] sm:$0xff] %v13203_v26  ;;  %v15532_v61 = vld [vmem:[#allocation90_spill] sm:$0xff] }
 0x960   : > { %v5943_v41 = vadd.f32 %v5927_v46, %v5909_v43  ;;  %v5961_v42 = vmul.f32 %v12620_v57, %v13030_v14  ;;  %v6105_v22 = vmul.f32 %v13183_v5, %v13089_v7  ;;  %v13188_v59 = vadd.f32 %v15513_v49, %v5593_v6  ;;  %15527 = vst [vmem:[#allocation60_spill] sm:$0xff] %v13213_v28  ;;  %v15530_v6 = vld [vmem:[#allocation25_spill] sm:$0xff] }
 0x961   : > { %v6014_v23 = vmax.f32 %v5998_v25, 0.0  ;;  %v6106_v34 = vmul.f32 %v13191_v24, %v13089_v7  ;;  %v6123_v57 = vmul.f32 %v13196_v56, %v13177_v55  ;;  %v6015_v50 = vmax.f32 %v5999_v9, 0.0  ;;  %15528 = vst [vmem:[#allocation88_spill] sm:$0xff] %v13218_v30  ;;  %v15533_v25 = vld [vmem:[#allocation91_spill] sm:$0xff] }
 0x962   : > { %v5976_v47 = vadd.f32 %v5960_v13, %v5942_v37  ;;  %v6124_v39 = vmul.f32 %v13203_v26, %v13177_v55  ;;  %v13208_v58 = vstv %s13147_s6  ;;  %v5626_v19 = vmax.f32 %v13173_v60, 0.0  ;;  %v15531_v13 = vld [vmem:[#allocation31_spill] sm:$0xff] }
 0x963   : > { %15525 = vst [vmem:[#allocation24_spill] sm:$0xff] %v13208_v58  ;;  %4872 = vadd.xlane.f32.xlu1 %v15526_v45  ;;  %v6139_v35 = vadd.f32 %v6123_v57, %v6105_v22  ;;  %v6157_v17 = vmul.f32 %v13213_v28, %v13208_v58  ;;  %v6158_v27 = vmul.f32 %v13218_v30, %v13208_v58  ;;  %v13223_v63 = vstv %s13161_s1  ;;  %v15534_v9 = vld [vmem:[#allocation63_spill] sm:$0xff] }
 0x964   : > { %v6032_v8 = vadd.f32 %v6015_v50, %v6014_v23  ;;  %v5977_v18 = vadd.f32 %v5961_v42, %v5943_v41  ;;  %v6140_v10 = vadd.f32 %v6124_v39, %v6106_v34  ;;  %15529 = vst [vmem:[#allocation72_spill] sm:$0xff] %v13223_v63  ;;  %v5627_v43 = vmax.f32 %v13188_v59, 0.0  ;;  %v15535_v42 = vld [vmem:[#allocation32_spill] sm:$0xff]  ;;  %v15537_v59 = vld [vmem:[#allocation53_spill] sm:$0xff]  ;;  %v13245_v34 = vpop.xlane.xlu0 %4473 }
 0x965   : > { %v6173_v48 = vadd.f32 %v6157_v17, %v6139_v35  ;;  %v4947_v3 = vmul.f32 %v15484_v36, %v15530_v6  ;;  %v4948_v20 = vmul.f32 %v15487_v12, %v15530_v6  ;;  %v13231_v31 = vadd.f32 %v13045_v32, %v5976_v47  ;;  %v15536_v36 = vld [vmem:[#allocation92_spill] sm:$0xff]  ;;  %15538 = vst [vmem:[#allocation73_spill] sm:$0xff] %v13245_v34  ;;  %v15539_v35 = vld [vmem:[#allocation95_spill] sm:$0xff] }
 0x966   : > { %6033 = vadd.xlane.f32.xlu0 %v6032_v8  ;;  %v6174_v46 = vadd.f32 %v6158_v27, %v6140_v10  ;;  %v4965_v60 = vmul.f32 %v15532_v61, %v15531_v13  ;;  %v4966_v37 = vmul.f32 %v15533_v25, %v15531_v13  ;;  %v4999_v22 = vmul.f32 %v15536_v36, %v15535_v42  ;;  %v15540_v27 = vld [vmem:[#allocation37_spill] sm:$0xff]  ;;  %v15541_v8 = vld [vmem:[#allocation96_spill] sm:$0xff]  ;;  %v15543_v13 = vld [vmem:[#allocation47_spill] sm:$0xff] }
 0x967   : > { %5256 = vadd.xlane.f32.xlu1 %v15534_v9  ;;  %v6191_v41 = vadd.f32 %v13223_v63, %v6173_v48  ;;  %v5000_v12 = vmul.f32 %v15495_v51, %v15535_v42  ;;  %v5335_v23 = vmul.f32 %v15497_v33, %v15537_v59  ;;  %v5995_v57 = vadd.f32 %v13045_v32, %v5977_v18  ;;  %v15542_v10 = vld [vmem:[#allocation97_spill] sm:$0xff]  ;;  %v15544_v61 = vld [vmem:[#allocation98_spill] sm:$0xff]  ;;  %v15546_v25 = vld [vmem:[#allocation99_spill] sm:$0xff] }
 0x968   : > { %v6192_v50 = vadd.f32 %v13223_v63, %v6174_v46  ;;  %v4981_v47 = vadd.f32 %v4965_v60, %v4947_v3  ;;  %v4982_v39 = vadd.f32 %v4966_v37, %v4948_v20  ;;  %v5336_v17 = vmul.f32 %v15539_v35, %v15537_v59  ;;  %v15545_v3 = vld [vmem:[#allocation64_spill] sm:$0xff]  ;;  %v13273_v35 = vld [vmem:[%s8017_s9 + $0x100] sm:$0xff] }
 0x969   : > { %v6207_v45 = vmax.f32 %v6191_v41, 0.0  ;;  %v5353_v51 = vmul.f32 %v15541_v8, %v15540_v27  ;;  %v5354_v33 = vmul.f32 %v15542_v10, %v15540_v27  ;;  %v5387_v46 = vmul.f32 %v15544_v61, %v15543_v13  ;;  %v13261_v9 = vld [vmem:[%s8017_s9 + $0xf0] sm:$0xff]  ;;  %v13278_v8 = vld [vmem:[%s8017_s9 + $0x108] sm:$0xff]  ;;  %v15550_v61 = vld [vmem:[#allocation74_spill] sm:$0xff] }
 0x96a   : > { %v6208_v48 = vmax.f32 %v6192_v50, 0.0  ;;  %v5015_v6 = vadd.f32 %v4999_v22, %v4981_v47  ;;  %v5016_v18 = vadd.f32 %v5000_v12, %v4982_v39  ;;  %v5388_v37 = vmul.f32 %v15546_v25, %v15543_v13  ;;  %v15547_v36 = vld [vmem:[#allocation36_spill] sm:$0xff]  ;;  %v13268_v50 = vld [vmem:[%s8017_s9 + $0xf8] sm:$0xff] }
 0x96b   : > { %5637 = vadd.xlane.f32.xlu1 %v15545_v3  ;;  %v5369_v20 = vadd.f32 %v5353_v51, %v5335_v23  ;;  %v5370_v60 = vadd.f32 %v5354_v33, %v5336_v17  ;;  %v5333_v41 = vmul.f32 %v13261_v9, %v15537_v59  ;;  %v5334_v47 = vmul.f32 %v13268_v50, %v15537_v59  ;;  %v13282_v51 = vpop.xlane.xlu0 %4665  ;;  %v15557_v59 = vld [vmem:[#allocation45_spill] sm:$0xff] }
 0x96c   : > { %v6224_v42 = vadd.f32 %v6208_v48, %v6207_v45  ;;  %v5033_v22 = vadd.f32 %v15547_v36, %v5015_v6  ;;  %v5034_v12 = vadd.f32 %v15547_v36, %v5016_v18  ;;  %v5351_v17 = vmul.f32 %v13273_v35, %v15540_v27  ;;  %15548 = vst [vmem:[#allocation89_spill] sm:$0xff] %v13282_v51  ;;  %v15549_v18 = vld [vmem:[#allocation41_spill] sm:$0xff]  ;;  %v13306_v36 = vld [vmem:[%s8017_s9 + $0xd0] sm:$0xff] }
 0x96d   : > { %v5403_v23 = vadd.f32 %v5387_v46, %v5369_v20  ;;  %v5404_v39 = vadd.f32 %v5388_v37, %v5370_v60  ;;  %v5352_v45 = vmul.f32 %v13278_v8, %v15540_v27  ;;  %v13284_v10 = vadd.f32 %v5627_v43, %v5626_v19  ;;  %v13291_v60 = vld [vmem:[%s8017_s9 + $0x110] sm:$0xff]  ;;  %v13301_v37 = vld [vmem:[%s8017_s9 + $0xc8] sm:$0xff]  ;;  %15552 = vst [vmem:[#allocation33_spill] sm:$0xff] %v13306_v36  ;;  %v13316_v51 = vld [vmem:[%s8017_s9 + $0xd8] sm:$0xff] }
 0x96e   : > { %v6010_v33 = vmax.f32 %v13231_v31, 0.0  ;;  %v6011_v48 = vmax.f32 %v5995_v57, 0.0  ;;  %6225 = vadd.xlane.f32.xlu0 %v6224_v42  ;;  %v5049_v6 = vmax.f32 %v5033_v22, 0.0  ;;  %v5367_v20 = vadd.f32 %v5351_v17, %v5333_v41  ;;  %v13296_v31 = vld [vmem:[%s8017_s9 + $0xc0] sm:$0xff]  ;;  %v15553_v41 = vld [vmem:[#allocation35_spill] sm:$0xff]  ;;  %v13311_v17 = vld [vmem:[%s8017_s9 + $0x118] sm:$0xff] }
 0x96f   : > { %4683 = vadd.xlane.f32.xlu1 %v15549_v18  ;;  %v5421_v46 = vadd.f32 %v15550_v61, %v5403_v23  ;;  %v5422_v3 = vadd.f32 %v15550_v61, %v5404_v39  ;;  %v5385_v19 = vmul.f32 %v13291_v60, %v15543_v13  ;;  %v5050_v43 = vmax.f32 %v5034_v12, 0.0  ;;  %v15551_v57 = vld [vmem:[#allocation78_spill] sm:$0xff]  ;;  %15554 = vst [vmem:[#allocation62_spill] sm:$0xff] %v13311_v17 }
 0x970   : > { %v5721_v25 = vmul.f32 %v13296_v31, %v15551_v57  ;;  %v5722_v42 = vmul.f32 %v13301_v37, %v15551_v57  ;;  %v5739_v22 = vmul.f32 %v13306_v36, %v15553_v41  ;;  %v5368_v12 = vadd.f32 %v5352_v45, %v5334_v47  ;;  %15555 = vst [vmem:[#allocation28_spill] sm:$0xff] %v13316_v51  ;;  %v13321_v27 = vld [vmem:[%s8017_s9 + $0xe0] sm:$0xff]  ;;  %v15558_v45 = vld [vmem:[#allocation57_spill] sm:$0xff] }
 0x971   : > { %v5437_v23 = vmax.f32 %v5421_v46, 0.0  ;;  %v5438_v39 = vmax.f32 %v5422_v3, 0.0  ;;  %v5386_v18 = vmul.f32 %v13311_v17, %v15543_v13  ;;  %v5740_v34 = vmul.f32 %v13316_v51, %v15553_v41  ;;  %15556 = vst [vmem:[#allocation93_spill] sm:$0xff] %v13321_v27  ;;  %v13326_v3 = vld [vmem:[%s8017_s9 + $0xe8] sm:$0xff]  ;;  %v13338_v51 = vpop.xlane.xlu0 %4668 }
 0x972   : > { %v5755_v40 = vadd.f32 %v5739_v22, %v5721_v25  ;;  %v5773_v46 = vmul.f32 %v13321_v27, %v15557_v59  ;;  %v5774_v47 = vmul.f32 %v13326_v3, %v15557_v59  ;;  %v13331_v13 = vadd.f32 %v6011_v48, %v6010_v33  ;;  %v13334_v25 = vld [vmem:[%s8017_s9 + $0x90] sm:$0xff]  ;;  %15559 = vst [vmem:[#allocation67_spill] sm:$0xff] %v13338_v51  ;;  %v13346_v33 = vld [vmem:[%s8017_s9 + $0xa0] sm:$0xff] }
 0x973   : > { %5067 = vadd.xlane.f32.xlu1 %v15558_v45  ;;  %v5459_v32 = vadd.f32 %v5438_v39, %v5437_v23  ;;  %v5401_v14 = vadd.f32 %v5385_v19, %v5367_v20  ;;  %v5719_v22 = vmul.f32 %v13334_v25, %v15551_v57  ;;  %v5756_v27 = vadd.f32 %v5740_v34, %v5722_v42  ;;  %v13353_v23 = vld [vmem:[%s8017_s9 + $0xa8] sm:$0xff]  ;;  %v13358_v34 = vld [vmem:[%s8017_s9 + $0xb0] sm:$0xff] }
 0x974   : > { %v5789_v36 = vadd.f32 %v5773_v46, %v5755_v40  ;;  %v5720_v45 = vmul.f32 %v13341_v21, %v15551_v57  ;;  %v5737_v48 = vmul.f32 %v13346_v33, %v15553_v41  ;;  %v13350_v20 = vadd.f32 %v5050_v43, %v5049_v6  ;;  %v15560_v46 = vld [vmem:[#allocation43_spill] sm:$0xff]  ;;  %v13364_v6 = vld [vmem:[%s8017_s9 + $0xb8] sm:$0xff] }
 0x975   : > { %5460 = vadd.xlane.f32.xlu0 %v5459_v32  ;;  %v5402_v19 = vadd.f32 %v5386_v18, %v5368_v12  ;;  %v5738_v40 = vmul.f32 %v13353_v23, %v15553_v41  ;;  %v5771_v42 = vmul.f32 %v13358_v34, %v15557_v59  ;;  %v5790_v39 = vadd.f32 %v5774_v47, %v5756_v27  ;;  %v15561_v43 = vld [vmem:[#allocation65_spill] sm:$0xff]  ;;  %v13375_v41 = vld [vmem:[%s8017_s9 + $0x60] sm:$0xff] }
 0x976   : > { %v5807_v51 = vadd.f32 %v15560_v46, %v5789_v36  ;;  %v5753_v57 = vadd.f32 %v5737_v48, %v5719_v22  ;;  %v5772_v32 = vmul.f32 %v13364_v6, %v15557_v59  ;;  %v13372_v12 = vadd.f32 %v15550_v61, %v5401_v14  ;;  %v13383_v59 = vld [vmem:[%s8017_s9 + $0x70] sm:$0xff] }
 0x977   : > { %5451 = vadd.xlane.f32.xlu1 %v15561_v43  ;;  %v5754_v18 = vadd.f32 %v5738_v40, %v5720_v45  ;;  %v6107_v27 = vmul.f32 %v13375_v41, %v13089_v7  ;;  %v6108_v36 = vmul.f32 %v13131_v4, %v13089_v7  ;;  %v5808_v47 = vadd.f32 %v15560_v46, %v5790_v39  ;;  %v13390_v40 = vld [vmem:[%s8017_s9 + $0x78] sm:$0xff] }
 0x978   : > { %v5823_v22 = vmax.f32 %v5807_v51, 0.0  ;;  %v5787_v48 = vadd.f32 %v5771_v42, %v5753_v57  ;;  %15562 = vst [vmem:[#allocation94_spill] sm:$0xff] %v13383_v59  ;;  %v6125_v14 = vmul.f32 %v13383_v59, %v13177_v55  ;;  %v6126_v43 = vmul.f32 %v13390_v40, %v13177_v55  ;;  %v13398_v57 = vpop.xlane.xlu0 %4860 }
 0x979   : > { %v5788_v45 = vadd.f32 %v5772_v32, %v5754_v18  ;;  %v6159_v39 = vmul.f32 %v13143_v11, %v13208_v58  ;;  %v6160_v51 = vmul.f32 %v13151_v1, %v13208_v58  ;;  %15563 = vst [vmem:[#allocation68_spill] sm:$0xff] %v13398_v57  ;;  %v13401_v42 = vadd.f32 %v15550_v61, %v5402_v19  ;;  %v13404_v18 = vld [vmem:[%s8017_s9] sm:$0xff]  ;;  %v13413_v57 = vld [vmem:[%s8017_s9 + $0x8] sm:$0xff] }
 0x97a   : > { %v5824_v59 = vmax.f32 %v5808_v47, 0.0  ;;  %v6141_v32 = vadd.f32 %v6125_v14, %v6107_v27  ;;  %15564 = vst [vmem:[#allocation81_spill] sm:$0xff] %v13404_v18  ;;  %v6103_v4 = vmul.f32 %v13404_v18, %v13089_v7  ;;  %v6142_v11 = vadd.f32 %v6126_v43, %v6108_v36  ;;  %15565 = vst [vmem:[#allocation69_spill] sm:$0xff] %v13413_v57  ;;  %v13418_v47 = vld [vmem:[%s8017_s9 + $0x10] sm:$0xff]  ;;  %v13426_v18 = vld [vmem:[%s8017_s9 + $0x18] sm:$0xff] }
 0x97b   : > { %5832 = vadd.xlane.f32.xlu1 %v13112_v44  ;;  %v6104_v19 = vmul.f32 %v13413_v57, %v13089_v7  ;;  %v6121_v27 = vmul.f32 %v13418_v47, %v13177_v55  ;;  %v13423_v61 = vadd.f32 %v15560_v46, %v5787_v48  ;;  %v6122_v36 = vmul.f32 %v13426_v18, %v13177_v55  ;;  %v13436_v57 = vld [vmem:[%s8017_s9 + $0x20] sm:$0xff] }
 0x97c   : > { %v5843_v14 = vadd.f32 %v5824_v59, %v5823_v22  ;;  %v6175_v44 = vadd.f32 %v6159_v39, %v6141_v32  ;;  %v13433_v43 = vadd.f32 %v15560_v46, %v5788_v45  ;;  %v6176_v1 = vadd.f32 %v6160_v51, %v6142_v11  ;;  %v13442_v39 = vld [vmem:[%s8017_s9 + $0x28] sm:$0xff] }
 0x97d   : > { %v6137_v7 = vadd.f32 %v6121_v27, %v6103_v4  ;;  %v6155_v59 = vmul.f32 %v13436_v57, %v13208_v58  ;;  %v6138_v48 = vadd.f32 %v6122_v36, %v6104_v19  ;;  %v6156_v32 = vmul.f32 %v13442_v39, %v13208_v58  ;;  %v13454_v27 = vpop.xlane.xlu0 %4671  ;;  %v13476_v58 = vld [vmem:[%s8017_s9 + $0x150] sm:$0xff] }
 0x97e   : > { %5844 = vadd.xlane.f32.xlu0 %v5843_v14  ;;  %v6193_v22 = vadd.f32 %v13223_v63, %v6175_v44  ;;  %v13447_v55 = vstv %s13368_s2  ;;  %v5436_v4 = vmax.f32 %v13401_v42, 0.0  ;;  %v6194_v11 = vadd.f32 %v13223_v63, %v6176_v1  ;;  %15567 = vst [vmem:[#allocation34_spill] sm:$0xff] %v13454_v27  ;;  %15570 = vst [vmem:[#allocation100_spill] sm:$0xff] %v13476_v58 }
 0x97f   : > { %15566 = vst [vmem:[#allocation82_spill] sm:$0xff] %v13447_v55  ;;  %4878 = vadd.xlane.f32.xlu1 %v13155_v52  ;;  %v6171_v45 = vadd.f32 %v6155_v59, %v6137_v7  ;;  %v6300_v51 = vmul.f32 %v13183_v5, %v13447_v55  ;;  %v6172_v14 = vadd.f32 %v6156_v32, %v6138_v48  ;;  %v13459_v36 = vstv %s13387_s7 }
 0x980   : > { %v6209_v19 = vmax.f32 %v6193_v22, 0.0  ;;  %v6301_v44 = vmul.f32 %v13191_v24, %v13447_v55  ;;  %15568 = vst [vmem:[#allocation71_spill] sm:$0xff] %v13459_v36  ;;  %v6210_v52 = vmax.f32 %v6194_v11, 0.0  ;;  %v6318_v7 = vmul.f32 %v13196_v56, %v13459_v36 }
 0x981   : > { %v13462_v42 = vadd.f32 %v13223_v63, %v6171_v45  ;;  %v6319_v1 = vmul.f32 %v13203_v26, %v13459_v36  ;;  %v5821_v59 = vmax.f32 %v13423_v61, 0.0  ;;  %v5822_v22 = vmax.f32 %v13433_v43, 0.0 }
 0x982   : > { %v6190_v48 = vadd.f32 %v13223_v63, %v6172_v14  ;;  %v13472_v32 = vstv %s13408_s17  ;;  %v6227_v11 = vadd.f32 %v6210_v52, %v6209_v19  ;;  %v6334_v45 = vadd.f32 %v6318_v7, %v6300_v51  ;;  %v13499_v7 = vld [vmem:[%s8017_s9 + $0x168] sm:$0xff]  ;;  %v13504_v63 = vld [vmem:[%s8017_s9 + $0x170] sm:$0xff] }
 0x983   : > { %15569 = vst [vmem:[#allocation84_spill] sm:$0xff] %v13472_v32  ;;  %5262 = vadd.xlane.f32.xlu1 %v13165_v53  ;;  %v6335_v27 = vadd.f32 %v6319_v1, %v6301_v44  ;;  %v5142_v46 = vmul.f32 %v13476_v58, %v15496_v29  ;;  %v6352_v61 = vmul.f32 %v13213_v28, %v13472_v32  ;;  %v13485_v14 = vstv %s13430_s30  ;;  %v13488_v53 = vld [vmem:[%s8017_s9 + $0x158] sm:$0xff]  ;;  %v13494_v44 = vld [vmem:[%s8017_s9 + $0x160] sm:$0xff] }
 0x984   : > { %v6353_v43 = vmul.f32 %v13218_v30, %v13472_v32  ;;  %15571 = vst [vmem:[#allocation75_spill] sm:$0xff] %v13485_v14  ;;  %15572 = vst [vmem:[#allocation76_spill] sm:$0xff] %v13488_v53  ;;  %v5143_v51 = vmul.f32 %v13488_v53, %v15496_v29  ;;  %6228 = vadd.xlane.f32.xlu0 %v6227_v11  ;;  %v6205_v19 = vmax.f32 %v13462_v42, 0.0  ;;  %v13508_v11 = vpop.xlane.xlu0 %5052  ;;  %v13511_v58 = vld [vmem:[%s8017_s9 + $0x178] sm:$0xff]  ;;  %v13516_v30 = vld [vmem:[%s8017_s9 + $0x120] sm:$0xff] }
 0x985   : > { %15573 = vst [vmem:[#allocation77_spill] sm:$0xff] %v13494_v44  ;;  %v5160_v52 = vmul.f32 %v13494_v44, %v15499_v16  ;;  %15574 = vst [vmem:[#allocation25_spill] sm:$0xff] %v13499_v7  ;;  %v5161_v1 = vmul.f32 %v13499_v7, %v15499_v16  ;;  %v5194_v29 = vmul.f32 %v13504_v63, %v15503_v38 }
 0x986   : > { %15575 = vst [vmem:[#allocation31_spill] sm:$0xff] %v13504_v63  ;;  %15576 = vst [vmem:[#allocation90_spill] sm:$0xff] %v13508_v11  ;;  %v6368_v42 = vadd.f32 %v6352_v61, %v6334_v45  ;;  %v6369_v53 = vadd.f32 %v6353_v43, %v6335_v27  ;;  %v5195_v44 = vmul.f32 %v13511_v58, %v15503_v38  ;;  %v13522_v11 = vld [vmem:[%s8017_s9 + $0x128] sm:$0xff]  ;;  %v13527_v45 = vld [vmem:[%s8017_s9 + $0x130] sm:$0xff] }
 0x987   : > { %15577 = vst [vmem:[#allocation91_spill] sm:$0xff] %v13511_v58  ;;  %15578 = vst [vmem:[#allocation63_spill] sm:$0xff] %v13516_v30  ;;  %v5530_v16 = vmul.f32 %v13516_v30, %v15508_v54  ;;  %5646 = vadd.xlane.f32.xlu1 %v13284_v10  ;;  %v5176_v63 = vadd.f32 %v5160_v52, %v5142_v46  ;;  %v5177_v7 = vadd.f32 %v5161_v1, %v5143_v51  ;;  %v13534_v30 = vld [vmem:[%s8017_s9 + $0x138] sm:$0xff]  ;;  %v13539_v46 = vld [vmem:[%s8017_s9 + $0x140] sm:$0xff] }
 0x988   : > { %15579 = vst [vmem:[#allocation32_spill] sm:$0xff] %v13522_v11  ;;  %v5531_v27 = vmul.f32 %v13522_v11, %v15508_v54  ;;  %15580 = vst [vmem:[#allocation92_spill] sm:$0xff] %v13527_v45  ;;  %v5548_v38 = vmul.f32 %v13527_v45, %v15509_v15  ;;  %v6386_v61 = vadd.f32 %v13485_v14, %v6368_v42  ;;  %v6206_v52 = vmax.f32 %v6190_v48, 0.0  ;;  %v13544_v58 = vld [vmem:[%s8017_s9 + $0x148] sm:$0xff]  ;;  %v13553_v48 = vpop.xlane.xlu0 %4482 }
 0x989   : > { %v6387_v43 = vadd.f32 %v13485_v14, %v6369_v53  ;;  %15581 = vst [vmem:[#allocation95_spill] sm:$0xff] %v13534_v30  ;;  %v5549_v10 = vmul.f32 %v13534_v30, %v15509_v15  ;;  %15582 = vst [vmem:[#allocation96_spill] sm:$0xff] %v13539_v46  ;;  %v5582_v51 = vmul.f32 %v13539_v46, %v15511_v62  ;;  %v15584_v53 = vmax.f32 %v13372_v12, 0.0 }
 0x98a   : > { %v5210_v1 = vadd.f32 %v5194_v29, %v5176_v63  ;;  %v5564_v11 = vadd.f32 %v5548_v38, %v5530_v16  ;;  %15583 = vst [vmem:[#allocation97_spill] sm:$0xff] %v13544_v58  ;;  %v5583_v42 = vmul.f32 %v13544_v58, %v15511_v62  ;;  %v6402_v28 = vmax.f32 %v6386_v61, 0.0  ;;  %15585 = vst [vmem:[#allocation98_spill] sm:$0xff] %v13553_v48  ;;  %v15597_v48 = vld [vmem:[#allocation79_spill] sm:$0xff] }
 0x98b   : > { %v5456_v45 = vadd.f32 %v5436_v4, %v15584_v53  ;;  %v6403_v26 = vmax.f32 %v6387_v43, 0.0  ;;  %v5565_v56 = vadd.f32 %v5549_v10, %v5531_v27  ;;  %6027 = vadd.xlane.f32.xlu1 %v13331_v13  ;;  %v5840_v30 = vadd.f32 %v5822_v22, %v5821_v59  ;;  %v15586_v10 = vld [vmem:[#allocation42_spill] sm:$0xff] }
 0x98c   : > { %v5211_v24 = vadd.f32 %v5195_v44, %v5177_v7  ;;  %v5598_v5 = vadd.f32 %v5582_v51, %v5564_v11  ;;  %v5528_v63 = vmul.f32 %v13261_v9, %v15508_v54  ;;  %v5529_v38 = vmul.f32 %v13268_v50, %v15508_v54  ;;  %v15587_v51 = vld [vmem:[#allocation33_spill] sm:$0xff] }
 0x98d   : > { %v6419_v29 = vadd.f32 %v6403_v26, %v6402_v28  ;;  %v5599_v16 = vadd.f32 %v5583_v42, %v5565_v56  ;;  %v5546_v12 = vmul.f32 %v13273_v35, %v15509_v15  ;;  %v13559_v4 = vadd.f32 %v6206_v52, %v6205_v19  ;;  %v15588_v42 = vld [vmem:[#allocation28_spill] sm:$0xff]  ;;  %v15608_v54 = vld [vmem:[#allocation53_spill] sm:$0xff] }
 0x98e   : > { %v5228_v13 = vadd.f32 %v15507_v0, %v5210_v1  ;;  %v5616_v59 = vadd.f32 %v15513_v49, %v5598_v5  ;;  %v5547_v22 = vmul.f32 %v13278_v8, %v15509_v15  ;;  %v5580_v56 = vmul.f32 %v13291_v60, %v15511_v62 }
 0x98f   : > { %6420 = vadd.xlane.f32.xlu0 %v6419_v29  ;;  %v5617_v44 = vadd.f32 %v15513_v49, %v5599_v16  ;;  %v5562_v26 = vadd.f32 %v5546_v12, %v5528_v63  ;;  %v5581_v28 = vmul.f32 %v13311_v17, %v15511_v62  ;;  %5073 = vadd.xlane.f32.xlu1 %v13350_v20  ;;  %v15589_v20 = vld [vmem:[#allocation59_spill] sm:$0xff]  ;;  %v15590_v63 = vld [vmem:[#allocation93_spill] sm:$0xff]  ;;  %v13584_v29 = vpop.xlane.xlu0 %4866 }
 0x990   : > { %v5229_v19 = vadd.f32 %v15507_v0, %v5211_v24  ;;  %v5632_v7 = vmax.f32 %v5616_v59, 0.0  ;;  %v5563_v11 = vadd.f32 %v5547_v22, %v5529_v38  ;;  %v5916_v5 = vmul.f32 %v13296_v31, %v12994_v2  ;;  %15591 = vst [vmem:[#allocation64_spill] sm:$0xff] %v13584_v29 }
 0x991   : > { %v5633_v27 = vmax.f32 %v5617_v44, 0.0  ;;  %v5596_v61 = vadd.f32 %v5580_v56, %v5562_v26  ;;  %v5917_v43 = vmul.f32 %v13301_v37, %v12994_v2  ;;  %v5934_v52 = vmul.f32 %v15587_v51, %v15586_v10 }
 0x992   : > { %v5597_v1 = vadd.f32 %v5581_v28, %v5563_v11  ;;  %v5935_v53 = vmul.f32 %v15588_v42, %v15586_v10  ;;  %v5968_v0 = vmul.f32 %v15590_v63, %v15589_v20  ;;  %v5969_v24 = vmul.f32 %v13326_v3, %v15589_v20 }
 0x993   : > { %v5244_v16 = vmax.f32 %v5228_v13, 0.0  ;;  %v5654_v38 = vadd.f32 %v5633_v27, %v5632_v7  ;;  %v5614_v12 = vadd.f32 %v15513_v49, %v5596_v61  ;;  %v5950_v59 = vadd.f32 %v5934_v52, %v5916_v5  ;;  %5457 = vadd.xlane.f32.xlu1 %v5456_v45  ;;  %v13610_v29 = vpop.xlane.xlu0 %5247 }
 0x994   : > { %v5615_v22 = vadd.f32 %v15513_v49, %v5597_v1  ;;  %v5951_v44 = vadd.f32 %v5935_v53, %v5917_v43  ;;  %v5914_v26 = vmul.f32 %v13334_v25, %v12994_v2  ;;  %v5915_v56 = vmul.f32 %v13341_v21, %v12994_v2  ;;  %v15592_v43 = vld [vmem:[#allocation66_spill] sm:$0xff]  ;;  %15595 = vst [vmem:[#allocation99_spill] sm:$0xff] %v13610_v29  ;;  %v15598_v29 = vld [vmem:[#allocation81_spill] sm:$0xff] }
 0x995   : > { %v5245_v28 = vmax.f32 %v5229_v19, 0.0  ;;  %5655 = vadd.xlane.f32.xlu0 %v5654_v38  ;;  %v5984_v11 = vadd.f32 %v5968_v0, %v5950_v59  ;;  %v5932_v13 = vmul.f32 %v13346_v33, %v15586_v10  ;;  %v5933_v7 = vmul.f32 %v13353_v23, %v15586_v10  ;;  %v15594_v59 = vld [vmem:[#allocation94_spill] sm:$0xff]  ;;  %v15618_v10 = vld [vmem:[#allocation63_spill] sm:$0xff] }
 0x996   : > { %v5630_v5 = vmax.f32 %v5614_v12, 0.0  ;;  %v5985_v45 = vadd.f32 %v5969_v24, %v5951_v44  ;;  %v5966_v27 = vmul.f32 %v13358_v34, %v15589_v20  ;;  %v5967_v61 = vmul.f32 %v13364_v6, %v15589_v20  ;;  %v15593_v24 = vld [vmem:[#allocation30_spill] sm:$0xff] }
 0x997   : > { %v6002_v52 = vadd.f32 %v15592_v43, %v5984_v11  ;;  %v5948_v1 = vadd.f32 %v5932_v13, %v5914_v26  ;;  %v5949_v19 = vadd.f32 %v5933_v7, %v5915_v56  ;;  %v6302_v53 = vmul.f32 %v13375_v41, %v13447_v55  ;;  %5841 = vadd.xlane.f32.xlu1 %v5840_v30  ;;  %v15596_v7 = vld [vmem:[#allocation48_spill] sm:$0xff] }
 0x998   : > { %v5631_v0 = vmax.f32 %v5615_v22, 0.0  ;;  %v6003_v38 = vadd.f32 %v15592_v43, %v5985_v45  ;;  %v6303_v12 = vmul.f32 %v15593_v24, %v13447_v55  ;;  %v6320_v44 = vmul.f32 %v15594_v59, %v13459_v36 }
 0x999   : > { %v6018_v11 = vmax.f32 %v6002_v52, 0.0  ;;  %v5982_v26 = vadd.f32 %v5966_v27, %v5948_v1  ;;  %v5983_v56 = vadd.f32 %v5967_v61, %v5949_v19  ;;  %v6321_v13 = vmul.f32 %v13390_v40, %v13459_v36 }
 0x99a   : > { %v6019_v30 = vmax.f32 %v6003_v38, 0.0  ;;  %v6336_v22 = vadd.f32 %v6320_v44, %v6302_v53  ;;  %v6354_v45 = vmul.f32 %v15596_v7, %v13472_v32  ;;  %v6355_v49 = vmul.f32 %v15597_v48, %v13472_v32  ;;  %v15599_v53 = vld [vmem:[#allocation69_spill] sm:$0xff] }
 0x99b   : > { %v5267_v62 = vadd.f32 %v5245_v28, %v5244_v16  ;;  %v6000_v52 = vadd.f32 %v15592_v43, %v5982_v26  ;;  %v6001_v27 = vadd.f32 %v15592_v43, %v5983_v56  ;;  %v6337_v61 = vadd.f32 %v6321_v13, %v6303_v12  ;;  %6222 = vadd.xlane.f32.xlu1 %v13559_v4 }
 0x99c   : > { %v6038_v1 = vadd.f32 %v6019_v30, %v6018_v11  ;;  %v6370_v19 = vadd.f32 %v6354_v45, %v6336_v22  ;;  %v6298_v38 = vmul.f32 %v15598_v29, %v13447_v55  ;;  %v6299_v44 = vmul.f32 %v15599_v53, %v13447_v55 }
 0x99d   : > { %v5651_v15 = vadd.f32 %v5631_v0, %v5630_v5  ;;  %v6016_v16 = vmax.f32 %v6000_v52, 0.0  ;;  %v6371_v28 = vadd.f32 %v6355_v49, %v6337_v61  ;;  %v6316_v26 = vmul.f32 %v13418_v47, %v13459_v36  ;;  %v13640_v5 = vpop.xlane.xlu0 %4485  ;;  %v15601_v52 = vld [vmem:[#allocation80_spill] sm:$0xff] }
 0x99e   : > { %6039 = vadd.xlane.f32.xlu0 %v6038_v1  ;;  %v6388_v4 = vadd.f32 %v13485_v14, %v6370_v19  ;;  %v6317_v12 = vmul.f32 %v13426_v18, %v13459_v36  ;;  %v6350_v11 = vmul.f32 %v13436_v57, %v13472_v32  ;;  %v6351_v56 = vmul.f32 %v13442_v39, %v13472_v32  ;;  %v15602_v1 = vld [vmem:[#allocation40_spill] sm:$0xff] }
 0x99f   : > { %15600 = vst [vmem:[#allocation36_spill] sm:$0xff] %v13640_v5  ;;  %v6017_v49 = vmax.f32 %v6001_v27, 0.0  ;;  %v6389_v0 = vadd.f32 %v13485_v14, %v6371_v28  ;;  %v6332_v13 = vadd.f32 %v6316_v26, %v6298_v38  ;;  %v13644_v30 = vstv %s13603_s13  ;;  %5268 = vadd.xlane.f32.xlu1 %v5267_v62  ;;  %v15603_v38 = vld [vmem:[#allocation44_spill] sm:$0xff]  ;;  %v15604_v62 = vld [vmem:[#allocation23_spill] sm:$0xff] }
 0x9a0   : > { %v6404_v22 = vmax.f32 %v6388_v4, 0.0  ;;  %v6333_v45 = vadd.f32 %v6317_v12, %v6299_v44  ;;  %v6495_v61 = vmul.f32 %v15601_v52, %v13644_v30  ;;  %v6496_v19 = vmul.f32 %v15602_v1, %v13644_v30  ;;  %v15605_v4 = vld [vmem:[#allocation60_spill] sm:$0xff] }
 0x9a1   : > { %v6405_v36 = vmax.f32 %v6389_v0, 0.0  ;;  %v6366_v32 = vadd.f32 %v6350_v11, %v6332_v13  ;;  %v13651_v55 = vstv %s13614_s10  ;;  %v13654_v27 = vstv %s13616_s8  ;;  %v15606_v11 = vld [vmem:[#allocation88_spill] sm:$0xff] }
 0x9a2   : > { %v6367_v28 = vadd.f32 %v6351_v56, %v6333_v45  ;;  %v6513_v26 = vmul.f32 %v15603_v38, %v13651_v55  ;;  %v6514_v44 = vmul.f32 %v15604_v62, %v13651_v55  ;;  %v6547_v12 = vmul.f32 %v15605_v4, %v13654_v27  ;;  %v13669_v38 = vpop.xlane.xlu0 %4869  ;;  %v15609_v4 = vld [vmem:[#allocation100_spill] sm:$0xff] }
 0x9a3   : > { %v6035_v52 = vadd.f32 %v6017_v49, %v6016_v16  ;;  %v6422_v5 = vadd.f32 %v6405_v36, %v6404_v22  ;;  %v6384_v0 = vadd.f32 %v13485_v14, %v6366_v32  ;;  %v6548_v13 = vmul.f32 %v15606_v11, %v13654_v27  ;;  %5652 = vadd.xlane.f32.xlu1 %v5651_v15  ;;  %v15610_v36 = vld [vmem:[#allocation76_spill] sm:$0xff]  ;;  %v15611_v49 = vld [vmem:[#allocation37_spill] sm:$0xff] }
 0x9a4   : > { %v6385_v1 = vadd.f32 %v13485_v14, %v6367_v28  ;;  %v6529_v56 = vadd.f32 %v6513_v26, %v6495_v61  ;;  %v6530_v45 = vadd.f32 %v6514_v44, %v6496_v19  ;;  %v13667_v43 = vstv %s13629_s12  ;;  %15607 = vst [vmem:[#allocation41_spill] sm:$0xff] %v13669_v38  ;;  %v15612_v22 = vld [vmem:[#allocation77_spill] sm:$0xff]  ;;  %v15614_v44 = vld [vmem:[#allocation47_spill] sm:$0xff] }
 0x9a5   : > { %6423 = vadd.xlane.f32.xlu0 %v6422_v5  ;;  %v6400_v62 = vmax.f32 %v6384_v0, 0.0  ;;  %v5337_v16 = vmul.f32 %v15609_v4, %v15608_v54  ;;  %v5338_v32 = vmul.f32 %v15610_v36, %v15608_v54  ;;  %v5355_v11 = vmul.f32 %v15612_v22, %v15611_v49  ;;  %v15613_v61 = vld [vmem:[#allocation25_spill] sm:$0xff]  ;;  %v15615_v38 = vld [vmem:[#allocation31_spill] sm:$0xff]  ;;  %v15617_v4 = vld [vmem:[#allocation78_spill] sm:$0xff] }
 0x9a6   : > { %v6401_v15 = vmax.f32 %v6385_v1, 0.0  ;;  %v6563_v20 = vadd.f32 %v6547_v12, %v6529_v56  ;;  %v6564_v28 = vadd.f32 %v6548_v13, %v6530_v45  ;;  %v5356_v19 = vmul.f32 %v15613_v61, %v15611_v49  ;;  %v15616_v0 = vld [vmem:[#allocation91_spill] sm:$0xff]  ;;  %v13687_v1 = vpop.xlane.xlu0 %5253  ;;  %v15620_v45 = vld [vmem:[#allocation32_spill] sm:$0xff] }
 0x9a7   : > { %v5371_v26 = vadd.f32 %v5355_v11, %v5337_v16  ;;  %v5389_v5 = vmul.f32 %v15615_v38, %v15614_v44  ;;  %v5390_v14 = vmul.f32 %v15616_v0, %v15614_v44  ;;  %v5725_v2 = vmul.f32 %v15618_v10, %v15617_v4  ;;  %6036 = vadd.xlane.f32.xlu1 %v6035_v52  ;;  %v15621_v49 = vld [vmem:[#allocation35_spill] sm:$0xff]  ;;  %v15622_v11 = vld [vmem:[#allocation92_spill] sm:$0xff] }
 0x9a8   : > { %v6416_v54 = vadd.f32 %v6401_v15, %v6400_v62  ;;  %v6581_v22 = vadd.f32 %v13667_v43, %v6563_v20  ;;  %v6582_v12 = vadd.f32 %v13667_v43, %v6564_v28  ;;  %v5372_v13 = vadd.f32 %v5356_v19, %v5338_v32  ;;  %15619 = vst [vmem:[#allocation57_spill] sm:$0xff] %v13687_v1  ;;  %v15623_v44 = vld [vmem:[#allocation95_spill] sm:$0xff]  ;;  %v15624_v15 = vld [vmem:[#allocation45_spill] sm:$0xff]  ;;  %v15625_v28 = vld [vmem:[#allocation74_spill] sm:$0xff] }
 0x9a9   : > { %v5405_v56 = vadd.f32 %v5389_v5, %v5371_v26  ;;  %v5726_v16 = vmul.f32 %v15620_v45, %v15617_v4  ;;  %v5743_v38 = vmul.f32 %v15622_v11, %v15621_v49  ;;  %v5744_v0 = vmul.f32 %v15623_v44, %v15621_v49 }
 0x9aa   : > { %v6597_v61 = vmax.f32 %v6581_v22, 0.0  ;;  %v6598_v52 = vmax.f32 %v6582_v12, 0.0  ;;  %v5406_v62 = vadd.f32 %v5390_v14, %v5372_v13  ;;  %v5777_v20 = vmul.f32 %v13539_v46, %v15624_v15 }
 0x9ab   : > { %v5423_v32 = vadd.f32 %v15625_v28, %v5405_v56  ;;  %v5759_v19 = vadd.f32 %v5743_v38, %v5725_v2  ;;  %v5760_v1 = vadd.f32 %v5744_v0, %v5726_v16  ;;  %v5778_v26 = vmul.f32 %v13544_v58, %v15624_v15  ;;  %6417 = vadd.xlane.f32.xlu1 %v6416_v54  ;;  %v13711_v0 = vpop.xlane.xlu0 %5445  ;;  %v15627_v54 = vld [vmem:[#allocation43_spill] sm:$0xff] }
 0x9ac   : > { %v6614_v5 = vadd.f32 %v6598_v52, %v6597_v61  ;;  %v5424_v36 = vadd.f32 %v15625_v28, %v5406_v62  ;;  %v5723_v44 = vmul.f32 %v13261_v9, %v15617_v4  ;;  %v5724_v13 = vmul.f32 %v13268_v50, %v15617_v4  ;;  %15626 = vst [vmem:[#allocation65_spill] sm:$0xff] %v13711_v0  ;;  %v15628_v62 = vld [vmem:[#allocation70_spill] sm:$0xff]  ;;  %v15630_v4 = vld [vmem:[#allocation24_spill] sm:$0xff] }
 0x9ad   : > { %v5439_v22 = vmax.f32 %v5423_v32, 0.0  ;;  %v5793_v12 = vadd.f32 %v5777_v20, %v5759_v19  ;;  %v5794_v14 = vadd.f32 %v5778_v26, %v5760_v1  ;;  %v5741_v2 = vmul.f32 %v13273_v35, %v15621_v49 }
 0x9ae   : > { %6615 = vadd.xlane.f32.xlu0 %v6614_v5  ;;  %v5440_v56 = vmax.f32 %v5424_v36, 0.0  ;;  %v5742_v38 = vmul.f32 %v13278_v8, %v15621_v49  ;;  %v5775_v61 = vmul.f32 %v13291_v60, %v15624_v15  ;;  %v5776_v52 = vmul.f32 %v13311_v17, %v15624_v15  ;;  %v15629_v49 = vld [vmem:[#allocation38_spill] sm:$0xff] }
 0x9af   : > { %v5811_v16 = vadd.f32 %v15627_v54, %v5793_v12  ;;  %v5812_v1 = vadd.f32 %v15627_v54, %v5794_v14  ;;  %v6111_v36 = vmul.f32 %v13296_v31, %v15628_v62  ;;  %v5757_v28 = vadd.f32 %v5741_v2, %v5723_v44 }
 0x9b0   : > { %v5462_v20 = vadd.f32 %v5440_v56, %v5439_v22  ;;  %v5758_v32 = vadd.f32 %v5742_v38, %v5724_v13  ;;  %v6112_v19 = vmul.f32 %v13301_v37, %v15628_v62  ;;  %v6129_v0 = vmul.f32 %v15587_v51, %v15629_v49 }
 0x9b1   : > { %v5827_v26 = vmax.f32 %v5811_v16, 0.0  ;;  %v5828_v5 = vmax.f32 %v5812_v1, 0.0  ;;  %v6130_v12 = vmul.f32 %v15588_v42, %v15629_v49  ;;  %v5791_v14 = vadd.f32 %v5775_v61, %v5757_v28  ;;  %v13735_v1 = vpop.xlane.xlu0 %4680 }
 0x9b2   : > { %5463 = vadd.xlane.f32.xlu1 %v5462_v20  ;;  %v5792_v15 = vadd.f32 %v5776_v52, %v5758_v32  ;;  %v6163_v17 = vmul.f32 %v15590_v63, %v15630_v4  ;;  %v6164_v44 = vmul.f32 %v13326_v3, %v15630_v4  ;;  %v6145_v13 = vadd.f32 %v6129_v0, %v6111_v36 }
 0x9b3   : > { %v5849_v22 = vadd.f32 %v5828_v5, %v5827_v26  ;;  %v6146_v56 = vadd.f32 %v6130_v12, %v6112_v19  ;;  %v5809_v2 = vadd.f32 %v15627_v54, %v5791_v14  ;;  %v6109_v16 = vmul.f32 %v13334_v25, %v15628_v62  ;;  %15631 = vst [vmem:[#allocation33_spill] sm:$0xff] %v13735_v1  ;;  %v15633_v26 = vld [vmem:[#allocation72_spill] sm:$0xff] }
 0x9b4   : > { %v5810_v38 = vadd.f32 %v15627_v54, %v5792_v15  ;;  %v6110_v61 = vmul.f32 %v13341_v21, %v15628_v62  ;;  %v13737_v52 = vpop.xlane.xlu1 %4344  ;;  %v6179_v20 = vadd.f32 %v6163_v17, %v6145_v13  ;;  %v6127_v0 = vmul.f32 %v13346_v33, %v15629_v49 }
 0x9b5   : > { %5850 = vadd.xlane.f32.xlu0 %v5849_v22  ;;  %15632 = vst [vmem:[#allocation28_spill] sm:$0xff] %v13737_v52  ;;  %v6180_v28 = vadd.f32 %v6164_v44, %v6146_v56  ;;  %v6128_v36 = vmul.f32 %v13353_v23, %v15629_v49  ;;  %v5825_v15 = vmax.f32 %v5809_v2, 0.0  ;;  %v6161_v19 = vmul.f32 %v13358_v34, %v15630_v4 }
 0x9b6   : > { %v5826_v32 = vmax.f32 %v5810_v38, 0.0  ;;  %v6197_v5 = vadd.f32 %v15633_v26, %v6179_v20  ;;  %v6143_v14 = vadd.f32 %v6127_v0, %v6109_v16  ;;  %v6162_v17 = vmul.f32 %v13364_v6, %v15630_v4 }
 0x9b7   : > { %v6198_v12 = vadd.f32 %v15633_v26, %v6180_v28  ;;  %v6144_v22 = vadd.f32 %v6128_v36, %v6110_v61  ;;  %v6497_v44 = vmul.f32 %v13375_v41, %v13644_v30  ;;  %v6498_v13 = vmul.f32 %v15593_v24, %v13644_v30  ;;  %v13761_v41 = vpop.xlane.xlu0 %5064 }
 0x9b8   : > { %v5846_v52 = vadd.f32 %v5826_v32, %v5825_v15  ;;  %v6213_v56 = vmax.f32 %v6197_v5, 0.0  ;;  %v6177_v38 = vadd.f32 %v6161_v19, %v6143_v14  ;;  %v13753_v1 = vpop.xlane.xlu1 %4470  ;;  %v6515_v20 = vmul.f32 %v15594_v59, %v13651_v55  ;;  %15634 = vst [vmem:[#allocation93_spill] sm:$0xff] %v13761_v41 }
 0x9b9   : > { %v6214_v2 = vmax.f32 %v6198_v12, 0.0  ;;  %v6178_v16 = vadd.f32 %v6162_v17, %v6144_v22  ;;  %v6516_v61 = vmul.f32 %v13390_v40, %v13651_v55  ;;  %v6549_v28 = vmul.f32 %v15596_v7, %v13654_v27 }
 0x9ba   : > { %5847 = vadd.xlane.f32.xlu1 %v5846_v52  ;;  %v6195_v24 = vadd.f32 %v15633_v26, %v6177_v38  ;;  %v6531_v36 = vadd.f32 %v6515_v20, %v6497_v44  ;;  %v6550_v15 = vmul.f32 %v15597_v48, %v13654_v27  ;;  %v6493_v40 = vmul.f32 %v15598_v29, %v13644_v30 }
 0x9bb   : > { %v6233_v0 = vadd.f32 %v6214_v2, %v6213_v56  ;;  %v6196_v32 = vadd.f32 %v15633_v26, %v6178_v16  ;;  %v6532_v59 = vadd.f32 %v6516_v61, %v6498_v13  ;;  %v6494_v7 = vmul.f32 %v15599_v53, %v13644_v30  ;;  %v13783_v38 = vpop.xlane.xlu0 %5448 }
 0x9bc   : > { %v6211_v52 = vmax.f32 %v6195_v24, 0.0  ;;  %v6565_v19 = vadd.f32 %v6549_v28, %v6531_v36  ;;  %v13771_v5 = vpop.xlane.xlu1 %4662  ;;  %v6511_v22 = vmul.f32 %v13418_v47, %v13651_v55  ;;  %v6512_v48 = vmul.f32 %v13426_v18, %v13651_v55  ;;  %15635 = vst [vmem:[#allocation30_spill] sm:$0xff] %v13783_v38  ;;  %v15636_v47 = vld [vmem:[#allocation22_spill] sm:$0xff]  ;;  %v15638_v36 = vld [vmem:[#allocation95_spill] sm:$0xff]  ;;  %v15645_v38 = vld [vmem:[#allocation77_spill] sm:$0xff] }
 0x9bd   : > { %6234 = vadd.xlane.f32.xlu0 %v6233_v0  ;;  %v6212_v12 = vmax.f32 %v6196_v32, 0.0  ;;  %v6566_v14 = vadd.f32 %v6550_v15, %v6532_v59  ;;  %v6545_v44 = vmul.f32 %v13436_v57, %v13654_v27  ;;  %v6546_v29 = vmul.f32 %v13442_v39, %v13654_v27  ;;  %v15637_v0 = vld [vmem:[#allocation42_spill] sm:$0xff]  ;;  %v15639_v32 = vld [vmem:[#allocation59_spill] sm:$0xff] }
 0x9be   : > { %v6583_v17 = vadd.f32 %v13667_v43, %v6565_v19  ;;  %v6527_v56 = vadd.f32 %v6511_v22, %v6493_v40  ;;  %v6528_v2 = vadd.f32 %v6512_v48, %v6494_v7  ;;  %v5920_v16 = vmul.f32 %v15618_v10, %v15636_v47  ;;  %v15640_v22 = vld [vmem:[#allocation83_spill] sm:$0xff]  ;;  %v15641_v48 = vld [vmem:[#allocation100_spill] sm:$0xff] }
 0x9bf   : > { %v6230_v13 = vadd.f32 %v6212_v12, %v6211_v52  ;;  %v6584_v53 = vadd.f32 %v13667_v43, %v6566_v14  ;;  %v5921_v18 = vmul.f32 %v15620_v45, %v15636_v47  ;;  %v5938_v24 = vmul.f32 %v15622_v11, %v15637_v0  ;;  %v15651_v11 = vld [vmem:[#allocation82_spill] sm:$0xff] }
 0x9c0   : > { %v6599_v20 = vmax.f32 %v6583_v17, 0.0  ;;  %v13789_v61 = vpop.xlane.xlu1 %4476  ;;  %v6561_v28 = vadd.f32 %v6545_v44, %v6527_v56  ;;  %v6562_v39 = vadd.f32 %v6546_v29, %v6528_v2  ;;  %v5939_v15 = vmul.f32 %v15638_v36, %v15637_v0  ;;  %v15642_v44 = vld [vmem:[#allocation76_spill] sm:$0xff]  ;;  %v15644_v2 = vld [vmem:[#allocation85_spill] sm:$0xff] }
 0x9c1   : > { %6231 = vadd.xlane.f32.xlu1 %v6230_v13  ;;  %v6600_v57 = vmax.f32 %v6584_v53, 0.0  ;;  %v5972_v59 = vmul.f32 %v13539_v46, %v15639_v32  ;;  %v5973_v52 = vmul.f32 %v13544_v58, %v15639_v32  ;;  %v5954_v12 = vadd.f32 %v5938_v24, %v5920_v16  ;;  %v15647_v24 = vld [vmem:[#allocation86_spill] sm:$0xff] }
 0x9c2   : > { %v6579_v40 = vadd.f32 %v13667_v43, %v6561_v28  ;;  %v6580_v7 = vadd.f32 %v13667_v43, %v6562_v39  ;;  %v5955_v14 = vadd.f32 %v5939_v15, %v5921_v18  ;;  %v5532_v17 = vmul.f32 %v15641_v48, %v15640_v22  ;;  %v13811_v39 = vpop.xlane.xlu0 %5640  ;;  %v15648_v15 = vld [vmem:[#allocation31_spill] sm:$0xff] }
 0x9c3   : > { %v6617_v19 = vadd.f32 %v6600_v57, %v6599_v20  ;;  %v5533_v29 = vmul.f32 %v15642_v44, %v15640_v22  ;;  %v5550_v20 = vmul.f32 %v15645_v38, %v15644_v2  ;;  %v15646_v57 = vld [vmem:[#allocation25_spill] sm:$0xff]  ;;  %v5988_v16 = vadd.f32 %v5972_v59, %v5954_v12  ;;  %v15649_v22 = vld [vmem:[#allocation91_spill] sm:$0xff] }
 0x9c4   : > { %v13805_v13 = vpop.xlane.xlu1 %4857  ;;  %v6595_v53 = vmax.f32 %v6579_v40, 0.0  ;;  %v6596_v56 = vmax.f32 %v6580_v7, 0.0  ;;  %v5551_v28 = vmul.f32 %v15646_v57, %v15644_v2  ;;  %v5989_v18 = vadd.f32 %v5973_v52, %v5955_v14  ;;  %v15650_v7 = vld [vmem:[#allocation66_spill] sm:$0xff] }
 0x9c5   : > { %15643 = vst [vmem:[#allocation94_spill] sm:$0xff] %v13805_v13  ;;  %6618 = vadd.xlane.f32.xlu0 %v6617_v19  ;;  %v5584_v41 = vmul.f32 %v15648_v15, %v15647_v24  ;;  %v5585_v58 = vmul.f32 %v15649_v22, %v15647_v24  ;;  %v5566_v19 = vadd.f32 %v5550_v20, %v5532_v17 }
 0x9c6   : > { %v6611_v13 = vadd.f32 %v6596_v56, %v6595_v53  ;;  %v5567_v40 = vadd.f32 %v5551_v28, %v5533_v29  ;;  %v6006_v46 = vadd.f32 %v15650_v7, %v5988_v16  ;;  %v6007_v36 = vadd.f32 %v15650_v7, %v5989_v18  ;;  %v15652_v53 = vld [vmem:[#allocation71_spill] sm:$0xff]  ;;  %v15654_v28 = vld [vmem:[#allocation84_spill] sm:$0xff] }
 0x9c7   : > { %v6306_v2 = vmul.f32 %v13296_v31, %v15651_v11  ;;  %v5600_v59 = vadd.f32 %v5584_v41, %v5566_v19  ;;  %v6307_v12 = vmul.f32 %v13301_v37, %v15651_v11  ;;  %v6324_v17 = vmul.f32 %v15587_v51, %v15652_v53  ;;  %v15653_v56 = vld [vmem:[#allocation87_spill] sm:$0xff]  ;;  %v13835_v41 = vpop.xlane.xlu0 %4875 }
 0x9c8   : > { %v13821_v45 = vpop.xlane.xlu1 %4479  ;;  %6612 = vadd.xlane.f32.xlu1 %v6611_v13  ;;  %v5601_v52 = vadd.f32 %v5585_v58, %v5567_v40  ;;  %v6022_v14 = vmax.f32 %v6006_v46, 0.0  ;;  %v6023_v24 = vmax.f32 %v6007_v36, 0.0  ;;  %v6325_v29 = vmul.f32 %v15588_v42, %v15652_v53  ;;  %15655 = vst [vmem:[#allocation48_spill] sm:$0xff] %v13835_v41 }
 0x9c9   : > { %v5618_v20 = vadd.f32 %v15653_v56, %v5600_v59  ;;  %v6358_v13 = vmul.f32 %v15590_v63, %v15654_v28  ;;  %v6359_v58 = vmul.f32 %v13326_v3, %v15654_v28  ;;  %v6340_v46 = vadd.f32 %v6324_v17, %v6306_v2 }
 0x9ca   : > { %v5619_v31 = vadd.f32 %v15653_v56, %v5601_v52  ;;  %v6044_v37 = vadd.f32 %v6023_v24, %v6022_v14  ;;  %v6341_v36 = vadd.f32 %v6325_v29, %v6307_v12  ;;  %v5918_v42 = vmul.f32 %v13261_v9, %v15636_v47  ;;  %v15656_v12 = vld [vmem:[#allocation62_spill] sm:$0xff]  ;;  %v15657_v24 = vld [vmem:[#allocation75_spill] sm:$0xff] }
 0x9cb   : > { %v5634_v51 = vmax.f32 %v5618_v20, 0.0  ;;  %v5919_v19 = vmul.f32 %v13268_v50, %v15636_v47  ;;  %v6374_v63 = vadd.f32 %v6358_v13, %v6340_v46  ;;  %v5936_v3 = vmul.f32 %v13273_v35, %v15637_v0  ;;  %v13861_v46 = vpop.xlane.xlu0 %5259 }
 0x9cc   : > { %v13837_v16 = vpop.xlane.xlu1 %4863  ;;  %v5635_v18 = vmax.f32 %v5619_v31, 0.0  ;;  %6045 = vadd.xlane.f32.xlu0 %v6044_v37  ;;  %v6375_v40 = vadd.f32 %v6359_v58, %v6341_v36  ;;  %v5937_v2 = vmul.f32 %v13278_v8, %v15637_v0  ;;  %v5970_v52 = vmul.f32 %v13291_v60, %v15639_v32  ;;  %15658 = vst [vmem:[#allocation79_spill] sm:$0xff] %v13861_v46 }
 0x9cd   : > { %v5971_v14 = vmul.f32 %v15656_v12, %v15639_v32  ;;  %v6392_v17 = vadd.f32 %v15657_v24, %v6374_v63  ;;  %v5952_v56 = vadd.f32 %v5936_v3, %v5918_v42  ;;  %v5922_v13 = vmul.f32 %v15641_v48, %v15636_v47 }
 0x9ce   : > { %v5657_v59 = vadd.f32 %v5635_v18, %v5634_v51  ;;  %v6393_v29 = vadd.f32 %v15657_v24, %v6375_v40  ;;  %v5953_v20 = vadd.f32 %v5937_v2, %v5919_v19  ;;  %v5923_v58 = vmul.f32 %v15642_v44, %v15636_v47  ;;  %v15659_v47 = vld [vmem:[#allocation61_spill] sm:$0xff]  ;;  %v15660_v2 = vld [vmem:[#allocation58_spill] sm:$0xff] }
 0x9cf   : > { %v5940_v37 = vmul.f32 %v15645_v38, %v15637_v0  ;;  %v6408_v36 = vmax.f32 %v6392_v17, 0.0  ;;  %v5986_v18 = vadd.f32 %v5970_v52, %v5952_v56  ;;  %v5941_v42 = vmul.f32 %v15646_v57, %v15637_v0 }
 0x9d0   : > { %v13853_v31 = vpop.xlane.xlu1 %5055  ;;  %5658 = vadd.xlane.f32.xlu1 %v5657_v59  ;;  %v6409_v51 = vmax.f32 %v6393_v29, 0.0  ;;  %v5987_v63 = vadd.f32 %v5971_v14, %v5953_v20  ;;  %v5974_v40 = vmul.f32 %v15648_v15, %v15639_v32  ;;  %v5975_v3 = vmul.f32 %v15649_v22, %v15639_v32 }
 0x9d1   : > { %v5956_v19 = vadd.f32 %v5940_v37, %v5922_v13  ;;  %v4501_v59 = vrot.slane %v15660_v2, %v15659_v47  ;;  %v6004_v46 = vadd.f32 %v15650_v7, %v5986_v18  ;;  %v5957_v14 = vadd.f32 %v5941_v42, %v5923_v58  ;;  %v13888_v18 = vpop.xlane.xlu0 %5643 }
 0x9d2   : > { %v6428_v41 = vadd.f32 %v6409_v51, %v6408_v36  ;;  %v6005_v17 = vadd.f32 %v15650_v7, %v5987_v63  ;;  %v6304_v0 = vmul.f32 %v13334_v25, %v15651_v11  ;;  %v6305_v56 = vmul.f32 %v13341_v21, %v15651_v11  ;;  %15661 = vst [vmem:[#allocation81_spill] sm:$0xff] %v13888_v18  ;;  %v15662_v21 = vld [vmem:[#allocation73_spill] sm:$0xff] }
 0x9d3   : > { %v5990_v29 = vadd.f32 %v5974_v40, %v5956_v19  ;;  %v6020_v32 = vmax.f32 %v6004_v46, 0.0  ;;  %v6322_v13 = vmul.f32 %v13346_v33, %v15652_v53  ;;  %v6323_v37 = vmul.f32 %v13353_v23, %v15652_v53 }
 0x9d4   : > { %v13873_v52 = vpop.xlane.xlu1 %4674  ;;  %6429 = vadd.xlane.f32.xlu0 %v6428_v41  ;;  %v6021_v20 = vmax.f32 %v6005_v17, 0.0  ;;  %v5991_v36 = vadd.f32 %v5975_v3, %v5957_v14  ;;  %v6356_v58 = vmul.f32 %v13358_v34, %v15654_v28  ;;  %v6357_v25 = vmul.f32 %v13364_v6, %v15654_v28  ;;  %v15663_v6 = vld [vmem:[#allocation89_spill] sm:$0xff] }
 0x9d5   : > { %v6008_v51 = vadd.f32 %v15650_v7, %v5990_v29  ;;  %v6338_v63 = vadd.f32 %v6322_v13, %v6304_v0  ;;  %v6339_v33 = vadd.f32 %v6323_v37, %v6305_v56  ;;  %v6308_v40 = vmul.f32 %v13261_v9, %v15651_v11 }
 0x9d6   : > { %v6041_v46 = vadd.f32 %v6021_v20, %v6020_v32  ;;  %v6009_v23 = vadd.f32 %v15650_v7, %v5991_v36  ;;  %v6309_v34 = vmul.f32 %v13268_v50, %v15651_v11  ;;  %v4700_v3 = vrot.slane %v15663_v6, %v15659_v47  ;;  %v15664_v50 = vld [vmem:[#allocation67_spill] sm:$0xff]  ;;  %v15672_v6 = vld [vmem:[#allocation90_spill] sm:$0xff] }
 0x9d7   : > { %v6024_v19 = vmax.f32 %v6008_v51, 0.0  ;;  %v6372_v17 = vadd.f32 %v6356_v58, %v6338_v63  ;;  %v6373_v14 = vadd.f32 %v6357_v25, %v6339_v33  ;;  %v6326_v29 = vmul.f32 %v13273_v35, %v15652_v53  ;;  %v15665_v58 = vld [vmem:[#allocation78_spill] sm:$0xff]  ;;  %v13919_v25 = vpop.xlane.xlu0 %5835  ;;  %v15667_v33 = vld [vmem:[#allocation35_spill] sm:$0xff] }
 0x9d8   : > { %v13892_v42 = vpop.xlane.xlu1 %5058  ;;  %6042 = vadd.xlane.f32.xlu1 %v6041_v46  ;;  %v6025_v0 = vmax.f32 %v6009_v23, 0.0  ;;  %v6327_v7 = vmul.f32 %v13278_v8, %v15652_v53  ;;  %v6360_v56 = vmul.f32 %v13291_v60, %v15654_v28  ;;  %v6361_v9 = vmul.f32 %v15656_v12, %v15654_v28  ;;  %15666 = vst [vmem:[#allocation69_spill] sm:$0xff] %v13919_v25 }
 0x9d9   : > { %v6390_v20 = vadd.f32 %v15657_v24, %v6372_v17  ;;  %v6391_v13 = vadd.f32 %v15657_v24, %v6373_v14  ;;  %v6342_v37 = vadd.f32 %v6326_v29, %v6308_v40  ;;  %v5727_v8 = vmul.f32 %v15641_v48, %v15665_v58 }
 0x9da   : > { %v6047_v35 = vadd.f32 %v6025_v0, %v6024_v19  ;;  %v6343_v51 = vadd.f32 %v6327_v7, %v6309_v34  ;;  %v5728_v60 = vmul.f32 %v15642_v44, %v15665_v58  ;;  %v5745_v23 = vmul.f32 %v15645_v38, %v15667_v33  ;;  %v15668_v34 = vld [vmem:[#allocation45_spill] sm:$0xff] }
 0x9db   : > { %v6406_v12 = vmax.f32 %v6390_v20, 0.0  ;;  %v6407_v46 = vmax.f32 %v6391_v13, 0.0  ;;  %v6376_v63 = vadd.f32 %v6360_v56, %v6342_v37  ;;  %v5746_v19 = vmul.f32 %v15646_v57, %v15667_v33 }
 0x9dc   : > { %v13913_v36 = vpop.xlane.xlu1 %5250  ;;  %6048 = vadd.xlane.f32.xlu0 %v6047_v35  ;;  %v6377_v40 = vadd.f32 %v6361_v9, %v6343_v51  ;;  %v5779_v17 = vmul.f32 %v15648_v15, %v15668_v34  ;;  %v5780_v14 = vmul.f32 %v15649_v22, %v15668_v34  ;;  %v4505_v29 = vrot.slane %v13753_v1, %v15659_v47  ;;  %v15669_v9 = vld [vmem:[#allocation68_spill] sm:$0xff]  ;;  %v13956_v34 = vpop.xlane.xlu0 %5070 }
 0x9dd   : > { %v6425_v0 = vadd.f32 %v6407_v46, %v6406_v12  ;;  %v6394_v7 = vadd.f32 %v15657_v24, %v6376_v63  ;;  %v5761_v56 = vadd.f32 %v5745_v23, %v5727_v8  ;;  %v5762_v35 = vadd.f32 %v5746_v19, %v5728_v60  ;;  %v13938_v51 = vld [vmem:[%s8017_s9 + $0xf0] sm:$0xff]  ;;  %v13945_v46 = vld [vmem:[%s8017_s9 + $0xf8] sm:$0xff]  ;;  %v15670_v60 = vld [vmem:[#allocation34_spill] sm:$0xff]  ;;  %15671 = vst [vmem:[#allocation80_spill] sm:$0xff] %v13956_v34 }
 0x9de   : > { %v6395_v37 = vadd.f32 %v15657_v24, %v6377_v40  ;;  %v6113_v58 = vmul.f32 %v13938_v51, %v15628_v62  ;;  %v4696_v1 = vrot.slane %v13771_v5, %v15659_v47  ;;  %v6114_v63 = vmul.f32 %v13945_v46, %v15628_v62  ;;  %v13952_v19 = vld [vmem:[%s8017_s9 + $0x100] sm:$0xff]  ;;  %v7573_v34 = vld [vmem:[%s8017_s9 + $0x90] sm:$0xff] }
 0x9df   : > { %6426 = vadd.xlane.f32.xlu1 %v6425_v0  ;;  %v6410_v8 = vmax.f32 %v6394_v7, 0.0  ;;  %v5795_v12 = vadd.f32 %v5779_v17, %v5761_v56  ;;  %v5796_v40 = vadd.f32 %v5780_v14, %v5762_v35  ;;  %v6131_v5 = vmul.f32 %v13952_v19, %v15629_v49  ;;  %v13964_v7 = vld [vmem:[%s8017_s9 + $0x108] sm:$0xff]  ;;  %v13969_v56 = vld [vmem:[%s8017_s9 + $0x110] sm:$0xff] }
 0x9e0   : > { %v13932_v20 = vpop.xlane.xlu1 %4677  ;;  %v6411_v23 = vmax.f32 %v6395_v37, 0.0  ;;  %v4530_v17 = vsel %vm622_vm1, %v4505_v29, %v4501_v59  ;;  %v6132_v14 = vmul.f32 %v13964_v7, %v15629_v49  ;;  %v6165_v37 = vmul.f32 %v13969_v56, %v15630_v4  ;;  %v13977_v29 = vld [vmem:[%s8017_s9 + $0x118] sm:$0xff] }
 0x9e1   : > { %v5813_v0 = vadd.f32 %v15627_v54, %v5795_v12  ;;  %v5814_v33 = vadd.f32 %v15627_v54, %v5796_v40  ;;  %v6147_v59 = vadd.f32 %v6131_v5, %v6113_v58  ;;  %v6166_v12 = vmul.f32 %v13977_v29, %v15630_v4  ;;  %v7575_v5 = vld [vmem:[%s8017_s9 + $0xa0] sm:$0xff] }
 0x9e2   : > { %v6431_v2 = vadd.f32 %v6411_v23, %v6410_v8  ;;  %v4725_v13 = vsel %vm622_vm1, %v4700_v3, %v4696_v1  ;;  %v6148_v32 = vadd.f32 %v6132_v14, %v6114_v63  ;;  %v6499_v8 = vmul.f32 %v7573_v34, %v13644_v30  ;;  %v7574_v23 = vld [vmem:[%s8017_s9 + $0x98] sm:$0xff]  ;;  %v7576_v1 = vld [vmem:[%s8017_s9 + $0xa8] sm:$0xff] }
 0x9e3   : > { %v5829_v41 = vmax.f32 %v5813_v0, 0.0  ;;  %v5830_v54 = vmax.f32 %v5814_v33, 0.0  ;;  %v6181_v58 = vadd.f32 %v6165_v37, %v6147_v59  ;;  %v6500_v40 = vmul.f32 %v7574_v23, %v13644_v30  ;;  %v7577_v0 = vld [vmem:[%s8017_s9 + $0xb0] sm:$0xff]  ;;  %v7578_v59 = vld [vmem:[%s8017_s9 + $0xb8] sm:$0xff] }
 0x9e4   : > { %v13973_v35 = vpop.xlane.xlu1 %5061  ;;  %6432 = vadd.xlane.f32.xlu0 %v6431_v2  ;;  %v6517_v18 = vmul.f32 %v7575_v5, %v13651_v55  ;;  %v6182_v3 = vadd.f32 %v6166_v12, %v6148_v32  ;;  %v6518_v63 = vmul.f32 %v7576_v1, %v13651_v55  ;;  %v6551_v34 = vmul.f32 %v7577_v0, %v13654_v27  ;;  %v14002_v5 = vpop.xlane.xlu0 %5454  ;;  %v15674_v1 = vld [vmem:[#allocation98_spill] sm:$0xff] }
 0x9e5   : > { %v5852_v33 = vadd.f32 %v5830_v54, %v5829_v41  ;;  %v6199_v37 = vadd.f32 %v15633_v26, %v6181_v58  ;;  %v6552_v23 = vmul.f32 %v7578_v59, %v13654_v27  ;;  %v15673_v32 = vrot.slane %v15664_v50, %v15659_v47 }
 0x9e6   : > { %v6533_v2 = vadd.f32 %v6517_v18, %v6499_v8  ;;  %v6200_v25 = vadd.f32 %v15633_v26, %v6182_v3  ;;  %v6534_v41 = vadd.f32 %v6518_v63, %v6500_v40  ;;  %v6117_v8 = vmul.f32 %v15641_v48, %v15628_v62 }
 0x9e7   : > { %v14008_v12 = vsel %vm624_vm2, %v15673_v32, %v4725_v13  ;;  %5853 = vadd.xlane.f32.xlu1 %v5852_v33  ;;  %v6215_v54 = vmax.f32 %v6199_v37, 0.0  ;;  %v6118_v58 = vmul.f32 %v15642_v44, %v15628_v62  ;;  %v4513_v50 = vrot.slane %v13789_v61, %v15659_v47 }
 0x9e8   : > { %v13997_v14 = vpop.xlane.xlu1 %5442  ;;  %v6567_v18 = vadd.f32 %v6551_v34, %v6533_v2  ;;  %v6216_v13 = vmax.f32 %v6200_v25, 0.0  ;;  %v6568_v59 = vadd.f32 %v6552_v23, %v6534_v41  ;;  %v6135_v32 = vmul.f32 %v15645_v38, %v15629_v49  ;;  %v15676_v2 = vld [vmem:[#allocation32_spill] sm:$0xff]  ;;  %v14039_v23 = vpop.xlane.xlu0 %5838 }
 0x9e9   : > { %v6136_v3 = vmul.f32 %v15646_v57, %v15629_v49  ;;  %v6169_v48 = vmul.f32 %v15648_v15, %v15630_v4  ;;  %v6170_v44 = vmul.f32 %v15649_v22, %v15630_v4  ;;  %v15675_v61 = vrot.slane %v15662_v21, %v15659_v47  ;;  %v15677_v21 = vld [vmem:[#allocation92_spill] sm:$0xff] }
 0x9ea   : > { %v6585_v40 = vadd.f32 %v13667_v43, %v6567_v18  ;;  %v6236_v63 = vadd.f32 %v6216_v13, %v6215_v54  ;;  %v6586_v38 = vadd.f32 %v13667_v43, %v6568_v59  ;;  %v6151_v34 = vadd.f32 %v6135_v32, %v6117_v8  ;;  %v15678_v54 = vld [vmem:[#allocation95_spill] sm:$0xff]  ;;  %v15679_v13 = vld [vmem:[#allocation96_spill] sm:$0xff]  ;;  %v15680_v59 = vld [vmem:[#allocation97_spill] sm:$0xff] }
 0x9eb   : > { %v4531_v25 = vsel %vm624_vm2, %v15675_v61, %v4530_v17  ;;  %v6152_v37 = vadd.f32 %v6136_v3, %v6118_v58  ;;  %v6115_v57 = vmul.f32 %v15618_v10, %v15628_v62  ;;  %v6116_v15 = vmul.f32 %v15676_v2, %v15628_v62 }
 0x9ec   : > { %v14021_v0 = vpop.xlane.xlu1 %4488  ;;  %v6601_v33 = vmax.f32 %v6585_v40, 0.0  ;;  %6237 = vadd.xlane.f32.xlu1 %v6236_v63  ;;  %v6602_v22 = vmax.f32 %v6586_v38, 0.0  ;;  %v6185_v41 = vadd.f32 %v6169_v48, %v6151_v34  ;;  %v6133_v17 = vmul.f32 %v15677_v21, %v15629_v49  ;;  %v15681_v63 = vld [vmem:[#allocation64_spill] sm:$0xff] }
 0x9ed   : > { %v6134_v18 = vmul.f32 %v15678_v54, %v15629_v49  ;;  %v14048_v58 = vsel %vm626_vm3, %v4513_v50, %v4531_v25  ;;  %v6186_v10 = vadd.f32 %v6170_v44, %v6152_v37  ;;  %v6167_v62 = vmul.f32 %v15679_v13, %v15630_v4 }
 0x9ee   : > { %v6168_v32 = vmul.f32 %v15680_v59, %v15630_v4  ;;  %v6620_v40 = vadd.f32 %v6602_v22, %v6601_v33  ;;  %v6203_v3 = vadd.f32 %v15633_v26, %v6185_v41  ;;  %v6149_v48 = vadd.f32 %v6133_v17, %v6115_v57  ;;  %v15682_v22 = vld [vmem:[#allocation99_spill] sm:$0xff] }
 0x9ef   : > { %v6150_v61 = vadd.f32 %v6134_v18, %v6116_v15  ;;  %v6204_v38 = vadd.f32 %v15633_v26, %v6186_v10  ;;  %v6503_v50 = vmul.f32 %v13938_v51, %v13644_v30  ;;  %v6504_v44 = vmul.f32 %v13945_v46, %v13644_v30  ;;  %v14072_v15 = vpop.xlane.xlu0 %6030  ;;  %v7579_v18 = vld [vmem:[%s8017_s9 + $0xc0] sm:$0xff]  ;;  %v7580_v10 = vld [vmem:[%s8017_s9 + $0xc8] sm:$0xff] }
 0x9f0   : > { %v14045_v8 = vpop.xlane.xlu1 %4872  ;;  %6621 = vadd.xlane.f32.xlu1 %v6620_v40  ;;  %v6219_v25 = vmax.f32 %v6203_v3, 0.0  ;;  %v6183_v4 = vadd.f32 %v6167_v62, %v6149_v48  ;;  %v6521_v33 = vmul.f32 %v13952_v19, %v13651_v55  ;;  %v6522_v2 = vmul.f32 %v13964_v7, %v13651_v55  ;;  %v7582_v48 = vld [vmem:[%s8017_s9 + $0xd8] sm:$0xff] }
 0x9f1   : > { %v6184_v34 = vadd.f32 %v6168_v32, %v6150_v61  ;;  %v6220_v57 = vmax.f32 %v6204_v38, 0.0  ;;  %v6555_v51 = vmul.f32 %v13969_v56, %v13654_v27  ;;  %v6556_v46 = vmul.f32 %v13977_v29, %v13654_v27  ;;  %v7581_v32 = vld [vmem:[%s8017_s9 + $0xd0] sm:$0xff]  ;;  %v7583_v38 = vld [vmem:[%s8017_s9 + $0xe0] sm:$0xff] }
 0x9f2   : > { %v5281_v41 = vrot.slane %v15682_v22, %v15659_v47  ;;  %v6201_v19 = vadd.f32 %v15633_v26, %v6183_v4  ;;  %v6537_v17 = vadd.f32 %v6521_v33, %v6503_v50  ;;  %v6538_v7 = vadd.f32 %v6522_v2, %v6504_v44  ;;  %v7584_v44 = vld [vmem:[%s8017_s9 + $0xe8] sm:$0xff] }
 0x9f3   : > { %v6202_v21 = vadd.f32 %v15633_v26, %v6184_v34  ;;  %v6242_v54 = vadd.f32 %v6220_v57, %v6219_v25  ;;  %v6501_v56 = vmul.f32 %v7579_v18, %v13644_v30  ;;  %v6502_v29 = vmul.f32 %v7580_v10, %v13644_v30 }
 0x9f4   : > { %v14064_v37 = vpop.xlane.xlu1 %5256  ;;  %v6217_v13 = vmax.f32 %v6201_v19, 0.0  ;;  %v6571_v59 = vadd.f32 %v6555_v51, %v6537_v17  ;;  %v6519_v40 = vmul.f32 %v7581_v32, %v13651_v55  ;;  %v6572_v3 = vadd.f32 %v6556_v46, %v6538_v7  ;;  %v7585_v46 = vld [vmem:[%s8017_s9 + $0x120] sm:$0xff]  ;;  %v7586_v19 = vld [vmem:[%s8017_s9 + $0x128] sm:$0xff]  ;;  %v14100_v17 = vpop.xlane.xlu0 %5265 }
 0x9f5   : > { %v6218_v62 = vmax.f32 %v6202_v21, 0.0  ;;  %6243 = vadd.xlane.f32.xlu0 %v6242_v54  ;;  %v6520_v61 = vmul.f32 %v7582_v48, %v13651_v55  ;;  %v6553_v50 = vmul.f32 %v7583_v38, %v13654_v27  ;;  %v6554_v25 = vmul.f32 %v7584_v44, %v13654_v27  ;;  %v7589_v32 = vld [vmem:[%s8017_s9 + $0x140] sm:$0xff]  ;;  %v7590_v38 = vld [vmem:[%s8017_s9 + $0x148] sm:$0xff] }
 0x9f6   : > { %v6589_v34 = vadd.f32 %v13667_v43, %v6571_v59  ;;  %v6535_v33 = vadd.f32 %v6519_v40, %v6501_v56  ;;  %v5285_v57 = vrot.slane %v13913_v36, %v15659_v47  ;;  %v6590_v2 = vadd.f32 %v13667_v43, %v6572_v3  ;;  %v7587_v36 = vld [vmem:[%s8017_s9 + $0x130] sm:$0xff]  ;;  %v15683_v3 = vld [vmem:[#allocation94_spill] sm:$0xff] }
 0x9f7   : > { %v6239_v4 = vadd.f32 %v6218_v62, %v6217_v13  ;;  %v6536_v51 = vadd.f32 %v6520_v61, %v6502_v29  ;;  %v6505_v22 = vmul.f32 %v7585_v46, %v13644_v30  ;;  %v6506_v21 = vmul.f32 %v7586_v19, %v13644_v30  ;;  %v7588_v62 = vld [vmem:[%s8017_s9 + $0x138] sm:$0xff] }
 0x9f8   : > { %v14084_v26 = vpop.xlane.xlu1 %5637  ;;  %v6605_v54 = vmax.f32 %v6589_v34, 0.0  ;;  %v6569_v7 = vadd.f32 %v6553_v50, %v6535_v33  ;;  %v14103_v18 = vsel %vm622_vm1, %v5285_v57, %v5281_v41  ;;  %v6523_v56 = vmul.f32 %v7587_v36, %v13651_v55 }
 0x9f9   : > { %6240 = vadd.xlane.f32.xlu1 %v6239_v4  ;;  %v6606_v29 = vmax.f32 %v6590_v2, 0.0  ;;  %v6570_v13 = vadd.f32 %v6554_v25, %v6536_v51  ;;  %v6524_v59 = vmul.f32 %v7588_v62, %v13651_v55  ;;  %v6557_v40 = vmul.f32 %v7589_v32, %v13654_v27 }
 0x9fa   : > { %v4891_v48 = vrot.slane %v15683_v3, %v15659_v47  ;;  %v6587_v61 = vadd.f32 %v13667_v43, %v6569_v7  ;;  %v6539_v41 = vadd.f32 %v6523_v56, %v6505_v22  ;;  %v6558_v50 = vmul.f32 %v7590_v38, %v13654_v27 }
 0x9fb   : > { %v6626_v44 = vadd.f32 %v6606_v29, %v6605_v54  ;;  %v6588_v4 = vadd.f32 %v13667_v43, %v6570_v13  ;;  %v6540_v34 = vadd.f32 %v6524_v59, %v6506_v21  ;;  %v6310_v25 = vmul.f32 %v7585_v46, %v15651_v11  ;;  %v14126_v29 = vpop.xlane.xlu0 %5649 }
 0x9fc   : > { %v14107_v10 = vpop.xlane.xlu1 %4683  ;;  %v6603_v33 = vmax.f32 %v6587_v61, 0.0  ;;  %v6573_v57 = vadd.f32 %v6557_v40, %v6539_v41  ;;  %v6311_v2 = vmul.f32 %v7586_v19, %v15651_v11  ;;  %v6328_v51 = vmul.f32 %v7587_v36, %v15652_v53  ;;  %v7591_v61 = vld [vmem:[%s8017_s9 + $0x150] sm:$0xff] }
 0x9fd   : > { %6627 = vadd.xlane.f32.xlu0 %v6626_v44  ;;  %v6604_v7 = vmax.f32 %v6588_v4, 0.0  ;;  %v6574_v22 = vadd.f32 %v6558_v50, %v6540_v34  ;;  %v6329_v56 = vmul.f32 %v7588_v62, %v15652_v53  ;;  %v6362_v54 = vmul.f32 %v7589_v32, %v15654_v28  ;;  %v7592_v44 = vld [vmem:[%s8017_s9 + $0x158] sm:$0xff]  ;;  %v7593_v34 = vld [vmem:[%s8017_s9 + $0x160] sm:$0xff] }
 0x9fe   : > { %v15684_v46 = vrot.slane %v15669_v9, %v15659_v47  ;;  %v6591_v19 = vadd.f32 %v13667_v43, %v6573_v57  ;;  %v6344_v36 = vadd.f32 %v6328_v51, %v6310_v25  ;;  %v6363_v13 = vmul.f32 %v7590_v38, %v15654_v28 }
 0x9ff   : > { %v4517_v59 = vrot.slane %v13821_v45, %v15659_v47  ;;  %v6623_v62 = vadd.f32 %v6604_v7, %v6603_v33  ;;  %v6592_v32 = vadd.f32 %v13667_v43, %v6574_v22  ;;  %v6345_v40 = vadd.f32 %v6329_v56, %v6311_v2  ;;  %v7594_v33 = vld [vmem:[%s8017_s9 + $0x168] sm:$0xff]  ;;  %v7595_v2 = vld [vmem:[%s8017_s9 + $0x170] sm:$0xff]  ;;  %v7596_v7 = vld [vmem:[%s8017_s9 + $0x178] sm:$0xff]  ;;  %s7750_s9 = smov 16  }
 0xa00   : > { %v14122_v49 = vpop.xlane.xlu1 %5067  ;;  %v4920_v21 = vsel %vm622_vm1, %v15684_v46, %v4891_v48  ;;  %v4899_v9 = vrot.slane %v13837_v16, %v15659_v47  ;;  %v6607_v3 = vmax.f32 %v6591_v19, 0.0  ;;  %v6378_v48 = vadd.f32 %v6362_v54, %v6344_v36  ;;  %v14157_v19 = vpop.xlane.xlu0 %6033  ;;  %v15685_v36 = vld [vmem:[#allocation41_spill] sm:$0xff] }
 0xa01   : > { %v6312_v41 = vmul.f32 %v7591_v61, %v15651_v11  ;;  %6624 = vadd.xlane.f32.xlu1 %v6623_v62  ;;  %v6608_v50 = vmax.f32 %v6592_v32, 0.0  ;;  %v6379_v45 = vadd.f32 %v6363_v13, %v6345_v40  ;;  %v6313_v4 = vmul.f32 %v7592_v44, %v15651_v11 }
 0xa02   : > { %v6330_v25 = vmul.f32 %v7593_v34, %v15652_v53  ;;  %v6396_v16 = vadd.f32 %v15657_v24, %v6378_v48  ;;  %v6331_v57 = vmul.f32 %v7594_v33, %v15652_v53  ;;  %v6364_v51 = vmul.f32 %v7595_v2, %v15654_v28 }
 0xa03   : > { %v6365_v22 = vmul.f32 %v7596_v7, %v15654_v28  ;;  %v4533_v56 = vsel %vm628_vm4, %v4517_v59, %v14048_v58  ;;  %v6629_v54 = vadd.f32 %v6608_v50, %v6607_v3  ;;  %v6397_v11 = vadd.f32 %v15657_v24, %v6379_v45 }
 0xa04   : > { %v14141_v38 = vpop.xlane.xlu1 %5451  ;;  %v6346_v46 = vadd.f32 %v6330_v25, %v6312_v41  ;;  %v4907_v13 = vrot.slane %v15685_v36, %v15659_v47  ;;  %v6412_v62 = vmax.f32 %v6396_v16, 0.0  ;;  %v6347_v53 = vadd.f32 %v6331_v57, %v6313_v4  ;;  %v15690_v36 = vld [vmem:[#allocation33_spill] sm:$0xff] }
 0xa05   : > { %v6507_v32 = vmul.f32 %v7591_v61, %v13644_v30  ;;  %v4921_v28 = vsel %vm624_vm2, %v4899_v9, %v4920_v21  ;;  %6630 = vadd.xlane.f32.xlu0 %v6629_v54  ;;  %v6413_v48 = vmax.f32 %v6397_v11, 0.0  ;;  %v6508_v59 = vmul.f32 %v7592_v44, %v13644_v30 }
 0xa06   : > { %v6380_v58 = vadd.f32 %v6364_v51, %v6346_v46  ;;  %v6381_v3 = vadd.f32 %v6365_v22, %v6347_v53  ;;  %v6525_v41 = vmul.f32 %v7593_v34, %v13651_v55  ;;  %v6526_v50 = vmul.f32 %v7594_v33, %v13651_v55  ;;  %v15687_v33 = vld [vmem:[#allocation36_spill] sm:$0xff]  ;;  %v14187_v51 = vpop.xlane.xlu0 %6225 }
 0xa07   : > { %v6559_v45 = vmul.f32 %v7595_v2, %v13654_v27  ;;  %v4712_v4 = vrot.slane %v13873_v52, %v15659_v47  ;;  %v6434_v61 = vadd.f32 %v6413_v48, %v6412_v62  ;;  %v6560_v21 = vmul.f32 %v7596_v7, %v13654_v27 }
 0xa08   : > { %v14162_v40 = vpop.xlane.xlu1 %5832  ;;  %v6398_v25 = vadd.f32 %v15657_v24, %v6380_v58  ;;  %v15686_v9 = vrot.slane %v15681_v63, %v15659_v47  ;;  %v6399_v44 = vadd.f32 %v15657_v24, %v6381_v3  ;;  %v6541_v34 = vadd.f32 %v6525_v41, %v6507_v32 }
 0xa09   : > { %v6542_v16 = vadd.f32 %v6526_v50, %v6508_v59  ;;  %v4525_v57 = vrot.slane %v15687_v33, %v15659_v47  ;;  %v15688_v52 = vrot.slane %v15670_v60, %v15659_v47  ;;  %6435 = vadd.xlane.f32.xlu1 %v6434_v61  ;;  %v4716_v27 = vrot.slane %v13932_v20, %v15659_v47  ;;  %v15692_v61 = vld [vmem:[#allocation48_spill] sm:$0xff]  ;;  %v15695_v33 = vld [vmem:[#allocation81_spill] sm:$0xff] }
 0xa0a   : > { %v4922_v30 = vsel %vm626_vm3, %v15686_v9, %v4921_v28  ;;  %v6414_v63 = vmax.f32 %v6398_v25, 0.0  ;;  %v6415_v24 = vmax.f32 %v6399_v44, 0.0  ;;  %v6575_v7 = vadd.f32 %v6559_v45, %v6541_v34  ;;  %v14221_v50 = vpop.xlane.xlu0 %5460 }
 0xa0b   : > { %v4727_v2 = vsel %vm626_vm3, %v15688_v52, %v14008_v12  ;;  %v6576_v22 = vadd.f32 %v6560_v21, %v6542_v16  ;;  %v4529_v54 = vrot.slane %v14021_v0, %v15659_v47  ;;  %v4923_v11 = vsel %vm628_vm4, %v4907_v13, %v4922_v30 }
 0xa0c   : > { %v4879_v55 = vpop.xlane.xlu1 %4878  ;;  %v5090_v60 = vrot.slane %v13853_v31, %v15659_v47  ;;  %v4728_v12 = vsel %vm628_vm4, %v4712_v4, %v4727_v2  ;;  %v15689_v46 = vrot.slane %v15674_v1, %v15659_v47  ;;  %v4720_v62 = vrot.slane %v15690_v36, %v15659_v47 }
 0xa0d   : > { %v6437_v53 = vadd.f32 %v6415_v24, %v6414_v63  ;;  %v6593_v32 = vadd.f32 %v13667_v43, %v6575_v7  ;;  %v6594_v0 = vadd.f32 %v13667_v43, %v6576_v22  ;;  %v5094_v31 = vrot.slane %v13892_v42, %v15659_v47 }
 0xa0e   : > { %v4534_v20 = vsel %vm630_vm5, %v15689_v46, %v4533_v56  ;;  %v4729_v13 = vsel %vm630_vm5, %v4716_v27, %v4728_v12  ;;  %v4911_v1 = vrot.slane %v14045_v8, %v15659_v47  ;;  %v5098_v48 = vrot.slane %v13973_v35, %v15659_v47 }
 0xa0f   : > { %v4535_v56 = vsel %vm632_vm6, %v4525_v57, %v4534_v20  ;;  %6438 = vadd.xlane.f32.xlu1 %v6437_v53  ;;  %v6609_v58 = vmax.f32 %v6593_v32, 0.0  ;;  %v6610_v59 = vmax.f32 %v6594_v0, 0.0  ;;  %v5675_v3 = vrot.slane %v13811_v39, %v15659_v47  ;;  %v14257_v20 = vpop.xlane.xlu0 %5844 }
 0xa10   : > { %v14203_v28 = vpop.xlane.xlu1 %5262  ;;  %v4536_v43 = vsel %vm634_vm7, %v4529_v54, %v4535_v56  ;;  %v5671_v41 = vrot.slane %v14084_v26, %v15659_v47  ;;  %v4724_v8 = vrot.slane %v14107_v10, %v15659_v47  ;;  %v15691_v35 = vrot.slane %v15672_v6, %v15659_v47  ;;  %v15693_v10 = vld [vmem:[#allocation69_spill] sm:$0xff] }
 0xa11   : > { %v4538_v42 = vsel %vm637_vm8, %v4536_v43, 0.0  ;;  %v6632_v4 = vadd.f32 %v6610_v59, %v6609_v58  ;;  %v4915_v25 = vrot.slane %v15692_v61, %v15659_v47  ;;  %v4730_v39 = vsel %vm632_vm6, %v4720_v62, %v4729_v13  ;;  %v15694_v6 = vld [vmem:[#allocation93_spill] sm:$0xff] }
 0xa12   : > { %v5115_v45 = vsel %vm622_vm1, %v5090_v60, %v15691_v35  ;;  %4539 = vadd.xlane.f32.xlu0 %v4538_v42  ;;  %v4924_v9 = vsel %vm630_vm5, %v4911_v1, %v4923_v11  ;;  %v5870_v30 = vrot.slane %v15693_v10, %v15659_v47  ;;  %v4731_v44 = vsel %vm634_vm7, %v4724_v8, %v4730_v39  ;;  %v15697_v43 = vld [vmem:[#allocation57_spill] sm:$0xff] }
 0xa13   : > { %v5116_v26 = vsel %vm624_vm2, %v5094_v31, %v5115_v45  ;;  %v5102_v34 = vrot.slane %v15694_v6, %v15659_v47  ;;  %6633 = vadd.xlane.f32.xlu1 %v6632_v4  ;;  %v5679_v57 = vrot.slane %v15695_v33, %v15659_v47  ;;  %v5866_v52 = vrot.slane %v14162_v40, %v15659_v47  ;;  %v15696_v40 = vld [vmem:[#allocation80_spill] sm:$0xff]  ;;  %v15698_v45 = vld [vmem:[#allocation79_spill] sm:$0xff] }
 0xa14   : > { %v5647_v21 = vpop.xlane.xlu1 %5646  ;;  %v5117_v16 = vsel %vm626_vm3, %v5098_v48, %v5116_v26  ;;  %v5700_v2 = vsel %vm622_vm1, %v5675_v3, %v5671_v41  ;;  %v5106_v27 = vrot.slane %v14122_v49, %v15659_v47  ;;  %v4733_v63 = vsel %vm637_vm8, %v4731_v44, 0.0  ;;  %v6229_v48 = vpop.xlane.xlu0 %6228 }
 0xa15   : > { %v4919_v24 = vrot.slane %v4879_v55, %v15659_v47  ;;  %v5874_v7 = vrot.slane %v14039_v23, %v15659_v47  ;;  %v6065_v22 = vrot.slane %v14072_v15, %v15659_v47  ;;  %v4925_v54 = vsel %vm632_vm6, %v4915_v25, %v4924_v9 }
 0xa16   : > { %v5110_v60 = vrot.slane %v15696_v40, %v15659_v47  ;;  %v5895_v12 = vsel %vm622_vm1, %v5870_v30, %v5866_v52  ;;  %v5683_v46 = vrot.slane %v5647_v21, %v15659_v47  ;;  %v5118_v55 = vsel %vm628_vm4, %v5102_v34, %v5117_v16 }
 0xa17   : > { %v4926_v49 = vsel %vm634_vm7, %v4919_v24, %v4925_v54  ;;  %4734 = vadd.xlane.f32.xlu1 %v4733_v63  ;;  %v5701_v15 = vsel %vm624_vm2, %v5679_v57, %v5700_v2  ;;  %v5119_v62 = vsel %vm630_vm5, %v5106_v27, %v5118_v55  ;;  %v5896_v31 = vsel %vm624_vm2, %v5874_v7, %v5895_v12  ;;  %v15699_v2 = vld [vmem:[#allocation65_spill] sm:$0xff]  ;;  %v15700_v7 = vld [vmem:[#allocation30_spill] sm:$0xff] }
 0xa18   : > { %v6028_v11 = vpop.xlane.xlu1 %6027  ;;  %v4928_v23 = vsel %vm637_vm8, %v4926_v49, 0.0  ;;  %v14265_v53 = vsel %vm626_vm3, %v5683_v46, %v5701_v15  ;;  %v5120_v1 = vsel %vm632_vm6, %v5110_v60, %v5119_v62  ;;  %v5289_v3 = vrot.slane %v15697_v43, %v15659_v47 }
 0xa19   : > { %v6061_v36 = vrot.slane %v6028_v11, %v15659_v47  ;;  %4929 = vadd.xlane.f32.xlu0 %v4928_v23  ;;  %v5293_v42 = vrot.slane %v14064_v37, %v15659_v47  ;;  %v5297_v4 = vrot.slane %v15698_v45, %v15659_v47  ;;  %v5301_v39 = vrot.slane %v14203_v28, %v15659_v47 }
 0xa1a   : > { %v5311_v61 = vsel %vm624_vm2, %v5289_v3, %v14103_v18  ;;  %v6260_v21 = vrot.slane %v14187_v51, %v15659_v47  ;;  %v6264_v26 = vrot.slane %v6229_v48, %v15659_v47  ;;  %v5305_v30 = vrot.slane %v14100_v17, %v15659_v47 }
 0xa1b   : > { %v14268_v32 = vsel %vm622_vm1, %v6065_v22, %v6061_v36  ;;  %v5312_v25 = vsel %vm626_vm3, %v5293_v42, %v5311_v61  ;;  %v5480_v27 = vrot.slane %v15699_v2, %v15659_v47  ;;  %v5476_v63 = vrot.slane %v13997_v14, %v15659_v47 }
 0xa1c   : > { %v5074_v0 = vpop.xlane.xlu1 %5073  ;;  %v6421_v35 = vpop.xlane.xlu0 %6420  ;;  %v5313_v18 = vsel %vm628_vm4, %v5297_v4, %v5312_v25  ;;  %v5484_v22 = vrot.slane %v15700_v7, %v15659_v47  ;;  %v5488_v40 = vrot.slane %v14141_v38, %v15659_v47  ;;  %v5492_v49 = vrot.slane %v14002_v5, %v15659_v47 }
 0xa1d   : > { %v5114_v13 = vrot.slane %v5074_v0, %v15659_v47  ;;  %v5314_v44 = vsel %vm630_vm5, %v5301_v39, %v5313_v18  ;;  %v5505_v11 = vsel %vm622_vm1, %v5480_v27, %v5476_v63  ;;  %v6455_v60 = vrot.slane %v6421_v35, %v15659_v47 }
 0xa1e   : > { %v5315_v33 = vsel %vm632_vm6, %v5305_v30, %v5314_v44  ;;  %v5506_v46 = vsel %vm624_vm2, %v5484_v22, %v5505_v11  ;;  %v5500_v38 = vrot.slane %v14221_v50, %v15659_v47  ;;  %v5687_v45 = vrot.slane %v14126_v29, %v15659_v47 }
 0xa1f   : > { %v5121_v56 = vsel %vm634_vm7, %v5114_v13, %v5120_v1  ;;  %v5507_v23 = vsel %vm626_vm3, %v5488_v40, %v5506_v46  ;;  %v6069_v18 = vrot.slane %v14157_v19, %v15659_v47  ;;  %v5882_v22 = vrot.slane %v14257_v20, %v15659_v47 }
 0xa20   : > { %v5458_v58 = vpop.xlane.xlu1 %5457  ;;  %v5123_v59 = vsel %vm637_vm8, %v5121_v56, 0.0  ;;  %v5508_v0 = vsel %vm628_vm4, %v5492_v49, %v5507_v23 }
 0xa21   : > { %5124 = vadd.xlane.f32.xlu1 %v5123_v59  ;;  %v5496_v15 = vrot.slane %v5458_v58, %v15659_v47 }
 0xa22   : > { %v5656_v6 = vpop.xlane.xlu0 %5655 }
 0xa23   : > { %v5695_v39 = vrot.slane %v5656_v6, %v15659_v47 }
 0xa24   : > { %v5842_v41 = vpop.xlane.xlu1 %5841 }
 0xa25   : > { %v5878_v8 = vrot.slane %v5842_v41, %v15659_v47 }
 0xa27   : > { %v14290_v37 = vsel %vm626_vm3, %v5878_v8, %v5896_v31  ;;  %v5509_v31 = vsel %vm630_vm5, %v5496_v15, %v5508_v0 }
 0xa28   : > { %v6223_v9 = vpop.xlane.xlu1 %6222  ;;  %v5510_v56 = vsel %vm632_vm6, %v5500_v38, %v5509_v31 }
 0xa29   : > { %v6256_v10 = vrot.slane %v6223_v9, %v15659_v47 }
 0xa2b   : > { %v6285_v28 = vsel %vm622_vm1, %v6260_v21, %v6256_v10  ;;  %v6040_v24 = vpop.xlane.xlu0 %6039  ;;  %v5703_v21 = vsel %vm628_vm4, %v5687_v45, %v14265_v53 }
 0xa2c   : > { %v5269_v34 = vpop.xlane.xlu1 %5268  ;;  %v14300_v51 = vsel %vm624_vm2, %v6264_v26, %v6285_v28  ;;  %v6077_v53 = vrot.slane %v6040_v24, %v15659_v47 }
 0xa2d   : > { %v5309_v16 = vrot.slane %v5269_v34, %v15659_v47  ;;  %v6091_v34 = vsel %vm624_vm2, %v6069_v18, %v14268_v32 }
 0xa2f   : > { %v5316_v57 = vsel %vm634_vm7, %v5309_v16, %v5315_v33 }
 0xa30   : > { %v5653_v52 = vpop.xlane.xlu1 %5652  ;;  %v5318_v17 = vsel %vm637_vm8, %v5316_v57, 0.0 }
 0xa31   : > { %5319 = vadd.xlane.f32.xlu0 %v5318_v17  ;;  %v5691_v4 = vrot.slane %v5653_v52, %v15659_v47 }
 0xa32   : > { %v6424_v12 = vpop.xlane.xlu0 %6423 }
 0xa33   : > { %v6459_v14 = vrot.slane %v6424_v12, %v15659_v47  ;;  %v5704_v26 = vsel %vm630_vm5, %v5691_v4, %v5703_v21 }
 0xa34   : > { %v6037_v54 = vpop.xlane.xlu1 %6036  ;;  %v5705_v29 = vsel %vm632_vm6, %v5695_v39, %v5704_v26 }
 0xa35   : > { %v6073_v28 = vrot.slane %v6037_v54, %v15659_v47 }
 0xa37   : > { %v6092_v16 = vsel %vm626_vm3, %v6073_v28, %v6091_v34 }
 0xa38   : > { %v6418_v55 = vpop.xlane.xlu1 %6417  ;;  %v6093_v17 = vsel %vm628_vm4, %v6077_v53, %v6092_v16 }
 0xa39   : > { %v6451_v36 = vrot.slane %v6418_v55, %v15659_v47 }
 0xa3b   : > { %v6480_v62 = vsel %vm622_vm1, %v6455_v60, %v6451_v36  ;;  %v6616_v59 = vpop.xlane.xlu0 %6615  ;;  %v5898_v60 = vsel %vm628_vm4, %v5882_v22, %v14290_v37 }
 0xa3c   : > { %v14328_v5 = vsel %vm624_vm2, %v6459_v14, %v6480_v62  ;;  %v6650_v41 = vrot.slane %v6616_v59, %v15659_v47 }
 0xa3f   : > { %v5464_v13 = vpop.xlane.xlu1 %5463 }
 0xa40   : > { %v5504_v1 = vrot.slane %v5464_v13, %v15659_v47 }
 0xa42   : > { %v5511_v48 = vsel %vm634_vm7, %v5504_v1, %v5510_v56  ;;  %v5851_v50 = vpop.xlane.xlu0 %5850 }
 0xa43   : > { %v5513_v58 = vsel %vm637_vm8, %v5511_v48, 0.0  ;;  %v5890_v40 = vrot.slane %v5851_v50, %v15659_v47 }
 0xa44   : > { %5514 = vadd.xlane.f32.xlu1 %v5513_v58 }
 0xa47   : > { %v5848_v43 = vpop.xlane.xlu1 %5847 }
 0xa48   : > { %v5886_v11 = vrot.slane %v5848_v43, %v15659_v47 }
 0xa4a   : > { %v6235_v42 = vpop.xlane.xlu0 %6234  ;;  %v5899_v12 = vsel %vm630_vm5, %v5886_v11, %v5898_v60 }
 0xa4b   : > { %v5900_v14 = vsel %vm632_vm6, %v5890_v40, %v5899_v12  ;;  %v6272_v38 = vrot.slane %v6235_v42, %v15659_v47  ;;  %v15704_v40 = vld [vmem:[#allocation28_spill] sm:$0xff] }
 0xa4e   : > { %v6232_v3 = vpop.xlane.xlu1 %6231 }
 0xa4f   : > { %v6268_v15 = vrot.slane %v6232_v3, %v15659_v47 }
 0xa51   : > { %v6287_v37 = vsel %vm626_vm3, %v6268_v15, %v14300_v51 }
 0xa52   : > { %v14343_v25 = vpop.xlane.xlu0 %6618  ;;  %v6288_v56 = vsel %vm628_vm4, %v6272_v38, %v6287_v37 }
 0xa55   : > { %v6613_v8 = vpop.xlane.xlu1 %6612 }
 0xa56   : > { %v6646_v35 = vrot.slane %v6613_v8, %v15659_v47 }
 0xa58   : > { %v14341_v61 = vsel %vm622_vm1, %v6650_v41, %v6646_v35  ;;  %v6654_v41 = vrot.slane %v14343_v25, %v15659_v47  ;;  %vm6704_vm1 = vcmask 80896  }
 0xa59   : > { %v6046_v30 = vpop.xlane.xlu0 %6045 }
 0xa5a   : > { %v6085_v52 = vrot.slane %v6046_v30, %v15659_v47 }
 0xa5d   : > { %v5659_v9 = vpop.xlane.xlu1 %5658 }
 0xa5e   : > { %v5699_v10 = vrot.slane %v5659_v9, %v15659_v47  ;;  %v6676_v9 = vsel %vm624_vm2, %v6654_v41, %v14341_v61  ;;  %vm6706_vm2 = vcmask 89088  }
 0xa60   : > { %v5706_v44 = vsel %vm634_vm7, %v5699_v10, %v5705_v29 }
 0xa61   : > { %v5708_v6 = vsel %vm637_vm8, %v5706_v44, 0.0  ;;  %v6430_v33 = vpop.xlane.xlu0 %6429 }
 0xa62   : > { %5709 = vadd.xlane.f32.xlu0 %v5708_v6  ;;  %v6467_v8 = vrot.slane %v6430_v33, %v15659_v47 }
 0xa65   : > { %v6043_v57 = vpop.xlane.xlu1 %6042 }
 0xa66   : > { %v6081_v19 = vrot.slane %v6043_v57, %v15659_v47 }
 0xa68   : > { %v6094_v2 = vsel %vm630_vm5, %v6081_v19, %v6093_v17 }
 0xa69   : > { %v6049_v27 = vpop.xlane.xlu0 %6048  ;;  %v6095_v63 = vsel %vm632_vm6, %v6085_v52, %v6094_v2 }
 0xa6a   : > { %v6089_v24 = vrot.slane %v6049_v27, %v15659_v47 }
 0xa6c   : > { %v6096_v7 = vsel %vm634_vm7, %v6089_v24, %v6095_v63  ;;  %v6427_v54 = vpop.xlane.xlu1 %6426 }
 0xa6d   : > { %v6098_v32 = vsel %vm637_vm8, %v6096_v7, 0.0  ;;  %v6463_v3 = vrot.slane %v6427_v54, %v15659_v47  ;;  %v15701_v7 = vld [vmem:[#allocation39_spill] sm:$0xff] }
 0xa6e   : > { %6099 = vadd.xlane.f32.xlu0 %v6098_v32  ;;  %v15702_v32 = vld [vmem:[#allocation46_spill] sm:$0xff] }
 0xa6f   : > { %v6482_v35 = vsel %vm626_vm3, %v6463_v3, %v14328_v5  ;;  %v6716_v22 = vsel %vm6687_vm9, %v15702_v32, %v15701_v7  ;;  %v6747_v7 = vld [vmem:[%s14552_s3 + $0x10] sm:$0xff] (!%p7085_p2)  ;;  %v7751_v32 = vmov (!%p7085_p2), 0.0|0.0  }
 0xa70   : > { %v6483_v26 = vsel %vm628_vm4, %v6467_v8, %v6482_v35  ;;  %v15709_v8 = vld [vmem:[#allocation26_spill] sm:$0xff]  ;;  %7108 = vmatprep.subr.bf16.mxu0 (!%p7085_p2), %v7751_v32 }
 0xa71   : > { %v6433_v62 = vpop.xlane.xlu0 %6432 }
 0xa72   : > { %v6471_v21 = vrot.slane %v6433_v62, %v15659_v47 }
 0xa74   : > { %v5854_v49 = vpop.xlane.xlu1 %5853  ;;  %v6484_v44 = vsel %vm630_vm5, %v6471_v21, %v6483_v26  ;;  %v15712_v26 = vld [vmem:[#allocation16_spill] sm:$0xff] }
 0xa75   : > { %v5894_v46 = vrot.slane %v5854_v49, %v15659_v47 }
 0xa77   : > { %v5901_v55 = vsel %vm634_vm7, %v5894_v46, %v5900_v14 }
 0xa78   : > { %v5903_v23 = vsel %vm637_vm8, %v5901_v55, 0.0 }
 0xa79   : > { %v6238_v20 = vpop.xlane.xlu1 %6237  ;;  %5904 = vadd.xlane.f32.xlu1 %v5903_v23 }
 0xa7a   : > { %v6276_v0 = vrot.slane %v6238_v20, %v15659_v47 }
 0xa7c   : > { %v6289_v58 = vsel %vm630_vm5, %v6276_v0, %v6288_v56 }
 0xa7d   : > { %v6622_v36 = vpop.xlane.xlu1 %6621 }
 0xa7e   : > { %v6658_v45 = vrot.slane %v6622_v36, %v15659_v47 }
 0xa80   : > { %v6677_v25 = vsel %vm626_vm3, %v6658_v45, %v6676_v9  ;;  %vm6708_vm3 = vcmask 97280   ;;  %v15710_v45 = vld [vmem:[#allocation27_spill] sm:$0xff] }
 0xa82   : > { %v6244_v31 = vpop.xlane.xlu0 %6243 }
 0xa83   : > { %v6284_v13 = vrot.slane %v6244_v31, %v15659_v47 }
 0xa86   : > { %v6241_v1 = vpop.xlane.xlu1 %6240 }
 0xa87   : > { %v6280_v48 = vrot.slane %v6241_v1, %v15659_v47 }
 0xa89   : > { %v6290_v59 = vsel %vm632_vm6, %v6280_v48, %v6289_v58 }
 0xa8a   : > { %v6291_v43 = vsel %vm634_vm7, %v6284_v13, %v6290_v59  ;;  %v6628_v42 = vpop.xlane.xlu0 %6627  ;;  %v15705_v59 = vld [vmem:[#allocation21_spill] sm:$0xff] }
 0xa8b   : > { %v6293_v50 = vsel %vm637_vm8, %v6291_v43, 0.0  ;;  %v6666_v30 = vrot.slane %v6628_v42, %v15659_v47  ;;  %v15706_v43 = vld [vmem:[#allocation20_spill] sm:$0xff]  ;;  %v15708_v42 = vld [vmem:[#allocation19_spill] sm:$0xff] }
 0xa8c   : > { %6294 = vadd.xlane.f32.xlu1 %v6293_v50  ;;  %v6688_v50 = vsel %vm6687_vm9, %v15706_v43, %v15705_v59  ;;  %vm7752_vm9 = vmmov (!%p7085_p2), 0  }
 0xa8e   : > { %v6625_v51 = vpop.xlane.xlu1 %6624 }
 0xa8f   : > { %v6662_v39 = vrot.slane %v6625_v51, %v15659_v47  ;;  %v15707_v51 = vld [vmem:[#allocation18_spill] sm:$0xff] }
 0xa90   : > { %v6690_v3 = vsel %vm6689_vm10, %v6688_v50, %v15707_v51 }
 0xa91   : > { %v6678_v5 = vsel %vm628_vm4, %v6662_v39, %v6677_v25  ;;  %vm6710_vm4 = vcmask 105472   ;;  %v6692_v41 = vsel %vm6691_vm11, %v6690_v3, %v15708_v42  ;;  %v15711_v39 = vld [vmem:[#allocation17_spill] sm:$0xff] }
 0xa92   : > { %v6631_v29 = vpop.xlane.xlu0 %6630  ;;  %v6679_v34 = vsel %vm630_vm5, %v6666_v30, %v6678_v5  ;;  %vm6712_vm5 = vcmask 113664   ;;  %v6694_v35 = vsel %vm6693_vm12, %v6692_v41, %v15709_v8  ;;  %v15714_v30 = vld [vmem:[#allocation52_spill] sm:$0xff]  ;;  %v15715_v5 = vld [vmem:[#allocation54_spill] sm:$0xff] }
 0xa93   : > { %v6670_v6 = vrot.slane %v6631_v29, %v15659_v47 }
 0xa95   : > { %v6680_v52 = vsel %vm632_vm6, %v6670_v6, %v6679_v34  ;;  %v15717_v6 = vld [vmem:[#allocation56_spill] sm:$0xff] }
 0xa96   : > { %v6436_v4 = vpop.xlane.xlu1 %6435 }
 0xa97   : > { %v6475_v10 = vrot.slane %v6436_v4, %v15659_v47  ;;  %v6696_v4 = vsel %vm6695_vm13, %v6694_v35, %v15710_v45 }
 0xa98   : > { %v6698_v21 = vsel %vm6697_vm14, %v6696_v4, %v15711_v39 }
 0xa99   : > { %v6485_v53 = vsel %vm632_vm6, %v6475_v10, %v6484_v44  ;;  %vm6714_vm6 = vcmask 121856   ;;  %v6700_v9 = vsel %vm6699_vm15, %v6698_v21, %v15712_v26  ;;  %v15713_v10 = vld [vmem:[#allocation29_spill] sm:$0xff]  ;;  %v15716_v44 = vld [vmem:[#allocation55_spill] sm:$0xff] }
 0xa9a   : > { %v6701_v25 = vsel %vm637_vm8, %v6700_v9, %v15713_v10 }
 0xa9b   : > { %v6703_v29 = vsel %vm6702_vm0, %v6701_v25, %v15714_v30 }
 0xa9c   : > { %v6439_v18 = vpop.xlane.xlu1 %6438 }
 0xa9d   : > { %v6479_v28 = vrot.slane %v6439_v18, %v15659_v47  ;;  %v6705_v18 = vsel %vm6704_vm1, %v6703_v29, %v15715_v5 }
 0xa9f   : > { %v6486_v61 = vsel %vm634_vm7, %v6479_v28, %v6485_v53  ;;  %v4540_v2 = vpop.xlane.xlu0 %4539  ;;  %v6707_v28 = vsel %vm6706_vm2, %v6705_v18, %v15716_v44 }
 0xaa0   : > { %v6634_v16 = vpop.xlane.xlu1 %6633  ;;  %v6488_v33 = vsel %vm637_vm8, %v6486_v61, 0.0  ;;  %v6709_v53 = vsel %vm6708_vm3, %v6707_v28, %v15717_v6  ;;  %v15718_v61 = vld [vmem:[#allocation49_spill] sm:$0xff] }
 0xaa1   : > { %v6674_v57 = vrot.slane %v6634_v16, %v15659_v47  ;;  %6489 = vadd.xlane.f32.xlu0 %v6488_v33  ;;  %v15703_v47 = vld [vmem:[#allocation101_spill] sm:$0xff]  ;;  %v6711_v34 = vsel %vm6710_vm4, %v6709_v53, %v15718_v61  ;;  %v15719_v16 = vld [vmem:[#allocation50_spill] sm:$0xff] }
 0xaa2   : > { %v6717_v11 = vsel %vm6689_vm10, %v6716_v22, %v15703_v47  ;;  %v6713_v33 = vsel %vm6712_vm5, %v6711_v34, %v15719_v16  ;;  %v7753_v47 = vmov (!%p7085_p2), 0.0  }
 0xaa3   : > { %v6681_v19 = vsel %vm634_vm7, %v6674_v57, %v6680_v52  ;;  %v6718_v60 = vsel %vm6691_vm11, %v6717_v11, %v15704_v40  ;;  %vm6735_vm7 = vcmask 130048   ;;  %v6686_v57 = vld [vmem:[#allocation2] sm:$0xff]  ;;  %v15720_v52 = vld [vmem:[#allocation51_spill] sm:$0xff]  ;;  %7105 = vmatprep.mubr.msk.f32.mxu0 (!%p7085_p2), %vm7752_vm9, %v7753_v47 }
 0xaa4   : > { %v6683_v17 = vsel %vm637_vm8, %v6681_v19, 0.0  ;;  %v4735_v27 = vpop.xlane.xlu1 %4734  ;;  %v6719_v12 = vsel %vm6693_vm12, %v6718_v60, %v4540_v2  ;;  %v6715_v19 = vsel %vm6714_vm6, %v6713_v33, %v15720_v52  ;;  %v7086_v60 = vld [vmem:[%s14553_s4] ss:$0 sm:$0xff] (!%p7085_p2) }
 0xaa5   : > { %6684 = vadd.xlane.f32.xlu1 %v6683_v17  ;;  %v6720_v46 = vsel %vm6695_vm13, %v6719_v12, %v4735_v27 }
 0xaa6   : > { %v4930_v63 = vpop.xlane.xlu0 %4929 }
 0xaa7   : > { %v6721_v55 = vsel %vm6697_vm14, %v6720_v46, %v4930_v63  ;;  %v6745_v63 = vld [vmem:[%s14552_s3] sm:$0xff] (!%p7085_p2) }
 0xaae   : > { %v5125_v24 = vpop.xlane.xlu1 %5124 }
 0xaaf   : > { %v6722_v23 = vsel %vm6699_vm15, %v6721_v55, %v5125_v24  ;;  %v6746_v24 = vld [vmem:[%s14552_s3 + $0x8] sm:$0xff] (!%p7085_p2) }
 0xab0   : > { %v7109_v22 = vpack.c.bf16 (!%p7085_p2), %v6746_v24, %v6745_v63 }
 0xab2   : > { %7110 = vmatpush3.bf16.msra.mxu0 (!%p7085_p2), %v7109_v22 }
 0xab3   : > { %7111 = vmatprep.subr.bf16.mxu0 (!%p7085_p2), %v7751_v32 }
 0xabe   : > { %v5320_v54 = vpop.xlane.xlu0 %5319 }
 0xabf   : > { %v6723_v20 = vsel %vm637_vm8, %v6722_v23, %v5320_v54  ;;  %vm6738_vm8 = vcmask 261120   ;;  %v6748_v54 = vld [vmem:[%s14552_s3 + $0x18] sm:$0xff] (!%p7085_p2) }
 0xac0   : > { %v7112_v11 = vpack.c.bf16 (!%p7085_p2), %v6748_v54, %v6747_v7 }
 0xac2   : > { %7113 = vmatpush3.bf16.msra.mxu0 (!%p7085_p2), %v7112_v11 }
 0xad1   : > { %v5515_v49 = vpop.xlane.xlu1 %5514 }
 0xad2   : > { %v6724_v36 = vsel %vm6702_vm0, %v6723_v20, %v5515_v49 }
 0xaef   : > { %v5710_v14 = vpop.xlane.xlu0 %5709 }
 0xaf0   : > { %v6725_v38 = vsel %vm6704_vm1, %v6724_v36, %v5710_v14 }
 0xafb   : > { %v6100_v62 = vpop.xlane.xlu0 %6099 }
 0xb06   : > { %v5905_v15 = vpop.xlane.xlu1 %5904 }
 0xb07   : > { %v6726_v37 = vsel %vm6706_vm2, %v6725_v38, %v5905_v15 }
 0xb08   : > { %v6727_v13 = vsel %vm6708_vm3, %v6726_v37, %v6100_v62 }
 0xb19   : > { %v6295_v0 = vpop.xlane.xlu1 %6294 }
 0xb1a   : > { %v6728_v1 = vsel %vm6710_vm4, %v6727_v13, %v6295_v0 }
 0xb2e   : > { %v6490_v31 = vpop.xlane.xlu0 %6489 }
 0xb2f   : > { %v6729_v56 = vsel %vm6712_vm5, %v6728_v1, %v6490_v31 }
 0xb32   : > { %v6685_v48 = vpop.xlane.xlu1 %6684 }
 0xb33   : > { %v6730_v58 = vsel %vm6714_vm6, %v6729_v56, %v6685_v48 }
 0xb34   : > { %6732 = vrot.lane.b32.xlu0 %v6730_v58, %s7750_s9 }
 0xba4   : > { %6743 = sbr.rel (%p7085_p2) target bundleno = 3209 (0xc89), region = 79 }
 0xba6   : > { %v6733_v17 = vpop.permute.xlu0 %6732 }
 0xba7   : > { %v6736_v2 = vsel %vm6735_vm7, %v6715_v19, %v6733_v17 }
 0xba8   : > { %v6737_v27 = vadd.f32 %v6736_v2, %v6686_v57 }
 0xbaa   : > { %6739 = vst.msk [vmem:[#allocation2] sm:$0xff] %vm6738_vm8, %v6737_v27 }
 0xbb1   : > { %v6744_v40 = vld [vmem:[#allocation2] sm:$0xff] }
 0xbb2   : > { %7106 = vmatmul.mubr.msk.f32.vlgmr.msra.gmra.mrb[0].mxu0 %vm6738_vm8, %v6744_v40 }
 0xc85   : > { %v6825_v12 = vpop.f32.mrb[0].mxu0 }
 0xc86   : > { %v6826_v49 = vadd.f32 %v7086_v60, %v6825_v12  ;;  %v7107_v46 = vpop.f32.mrb[1].mxu0 }
 0xc88   : > { %6829 = vst [vmem:[%s380_s29] sm:$0xff] %v6826_v49 }
 0xc89 PF: > { %s7089_s8 = sshll.u32 %s7733_s24, 7  ;;  %s6844_s6 = sshll.u32 %s380_s29, 4  ;;  %s6845_s6 = int_to_ptr.vmem [resolvable:$true] %s6844_s6 }
 0xc8a   : > { %s14492_s28 = scalar_lea.hbm %s14554_s5, %s7089_s8  ;;  %s6831_s1 = scalar_lea.sflag [#allocation5], %s378_s16 }
 0xc8b   : > { %s7627_s2 = scalar_lea.vmem %s6845_s6, 128  ;;  %p15721_p8 = scmp.ne.s32.totalorder %s14994_s11, 0 }
 0xc8c   : > { %p7628_p5 = scmp.ne.s32.totalorder %s6845_s6, %s7627_s2  ;;  %s7754_s7 = smov [#allocation9]  }
 0xc8d   : > { %s7631_s17 = sshll.u32 %s7754_s7, 4  ;;  %s7632_s17 = int_to_ptr.vmem [resolvable:$false] %s7631_s17 }
 0xc8e   : > { %p7629_p11 = pnand %p7628_p5, %p15721_p8  ;;  %s7633_s30 = scalar_lea.vmem %s7632_s17, 256 }
 0xc8f   : > { %p7634_p0 = scmp.lt.s32.totalorder %s6845_s6, %s7632_s17  ;;  %p7635_p4 = scmp.lt.s32.totalorder %s7633_s30, %s7627_s2 }
 0xc90   : > { %p7630_p13 = pneg %p7629_p11 }
 0xc91   : > { %p7636_p6 = por %p7635_p4, %p7634_p0 }
 0xc93   : > { %p7637_p9 = pnand %p7636_p6, %p7630_p13 }
 0xc95   : > { %7640 = shalt.err (!%p7637_p9)
}
 0xc96   : > { %s7641_s24 = scalar_lea.hbm %s14492_s28, 128  ;;  %s7645_s29 = scalar_lea.hbm %s14554_s5, 256 }
 0xc97   : > { %p7642_p10 = scmp.ne.s32.totalorder %s14492_s28, %s7641_s24  ;;  %p7646_p7 = scmp.lt.u32.totalorder %s14492_s28, %s14554_s5 }
 0xc98   : > { %p7647_p1 = scmp.lt.u32.totalorder %s7645_s29, %s7641_s24  ;;  %p7649_p5 = scmp.lt.u32.totalorder %s7641_s24, %s14492_s28 }
 0xc99   : > { %p7643_p12 = pnand %p7642_p10, %p15721_p8 }
 0xc9a   : > { %p7648_p2 = por %p7647_p1, %p7646_p7 }
 0xc9b   : > { %p7644_p3 = pneg %p7643_p12 }
 0xc9c   : > { %p7650_p11 = por %p7649_p5, %p7648_p2 }
 0xc9e   : > { %p7651_p13 = pnand %p7650_p11, %p7644_p3 }
 0xca0   : > { %7654 = shalt.err (!%p7651_p13)
}
 0xca1   : > { %7126 = dma.vmem_to_hbm [thread:$0]  (%p15721_p8), %s6845_s6, 128, %s14492_s28, %s6831_s1  }
 0xca2 PF: > { %p7143_p0 = scmp.ge.s32.totalorder %s7745_s27, 2  ;;  %s6856_s10 = sand.u32 1, %s7709_s18  }
 0xca3   : > { %p15722_p4 = scmp.ne.s32.totalorder %s14995_s14, 0  ;;  %s6857_s8 = scalar_lea.sflag [#allocation5], %s6856_s10 }
 0xca5   : > { %p7136_p6 = pnand %p7143_p0, %p15722_p4 }
 0xca7   : > { %7704 = dma.done.wait (!%p7136_p6), %s6857_s8, 128  }
 0xca8   : > { %7706 = vsyncadd (!%p7136_p6), %s6857_s8, 4294967168  ;;  %s20_s27 = sadd.s32 1, %s7745_s27   ;;  %s15723_s11 = sld [smem:[#allocation15_spill]] }
 0xca9   : > { %p17_p9 = scmp.ge.s32.totalorder %s20_s27, 6   ;;  %s15724_s12 = sld [smem:[#allocation13_spill]] }
 0xcaa   : > { %s15725_s9 = sld [smem:[#allocation14_spill]]  ;;  %s15726_s18 = smov %s7713_s19 }
 0xcab   : > { %s15727_s19 = smov %s7717_s20  ;;  %s15728_s20 = smov %s7870_s15 }
 0xcac   : > { %s15729_s21 = smov %s7725_s22  ;;  %s15731_s23 = smov %s7737_s25 }
 0xcad   : > { %s15732_s24 = smov %s7741_s26  ;;  %19 = sbr.rel (!%p17_p9) target bundleno = 11 (0xb), region = 120 }
 0xcae   : > { %s15730_s22 = smov %s15723_s11 }
 0xcaf   : > { %s15733_s25 = smov %s15724_s12 }
 0xcb0   : > { %s15734_s26 = smov %s15725_s9 }
 0xcb4   :  { %6862 = vsyncpa [#allocation5], 1 }
 0xcb5   :  { %6864 = vsyncpa [#allocation5 + $0x1], 1 }
 0xcb6   :  { %6865 = vsyncpa [#allocation6], 1 }
 0xcb7   :  { %6867 = vsyncpa [#allocation6 + $0x1], 1 }
 0xcb8   :  { %6868 = vsyncpa [#allocation8], 1 }

</bundles_post_ra>
